<compile_context>
chip_gen: v6e
topology: v6e:2x2x1
jax: 0.10.0
libtpu: 0.0.40
codegen_flags: <defaults>
</compile_context>

<pallas_src>
import numpy as np
import jax
import jax.numpy as jnp
from jax.experimental import pallas as pl
from jax.experimental.pallas import tpu as pltpu


# ----------------------------------------------------------------------------- #
# build_grid (same semantics as the PyTorch helper, plain numpy glue)
# ----------------------------------------------------------------------------- #
def build_grid(resolution):
    ranges = [np.linspace(0.0, 1.0, num=res) for res in resolution]
    grid = np.meshgrid(*ranges, sparse=False, indexing="ij")
    grid = np.stack(grid, axis=-1)
    grid = np.reshape(grid, [resolution[0], resolution[1], -1])
    grid = np.expand_dims(grid, axis=0)
    grid = grid.astype(np.float32)
    return np.concatenate([grid, 1.0 - grid], axis=-1)  # (1, H, W, 4)


# ----------------------------------------------------------------------------- #
# Fused kernel: 4x (pixel-pair im2col conv5x5 + bias + ReLU) + pos-embed, one batch elem
# ----------------------------------------------------------------------------- #
def fused_slot_encoder_kernel(x_ref, w_ref, b_ref, pos_ref, o_ref, xp_ref, col_ref):
    # x_ref:   (1, H+4, (W+4)//2, 2C)  pre-padded, pixel-pair-packed input (f32)
    # w_ref:   (L, K, 2C)              pixel-pair im2col weights (bf16), K = 5*3*2C
    # b_ref:   (L, 1, 2C)              biases, duplicated per pixel-in-pair (f32)
    # pos_ref: (H*W//2, 2C)            packed soft position embedding (f32)
    # o_ref:   (1, H*W//2, 2C)         packed output (f32)
    # xp_ref:  (H+4, X0+(W+4)//2, 2C)  packed activation scratch, interior 8-aligned (f32)
    # col_ref: (H*W//2, K)             pixel-pair im2col matrix (bf16)
    Hp = x_ref.shape[1]           # H + 4
    WPp = x_ref.shape[2]          # (W + 4) // 2  padded pixel pairs per row
    C2 = x_ref.shape[3]           # 2 * C = 128 lanes
    H = Hp - 4
    WP = WPp - 2                  # W // 2 output pixel pairs per row
    M = H * WP                    # GEMM rows (one per output pixel pair)
    L = w_ref.shape[0]
    X0 = xp_ref.shape[1] - WPp    # buffer column of padded pair 0 (=7 -> interior 8-aligned)

    # Zero only the halo of the packed activation scratch; the interior is overwritten
    # by every layer's write-back.  Done every grid step (each core owns its scratch).
    zrow = jnp.zeros((2, WPp, C2), jnp.float32)
    xp_ref[0:2, X0:X0 + WPp, :] = zrow
    xp_ref[H + 2:H + 4, X0:X0 + WPp, :] = zrow
    zcol = jnp.zeros((H, 1, C2), jnp.float32)
    xp_ref[2:2 + H, X0:X0 + 1, :] = zcol
    xp_ref[2:2 + H, X0 + WPp - 1:X0 + WPp, :] = zcol

    def build_col(load_tap):
        # col row (y*WP + k), block (dy*3 + p) holds packed padded pair (y+dy, k+p):
        # 15 full-128-lane copies per layer (bf16 stores).
        for dy in range(5):
            for p in range(3):
                j = dy * 3 + p
                col_ref[:, j * C2:(j + 1) * C2] = (
                    load_tap(dy, p).reshape(M, C2).astype(col_ref.dtype))

    for l in range(L):
        if l == 0:
            # Layer 0 reads the pre-packed, pre-padded input block directly.
            build_col(lambda dy, p: x_ref[0, dy:dy + H, p:p + WP, :])
        else:
            build_col(lambda dy, p: xp_ref[dy:dy + H, X0 + p:X0 + p + WP, :])

        # One MXU GEMM per layer: (M, K)bf16 @ (K, 2C)bf16 -> f32 accumulate,
        # then f32 bias + ReLU on the VPU.
        act = jnp.dot(col_ref[...], w_ref[l], preferred_element_type=jnp.float32)
        act = jnp.maximum(act + b_ref[l], 0.0)

        if l + 1 < L:
            # Next layer's input: 8-aligned, full-lane write-back into the interior.
            xp_ref[2:2 + H, X0 + 1:X0 + 1 + WP, :] = act.reshape(H, WP, C2)
        else:
            # Fused SoftPositionEmbed + flatten epilogue (full 128-lane store).
            o_ref[0] = (act + pos_ref[...]).astype(o_ref.dtype)


# ----------------------------------------------------------------------------- #
# Wrapper: layout plumbing (NCHW->packed, weight flattening, pos precompute) + pallas_call
# ----------------------------------------------------------------------------- #
def slot_encoder_forward(x_nchw, conv_params, wp, bp, grid):
    B, cin0, H, W = x_nchw.shape
    C = conv_params[0][0].shape[-1]            # hid_dim
    assert C == 64 and W % 2 == 0, "pixel-pair packing assumes hid_dim=64 and even W"
    C2 = 2 * C                                 # 128 lanes
    WP = W // 2
    WPp = (W + 4) // 2
    M = H * WP
    L = len(conv_params)
    K = 5 * 3 * C2                             # 1920 (multiple of 128 -> no K tail)
    X0 = 7                                     # interior pairs land at sublane offset 8

    # Input: NCHW -> NHWC, channels zero-padded 3->C, spatial zero-pad 2 (conv halo),
    # then pixel-pair pack: (B, H+4, W+4, C) -> (B, H+4, (W+4)/2, 2C).
    x_nhwc = jnp.transpose(x_nchw, (0, 2, 3, 1))
    x_pad = jnp.pad(x_nhwc, ((0, 0), (2, 2), (2, 2), (0, C - cin0)))
    x_packed = x_pad.reshape(B, H + 4, WPp, C2)

    # Weights: HWIO (5,5,cin,C) -> pixel-pair im2col matrix (K, 2C).
    #   col row  = (dy*3 + p)*2C + e_in*C + ci     (u = 2p + e_in = x-offset in the window)
    #   col col  = e_out*C + co                    (e_out = pixel index within output pair)
    #   W'[row, col] = w[dy, u - e_out, ci, co]    (0 when u - e_out is outside 0..4)
    w_blocks, b_rows = [], []
    for (w, b) in conv_params:
        cin = w.shape[2]
        w64 = jnp.pad(w, ((0, 0), (0, 0), (0, C - cin), (0, 0)))       # (5, 5, C, C)
        w_e0 = jnp.pad(w64, ((0, 0), (0, 1), (0, 0), (0, 0)))           # dx = u     (u=5 -> 0)
        w_e1 = jnp.pad(w64, ((0, 0), (1, 0), (0, 0), (0, 0)))           # dx = u - 1 (u=0 -> 0)
        wl = jnp.stack([w_e0, w_e1], axis=3).reshape(K, C2)             # (5,6,C,2,C) -> (K,2C)
        w_blocks.append(wl)
        b_rows.append(jnp.tile(b.reshape(1, C), (1, 2)))                # (1, 2C)
    w_all = jnp.stack(w_blocks).astype(jnp.bfloat16)                    # (L, K, 2C)  bf16
    b_all = jnp.stack(b_rows)                                           # (L, 1, 2C)  f32

    # Batch-invariant soft position embedding (tiny K=4 matmul stays outside the kernel),
    # packed to the same (M, 2C) layout as the kernel output.
    pos = jnp.dot(grid.reshape(H * W, 4), wp,
                  precision=jax.lax.Precision.HIGHEST) + bp              # (HW, C)
    pos_packed = pos.reshape(M, C2)

    out_packed = pl.pallas_call(
        fused_slot_encoder_kernel,
        out_shape=jax.ShapeDtypeStruct((B, M, C2), jnp.float32),
        grid_spec=pltpu.PrefetchScalarGridSpec(
            num_scalar_prefetch=0,
            grid=(B,),
            in_specs=[
                pl.BlockSpec((1, H + 4, WPp, C2), lambda b: (b, 0, 0, 0)),
                pl.BlockSpec((L, K, C2), lambda b: (0, 0, 0)),
                pl.BlockSpec((L, 1, C2), lambda b: (0, 0, 0)),
                pl.BlockSpec((M, C2), lambda b: (0, 0)),
            ],
            out_specs=pl.BlockSpec((1, M, C2), lambda b: (b, 0, 0)),
            scratch_shapes=[
                pltpu.VMEM((H + 4, X0 + WPp, C2), jnp.float32),   # packed activations
                pltpu.VMEM((M, K), jnp.bfloat16),                 # pixel-pair im2col
            ],
        ),
        compiler_params=pltpu.CompilerParams(
            dimension_semantics=("parallel",),
        ),
    )(x_packed, w_all, b_all, pos_packed)

    # (B, HW/2, 2C) is row-major identical to (B, HW, C): reshape back for free.
    return out_packed.reshape(B, H * W, C)


# ----------------------------------------------------------------------------- #
# Pure-JAX reference of the PyTorch forward (operand dtype selectable for bf16 check)
# ----------------------------------------------------------------------------- #
def reference_forward(x_nchw, conv_params, wp, bp, grid, operand_dtype=jnp.float32):
    prec = jax.lax.Precision.HIGHEST if operand_dtype == jnp.float32 else None
    h = jnp.transpose(x_nchw, (0, 2, 3, 1))
    for (w, b) in conv_params:
        y = jax.lax.conv_general_dilated(
            h.astype(operand_dtype), w.astype(operand_dtype),
            window_strides=(1, 1), padding="SAME",
            dimension_numbers=("NHWC", "HWIO", "NHWC"),
            preferred_element_type=jnp.float32, precision=prec)
        h = jnp.maximum(y + b.reshape(1, 1, 1, -1), 0.0)
    B, H, W, C = h.shape
    pos = jnp.dot(grid.reshape(H * W, 4), wp,
                  precision=jax.lax.Precision.HIGHEST) + bp
    return h.reshape(B, H * W, C) + pos[None]


# ----------------------------------------------------------------------------- #
# Deterministic parameter init + run
# ----------------------------------------------------------------------------- #
if __name__ == "__main__":
    B, H, W = 2, 16, 16
    hid_dim = 64            # matches LayerNorm(64)/Linear(64, ...) in the (unused) dense head
    resolution = (H, W)

    key = jax.random.PRNGKey(0)
    keys = jax.random.split(key, 7)

    # Example input (NCHW, like the PyTorch module expects: 3 input channels)
    x = jax.random.normal(keys[0], (B, 3, H, W), dtype=jnp.float32)

    def init_conv(k, cin, cout):
        kw, kb = jax.random.split(k)
        scale = 1.0 / np.sqrt(cin * 25)
        w = jax.random.uniform(kw, (5, 5, cin, cout), jnp.float32, -scale, scale)
        b = jax.random.uniform(kb, (cout,), jnp.float32, -scale, scale)
        return w, b

    conv_params = [
        init_conv(keys[1], 3, hid_dim),
        init_conv(keys[2], hid_dim, hid_dim),
        init_conv(keys[3], hid_dim, hid_dim),
        init_conv(keys[4], hid_dim, hid_dim),
    ]

    # SoftPositionEmbed linear: 4 -> hid_dim (stored as (in, out) so pos = grid @ wp + bp)
    pscale = 1.0 / np.sqrt(4.0)
    wp = jax.random.uniform(keys[5], (4, hid_dim), jnp.float32, -pscale, pscale)
    bp = jax.random.uniform(keys[6], (1, hid_dim), jnp.float32, -pscale, pscale)

    grid = jnp.asarray(build_grid(resolution))   # (1, H, W, 4)

    fwd = jax.jit(slot_encoder_forward)
    out = jax.block_until_ready(fwd(x, conv_params, wp, bp, grid))

    assert out.shape == (B, H * W, hid_dim), out.shape
    assert out.dtype == jnp.float32
    assert bool(jnp.all(jnp.isfinite(out)))

    # Tight check against a reference that rounds the conv operands to bf16 exactly like
    # the kernel's MXU path (f32 accumulation, f32 bias/ReLU/pos everywhere).
    ref_bf16 = reference_forward(x, conv_params, wp, bp, grid, operand_dtype=jnp.bfloat16)
    err_bf16 = float(jnp.max(jnp.abs(out - ref_bf16)))
    assert err_bf16 < 2e-3, f"max abs error vs bf16-operand reference: {err_bf16}"

    # Loose semantic check against the exact-f32 PyTorch-equivalent forward; the bound
    # covers the bf16 rounding of the MXU operands.
    ref_f32 = reference_forward(x, conv_params, wp, bp, grid, operand_dtype=jnp.float32)
    err_f32 = float(jnp.max(jnp.abs(out - ref_f32)))
    assert err_f32 < 5e-2, f"max abs error vs f32 reference: {err_f32}"

    print("KERNEL_OK")
</pallas_src>

<mosaic_0001>
module attributes {stable_mosaic.version = 11 : i64} {
  func.func @fused_slot_encoder_kernel(%arg0: i32, %arg1: memref<1x20x10x128xf32, #tpu.memory_space<vmem>>, %arg2: memref<4x1920x128xbf16, #tpu.memory_space<vmem>>, %arg3: memref<4x1x128xf32, #tpu.memory_space<vmem>>, %arg4: memref<128x128xf32, #tpu.memory_space<vmem>>, %arg5: memref<1x128x128xf32, #tpu.memory_space<vmem>>, %arg6: memref<20x17x128xf32, #tpu.memory_space<vmem>>, %arg7: memref<128x1920xbf16, #tpu.memory_space<vmem>>) attributes {dimension_semantics = [#tpu.dimension_semantics<parallel>], iteration_bounds = array<i64: 2>, scalar_prefetch = 0 : i64, scratch_operands = 2 : i64, tpu.core_type = #tpu.core_type<tc>, window_params = [{transform_indices = @transform_0, window_bounds = array<i64: 1, 20, 10, 128>}, {pipeline_mode = #tpu.pipeline_mode<synchronous>, transform_indices = @transform_1, window_bounds = array<i64: 4, 1920, 128>}, {pipeline_mode = #tpu.pipeline_mode<synchronous>, transform_indices = @transform_2, window_bounds = array<i64: 4, 1, 128>}, {pipeline_mode = #tpu.pipeline_mode<synchronous>, transform_indices = @transform_3, window_bounds = array<i64: 128, 128>}, {transform_indices = @transform_4, window_bounds = array<i64: 1, 128, 128>}]} {
    %cst = arith.constant 0.000000e+00 : f32
    %0 = vector.broadcast %cst : f32 to vector<2x10x128xf32>
    %c0 = arith.constant 0 : index
    %c7 = arith.constant 7 : index
    %c0_0 = arith.constant 0 : index
    %1 = vector.load %arg6[%c0, %c7, %c0_0] : memref<20x17x128xf32, #tpu.memory_space<vmem>>, vector<2x10x128xf32>
    tpu.vector_store %arg6[%c0, %c7, %c0_0], %0 {strides = array<i32>} : memref<20x17x128xf32, #tpu.memory_space<vmem>>, vector<2x10x128xf32>,
    %c18 = arith.constant 18 : index
    %c7_1 = arith.constant 7 : index
    %c0_2 = arith.constant 0 : index
    %2 = vector.load %arg6[%c18, %c7_1, %c0_2] : memref<20x17x128xf32, #tpu.memory_space<vmem>>, vector<2x10x128xf32>
    tpu.vector_store %arg6[%c18, %c7_1, %c0_2], %0 {strides = array<i32>} : memref<20x17x128xf32, #tpu.memory_space<vmem>>, vector<2x10x128xf32>,
    %cst_3 = arith.constant 0.000000e+00 : f32
    %3 = vector.broadcast %cst_3 : f32 to vector<16x1x128xf32>
    %c2 = arith.constant 2 : index
    %c7_4 = arith.constant 7 : index
    %c0_5 = arith.constant 0 : index
    %4 = vector.load %arg6[%c2, %c7_4, %c0_5] : memref<20x17x128xf32, #tpu.memory_space<vmem>>, vector<16x1x128xf32>
    tpu.vector_store %arg6[%c2, %c7_4, %c0_5], %3 {strides = array<i32>} : memref<20x17x128xf32, #tpu.memory_space<vmem>>, vector<16x1x128xf32>,
    %c2_6 = arith.constant 2 : index
    %c16 = arith.constant 16 : index
    %c0_7 = arith.constant 0 : index
    %5 = vector.load %arg6[%c2_6, %c16, %c0_7] : memref<20x17x128xf32, #tpu.memory_space<vmem>>, vector<16x1x128xf32>
    tpu.vector_store %arg6[%c2_6, %c16, %c0_7], %3 {strides = array<i32>} : memref<20x17x128xf32, #tpu.memory_space<vmem>>, vector<16x1x128xf32>,
    %c0_8 = arith.constant 0 : index
    %c0_9 = arith.constant 0 : index
    %c0_10 = arith.constant 0 : index
    %c0_11 = arith.constant 0 : index
    %6 = vector.load %arg1[%c0_8, %c0_9, %c0_10, %c0_11] : memref<1x20x10x128xf32, #tpu.memory_space<vmem>>, vector<1x16x8x128xf32>
    %7 = vector.shape_cast %6 : vector<1x16x8x128xf32> to vector<16x8x128xf32>
    %8 = vector.shape_cast %7 : vector<16x8x128xf32> to vector<128x128xf32>
    %9 = arith.truncf %8 : vector<128x128xf32> to vector<128x128xbf16>
    %c0_12 = arith.constant 0 : index
    %c0_13 = arith.constant 0 : index
    %10 = vector.load %arg7[%c0_12, %c0_13] : memref<128x1920xbf16, #tpu.memory_space<vmem>>, vector<128x128xbf16>
    tpu.vector_store %arg7[%c0_12, %c0_13], %9 {strides = array<i32>} : memref<128x1920xbf16, #tpu.memory_space<vmem>>, vector<128x128xbf16>,
    %c0_14 = arith.constant 0 : index
    %c0_15 = arith.constant 0 : index
    %c1 = arith.constant 1 : index
    %c0_16 = arith.constant 0 : index
    %11 = vector.load %arg1[%c0_14, %c0_15, %c1, %c0_16] : memref<1x20x10x128xf32, #tpu.memory_space<vmem>>, vector<1x16x8x128xf32>
    %12 = vector.shape_cast %11 : vector<1x16x8x128xf32> to vector<16x8x128xf32>
    %13 = vector.shape_cast %12 : vector<16x8x128xf32> to vector<128x128xf32>
    %14 = arith.truncf %13 : vector<128x128xf32> to vector<128x128xbf16>
    %c0_17 = arith.constant 0 : index
    %c128 = arith.constant 128 : index
    %15 = vector.load %arg7[%c0_17, %c128] : memref<128x1920xbf16, #tpu.memory_space<vmem>>, vector<128x128xbf16>
    tpu.vector_store %arg7[%c0_17, %c128], %14 {strides = array<i32>} : memref<128x1920xbf16, #tpu.memory_space<vmem>>, vector<128x128xbf16>,
    %c0_18 = arith.constant 0 : index
    %c0_19 = arith.constant 0 : index
    %c2_20 = arith.constant 2 : index
    %c0_21 = arith.constant 0 : index
    %16 = vector.load %arg1[%c0_18, %c0_19, %c2_20, %c0_21] : memref<1x20x10x128xf32, #tpu.memory_space<vmem>>, vector<1x16x8x128xf32>
    %17 = vector.shape_cast %16 : vector<1x16x8x128xf32> to vector<16x8x128xf32>
    %18 = vector.shape_cast %17 : vector<16x8x128xf32> to vector<128x128xf32>
    %19 = arith.truncf %18 : vector<128x128xf32> to vector<128x128xbf16>
    %c0_22 = arith.constant 0 : index
    %c256 = arith.constant 256 : index
    %20 = vector.load %arg7[%c0_22, %c256] : memref<128x1920xbf16, #tpu.memory_space<vmem>>, vector<128x128xbf16>
    tpu.vector_store %arg7[%c0_22, %c256], %19 {strides = array<i32>} : memref<128x1920xbf16, #tpu.memory_space<vmem>>, vector<128x128xbf16>,
    %c0_23 = arith.constant 0 : index
    %c1_24 = arith.constant 1 : index
    %c0_25 = arith.constant 0 : index
    %c0_26 = arith.constant 0 : index
    %21 = vector.load %arg1[%c0_23, %c1_24, %c0_25, %c0_26] : memref<1x20x10x128xf32, #tpu.memory_space<vmem>>, vector<1x16x8x128xf32>
    %22 = vector.shape_cast %21 : vector<1x16x8x128xf32> to vector<16x8x128xf32>
    %23 = vector.shape_cast %22 : vector<16x8x128xf32> to vector<128x128xf32>
    %24 = arith.truncf %23 : vector<128x128xf32> to vector<128x128xbf16>
    %c0_27 = arith.constant 0 : index
    %c384 = arith.constant 384 : index
    %25 = vector.load %arg7[%c0_27, %c384] : memref<128x1920xbf16, #tpu.memory_space<vmem>>, vector<128x128xbf16>
    tpu.vector_store %arg7[%c0_27, %c384], %24 {strides = array<i32>} : memref<128x1920xbf16, #tpu.memory_space<vmem>>, vector<128x128xbf16>,
    %c0_28 = arith.constant 0 : index
    %c1_29 = arith.constant 1 : index
    %c1_30 = arith.constant 1 : index
    %c0_31 = arith.constant 0 : index
    %26 = vector.load %arg1[%c0_28, %c1_29, %c1_30, %c0_31] : memref<1x20x10x128xf32, #tpu.memory_space<vmem>>, vector<1x16x8x128xf32>
    %27 = vector.shape_cast %26 : vector<1x16x8x128xf32> to vector<16x8x128xf32>
    %28 = vector.shape_cast %27 : vector<16x8x128xf32> to vector<128x128xf32>
    %29 = arith.truncf %28 : vector<128x128xf32> to vector<128x128xbf16>
    %c0_32 = arith.constant 0 : index
    %c512 = arith.constant 512 : index
    %30 = vector.load %arg7[%c0_32, %c512] : memref<128x1920xbf16, #tpu.memory_space<vmem>>, vector<128x128xbf16>
    tpu.vector_store %arg7[%c0_32, %c512], %29 {strides = array<i32>} : memref<128x1920xbf16, #tpu.memory_space<vmem>>, vector<128x128xbf16>,
    %c0_33 = arith.constant 0 : index
    %c1_34 = arith.constant 1 : index
    %c2_35 = arith.constant 2 : index
    %c0_36 = arith.constant 0 : index
    %31 = vector.load %arg1[%c0_33, %c1_34, %c2_35, %c0_36] : memref<1x20x10x128xf32, #tpu.memory_space<vmem>>, vector<1x16x8x128xf32>
    %32 = vector.shape_cast %31 : vector<1x16x8x128xf32> to vector<16x8x128xf32>
    %33 = vector.shape_cast %32 : vector<16x8x128xf32> to vector<128x128xf32>
    %34 = arith.truncf %33 : vector<128x128xf32> to vector<128x128xbf16>
    %c0_37 = arith.constant 0 : index
    %c640 = arith.constant 640 : index
    %35 = vector.load %arg7[%c0_37, %c640] : memref<128x1920xbf16, #tpu.memory_space<vmem>>, vector<128x128xbf16>
    tpu.vector_store %arg7[%c0_37, %c640], %34 {strides = array<i32>} : memref<128x1920xbf16, #tpu.memory_space<vmem>>, vector<128x128xbf16>,
    %c0_38 = arith.constant 0 : index
    %c2_39 = arith.constant 2 : index
    %c0_40 = arith.constant 0 : index
    %c0_41 = arith.constant 0 : index
    %36 = vector.load %arg1[%c0_38, %c2_39, %c0_40, %c0_41] : memref<1x20x10x128xf32, #tpu.memory_space<vmem>>, vector<1x16x8x128xf32>
    %37 = vector.shape_cast %36 : vector<1x16x8x128xf32> to vector<16x8x128xf32>
    %38 = vector.shape_cast %37 : vector<16x8x128xf32> to vector<128x128xf32>
    %39 = arith.truncf %38 : vector<128x128xf32> to vector<128x128xbf16>
    %c0_42 = arith.constant 0 : index
    %c768 = arith.constant 768 : index
    %40 = vector.load %arg7[%c0_42, %c768] : memref<128x1920xbf16, #tpu.memory_space<vmem>>, vector<128x128xbf16>
    tpu.vector_store %arg7[%c0_42, %c768], %39 {strides = array<i32>} : memref<128x1920xbf16, #tpu.memory_space<vmem>>, vector<128x128xbf16>,
    %c0_43 = arith.constant 0 : index
    %c2_44 = arith.constant 2 : index
    %c1_45 = arith.constant 1 : index
    %c0_46 = arith.constant 0 : index
    %41 = vector.load %arg1[%c0_43, %c2_44, %c1_45, %c0_46] : memref<1x20x10x128xf32, #tpu.memory_space<vmem>>, vector<1x16x8x128xf32>
    %42 = vector.shape_cast %41 : vector<1x16x8x128xf32> to vector<16x8x128xf32>
    %43 = vector.shape_cast %42 : vector<16x8x128xf32> to vector<128x128xf32>
    %44 = arith.truncf %43 : vector<128x128xf32> to vector<128x128xbf16>
    %c0_47 = arith.constant 0 : index
    %c896 = arith.constant 896 : index
    %45 = vector.load %arg7[%c0_47, %c896] : memref<128x1920xbf16, #tpu.memory_space<vmem>>, vector<128x128xbf16>
    tpu.vector_store %arg7[%c0_47, %c896], %44 {strides = array<i32>} : memref<128x1920xbf16, #tpu.memory_space<vmem>>, vector<128x128xbf16>,
    %c0_48 = arith.constant 0 : index
    %c2_49 = arith.constant 2 : index
    %c2_50 = arith.constant 2 : index
    %c0_51 = arith.constant 0 : index
    %46 = vector.load %arg1[%c0_48, %c2_49, %c2_50, %c0_51] : memref<1x20x10x128xf32, #tpu.memory_space<vmem>>, vector<1x16x8x128xf32>
    %47 = vector.shape_cast %46 : vector<1x16x8x128xf32> to vector<16x8x128xf32>
    %48 = vector.shape_cast %47 : vector<16x8x128xf32> to vector<128x128xf32>
    %49 = arith.truncf %48 : vector<128x128xf32> to vector<128x128xbf16>
    %c0_52 = arith.constant 0 : index
    %c1024 = arith.constant 1024 : index
    %50 = vector.load %arg7[%c0_52, %c1024] : memref<128x1920xbf16, #tpu.memory_space<vmem>>, vector<128x128xbf16>
    tpu.vector_store %arg7[%c0_52, %c1024], %49 {strides = array<i32>} : memref<128x1920xbf16, #tpu.memory_space<vmem>>, vector<128x128xbf16>,
    %c0_53 = arith.constant 0 : index
    %c3 = arith.constant 3 : index
    %c0_54 = arith.constant 0 : index
    %c0_55 = arith.constant 0 : index
    %51 = vector.load %arg1[%c0_53, %c3, %c0_54, %c0_55] : memref<1x20x10x128xf32, #tpu.memory_space<vmem>>, vector<1x16x8x128xf32>
    %52 = vector.shape_cast %51 : vector<1x16x8x128xf32> to vector<16x8x128xf32>
    %53 = vector.shape_cast %52 : vector<16x8x128xf32> to vector<128x128xf32>
    %54 = arith.truncf %53 : vector<128x128xf32> to vector<128x128xbf16>
    %c0_56 = arith.constant 0 : index
    %c1152 = arith.constant 1152 : index
    %55 = vector.load %arg7[%c0_56, %c1152] : memref<128x1920xbf16, #tpu.memory_space<vmem>>, vector<128x128xbf16>
    tpu.vector_store %arg7[%c0_56, %c1152], %54 {strides = array<i32>} : memref<128x1920xbf16, #tpu.memory_space<vmem>>, vector<128x128xbf16>,
    %c0_57 = arith.constant 0 : index
    %c3_58 = arith.constant 3 : index
    %c1_59 = arith.constant 1 : index
    %c0_60 = arith.constant 0 : index
    %56 = vector.load %arg1[%c0_57, %c3_58, %c1_59, %c0_60] : memref<1x20x10x128xf32, #tpu.memory_space<vmem>>, vector<1x16x8x128xf32>
    %57 = vector.shape_cast %56 : vector<1x16x8x128xf32> to vector<16x8x128xf32>
    %58 = vector.shape_cast %57 : vector<16x8x128xf32> to vector<128x128xf32>
    %59 = arith.truncf %58 : vector<128x128xf32> to vector<128x128xbf16>
    %c0_61 = arith.constant 0 : index
    %c1280 = arith.constant 1280 : index
    %60 = vector.load %arg7[%c0_61, %c1280] : memref<128x1920xbf16, #tpu.memory_space<vmem>>, vector<128x128xbf16>
    tpu.vector_store %arg7[%c0_61, %c1280], %59 {strides = array<i32>} : memref<128x1920xbf16, #tpu.memory_space<vmem>>, vector<128x128xbf16>,
    %c0_62 = arith.constant 0 : index
    %c3_63 = arith.constant 3 : index
    %c2_64 = arith.constant 2 : index
    %c0_65 = arith.constant 0 : index
    %61 = vector.load %arg1[%c0_62, %c3_63, %c2_64, %c0_65] : memref<1x20x10x128xf32, #tpu.memory_space<vmem>>, vector<1x16x8x128xf32>
    %62 = vector.shape_cast %61 : vector<1x16x8x128xf32> to vector<16x8x128xf32>
    %63 = vector.shape_cast %62 : vector<16x8x128xf32> to vector<128x128xf32>
    %64 = arith.truncf %63 : vector<128x128xf32> to vector<128x128xbf16>
    %c0_66 = arith.constant 0 : index
    %c1408 = arith.constant 1408 : index
    %65 = vector.load %arg7[%c0_66, %c1408] : memref<128x1920xbf16, #tpu.memory_space<vmem>>, vector<128x128xbf16>
    tpu.vector_store %arg7[%c0_66, %c1408], %64 {strides = array<i32>} : memref<128x1920xbf16, #tpu.memory_space<vmem>>, vector<128x128xbf16>,
    %c0_67 = arith.constant 0 : index
    %c4 = arith.constant 4 : index
    %c0_68 = arith.constant 0 : index
    %c0_69 = arith.constant 0 : index
    %66 = vector.load %arg1[%c0_67, %c4, %c0_68, %c0_69] : memref<1x20x10x128xf32, #tpu.memory_space<vmem>>, vector<1x16x8x128xf32>
    %67 = vector.shape_cast %66 : vector<1x16x8x128xf32> to vector<16x8x128xf32>
    %68 = vector.shape_cast %67 : vector<16x8x128xf32> to vector<128x128xf32>
    %69 = arith.truncf %68 : vector<128x128xf32> to vector<128x128xbf16>
    %c0_70 = arith.constant 0 : index
    %c1536 = arith.constant 1536 : index
    %70 = vector.load %arg7[%c0_70, %c1536] : memref<128x1920xbf16, #tpu.memory_space<vmem>>, vector<128x128xbf16>
    tpu.vector_store %arg7[%c0_70, %c1536], %69 {strides = array<i32>} : memref<128x1920xbf16, #tpu.memory_space<vmem>>, vector<128x128xbf16>,
    %c0_71 = arith.constant 0 : index
    %c4_72 = arith.constant 4 : index
    %c1_73 = arith.constant 1 : index
    %c0_74 = arith.constant 0 : index
    %71 = vector.load %arg1[%c0_71, %c4_72, %c1_73, %c0_74] : memref<1x20x10x128xf32, #tpu.memory_space<vmem>>, vector<1x16x8x128xf32>
    %72 = vector.shape_cast %71 : vector<1x16x8x128xf32> to vector<16x8x128xf32>
    %73 = vector.shape_cast %72 : vector<16x8x128xf32> to vector<128x128xf32>
    %74 = arith.truncf %73 : vector<128x128xf32> to vector<128x128xbf16>
    %c0_75 = arith.constant 0 : index
    %c1664 = arith.constant 1664 : index
    %75 = vector.load %arg7[%c0_75, %c1664] : memref<128x1920xbf16, #tpu.memory_space<vmem>>, vector<128x128xbf16>
    tpu.vector_store %arg7[%c0_75, %c1664], %74 {strides = array<i32>} : memref<128x1920xbf16, #tpu.memory_space<vmem>>, vector<128x128xbf16>,
    %c0_76 = arith.constant 0 : index
    %c4_77 = arith.constant 4 : index
    %c2_78 = arith.constant 2 : index
    %c0_79 = arith.constant 0 : index
    %76 = vector.load %arg1[%c0_76, %c4_77, %c2_78, %c0_79] : memref<1x20x10x128xf32, #tpu.memory_space<vmem>>, vector<1x16x8x128xf32>
    %77 = vector.shape_cast %76 : vector<1x16x8x128xf32> to vector<16x8x128xf32>
    %78 = vector.shape_cast %77 : vector<16x8x128xf32> to vector<128x128xf32>
    %79 = arith.truncf %78 : vector<128x128xf32> to vector<128x128xbf16>
    %c0_80 = arith.constant 0 : index
    %c1792 = arith.constant 1792 : index
    %80 = vector.load %arg7[%c0_80, %c1792] : memref<128x1920xbf16, #tpu.memory_space<vmem>>, vector<128x128xbf16>
    tpu.vector_store %arg7[%c0_80, %c1792], %79 {strides = array<i32>} : memref<128x1920xbf16, #tpu.memory_space<vmem>>, vector<128x128xbf16>,
    %c0_81 = arith.constant 0 : index
    %c0_82 = arith.constant 0 : index
    %81 = vector.load %arg7[%c0_81, %c0_82] : memref<128x1920xbf16, #tpu.memory_space<vmem>>, vector<128x1920xbf16>
    %c0_83 = arith.constant 0 : index
    %c0_84 = arith.constant 0 : index
    %c0_85 = arith.constant 0 : index
    %82 = vector.load %arg2[%c0_83, %c0_84, %c0_85] : memref<4x1920x128xbf16, #tpu.memory_space<vmem>>, vector<1x1920x128xbf16>
    %83 = vector.shape_cast %82 : vector<1x1920x128xbf16> to vector<1920x128xbf16>
    %cst_86 = arith.constant dense<0.000000e+00> : vector<128x128xf32>
    %84 = tpu.matmul %81, %83, %cst_86 {dimension_numbers = #tpu.dot_dimension_numbers<[1], [0], [0], [1], [0, 0, 1, 1], [], []>} : vector<128x1920xbf16>, vector<1920x128xbf16>, vector<128x128xf32> -> vector<128x128xf32>
    %c0_87 = arith.constant 0 : index
    %c0_88 = arith.constant 0 : index
    %c0_89 = arith.constant 0 : index
    %85 = vector.load %arg3[%c0_87, %c0_88, %c0_89] : memref<4x1x128xf32, #tpu.memory_space<vmem>>, vector<1x1x128xf32>
    %86 = vector.shape_cast %85 : vector<1x1x128xf32> to vector<1x128xf32>
    %87 = vector.broadcast %86 : vector<1x128xf32> to vector<128x128xf32>
    %88 = arith.addf %84, %87 : vector<128x128xf32>
    %cst_90 = arith.constant 0.000000e+00 : f32
    %89 = vector.broadcast %cst_90 : f32 to vector<128x128xf32>
    %90 = arith.maximumf %88, %89 : vector<128x128xf32>
    %91 = vector.shape_cast %90 : vector<128x128xf32> to vector<16x8x128xf32>
    %c2_91 = arith.constant 2 : index
    %c8 = arith.constant 8 : index
    %c0_92 = arith.constant 0 : index
    %92 = vector.load %arg6[%c2_91, %c8, %c0_92] : memref<20x17x128xf32, #tpu.memory_space<vmem>>, vector<16x8x128xf32>
    tpu.vector_store %arg6[%c2_91, %c8, %c0_92], %91 {strides = array<i32>} : memref<20x17x128xf32, #tpu.memory_space<vmem>>, vector<16x8x128xf32>,
    %c0_93 = arith.constant 0 : index
    %c7_94 = arith.constant 7 : index
    %c0_95 = arith.constant 0 : index
    %93 = vector.load %arg6[%c0_93, %c7_94, %c0_95] : memref<20x17x128xf32, #tpu.memory_space<vmem>>, vector<16x8x128xf32>
    %94 = vector.shape_cast %93 : vector<16x8x128xf32> to vector<128x128xf32>
    %95 = arith.truncf %94 : vector<128x128xf32> to vector<128x128xbf16>
    %c0_96 = arith.constant 0 : index
    %c0_97 = arith.constant 0 : index
    %96 = vector.load %arg7[%c0_96, %c0_97] : memref<128x1920xbf16, #tpu.memory_space<vmem>>, vector<128x128xbf16>
    tpu.vector_store %arg7[%c0_96, %c0_97], %95 {strides = array<i32>} : memref<128x1920xbf16, #tpu.memory_space<vmem>>, vector<128x128xbf16>,
    %c0_98 = arith.constant 0 : index
    %c8_99 = arith.constant 8 : index
    %c0_100 = arith.constant 0 : index
    %97 = vector.load %arg6[%c0_98, %c8_99, %c0_100] : memref<20x17x128xf32, #tpu.memory_space<vmem>>, vector<16x8x128xf32>
    %98 = vector.shape_cast %97 : vector<16x8x128xf32> to vector<128x128xf32>
    %99 = arith.truncf %98 : vector<128x128xf32> to vector<128x128xbf16>
    %c0_101 = arith.constant 0 : index
    %c128_102 = arith.constant 128 : index
    %100 = vector.load %arg7[%c0_101, %c128_102] : memref<128x1920xbf16, #tpu.memory_space<vmem>>, vector<128x128xbf16>
    tpu.vector_store %arg7[%c0_101, %c128_102], %99 {strides = array<i32>} : memref<128x1920xbf16, #tpu.memory_space<vmem>>, vector<128x128xbf16>,
    %c0_103 = arith.constant 0 : index
    %c9 = arith.constant 9 : index
    %c0_104 = arith.constant 0 : index
    %101 = vector.load %arg6[%c0_103, %c9, %c0_104] : memref<20x17x128xf32, #tpu.memory_space<vmem>>, vector<16x8x128xf32>
    %102 = vector.shape_cast %101 : vector<16x8x128xf32> to vector<128x128xf32>
    %103 = arith.truncf %102 : vector<128x128xf32> to vector<128x128xbf16>
    %c0_105 = arith.constant 0 : index
    %c256_106 = arith.constant 256 : index
    %104 = vector.load %arg7[%c0_105, %c256_106] : memref<128x1920xbf16, #tpu.memory_space<vmem>>, vector<128x128xbf16>
    tpu.vector_store %arg7[%c0_105, %c256_106], %103 {strides = array<i32>} : memref<128x1920xbf16, #tpu.memory_space<vmem>>, vector<128x128xbf16>,
    %c1_107 = arith.constant 1 : index
    %c7_108 = arith.constant 7 : index
    %c0_109 = arith.constant 0 : index
    %105 = vector.load %arg6[%c1_107, %c7_108, %c0_109] : memref<20x17x128xf32, #tpu.memory_space<vmem>>, vector<16x8x128xf32>
    %106 = vector.shape_cast %105 : vector<16x8x128xf32> to vector<128x128xf32>
    %107 = arith.truncf %106 : vector<128x128xf32> to vector<128x128xbf16>
    %c0_110 = arith.constant 0 : index
    %c384_111 = arith.constant 384 : index
    %108 = vector.load %arg7[%c0_110, %c384_111] : memref<128x1920xbf16, #tpu.memory_space<vmem>>, vector<128x128xbf16>
    tpu.vector_store %arg7[%c0_110, %c384_111], %107 {strides = array<i32>} : memref<128x1920xbf16, #tpu.memory_space<vmem>>, vector<128x128xbf16>,
    %c1_112 = arith.constant 1 : index
    %c8_113 = arith.constant 8 : index
    %c0_114 = arith.constant 0 : index
    %109 = vector.load %arg6[%c1_112, %c8_113, %c0_114] : memref<20x17x128xf32, #tpu.memory_space<vmem>>, vector<16x8x128xf32>
    %110 = vector.shape_cast %109 : vector<16x8x128xf32> to vector<128x128xf32>
    %111 = arith.truncf %110 : vector<128x128xf32> to vector<128x128xbf16>
    %c0_115 = arith.constant 0 : index
    %c512_116 = arith.constant 512 : index
    %112 = vector.load %arg7[%c0_115, %c512_116] : memref<128x1920xbf16, #tpu.memory_space<vmem>>, vector<128x128xbf16>
    tpu.vector_store %arg7[%c0_115, %c512_116], %111 {strides = array<i32>} : memref<128x1920xbf16, #tpu.memory_space<vmem>>, vector<128x128xbf16>,
    %c1_117 = arith.constant 1 : index
    %c9_118 = arith.constant 9 : index
    %c0_119 = arith.constant 0 : index
    %113 = vector.load %arg6[%c1_117, %c9_118, %c0_119] : memref<20x17x128xf32, #tpu.memory_space<vmem>>, vector<16x8x128xf32>
    %114 = vector.shape_cast %113 : vector<16x8x128xf32> to vector<128x128xf32>
    %115 = arith.truncf %114 : vector<128x128xf32> to vector<128x128xbf16>
    %c0_120 = arith.constant 0 : index
    %c640_121 = arith.constant 640 : index
    %116 = vector.load %arg7[%c0_120, %c640_121] : memref<128x1920xbf16, #tpu.memory_space<vmem>>, vector<128x128xbf16>
    tpu.vector_store %arg7[%c0_120, %c640_121], %115 {strides = array<i32>} : memref<128x1920xbf16, #tpu.memory_space<vmem>>, vector<128x128xbf16>,
    %c2_122 = arith.constant 2 : index
    %c7_123 = arith.constant 7 : index
    %c0_124 = arith.constant 0 : index
    %117 = vector.load %arg6[%c2_122, %c7_123, %c0_124] : memref<20x17x128xf32, #tpu.memory_space<vmem>>, vector<16x8x128xf32>
    %118 = vector.shape_cast %117 : vector<16x8x128xf32> to vector<128x128xf32>
    %119 = arith.truncf %118 : vector<128x128xf32> to vector<128x128xbf16>
    %c0_125 = arith.constant 0 : index
    %c768_126 = arith.constant 768 : index
    %120 = vector.load %arg7[%c0_125, %c768_126] : memref<128x1920xbf16, #tpu.memory_space<vmem>>, vector<128x128xbf16>
    tpu.vector_store %arg7[%c0_125, %c768_126], %119 {strides = array<i32>} : memref<128x1920xbf16, #tpu.memory_space<vmem>>, vector<128x128xbf16>,
    %c2_127 = arith.constant 2 : index
    %c8_128 = arith.constant 8 : index
    %c0_129 = arith.constant 0 : index
    %121 = vector.load %arg6[%c2_127, %c8_128, %c0_129] : memref<20x17x128xf32, #tpu.memory_space<vmem>>, vector<16x8x128xf32>
    %122 = vector.shape_cast %121 : vector<16x8x128xf32> to vector<128x128xf32>
    %123 = arith.truncf %122 : vector<128x128xf32> to vector<128x128xbf16>
    %c0_130 = arith.constant 0 : index
    %c896_131 = arith.constant 896 : index
    %124 = vector.load %arg7[%c0_130, %c896_131] : memref<128x1920xbf16, #tpu.memory_space<vmem>>, vector<128x128xbf16>
    tpu.vector_store %arg7[%c0_130, %c896_131], %123 {strides = array<i32>} : memref<128x1920xbf16, #tpu.memory_space<vmem>>, vector<128x128xbf16>,
    %c2_132 = arith.constant 2 : index
    %c9_133 = arith.constant 9 : index
    %c0_134 = arith.constant 0 : index
    %125 = vector.load %arg6[%c2_132, %c9_133, %c0_134] : memref<20x17x128xf32, #tpu.memory_space<vmem>>, vector<16x8x128xf32>
    %126 = vector.shape_cast %125 : vector<16x8x128xf32> to vector<128x128xf32>
    %127 = arith.truncf %126 : vector<128x128xf32> to vector<128x128xbf16>
    %c0_135 = arith.constant 0 : index
    %c1024_136 = arith.constant 1024 : index
    %128 = vector.load %arg7[%c0_135, %c1024_136] : memref<128x1920xbf16, #tpu.memory_space<vmem>>, vector<128x128xbf16>
    tpu.vector_store %arg7[%c0_135, %c1024_136], %127 {strides = array<i32>} : memref<128x1920xbf16, #tpu.memory_space<vmem>>, vector<128x128xbf16>,
    %c3_137 = arith.constant 3 : index
    %c7_138 = arith.constant 7 : index
    %c0_139 = arith.constant 0 : index
    %129 = vector.load %arg6[%c3_137, %c7_138, %c0_139] : memref<20x17x128xf32, #tpu.memory_space<vmem>>, vector<16x8x128xf32>
    %130 = vector.shape_cast %129 : vector<16x8x128xf32> to vector<128x128xf32>
    %131 = arith.truncf %130 : vector<128x128xf32> to vector<128x128xbf16>
    %c0_140 = arith.constant 0 : index
    %c1152_141 = arith.constant 1152 : index
    %132 = vector.load %arg7[%c0_140, %c1152_141] : memref<128x1920xbf16, #tpu.memory_space<vmem>>, vector<128x128xbf16>
    tpu.vector_store %arg7[%c0_140, %c1152_141], %131 {strides = array<i32>} : memref<128x1920xbf16, #tpu.memory_space<vmem>>, vector<128x128xbf16>,
    %c3_142 = arith.constant 3 : index
    %c8_143 = arith.constant 8 : index
    %c0_144 = arith.constant 0 : index
    %133 = vector.load %arg6[%c3_142, %c8_143, %c0_144] : memref<20x17x128xf32, #tpu.memory_space<vmem>>, vector<16x8x128xf32>
    %134 = vector.shape_cast %133 : vector<16x8x128xf32> to vector<128x128xf32>
    %135 = arith.truncf %134 : vector<128x128xf32> to vector<128x128xbf16>
    %c0_145 = arith.constant 0 : index
    %c1280_146 = arith.constant 1280 : index
    %136 = vector.load %arg7[%c0_145, %c1280_146] : memref<128x1920xbf16, #tpu.memory_space<vmem>>, vector<128x128xbf16>
    tpu.vector_store %arg7[%c0_145, %c1280_146], %135 {strides = array<i32>} : memref<128x1920xbf16, #tpu.memory_space<vmem>>, vector<128x128xbf16>,
    %c3_147 = arith.constant 3 : index
    %c9_148 = arith.constant 9 : index
    %c0_149 = arith.constant 0 : index
    %137 = vector.load %arg6[%c3_147, %c9_148, %c0_149] : memref<20x17x128xf32, #tpu.memory_space<vmem>>, vector<16x8x128xf32>
    %138 = vector.shape_cast %137 : vector<16x8x128xf32> to vector<128x128xf32>
    %139 = arith.truncf %138 : vector<128x128xf32> to vector<128x128xbf16>
    %c0_150 = arith.constant 0 : index
    %c1408_151 = arith.constant 1408 : index
    %140 = vector.load %arg7[%c0_150, %c1408_151] : memref<128x1920xbf16, #tpu.memory_space<vmem>>, vector<128x128xbf16>
    tpu.vector_store %arg7[%c0_150, %c1408_151], %139 {strides = array<i32>} : memref<128x1920xbf16, #tpu.memory_space<vmem>>, vector<128x128xbf16>,
    %c4_152 = arith.constant 4 : index
    %c7_153 = arith.constant 7 : index
    %c0_154 = arith.constant 0 : index
    %141 = vector.load %arg6[%c4_152, %c7_153, %c0_154] : memref<20x17x128xf32, #tpu.memory_space<vmem>>, vector<16x8x128xf32>
    %142 = vector.shape_cast %141 : vector<16x8x128xf32> to vector<128x128xf32>
    %143 = arith.truncf %142 : vector<128x128xf32> to vector<128x128xbf16>
    %c0_155 = arith.constant 0 : index
    %c1536_156 = arith.constant 1536 : index
    %144 = vector.load %arg7[%c0_155, %c1536_156] : memref<128x1920xbf16, #tpu.memory_space<vmem>>, vector<128x128xbf16>
    tpu.vector_store %arg7[%c0_155, %c1536_156], %143 {strides = array<i32>} : memref<128x1920xbf16, #tpu.memory_space<vmem>>, vector<128x128xbf16>,
    %c4_157 = arith.constant 4 : index
    %c8_158 = arith.constant 8 : index
    %c0_159 = arith.constant 0 : index
    %145 = vector.load %arg6[%c4_157, %c8_158, %c0_159] : memref<20x17x128xf32, #tpu.memory_space<vmem>>, vector<16x8x128xf32>
    %146 = vector.shape_cast %145 : vector<16x8x128xf32> to vector<128x128xf32>
    %147 = arith.truncf %146 : vector<128x128xf32> to vector<128x128xbf16>
    %c0_160 = arith.constant 0 : index
    %c1664_161 = arith.constant 1664 : index
    %148 = vector.load %arg7[%c0_160, %c1664_161] : memref<128x1920xbf16, #tpu.memory_space<vmem>>, vector<128x128xbf16>
    tpu.vector_store %arg7[%c0_160, %c1664_161], %147 {strides = array<i32>} : memref<128x1920xbf16, #tpu.memory_space<vmem>>, vector<128x128xbf16>,
    %c4_162 = arith.constant 4 : index
    %c9_163 = arith.constant 9 : index
    %c0_164 = arith.constant 0 : index
    %149 = vector.load %arg6[%c4_162, %c9_163, %c0_164] : memref<20x17x128xf32, #tpu.memory_space<vmem>>, vector<16x8x128xf32>
    %150 = vector.shape_cast %149 : vector<16x8x128xf32> to vector<128x128xf32>
    %151 = arith.truncf %150 : vector<128x128xf32> to vector<128x128xbf16>
    %c0_165 = arith.constant 0 : index
    %c1792_166 = arith.constant 1792 : index
    %152 = vector.load %arg7[%c0_165, %c1792_166] : memref<128x1920xbf16, #tpu.memory_space<vmem>>, vector<128x128xbf16>
    tpu.vector_store %arg7[%c0_165, %c1792_166], %151 {strides = array<i32>} : memref<128x1920xbf16, #tpu.memory_space<vmem>>, vector<128x128xbf16>,
    %c0_167 = arith.constant 0 : index
    %c0_168 = arith.constant 0 : index
    %153 = vector.load %arg7[%c0_167, %c0_168] : memref<128x1920xbf16, #tpu.memory_space<vmem>>, vector<128x1920xbf16>
    %c1_169 = arith.constant 1 : index
    %c0_170 = arith.constant 0 : index
    %c0_171 = arith.constant 0 : index
    %154 = vector.load %arg2[%c1_169, %c0_170, %c0_171] : memref<4x1920x128xbf16, #tpu.memory_space<vmem>>, vector<1x1920x128xbf16>
    %155 = vector.shape_cast %154 : vector<1x1920x128xbf16> to vector<1920x128xbf16>
    %cst_172 = arith.constant dense<0.000000e+00> : vector<128x128xf32>
    %156 = tpu.matmul %153, %155, %cst_172 {dimension_numbers = #tpu.dot_dimension_numbers<[1], [0], [0], [1], [0, 0, 1, 1], [], []>} : vector<128x1920xbf16>, vector<1920x128xbf16>, vector<128x128xf32> -> vector<128x128xf32>
    %c1_173 = arith.constant 1 : index
    %c0_174 = arith.constant 0 : index
    %c0_175 = arith.constant 0 : index
    %157 = vector.load %arg3[%c1_173, %c0_174, %c0_175] : memref<4x1x128xf32, #tpu.memory_space<vmem>>, vector<1x1x128xf32>
    %158 = vector.shape_cast %157 : vector<1x1x128xf32> to vector<1x128xf32>
    %159 = vector.broadcast %158 : vector<1x128xf32> to vector<128x128xf32>
    %160 = arith.addf %156, %159 : vector<128x128xf32>
    %cst_176 = arith.constant 0.000000e+00 : f32
    %161 = vector.broadcast %cst_176 : f32 to vector<128x128xf32>
    %162 = arith.maximumf %160, %161 : vector<128x128xf32>
    %163 = vector.shape_cast %162 : vector<128x128xf32> to vector<16x8x128xf32>
    %c2_177 = arith.constant 2 : index
    %c8_178 = arith.constant 8 : index
    %c0_179 = arith.constant 0 : index
    %164 = vector.load %arg6[%c2_177, %c8_178, %c0_179] : memref<20x17x128xf32, #tpu.memory_space<vmem>>, vector<16x8x128xf32>
    tpu.vector_store %arg6[%c2_177, %c8_178, %c0_179], %163 {strides = array<i32>} : memref<20x17x128xf32, #tpu.memory_space<vmem>>, vector<16x8x128xf32>,
    %c0_180 = arith.constant 0 : index
    %c7_181 = arith.constant 7 : index
    %c0_182 = arith.constant 0 : index
    %165 = vector.load %arg6[%c0_180, %c7_181, %c0_182] : memref<20x17x128xf32, #tpu.memory_space<vmem>>, vector<16x8x128xf32>
    %166 = vector.shape_cast %165 : vector<16x8x128xf32> to vector<128x128xf32>
    %167 = arith.truncf %166 : vector<128x128xf32> to vector<128x128xbf16>
    %c0_183 = arith.constant 0 : index
    %c0_184 = arith.constant 0 : index
    %168 = vector.load %arg7[%c0_183, %c0_184] : memref<128x1920xbf16, #tpu.memory_space<vmem>>, vector<128x128xbf16>
    tpu.vector_store %arg7[%c0_183, %c0_184], %167 {strides = array<i32>} : memref<128x1920xbf16, #tpu.memory_space<vmem>>, vector<128x128xbf16>,
    %c0_185 = arith.constant 0 : index
    %c8_186 = arith.constant 8 : index
    %c0_187 = arith.constant 0 : index
    %169 = vector.load %arg6[%c0_185, %c8_186, %c0_187] : memref<20x17x128xf32, #tpu.memory_space<vmem>>, vector<16x8x128xf32>
    %170 = vector.shape_cast %169 : vector<16x8x128xf32> to vector<128x128xf32>
    %171 = arith.truncf %170 : vector<128x128xf32> to vector<128x128xbf16>
    %c0_188 = arith.constant 0 : index
    %c128_189 = arith.constant 128 : index
    %172 = vector.load %arg7[%c0_188, %c128_189] : memref<128x1920xbf16, #tpu.memory_space<vmem>>, vector<128x128xbf16>
    tpu.vector_store %arg7[%c0_188, %c128_189], %171 {strides = array<i32>} : memref<128x1920xbf16, #tpu.memory_space<vmem>>, vector<128x128xbf16>,
    %c0_190 = arith.constant 0 : index
    %c9_191 = arith.constant 9 : index
    %c0_192 = arith.constant 0 : index
    %173 = vector.load %arg6[%c0_190, %c9_191, %c0_192] : memref<20x17x128xf32, #tpu.memory_space<vmem>>, vector<16x8x128xf32>
    %174 = vector.shape_cast %173 : vector<16x8x128xf32> to vector<128x128xf32>
    %175 = arith.truncf %174 : vector<128x128xf32> to vector<128x128xbf16>
    %c0_193 = arith.constant 0 : index
    %c256_194 = arith.constant 256 : index
    %176 = vector.load %arg7[%c0_193, %c256_194] : memref<128x1920xbf16, #tpu.memory_space<vmem>>, vector<128x128xbf16>
    tpu.vector_store %arg7[%c0_193, %c256_194], %175 {strides = array<i32>} : memref<128x1920xbf16, #tpu.memory_space<vmem>>, vector<128x128xbf16>,
    %c1_195 = arith.constant 1 : index
    %c7_196 = arith.constant 7 : index
    %c0_197 = arith.constant 0 : index
    %177 = vector.load %arg6[%c1_195, %c7_196, %c0_197] : memref<20x17x128xf32, #tpu.memory_space<vmem>>, vector<16x8x128xf32>
    %178 = vector.shape_cast %177 : vector<16x8x128xf32> to vector<128x128xf32>
    %179 = arith.truncf %178 : vector<128x128xf32> to vector<128x128xbf16>
    %c0_198 = arith.constant 0 : index
    %c384_199 = arith.constant 384 : index
    %180 = vector.load %arg7[%c0_198, %c384_199] : memref<128x1920xbf16, #tpu.memory_space<vmem>>, vector<128x128xbf16>
    tpu.vector_store %arg7[%c0_198, %c384_199], %179 {strides = array<i32>} : memref<128x1920xbf16, #tpu.memory_space<vmem>>, vector<128x128xbf16>,
    %c1_200 = arith.constant 1 : index
    %c8_201 = arith.constant 8 : index
    %c0_202 = arith.constant 0 : index
    %181 = vector.load %arg6[%c1_200, %c8_201, %c0_202] : memref<20x17x128xf32, #tpu.memory_space<vmem>>, vector<16x8x128xf32>
    %182 = vector.shape_cast %181 : vector<16x8x128xf32> to vector<128x128xf32>
    %183 = arith.truncf %182 : vector<128x128xf32> to vector<128x128xbf16>
    %c0_203 = arith.constant 0 : index
    %c512_204 = arith.constant 512 : index
    %184 = vector.load %arg7[%c0_203, %c512_204] : memref<128x1920xbf16, #tpu.memory_space<vmem>>, vector<128x128xbf16>
    tpu.vector_store %arg7[%c0_203, %c512_204], %183 {strides = array<i32>} : memref<128x1920xbf16, #tpu.memory_space<vmem>>, vector<128x128xbf16>,
    %c1_205 = arith.constant 1 : index
    %c9_206 = arith.constant 9 : index
    %c0_207 = arith.constant 0 : index
    %185 = vector.load %arg6[%c1_205, %c9_206, %c0_207] : memref<20x17x128xf32, #tpu.memory_space<vmem>>, vector<16x8x128xf32>
    %186 = vector.shape_cast %185 : vector<16x8x128xf32> to vector<128x128xf32>
    %187 = arith.truncf %186 : vector<128x128xf32> to vector<128x128xbf16>
    %c0_208 = arith.constant 0 : index
    %c640_209 = arith.constant 640 : index
    %188 = vector.load %arg7[%c0_208, %c640_209] : memref<128x1920xbf16, #tpu.memory_space<vmem>>, vector<128x128xbf16>
    tpu.vector_store %arg7[%c0_208, %c640_209], %187 {strides = array<i32>} : memref<128x1920xbf16, #tpu.memory_space<vmem>>, vector<128x128xbf16>,
    %c2_210 = arith.constant 2 : index
    %c7_211 = arith.constant 7 : index
    %c0_212 = arith.constant 0 : index
    %189 = vector.load %arg6[%c2_210, %c7_211, %c0_212] : memref<20x17x128xf32, #tpu.memory_space<vmem>>, vector<16x8x128xf32>
    %190 = vector.shape_cast %189 : vector<16x8x128xf32> to vector<128x128xf32>
    %191 = arith.truncf %190 : vector<128x128xf32> to vector<128x128xbf16>
    %c0_213 = arith.constant 0 : index
    %c768_214 = arith.constant 768 : index
    %192 = vector.load %arg7[%c0_213, %c768_214] : memref<128x1920xbf16, #tpu.memory_space<vmem>>, vector<128x128xbf16>
    tpu.vector_store %arg7[%c0_213, %c768_214], %191 {strides = array<i32>} : memref<128x1920xbf16, #tpu.memory_space<vmem>>, vector<128x128xbf16>,
    %c2_215 = arith.constant 2 : index
    %c8_216 = arith.constant 8 : index
    %c0_217 = arith.constant 0 : index
    %193 = vector.load %arg6[%c2_215, %c8_216, %c0_217] : memref<20x17x128xf32, #tpu.memory_space<vmem>>, vector<16x8x128xf32>
    %194 = vector.shape_cast %193 : vector<16x8x128xf32> to vector<128x128xf32>
    %195 = arith.truncf %194 : vector<128x128xf32> to vector<128x128xbf16>
    %c0_218 = arith.constant 0 : index
    %c896_219 = arith.constant 896 : index
    %196 = vector.load %arg7[%c0_218, %c896_219] : memref<128x1920xbf16, #tpu.memory_space<vmem>>, vector<128x128xbf16>
    tpu.vector_store %arg7[%c0_218, %c896_219], %195 {strides = array<i32>} : memref<128x1920xbf16, #tpu.memory_space<vmem>>, vector<128x128xbf16>,
    %c2_220 = arith.constant 2 : index
    %c9_221 = arith.constant 9 : index
    %c0_222 = arith.constant 0 : index
    %197 = vector.load %arg6[%c2_220, %c9_221, %c0_222] : memref<20x17x128xf32, #tpu.memory_space<vmem>>, vector<16x8x128xf32>
    %198 = vector.shape_cast %197 : vector<16x8x128xf32> to vector<128x128xf32>
    %199 = arith.truncf %198 : vector<128x128xf32> to vector<128x128xbf16>
    %c0_223 = arith.constant 0 : index
    %c1024_224 = arith.constant 1024 : index
    %200 = vector.load %arg7[%c0_223, %c1024_224] : memref<128x1920xbf16, #tpu.memory_space<vmem>>, vector<128x128xbf16>
    tpu.vector_store %arg7[%c0_223, %c1024_224], %199 {strides = array<i32>} : memref<128x1920xbf16, #tpu.memory_space<vmem>>, vector<128x128xbf16>,
    %c3_225 = arith.constant 3 : index
    %c7_226 = arith.constant 7 : index
    %c0_227 = arith.constant 0 : index
    %201 = vector.load %arg6[%c3_225, %c7_226, %c0_227] : memref<20x17x128xf32, #tpu.memory_space<vmem>>, vector<16x8x128xf32>
    %202 = vector.shape_cast %201 : vector<16x8x128xf32> to vector<128x128xf32>
    %203 = arith.truncf %202 : vector<128x128xf32> to vector<128x128xbf16>
    %c0_228 = arith.constant 0 : index
    %c1152_229 = arith.constant 1152 : index
    %204 = vector.load %arg7[%c0_228, %c1152_229] : memref<128x1920xbf16, #tpu.memory_space<vmem>>, vector<128x128xbf16>
    tpu.vector_store %arg7[%c0_228, %c1152_229], %203 {strides = array<i32>} : memref<128x1920xbf16, #tpu.memory_space<vmem>>, vector<128x128xbf16>,
    %c3_230 = arith.constant 3 : index
    %c8_231 = arith.constant 8 : index
    %c0_232 = arith.constant 0 : index
    %205 = vector.load %arg6[%c3_230, %c8_231, %c0_232] : memref<20x17x128xf32, #tpu.memory_space<vmem>>, vector<16x8x128xf32>
    %206 = vector.shape_cast %205 : vector<16x8x128xf32> to vector<128x128xf32>
    %207 = arith.truncf %206 : vector<128x128xf32> to vector<128x128xbf16>
    %c0_233 = arith.constant 0 : index
    %c1280_234 = arith.constant 1280 : index
    %208 = vector.load %arg7[%c0_233, %c1280_234] : memref<128x1920xbf16, #tpu.memory_space<vmem>>, vector<128x128xbf16>
    tpu.vector_store %arg7[%c0_233, %c1280_234], %207 {strides = array<i32>} : memref<128x1920xbf16, #tpu.memory_space<vmem>>, vector<128x128xbf16>,
    %c3_235 = arith.constant 3 : index
    %c9_236 = arith.constant 9 : index
    %c0_237 = arith.constant 0 : index
    %209 = vector.load %arg6[%c3_235, %c9_236, %c0_237] : memref<20x17x128xf32, #tpu.memory_space<vmem>>, vector<16x8x128xf32>
    %210 = vector.shape_cast %209 : vector<16x8x128xf32> to vector<128x128xf32>
    %211 = arith.truncf %210 : vector<128x128xf32> to vector<128x128xbf16>
    %c0_238 = arith.constant 0 : index
    %c1408_239 = arith.constant 1408 : index
    %212 = vector.load %arg7[%c0_238, %c1408_239] : memref<128x1920xbf16, #tpu.memory_space<vmem>>, vector<128x128xbf16>
    tpu.vector_store %arg7[%c0_238, %c1408_239], %211 {strides = array<i32>} : memref<128x1920xbf16, #tpu.memory_space<vmem>>, vector<128x128xbf16>,
    %c4_240 = arith.constant 4 : index
    %c7_241 = arith.constant 7 : index
    %c0_242 = arith.constant 0 : index
    %213 = vector.load %arg6[%c4_240, %c7_241, %c0_242] : memref<20x17x128xf32, #tpu.memory_space<vmem>>, vector<16x8x128xf32>
    %214 = vector.shape_cast %213 : vector<16x8x128xf32> to vector<128x128xf32>
    %215 = arith.truncf %214 : vector<128x128xf32> to vector<128x128xbf16>
    %c0_243 = arith.constant 0 : index
    %c1536_244 = arith.constant 1536 : index
    %216 = vector.load %arg7[%c0_243, %c1536_244] : memref<128x1920xbf16, #tpu.memory_space<vmem>>, vector<128x128xbf16>
    tpu.vector_store %arg7[%c0_243, %c1536_244], %215 {strides = array<i32>} : memref<128x1920xbf16, #tpu.memory_space<vmem>>, vector<128x128xbf16>,
    %c4_245 = arith.constant 4 : index
    %c8_246 = arith.constant 8 : index
    %c0_247 = arith.constant 0 : index
    %217 = vector.load %arg6[%c4_245, %c8_246, %c0_247] : memref<20x17x128xf32, #tpu.memory_space<vmem>>, vector<16x8x128xf32>
    %218 = vector.shape_cast %217 : vector<16x8x128xf32> to vector<128x128xf32>
    %219 = arith.truncf %218 : vector<128x128xf32> to vector<128x128xbf16>
    %c0_248 = arith.constant 0 : index
    %c1664_249 = arith.constant 1664 : index
    %220 = vector.load %arg7[%c0_248, %c1664_249] : memref<128x1920xbf16, #tpu.memory_space<vmem>>, vector<128x128xbf16>
    tpu.vector_store %arg7[%c0_248, %c1664_249], %219 {strides = array<i32>} : memref<128x1920xbf16, #tpu.memory_space<vmem>>, vector<128x128xbf16>,
    %c4_250 = arith.constant 4 : index
    %c9_251 = arith.constant 9 : index
    %c0_252 = arith.constant 0 : index
    %221 = vector.load %arg6[%c4_250, %c9_251, %c0_252] : memref<20x17x128xf32, #tpu.memory_space<vmem>>, vector<16x8x128xf32>
    %222 = vector.shape_cast %221 : vector<16x8x128xf32> to vector<128x128xf32>
    %223 = arith.truncf %222 : vector<128x128xf32> to vector<128x128xbf16>
    %c0_253 = arith.constant 0 : index
    %c1792_254 = arith.constant 1792 : index
    %224 = vector.load %arg7[%c0_253, %c1792_254] : memref<128x1920xbf16, #tpu.memory_space<vmem>>, vector<128x128xbf16>
    tpu.vector_store %arg7[%c0_253, %c1792_254], %223 {strides = array<i32>} : memref<128x1920xbf16, #tpu.memory_space<vmem>>, vector<128x128xbf16>,
    %c0_255 = arith.constant 0 : index
    %c0_256 = arith.constant 0 : index
    %225 = vector.load %arg7[%c0_255, %c0_256] : memref<128x1920xbf16, #tpu.memory_space<vmem>>, vector<128x1920xbf16>
    %c2_257 = arith.constant 2 : index
    %c0_258 = arith.constant 0 : index
    %c0_259 = arith.constant 0 : index
    %226 = vector.load %arg2[%c2_257, %c0_258, %c0_259] : memref<4x1920x128xbf16, #tpu.memory_space<vmem>>, vector<1x1920x128xbf16>
    %227 = vector.shape_cast %226 : vector<1x1920x128xbf16> to vector<1920x128xbf16>
    %cst_260 = arith.constant dense<0.000000e+00> : vector<128x128xf32>
    %228 = tpu.matmul %225, %227, %cst_260 {dimension_numbers = #tpu.dot_dimension_numbers<[1], [0], [0], [1], [0, 0, 1, 1], [], []>} : vector<128x1920xbf16>, vector<1920x128xbf16>, vector<128x128xf32> -> vector<128x128xf32>
    %c2_261 = arith.constant 2 : index
    %c0_262 = arith.constant 0 : index
    %c0_263 = arith.constant 0 : index
    %229 = vector.load %arg3[%c2_261, %c0_262, %c0_263] : memref<4x1x128xf32, #tpu.memory_space<vmem>>, vector<1x1x128xf32>
    %230 = vector.shape_cast %229 : vector<1x1x128xf32> to vector<1x128xf32>
    %231 = vector.broadcast %230 : vector<1x128xf32> to vector<128x128xf32>
    %232 = arith.addf %228, %231 : vector<128x128xf32>
    %cst_264 = arith.constant 0.000000e+00 : f32
    %233 = vector.broadcast %cst_264 : f32 to vector<128x128xf32>
    %234 = arith.maximumf %232, %233 : vector<128x128xf32>
    %235 = vector.shape_cast %234 : vector<128x128xf32> to vector<16x8x128xf32>
    %c2_265 = arith.constant 2 : index
    %c8_266 = arith.constant 8 : index
    %c0_267 = arith.constant 0 : index
    %236 = vector.load %arg6[%c2_265, %c8_266, %c0_267] : memref<20x17x128xf32, #tpu.memory_space<vmem>>, vector<16x8x128xf32>
    tpu.vector_store %arg6[%c2_265, %c8_266, %c0_267], %235 {strides = array<i32>} : memref<20x17x128xf32, #tpu.memory_space<vmem>>, vector<16x8x128xf32>,
    %c0_268 = arith.constant 0 : index
    %c7_269 = arith.constant 7 : index
    %c0_270 = arith.constant 0 : index
    %237 = vector.load %arg6[%c0_268, %c7_269, %c0_270] : memref<20x17x128xf32, #tpu.memory_space<vmem>>, vector<16x8x128xf32>
    %238 = vector.shape_cast %237 : vector<16x8x128xf32> to vector<128x128xf32>
    %239 = arith.truncf %238 : vector<128x128xf32> to vector<128x128xbf16>
    %c0_271 = arith.constant 0 : index
    %c0_272 = arith.constant 0 : index
    %240 = vector.load %arg7[%c0_271, %c0_272] : memref<128x1920xbf16, #tpu.memory_space<vmem>>, vector<128x128xbf16>
    tpu.vector_store %arg7[%c0_271, %c0_272], %239 {strides = array<i32>} : memref<128x1920xbf16, #tpu.memory_space<vmem>>, vector<128x128xbf16>,
    %c0_273 = arith.constant 0 : index
    %c8_274 = arith.constant 8 : index
    %c0_275 = arith.constant 0 : index
    %241 = vector.load %arg6[%c0_273, %c8_274, %c0_275] : memref<20x17x128xf32, #tpu.memory_space<vmem>>, vector<16x8x128xf32>
    %242 = vector.shape_cast %241 : vector<16x8x128xf32> to vector<128x128xf32>
    %243 = arith.truncf %242 : vector<128x128xf32> to vector<128x128xbf16>
    %c0_276 = arith.constant 0 : index
    %c128_277 = arith.constant 128 : index
    %244 = vector.load %arg7[%c0_276, %c128_277] : memref<128x1920xbf16, #tpu.memory_space<vmem>>, vector<128x128xbf16>
    tpu.vector_store %arg7[%c0_276, %c128_277], %243 {strides = array<i32>} : memref<128x1920xbf16, #tpu.memory_space<vmem>>, vector<128x128xbf16>,
    %c0_278 = arith.constant 0 : index
    %c9_279 = arith.constant 9 : index
    %c0_280 = arith.constant 0 : index
    %245 = vector.load %arg6[%c0_278, %c9_279, %c0_280] : memref<20x17x128xf32, #tpu.memory_space<vmem>>, vector<16x8x128xf32>
    %246 = vector.shape_cast %245 : vector<16x8x128xf32> to vector<128x128xf32>
    %247 = arith.truncf %246 : vector<128x128xf32> to vector<128x128xbf16>
    %c0_281 = arith.constant 0 : index
    %c256_282 = arith.constant 256 : index
    %248 = vector.load %arg7[%c0_281, %c256_282] : memref<128x1920xbf16, #tpu.memory_space<vmem>>, vector<128x128xbf16>
    tpu.vector_store %arg7[%c0_281, %c256_282], %247 {strides = array<i32>} : memref<128x1920xbf16, #tpu.memory_space<vmem>>, vector<128x128xbf16>,
    %c1_283 = arith.constant 1 : index
    %c7_284 = arith.constant 7 : index
    %c0_285 = arith.constant 0 : index
    %249 = vector.load %arg6[%c1_283, %c7_284, %c0_285] : memref<20x17x128xf32, #tpu.memory_space<vmem>>, vector<16x8x128xf32>
    %250 = vector.shape_cast %249 : vector<16x8x128xf32> to vector<128x128xf32>
    %251 = arith.truncf %250 : vector<128x128xf32> to vector<128x128xbf16>
    %c0_286 = arith.constant 0 : index
    %c384_287 = arith.constant 384 : index
    %252 = vector.load %arg7[%c0_286, %c384_287] : memref<128x1920xbf16, #tpu.memory_space<vmem>>, vector<128x128xbf16>
    tpu.vector_store %arg7[%c0_286, %c384_287], %251 {strides = array<i32>} : memref<128x1920xbf16, #tpu.memory_space<vmem>>, vector<128x128xbf16>,
    %c1_288 = arith.constant 1 : index
    %c8_289 = arith.constant 8 : index
    %c0_290 = arith.constant 0 : index
    %253 = vector.load %arg6[%c1_288, %c8_289, %c0_290] : memref<20x17x128xf32, #tpu.memory_space<vmem>>, vector<16x8x128xf32>
    %254 = vector.shape_cast %253 : vector<16x8x128xf32> to vector<128x128xf32>
    %255 = arith.truncf %254 : vector<128x128xf32> to vector<128x128xbf16>
    %c0_291 = arith.constant 0 : index
    %c512_292 = arith.constant 512 : index
    %256 = vector.load %arg7[%c0_291, %c512_292] : memref<128x1920xbf16, #tpu.memory_space<vmem>>, vector<128x128xbf16>
    tpu.vector_store %arg7[%c0_291, %c512_292], %255 {strides = array<i32>} : memref<128x1920xbf16, #tpu.memory_space<vmem>>, vector<128x128xbf16>,
    %c1_293 = arith.constant 1 : index
    %c9_294 = arith.constant 9 : index
    %c0_295 = arith.constant 0 : index
    %257 = vector.load %arg6[%c1_293, %c9_294, %c0_295] : memref<20x17x128xf32, #tpu.memory_space<vmem>>, vector<16x8x128xf32>
    %258 = vector.shape_cast %257 : vector<16x8x128xf32> to vector<128x128xf32>
    %259 = arith.truncf %258 : vector<128x128xf32> to vector<128x128xbf16>
    %c0_296 = arith.constant 0 : index
    %c640_297 = arith.constant 640 : index
    %260 = vector.load %arg7[%c0_296, %c640_297] : memref<128x1920xbf16, #tpu.memory_space<vmem>>, vector<128x128xbf16>
    tpu.vector_store %arg7[%c0_296, %c640_297], %259 {strides = array<i32>} : memref<128x1920xbf16, #tpu.memory_space<vmem>>, vector<128x128xbf16>,
    %c2_298 = arith.constant 2 : index
    %c7_299 = arith.constant 7 : index
    %c0_300 = arith.constant 0 : index
    %261 = vector.load %arg6[%c2_298, %c7_299, %c0_300] : memref<20x17x128xf32, #tpu.memory_space<vmem>>, vector<16x8x128xf32>
    %262 = vector.shape_cast %261 : vector<16x8x128xf32> to vector<128x128xf32>
    %263 = arith.truncf %262 : vector<128x128xf32> to vector<128x128xbf16>
    %c0_301 = arith.constant 0 : index
    %c768_302 = arith.constant 768 : index
    %264 = vector.load %arg7[%c0_301, %c768_302] : memref<128x1920xbf16, #tpu.memory_space<vmem>>, vector<128x128xbf16>
    tpu.vector_store %arg7[%c0_301, %c768_302], %263 {strides = array<i32>} : memref<128x1920xbf16, #tpu.memory_space<vmem>>, vector<128x128xbf16>,
    %c2_303 = arith.constant 2 : index
    %c8_304 = arith.constant 8 : index
    %c0_305 = arith.constant 0 : index
    %265 = vector.load %arg6[%c2_303, %c8_304, %c0_305] : memref<20x17x128xf32, #tpu.memory_space<vmem>>, vector<16x8x128xf32>
    %266 = vector.shape_cast %265 : vector<16x8x128xf32> to vector<128x128xf32>
    %267 = arith.truncf %266 : vector<128x128xf32> to vector<128x128xbf16>
    %c0_306 = arith.constant 0 : index
    %c896_307 = arith.constant 896 : index
    %268 = vector.load %arg7[%c0_306, %c896_307] : memref<128x1920xbf16, #tpu.memory_space<vmem>>, vector<128x128xbf16>
    tpu.vector_store %arg7[%c0_306, %c896_307], %267 {strides = array<i32>} : memref<128x1920xbf16, #tpu.memory_space<vmem>>, vector<128x128xbf16>,
    %c2_308 = arith.constant 2 : index
    %c9_309 = arith.constant 9 : index
    %c0_310 = arith.constant 0 : index
    %269 = vector.load %arg6[%c2_308, %c9_309, %c0_310] : memref<20x17x128xf32, #tpu.memory_space<vmem>>, vector<16x8x128xf32>
    %270 = vector.shape_cast %269 : vector<16x8x128xf32> to vector<128x128xf32>
    %271 = arith.truncf %270 : vector<128x128xf32> to vector<128x128xbf16>
    %c0_311 = arith.constant 0 : index
    %c1024_312 = arith.constant 1024 : index
    %272 = vector.load %arg7[%c0_311, %c1024_312] : memref<128x1920xbf16, #tpu.memory_space<vmem>>, vector<128x128xbf16>
    tpu.vector_store %arg7[%c0_311, %c1024_312], %271 {strides = array<i32>} : memref<128x1920xbf16, #tpu.memory_space<vmem>>, vector<128x128xbf16>,
    %c3_313 = arith.constant 3 : index
    %c7_314 = arith.constant 7 : index
    %c0_315 = arith.constant 0 : index
    %273 = vector.load %arg6[%c3_313, %c7_314, %c0_315] : memref<20x17x128xf32, #tpu.memory_space<vmem>>, vector<16x8x128xf32>
    %274 = vector.shape_cast %273 : vector<16x8x128xf32> to vector<128x128xf32>
    %275 = arith.truncf %274 : vector<128x128xf32> to vector<128x128xbf16>
    %c0_316 = arith.constant 0 : index
    %c1152_317 = arith.constant 1152 : index
    %276 = vector.load %arg7[%c0_316, %c1152_317] : memref<128x1920xbf16, #tpu.memory_space<vmem>>, vector<128x128xbf16>
    tpu.vector_store %arg7[%c0_316, %c1152_317], %275 {strides = array<i32>} : memref<128x1920xbf16, #tpu.memory_space<vmem>>, vector<128x128xbf16>,
    %c3_318 = arith.constant 3 : index
    %c8_319 = arith.constant 8 : index
    %c0_320 = arith.constant 0 : index
    %277 = vector.load %arg6[%c3_318, %c8_319, %c0_320] : memref<20x17x128xf32, #tpu.memory_space<vmem>>, vector<16x8x128xf32>
    %278 = vector.shape_cast %277 : vector<16x8x128xf32> to vector<128x128xf32>
    %279 = arith.truncf %278 : vector<128x128xf32> to vector<128x128xbf16>
    %c0_321 = arith.constant 0 : index
    %c1280_322 = arith.constant 1280 : index
    %280 = vector.load %arg7[%c0_321, %c1280_322] : memref<128x1920xbf16, #tpu.memory_space<vmem>>, vector<128x128xbf16>
    tpu.vector_store %arg7[%c0_321, %c1280_322], %279 {strides = array<i32>} : memref<128x1920xbf16, #tpu.memory_space<vmem>>, vector<128x128xbf16>,
    %c3_323 = arith.constant 3 : index
    %c9_324 = arith.constant 9 : index
    %c0_325 = arith.constant 0 : index
    %281 = vector.load %arg6[%c3_323, %c9_324, %c0_325] : memref<20x17x128xf32, #tpu.memory_space<vmem>>, vector<16x8x128xf32>
    %282 = vector.shape_cast %281 : vector<16x8x128xf32> to vector<128x128xf32>
    %283 = arith.truncf %282 : vector<128x128xf32> to vector<128x128xbf16>
    %c0_326 = arith.constant 0 : index
    %c1408_327 = arith.constant 1408 : index
    %284 = vector.load %arg7[%c0_326, %c1408_327] : memref<128x1920xbf16, #tpu.memory_space<vmem>>, vector<128x128xbf16>
    tpu.vector_store %arg7[%c0_326, %c1408_327], %283 {strides = array<i32>} : memref<128x1920xbf16, #tpu.memory_space<vmem>>, vector<128x128xbf16>,
    %c4_328 = arith.constant 4 : index
    %c7_329 = arith.constant 7 : index
    %c0_330 = arith.constant 0 : index
    %285 = vector.load %arg6[%c4_328, %c7_329, %c0_330] : memref<20x17x128xf32, #tpu.memory_space<vmem>>, vector<16x8x128xf32>
    %286 = vector.shape_cast %285 : vector<16x8x128xf32> to vector<128x128xf32>
    %287 = arith.truncf %286 : vector<128x128xf32> to vector<128x128xbf16>
    %c0_331 = arith.constant 0 : index
    %c1536_332 = arith.constant 1536 : index
    %288 = vector.load %arg7[%c0_331, %c1536_332] : memref<128x1920xbf16, #tpu.memory_space<vmem>>, vector<128x128xbf16>
    tpu.vector_store %arg7[%c0_331, %c1536_332], %287 {strides = array<i32>} : memref<128x1920xbf16, #tpu.memory_space<vmem>>, vector<128x128xbf16>,
    %c4_333 = arith.constant 4 : index
    %c8_334 = arith.constant 8 : index
    %c0_335 = arith.constant 0 : index
    %289 = vector.load %arg6[%c4_333, %c8_334, %c0_335] : memref<20x17x128xf32, #tpu.memory_space<vmem>>, vector<16x8x128xf32>
    %290 = vector.shape_cast %289 : vector<16x8x128xf32> to vector<128x128xf32>
    %291 = arith.truncf %290 : vector<128x128xf32> to vector<128x128xbf16>
    %c0_336 = arith.constant 0 : index
    %c1664_337 = arith.constant 1664 : index
    %292 = vector.load %arg7[%c0_336, %c1664_337] : memref<128x1920xbf16, #tpu.memory_space<vmem>>, vector<128x128xbf16>
    tpu.vector_store %arg7[%c0_336, %c1664_337], %291 {strides = array<i32>} : memref<128x1920xbf16, #tpu.memory_space<vmem>>, vector<128x128xbf16>,
    %c4_338 = arith.constant 4 : index
    %c9_339 = arith.constant 9 : index
    %c0_340 = arith.constant 0 : index
    %293 = vector.load %arg6[%c4_338, %c9_339, %c0_340] : memref<20x17x128xf32, #tpu.memory_space<vmem>>, vector<16x8x128xf32>
    %294 = vector.shape_cast %293 : vector<16x8x128xf32> to vector<128x128xf32>
    %295 = arith.truncf %294 : vector<128x128xf32> to vector<128x128xbf16>
    %c0_341 = arith.constant 0 : index
    %c1792_342 = arith.constant 1792 : index
    %296 = vector.load %arg7[%c0_341, %c1792_342] : memref<128x1920xbf16, #tpu.memory_space<vmem>>, vector<128x128xbf16>
    tpu.vector_store %arg7[%c0_341, %c1792_342], %295 {strides = array<i32>} : memref<128x1920xbf16, #tpu.memory_space<vmem>>, vector<128x128xbf16>,
    %c0_343 = arith.constant 0 : index
    %c0_344 = arith.constant 0 : index
    %297 = vector.load %arg7[%c0_343, %c0_344] : memref<128x1920xbf16, #tpu.memory_space<vmem>>, vector<128x1920xbf16>
    %c3_345 = arith.constant 3 : index
    %c0_346 = arith.constant 0 : index
    %c0_347 = arith.constant 0 : index
    %298 = vector.load %arg2[%c3_345, %c0_346, %c0_347] : memref<4x1920x128xbf16, #tpu.memory_space<vmem>>, vector<1x1920x128xbf16>
    %299 = vector.shape_cast %298 : vector<1x1920x128xbf16> to vector<1920x128xbf16>
    %cst_348 = arith.constant dense<0.000000e+00> : vector<128x128xf32>
    %300 = tpu.matmul %297, %299, %cst_348 {dimension_numbers = #tpu.dot_dimension_numbers<[1], [0], [0], [1], [0, 0, 1, 1], [], []>} : vector<128x1920xbf16>, vector<1920x128xbf16>, vector<128x128xf32> -> vector<128x128xf32>
    %c3_349 = arith.constant 3 : index
    %c0_350 = arith.constant 0 : index
    %c0_351 = arith.constant 0 : index
    %301 = vector.load %arg3[%c3_349, %c0_350, %c0_351] : memref<4x1x128xf32, #tpu.memory_space<vmem>>, vector<1x1x128xf32>
    %302 = vector.shape_cast %301 : vector<1x1x128xf32> to vector<1x128xf32>
    %303 = vector.broadcast %302 : vector<1x128xf32> to vector<128x128xf32>
    %304 = arith.addf %300, %303 : vector<128x128xf32>
    %cst_352 = arith.constant 0.000000e+00 : f32
    %305 = vector.broadcast %cst_352 : f32 to vector<128x128xf32>
    %306 = arith.maximumf %304, %305 : vector<128x128xf32>
    %c0_353 = arith.constant 0 : index
    %c0_354 = arith.constant 0 : index
    %307 = vector.load %arg4[%c0_353, %c0_354] : memref<128x128xf32, #tpu.memory_space<vmem>>, vector<128x128xf32>
    %308 = arith.addf %306, %307 : vector<128x128xf32>
    %c0_355 = arith.constant 0 : index
    %c0_356 = arith.constant 0 : index
    %c0_357 = arith.constant 0 : index
    %309 = vector.load %arg5[%c0_355, %c0_356, %c0_357] : memref<1x128x128xf32, #tpu.memory_space<vmem>>, vector<1x128x128xf32>
    %310 = vector.shape_cast %309 : vector<1x128x128xf32> to vector<128x128xf32>
    %311 = vector.shape_cast %308 : vector<128x128xf32> to vector<1x128x128xf32>
    tpu.vector_store %arg5[%c0_355, %c0_356, %c0_357], %311 {strides = array<i32>} : memref<1x128x128xf32, #tpu.memory_space<vmem>>, vector<1x128x128xf32>,
    return
  }
  func.func @transform_0(%arg0: i32) -> (i32, i32, i32, i32) {
    %c0_i32 = arith.constant 0 : i32
    %c0_i32_0 = arith.constant 0 : i32
    %c0_i32_1 = arith.constant 0 : i32
    %c0_i32_2 = arith.constant 0 : i32
    return %arg0, %c0_i32, %c0_i32_0, %c0_i32_1 : i32, i32, i32, i32
  }
  func.func @transform_1(%arg0: i32) -> (i32, i32, i32) {
    %c0_i32 = arith.constant 0 : i32
    %c0_i32_0 = arith.constant 0 : i32
    %c0_i32_1 = arith.constant 0 : i32
    %c0_i32_2 = arith.constant 0 : i32
    return %c0_i32, %c0_i32_0, %c0_i32_1 : i32, i32, i32
  }
  func.func @transform_2(%arg0: i32) -> (i32, i32, i32) {
    %c0_i32 = arith.constant 0 : i32
    %c0_i32_0 = arith.constant 0 : i32
    %c0_i32_1 = arith.constant 0 : i32
    %c0_i32_2 = arith.constant 0 : i32
    return %c0_i32, %c0_i32_0, %c0_i32_1 : i32, i32, i32
  }
  func.func @transform_3(%arg0: i32) -> (i32, i32) {
    %c0_i32 = arith.constant 0 : i32
    %c0_i32_0 = arith.constant 0 : i32
    %c0_i32_1 = arith.constant 0 : i32
    return %c0_i32, %c0_i32_0 : i32, i32
  }
  func.func @transform_4(%arg0: i32) -> (i32, i32, i32) {
    %c0_i32 = arith.constant 0 : i32
    %c0_i32_0 = arith.constant 0 : i32
    %c0_i32_1 = arith.constant 0 : i32
    return %arg0, %c0_i32, %c0_i32_0 : i32, i32, i32
  }
}

</mosaic_0001>

<bundles_post_ra>
// kernel: slot_encoder_forward.1
= control target key start
LH: loop header
LB: loop body
LE: loop exit
PB: predicated region body
PF: predicated region fallthrough
CT: control target
= control target key end

     0   :  { %s23125_s15 = smov 0   ;;  %s26157_s0 = inlined_call_operand.vmem [shape: f32[2,20,10,128], index: 0, kind: input, shape index: {}]   ;;  %s26158_s1 = inlined_call_operand.vmem [shape: bf16[4,1920,128], index: 1, kind: input, shape index: {}]   ;;  %s26159_s2 = inlined_call_operand.vmem [shape: f32[4,1,128], index: 2, kind: input, shape index: {}]   ;;  %s26160_s3 = inlined_call_operand.vmem [shape: f32[128,128], index: 3, kind: input, shape index: {}]   ;;  %s26161_s4 = inlined_call_operand.vmem [shape: f32[2,128,128], index: 4, kind: output, shape index: {}]  }
   0x1 LB: > { %s16145_s16 = sadd.s32 4294967295, %s23096_s15   ;;  %p16149_p0 = scmp.ge.s32.totalorder %s23096_s15, 1  ;;  %s23096_s15 = sphi %s23125_s15, %s14_s15  }
   0x2   : > { %p162_p1 = scmp.lt.s32.totalorder %s23096_s15, 3 }
   0x4   : > { %p163_p2 = pnand %p16149_p0, %p162_p1 }
   0x6   : > { %166 = sbr.rel (%p163_p2) target bundleno = 1831 (0x727), region = 36 }
   0xb   : > { %v21949_v0 = vld [vmem:[%s26158_s1 + $0x78] sm:$0xff]   ;;  %v23098_v3 = vmov 0.0   ;;  %v21953_v5 = vld [vmem:[%s26158_s1 + $0x70] sm:$0xff]   ;;  %v21957_v9 = vld [vmem:[%s26158_s1 + $0x68] sm:$0xff]   ;;  %p188_p3 = scmp.lt.s32.totalorder %s16145_s16, 1 }
   0xc   : > { %v21950_v1 = vld [vmem:[%s26158_s1 + $0xf8] sm:$0xff]   ;;  %19955 = vmatprep.subr.bf16.mxu0 %v21949_v0  ;;  %199 = vst [vmem:[#allocation2 + $0x7] sm:$0xff] %v23098_v3  ;;  %200 = vst [vmem:[#allocation2 + $0xf] sm:$0x3] %v23098_v3  ;;  %v21954_v6 = vld [vmem:[%s26158_s1 + $0xf0] sm:$0xff]  }
   0xd   : > { %v21951_v2 = vld [vmem:[%s26158_s1 + $0x38] sm:$0xff]   ;;  %201 = vst [vmem:[#allocation2 + $0x1f] sm:$0xff] %v23098_v3  ;;  %202 = vst [vmem:[#allocation2 + $0x27] sm:$0x3] %v23098_v3  ;;  %20019 = vmatprep.subr.bf16.mxu1 %v21950_v1  ;;  %v21955_v7 = vld [vmem:[%s26158_s1 + $0x30] sm:$0xff]   ;;  %s26387_s16 = smov (!%p188_p3, %s16145_s16), 1 }
   0xe   : > { %204 = vst [vmem:[#allocation2 + $0x1b7] sm:$0xff] %v23098_v3  ;;  %205 = vst [vmem:[#allocation2 + $0x1bf] sm:$0x3] %v23098_v3  ;;  %v21952_v4 = vld [vmem:[%s26158_s1 + $0xb8] sm:$0xff]   ;;  %19956 = vmatpush3.bf16.msra.mxu0 %v21951_v2  ;;  %v21956_v8 = vld [vmem:[%s26158_s1 + $0xb0] sm:$0xff]   ;;  %s21939_s21 = smul.u32 320, %s26387_s16 }
   0xf   : > { %206 = vst [vmem:[#allocation2 + $0x1cf] sm:$0xff] %v23098_v3  ;;  %207 = vst [vmem:[#allocation2 + $0x1d7] sm:$0x3] %v23098_v3  ;;  %20020 = vmatpush3.bf16.msra.mxu1 %v21952_v4  ;;  %19957 = vmatprep.subr.bf16.mxu0 %v21953_v5  ;;  %v21958_v10 = vld [vmem:[%s26158_s1 + $0xe8] sm:$0xff]   ;;  %v21961_v13 = vld [vmem:[%s26158_s1 + $0x60] sm:$0xff]   ;;  %s18994_s10 = sshll.u32 %s26387_s16, 7 }
  0x10   : > { %209 = vst [vmem:[#allocation2 + $0x37] sm:$0x1] %v23098_v3  ;;  %210 = vst [vmem:[#allocation2 + $0x4f] sm:$0x1] %v23098_v3  ;;  %20021 = vmatprep.subr.bf16.mxu1 %v21954_v6  ;;  %v21959_v11 = vld [vmem:[%s26158_s1 + $0x28] sm:$0xff]   ;;  %v21962_v14 = vld [vmem:[%s26158_s1 + $0xe0] sm:$0xff]   ;;  %s23233_s6 = scalar_lea.vmem %s26157_s0, %s21939_s21  ;;  %s26028_s17 = scalar_lea.vmem %s26161_s4, %s18994_s10 }
  0x11   : > { %211 = vst [vmem:[#allocation2 + $0x67] sm:$0x1] %v23098_v3  ;;  %212 = vst [vmem:[#allocation2 + $0x7f] sm:$0x1] %v23098_v3  ;;  %v21960_v12 = vld [vmem:[%s26158_s1 + $0xa8] sm:$0xff]   ;;  %v21963_v15 = vld [vmem:[%s26158_s1 + $0x20] sm:$0xff]  }
  0x12   : > { %213 = vst [vmem:[#allocation2 + $0x97] sm:$0x1] %v23098_v3  ;;  %214 = vst [vmem:[#allocation2 + $0xaf] sm:$0x1] %v23098_v3  ;;  %19958 = vmatpush3.bf16.msra.mxu0 %v21955_v7  ;;  %v21964_v16 = vld [vmem:[%s26158_s1 + $0xa0] sm:$0xff]   ;;  %v21965_v17 = vld [vmem:[%s26158_s1 + $0x58] sm:$0xff]  }
  0x13   : > { %215 = vst [vmem:[#allocation2 + $0xc7] sm:$0x1] %v23098_v3  ;;  %216 = vst [vmem:[#allocation2 + $0xdf] sm:$0x1] %v23098_v3  ;;  %20022 = vmatpush3.bf16.msra.mxu1 %v21956_v8  ;;  %19959 = vmatprep.subr.bf16.mxu0 %v21957_v9  ;;  %v21966_v18 = vld [vmem:[%s26158_s1 + $0xd8] sm:$0xff]   ;;  %v21969_v21 = vld [vmem:[%s26158_s1 + $0x50] sm:$0xff]  }
  0x14   : > { %217 = vst [vmem:[#allocation2 + $0xf7] sm:$0x1] %v23098_v3  ;;  %218 = vst [vmem:[#allocation2 + $0x10f] sm:$0x1] %v23098_v3  ;;  %20023 = vmatprep.subr.bf16.mxu1 %v21958_v10  ;;  %v21967_v19 = vld [vmem:[%s26158_s1 + $0x18] sm:$0xff]   ;;  %v21970_v22 = vld [vmem:[%s26158_s1 + $0xd0] sm:$0xff]  }
  0x15   : > { %219 = vst [vmem:[#allocation2 + $0x127] sm:$0x1] %v23098_v3  ;;  %220 = vst [vmem:[#allocation2 + $0x13f] sm:$0x1] %v23098_v3  ;;  %v21968_v20 = vld [vmem:[%s26158_s1 + $0x98] sm:$0xff]   ;;  %v21971_v23 = vld [vmem:[%s26158_s1 + $0x10] sm:$0xff]  }
  0x16   : > { %221 = vst [vmem:[#allocation2 + $0x157] sm:$0x1] %v23098_v3  ;;  %222 = vst [vmem:[#allocation2 + $0x16f] sm:$0x1] %v23098_v3  ;;  %19960 = vmatpush3.bf16.msra.mxu0 %v21959_v11  ;;  %v21972_v24 = vld [vmem:[%s26158_s1 + $0x90] sm:$0xff]   ;;  %v21973_v25 = vld [vmem:[%s26158_s1 + $0x48] sm:$0xff]  }
  0x17   : > { %223 = vst [vmem:[#allocation2 + $0x187] sm:$0x1] %v23098_v3  ;;  %224 = vst [vmem:[#allocation2 + $0x19f] sm:$0x1] %v23098_v3  ;;  %20024 = vmatpush3.bf16.msra.mxu1 %v21960_v12  ;;  %19961 = vmatprep.subr.bf16.mxu0 %v21961_v13  ;;  %v21974_v26 = vld [vmem:[%s26158_s1 + $0xc8] sm:$0xff]   ;;  %v21977_v29 = vld [vmem:[%s26158_s1 + $0x40] sm:$0xff]  }
  0x18   : > { %225 = vst [vmem:[#allocation2 + $0x40] sm:$0x1] %v23098_v3  ;;  %226 = vst [vmem:[#allocation2 + $0x58] sm:$0x1] %v23098_v3  ;;  %20025 = vmatprep.subr.bf16.mxu1 %v21962_v14  ;;  %v21975_v27 = vld [vmem:[%s26158_s1 + $0x8] sm:$0xff]   ;;  %v21978_v30 = vld [vmem:[%s26158_s1 + $0xc0] sm:$0xff]  }
  0x19   : > { %227 = vst [vmem:[#allocation2 + $0x70] sm:$0x1] %v23098_v3  ;;  %228 = vst [vmem:[#allocation2 + $0x88] sm:$0x1] %v23098_v3  ;;  %v21976_v28 = vld [vmem:[%s26158_s1 + $0x88] sm:$0xff]   ;;  %v21979_v31 = vld [vmem:[%s26158_s1] sm:$0xff]  }
  0x1a   : > { %229 = vst [vmem:[#allocation2 + $0xa0] sm:$0x1] %v23098_v3  ;;  %230 = vst [vmem:[#allocation2 + $0xb8] sm:$0x1] %v23098_v3  ;;  %19962 = vmatpush3.bf16.msra.mxu0 %v21963_v15  ;;  %v21980_v32 = vld [vmem:[%s26158_s1 + $0x80] sm:$0xff]   ;;  %v242_v34 = vld [vmem:[%s23233_s6 + $0x10] sm:$0xff] }
  0x1b   : > { %231 = vst [vmem:[#allocation2 + $0xd0] sm:$0x1] %v23098_v3  ;;  %232 = vst [vmem:[#allocation2 + $0xe8] sm:$0x1] %v23098_v3  ;;  %20026 = vmatpush3.bf16.msra.mxu1 %v21964_v16  ;;  %19963 = vmatprep.subr.bf16.mxu0 %v21965_v17  ;;  %v241_v33 = vld [vmem:[%s23233_s6] sm:$0xff]  ;;  %v18996_v37 = vpack.c.bf16 %v242_v34, %v242_v34  ;;  %v338_v38 = vld [vmem:[%s23233_s6 + $0x11] sm:$0xff] }
  0x1c   : > { %233 = vst [vmem:[#allocation2 + $0x100] sm:$0x1] %v23098_v3  ;;  %234 = vst [vmem:[#allocation2 + $0x118] sm:$0x1] %v23098_v3  ;;  %20027 = vmatprep.subr.bf16.mxu1 %v21966_v18  ;;  %v337_v35 = vld [vmem:[%s23233_s6 + $0x1] sm:$0xff]  ;;  %v18995_v36 = vpack.c.bf16 %v241_v33, %v241_v33  ;;  %v19012_v40 = vpack.c.bf16 %v338_v38, %v338_v38  ;;  %v434_v42 = vld [vmem:[%s23233_s6 + $0x12] sm:$0xff] }
  0x1d   : > { %235 = vst [vmem:[#allocation2 + $0x130] sm:$0x1] %v23098_v3  ;;  %236 = vst [vmem:[#allocation2 + $0x148] sm:$0x1] %v23098_v3  ;;  %v19011_v39 = vpack.c.bf16 %v337_v35, %v337_v35  ;;  %v433_v41 = vld [vmem:[%s23233_s6 + $0x2] sm:$0xff]  ;;  %v19028_v47 = vpack.c.bf16 %v434_v42, %v434_v42  ;;  %v21985_v50 = vld [vmem:[%s26158_s1 + $0x178] sm:$0xff]  }
  0x1e   : > { %237 = vst [vmem:[#allocation2 + $0x160] sm:$0x1] %v23098_v3  ;;  %238 = vst [vmem:[#allocation2 + $0x178] sm:$0x1] %v23098_v3  ;;  %19964 = vmatpush3.bf16.msra.mxu0 %v21967_v19  ;;  %v16202_v43 = vld [vmem:[%s23233_s6 + $0x20] sm:$0xff]  ;;  %v4292_v44 = vld [vmem:[#allocation2 + $0x8] sm:$0xff]  ;;  %v19027_v46 = vpack.c.bf16 %v433_v41, %v433_v41 }
  0x1f   : > { %239 = vst [vmem:[#allocation2 + $0x190] sm:$0x1] %v23098_v3  ;;  %240 = vst [vmem:[#allocation2 + $0x1a8] sm:$0x1] %v23098_v3  ;;  %20028 = vmatpush3.bf16.msra.mxu1 %v21968_v20  ;;  %19965 = vmatprep.subr.bf16.mxu0 %v21969_v21  ;;  %v4293_v45 = vld [vmem:[#allocation2 + $0x20] sm:$0xff]  ;;  %v19044_v48 = vpack.c.bf16 %v16202_v43, %v16202_v43  ;;  %v4388_v49 = vld [vmem:[#allocation2 + $0x9] sm:$0xff]  ;;  %v19251_v54 = vpack.c.bf16 %v4292_v44, %v4292_v44 }
  0x20   : > { %20029 = vmatprep.subr.bf16.mxu1 %v21970_v22  ;;  %321 = vst [vmem:[#allocation3] sm:$0xf] %v18995_v36  ;;  %322 = vst [vmem:[#allocation3 + $0x3c] sm:$0xf] %v18996_v37  ;;  %v4389_v51 = vld [vmem:[#allocation2 + $0x21] sm:$0xff]  ;;  %v21987_v52 = vld [vmem:[%s26158_s1 + $0x1f8] sm:$0xff]   ;;  %v23255_v55 = vpack.c.bf16 %v4293_v45, %v4293_v45  ;;  %v19267_v56 = vpack.c.bf16 %v4388_v49, %v4388_v49 }
  0x21   : > { %417 = vst [vmem:[#allocation3 + $0x4] sm:$0xf] %v19011_v39  ;;  %610 = vst [vmem:[#allocation3 + $0xc] sm:$0xf] %v18996_v37  ;;  %v244_v53 = vld [vmem:[%s23233_s6 + $0x30] sm:$0xff]  ;;  %v339_v58 = vld [vmem:[%s23233_s6 + $0x21] sm:$0xff]  ;;  %v23260_v61 = vpack.c.bf16 %v4389_v51, %v4389_v51 }
  0x22   : > { %19966 = vmatpush3.bf16.msra.mxu0 %v21971_v23  ;;  %418 = vst [vmem:[#allocation3 + $0x40] sm:$0xf] %v19012_v40  ;;  %706 = vst [vmem:[#allocation3 + $0x10] sm:$0xf] %v19012_v40  ;;  %v18998_v57 = vpack.c.bf16 %v244_v53, %v244_v53  ;;  %v340_v59 = vld [vmem:[%s23233_s6 + $0x31] sm:$0xff]  ;;  %v435_v60 = vld [vmem:[%s23233_s6 + $0x22] sm:$0xff]  ;;  %v19013_v63 = vpack.c.bf16 %v339_v58, %v339_v58 }
  0x23   : > { %20030 = vmatpush3.bf16.msra.mxu1 %v21972_v24  ;;  %19967 = vmatprep.subr.bf16.mxu0 %v21973_v25  ;;  %513 = vst [vmem:[#allocation3 + $0x8] sm:$0xf] %v19027_v46  ;;  %514 = vst [vmem:[#allocation3 + $0x44] sm:$0xf] %v19028_v47  ;;  %v21986_v62 = vld [vmem:[%s26158_s1 + $0x138] sm:$0xff]   ;;  %v19014_v0 = vpack.c.bf16 %v340_v59, %v340_v59  ;;  %v19029_v2 = vpack.c.bf16 %v435_v60, %v435_v60  ;;  %v16204_v3 = vld [vmem:[%s23233_s6 + $0x40] sm:$0xff] }
  0x24   : > { %20031 = vmatprep.subr.bf16.mxu1 %v21974_v26  ;;  %611 = vst [vmem:[#allocation3 + $0x48] sm:$0xf] %v19044_v48  ;;  %323 = vst [vmem:[#allocation3 + $0x78] sm:$0xf] %v19044_v48  ;;  %v436_v1 = vld [vmem:[%s23233_s6 + $0x32] sm:$0xff]  ;;  %v19046_v7 = vpack.c.bf16 %v16204_v3, %v16204_v3  ;;  %v23099_v11 = vmov 0.0|0.0  }
  0x25   : > { %802 = vst [vmem:[#allocation3 + $0x14] sm:$0xf] %v19028_v47  ;;  %899 = vst [vmem:[#allocation3 + $0x18] sm:$0xf] %v19044_v48  ;;  %v21988_v5 = vld [vmem:[%s26158_s1 + $0x1b8] sm:$0xff]   ;;  %v19030_v6 = vpack.c.bf16 %v436_v1, %v436_v1  ;;  %v21994_v8 = vld [vmem:[%s26158_s1 + $0x170] sm:$0xff]  }
  0x26   : > { %19968 = vmatpush3.bf16.msra.mxu0 %v21975_v27  ;;  %324 = vst [vmem:[#allocation3 + $0xb4] sm:$0xf] %v18998_v57  ;;  %612 = vst [vmem:[#allocation3 + $0x84] sm:$0xf] %v18998_v57  ;;  %v21995_v17 = vld [vmem:[%s26158_s1 + $0x130] sm:$0xff]   ;;  %v341_v22 = vld [vmem:[%s23233_s6 + $0x41] sm:$0xff] }
  0x27   : > { %20032 = vmatpush3.bf16.msra.mxu1 %v21976_v28  ;;  %19969 = vmatprep.subr.bf16.mxu0 %v21977_v29  ;;  %900 = vst [vmem:[#allocation3 + $0x54] sm:$0xf] %v18998_v57  ;;  %419 = vst [vmem:[#allocation3 + $0x7c] sm:$0xf] %v19013_v63  ;;  %v21996_v18 = vld [vmem:[%s26158_s1 + $0x1f0] sm:$0xff]   ;;  %v437_v24 = vld [vmem:[%s23233_s6 + $0x42] sm:$0xff]  ;;  %v19015_v25 = vpack.c.bf16 %v341_v22, %v341_v22 }
  0x28   : > { %20033 = vmatprep.subr.bf16.mxu1 %v21978_v30  ;;  %v1685_v4 = vld [vmem:[#allocation3] sm:$0xff]  ;;  %420 = vst [vmem:[#allocation3 + $0xb8] sm:$0xf] %v19014_v0  ;;  %515 = vst [vmem:[#allocation3 + $0x80] sm:$0xf] %v19029_v2  ;;  %v21997_v19 = vld [vmem:[%s26158_s1 + $0x1b0] sm:$0xff]   ;;  %v19031_v28 = vpack.c.bf16 %v437_v24, %v437_v24 }
  0x29   : > { %v1693_v9 = vld [vmem:[#allocation3 + $0x3c] sm:$0xff]  ;;  %707 = vst [vmem:[#allocation3 + $0x4c] sm:$0xf] %v19013_v63  ;;  %803 = vst [vmem:[#allocation3 + $0x50] sm:$0xf] %v19029_v2  ;;  %v246_v20 = vld [vmem:[%s23233_s6 + $0x50] sm:$0xff] }
  0x2a   : > { %19970 = vmatpush3.bf16.msra.mxu0 %v21979_v31  ;;  %v21981_v10 = vld [vmem:[#allocation3 + $0x4] ss:$60 sps:$4 sm:$0xff]   ;;  %995 = vst [vmem:[#allocation3 + $0x1c] sm:$0xf] %v19013_v63  ;;  %996 = vst [vmem:[#allocation3 + $0x58] sm:$0xf] %v19014_v0  ;;  %v16586_v15 = vcombine.low %v1685_v4, %v1693_v9  ;;  %v19000_v21 = vpack.c.bf16 %v246_v20, %v246_v20 }
  0x2b   : > { %20034 = vmatpush3.bf16.msra.mxu1 %v21980_v32  ;;  %20083 = vmatprep.subr.bf16.mxu0 %v21985_v50  ;;  %708 = vst [vmem:[#allocation3 + $0x88] sm:$0xf] %v19014_v0  ;;  %4276 = vst [vmem:[#allocation3] sm:$0xf] %v23099_v11  ;;  %v1686_v12 = vld [vmem:[#allocation3 + $0x8] sm:$0xff]  ;;  %v342_v23 = vld [vmem:[%s23233_s6 + $0x51] sm:$0xff] }
  0x2c   : > { %20147 = vmatprep.subr.bf16.mxu1 %v21987_v52  ;;  %4277 = vst [vmem:[#allocation3 + $0x3c] sm:$0xf] %v23099_v11  ;;  %4372 = vst [vmem:[#allocation3 + $0x4] sm:$0xf] %v19251_v54  ;;  %v1694_v13 = vld [vmem:[#allocation3 + $0x44] sm:$0xff]  ;;  %3420 = vmatprep.mubr.bf16.mxu0 %v21981_v10  ;;  %v19016_v26 = vpack.c.bf16 %v342_v23, %v342_v23  ;;  %v438_v27 = vld [vmem:[%s23233_s6 + $0x52] sm:$0xff] }
  0x2d   : > { %4373 = vst [vmem:[#allocation3 + $0x40] sm:$0xf] %v23255_v55  ;;  %v21983_v14 = vld [vmem:[#allocation3 + $0xc] ss:$60 sps:$4 sm:$0xff]   ;;  %516 = vst [vmem:[#allocation3 + $0xbc] sm:$0xf] %v19030_v6  ;;  %v16588_v16 = vcombine.low %v1686_v12, %v1694_v13  ;;  %3421 = vmatmul.mubr.bf16.vlgmr.msra.gmra.mxu0 %v16586_v15  ;;  %v19032_v33 = vpack.c.bf16 %v438_v27, %v438_v27 }
  0x2e   : > { %613 = vst [vmem:[#allocation3 + $0xc0] sm:$0xf] %v19046_v7  ;;  %325 = vst [vmem:[#allocation3 + $0xf0] sm:$0xf] %v19046_v7  ;;  %3517 = vmatprep.mubr.bf16.mxu1 %v21983_v14  ;;  %20084 = vmatpush3.bf16.msra.mxu0 %v21986_v62  ;;  %v16206_v29 = vld [vmem:[%s23233_s6 + $0x60] sm:$0xff]  ;;  %v1701_v30 = vld [vmem:[#allocation3 + $0x78] sm:$0xff] }
  0x2f   : > { %804 = vst [vmem:[#allocation3 + $0x8c] sm:$0xf] %v19030_v6  ;;  %901 = vst [vmem:[#allocation3 + $0x90] sm:$0xf] %v19046_v7  ;;  %3518 = vmatmul.mubr.bf16.vlgmr.msra.gmra.mxu1 %v16588_v16  ;;  %20085 = vmatprep.subr.bf16.mxu0 %v21994_v8  ;;  %v1709_v31 = vld [vmem:[#allocation3 + $0xb4] sm:$0xff]  ;;  %v19048_v34 = vpack.c.bf16 %v16206_v29, %v16206_v29  ;;  %v22003_v38 = vld [vmem:[%s26158_s1 + $0x168] sm:$0xff]  }
  0x30   : > { %4468 = vst [vmem:[#allocation3 + $0x8] sm:$0xf] %v19267_v56  ;;  %4469 = vst [vmem:[#allocation3 + $0x44] sm:$0xf] %v23260_v61  ;;  %20148 = vmatpush3.bf16.msra.mxu1 %v21988_v5  ;;  %v21989_v32 = vld [vmem:[#allocation3 + $0x7c] ss:$60 sps:$4 sm:$0xff]   ;;  %v16601_v36 = vcombine.low %v1701_v30, %v1709_v31 }
  0x31   : > { %4565 = vst [vmem:[#allocation3 + $0xc] sm:$0xf] %v23099_v11  ;;  %20149 = vmatprep.subr.bf16.mxu1 %v21996_v18  ;;  %326 = vst [vmem:[#allocation3 + $0x12c] sm:$0xf] %v19000_v21  ;;  %3428 = vmatprep.mubr.bf16.mxu0 %v21989_v32  ;;  %v22004_v39 = vld [vmem:[%s26158_s1 + $0x128] sm:$0xff]   ;;  %v248_v42 = vld [vmem:[%s23233_s6 + $0x70] sm:$0xff] }
  0x32   : > { %614 = vst [vmem:[#allocation3 + $0xfc] sm:$0xf] %v19000_v21  ;;  %902 = vst [vmem:[#allocation3 + $0xcc] sm:$0xf] %v19000_v21  ;;  %20086 = vmatpush3.bf16.msra.mxu0 %v21995_v17  ;;  %v22005_v40 = vld [vmem:[%s26158_s1 + $0x1e8] sm:$0xff]   ;;  %v344_v44 = vld [vmem:[%s23233_s6 + $0x71] sm:$0xff]  ;;  %v19002_v45 = vpack.c.bf16 %v248_v42, %v248_v42 }
  0x33   : > { %421 = vst [vmem:[#allocation3 + $0xf4] sm:$0xf] %v19015_v25  ;;  %422 = vst [vmem:[#allocation3 + $0x130] sm:$0xf] %v19016_v26  ;;  %20087 = vmatprep.subr.bf16.mxu0 %v22003_v38  ;;  %v22006_v41 = vld [vmem:[%s26158_s1 + $0x1a8] sm:$0xff]   ;;  %v19018_v47 = vpack.c.bf16 %v344_v44, %v344_v44  ;;  %v440_v49 = vld [vmem:[%s23233_s6 + $0x72] sm:$0xff] }
  0x34   : > { %517 = vst [vmem:[#allocation3 + $0xf8] sm:$0xf] %v19031_v28  ;;  %709 = vst [vmem:[#allocation3 + $0xc4] sm:$0xf] %v19015_v25  ;;  %v21993_v37 = vld [vmem:[#allocation3 + $0x80] ss:$60 sps:$4 sm:$0xff]   ;;  %20150 = vmatpush3.bf16.msra.mxu1 %v21997_v19  ;;  %v19034_v56 = vpack.c.bf16 %v440_v49, %v440_v49 }
  0x35   : > { %v21991_v35 = vld [vmem:[#allocation3 + $0x84] ss:$60 sps:$4 sm:$0xff]   ;;  %805 = vst [vmem:[#allocation3 + $0xc8] sm:$0xf] %v19031_v28  ;;  %997 = vst [vmem:[#allocation3 + $0x94] sm:$0xf] %v19015_v25  ;;  %3429 = vmatmul.mubr.bf16.gmra.mxu0 %v16601_v36  ;;  %20151 = vmatprep.subr.bf16.mxu1 %v22005_v40 }
  0x36   : > { %998 = vst [vmem:[#allocation3 + $0xd0] sm:$0xf] %v19016_v26  ;;  %710 = vst [vmem:[#allocation3 + $0x100] sm:$0xf] %v19016_v26  ;;  %3525 = vmatprep.mubr.bf16.mxu1 %v21991_v35  ;;  %20088 = vmatpush3.bf16.msra.mxu0 %v22004_v39  ;;  %v343_v43 = vld [vmem:[%s23233_s6 + $0x61] sm:$0xff]  ;;  %v250_v2 = vld [vmem:[%s23233_s6 + $0x90] sm:$0xff] }
  0x37   : > { %518 = vst [vmem:[#allocation3 + $0x134] sm:$0xf] %v19032_v33  ;;  %615 = vst [vmem:[#allocation3 + $0x138] sm:$0xf] %v19048_v34  ;;  %3526 = vmatmul.mubr.bf16.gmra.mxu1 %v21993_v37  ;;  %v19017_v46 = vpack.c.bf16 %v343_v43, %v343_v43  ;;  %v439_v48 = vld [vmem:[%s23233_s6 + $0x62] sm:$0xff]  ;;  %v19004_v4 = vpack.c.bf16 %v250_v2, %v250_v2  ;;  %v346_v5 = vld [vmem:[%s23233_s6 + $0x91] sm:$0xff] }
  0x38   : > { %327 = vst [vmem:[#allocation3 + $0x168] sm:$0xf] %v19048_v34  ;;  %806 = vst [vmem:[#allocation3 + $0x104] sm:$0xf] %v19032_v33  ;;  %20152 = vmatpush3.bf16.msra.mxu1 %v22006_v41  ;;  %v16208_v50 = vld [vmem:[%s23233_s6 + $0x80] sm:$0xff]  ;;  %v19033_v54 = vpack.c.bf16 %v439_v48, %v439_v48  ;;  %v442_v8 = vld [vmem:[%s23233_s6 + $0x92] sm:$0xff]  ;;  %v19020_v12 = vpack.c.bf16 %v346_v5, %v346_v5 }
  0x39   : > { %903 = vst [vmem:[#allocation3 + $0x108] sm:$0xf] %v19048_v34  ;;  %v19050_v57 = vpack.c.bf16 %v16208_v50, %v16208_v50  ;;  %328 = vst [vmem:[#allocation3 + $0x1a4] sm:$0xf] %v19002_v45  ;;  %v22012_v62 = vld [vmem:[%s26158_s1 + $0x160] sm:$0xff]   ;;  %v19036_v14 = vpack.c.bf16 %v442_v8, %v442_v8  ;;  %v22021_v20 = vld [vmem:[%s26158_s1 + $0x158] sm:$0xff]  }
  0x3a   : > { %v1717_v51 = vld [vmem:[#allocation3 + $0xf0] sm:$0xff]  ;;  %423 = vst [vmem:[#allocation3 + $0x16c] sm:$0xf] %v19017_v46  ;;  %424 = vst [vmem:[#allocation3 + $0x1a8] sm:$0xf] %v19018_v47  ;;  %v22013_v63 = vld [vmem:[%s26158_s1 + $0x120] sm:$0xff]   ;;  %20089 = vmatprep.subr.bf16.mxu0 %v22012_v62 }
  0x3b   : > { %v1725_v52 = vld [vmem:[#allocation3 + $0x12c] sm:$0xff]  ;;  %616 = vst [vmem:[#allocation3 + $0x174] sm:$0xf] %v19002_v45  ;;  %711 = vst [vmem:[#allocation3 + $0x13c] sm:$0xf] %v19017_v46  ;;  %v22014_v0 = vld [vmem:[%s26158_s1 + $0x1e0] sm:$0xff]   ;;  %20090 = vmatpush3.bf16.msra.mxu0 %v22013_v63 }
  0x3c   : > { %v21998_v53 = vld [vmem:[#allocation3 + $0xf4] ss:$60 sps:$4 sm:$0xff]   ;;  %v16616_v59 = vcombine.low %v1717_v51, %v1725_v52  ;;  %904 = vst [vmem:[#allocation3 + $0x144] sm:$0xf] %v19002_v45  ;;  %999 = vst [vmem:[#allocation3 + $0x10c] sm:$0xf] %v19017_v46  ;;  %20153 = vmatprep.subr.bf16.mxu1 %v22014_v0  ;;  %20091 = vmatprep.subr.bf16.mxu0 %v22021_v20 }
  0x3d   : > { %1000 = vst [vmem:[#allocation3 + $0x148] sm:$0xf] %v19018_v47  ;;  %712 = vst [vmem:[#allocation3 + $0x178] sm:$0xf] %v19018_v47  ;;  %3436 = vmatprep.mubr.bf16.mxu0 %v21998_v53  ;;  %v22015_v1 = vld [vmem:[%s26158_s1 + $0x1a0] sm:$0xff]   ;;  %v22022_v21 = vld [vmem:[%s26158_s1 + $0x118] sm:$0xff]  }
  0x3e   : > { %v22000_v58 = vld [vmem:[#allocation3 + $0xfc] ss:$60 sps:$4 sm:$0xff]   ;;  %519 = vst [vmem:[#allocation3 + $0x170] sm:$0xf] %v19033_v54  ;;  %520 = vst [vmem:[#allocation3 + $0x1ac] sm:$0xf] %v19034_v56  ;;  %3437 = vmatmul.mubr.bf16.gmra.mxu0 %v16616_v59  ;;  %20154 = vmatpush3.bf16.msra.mxu1 %v22015_v1 }
  0x3f   : > { %v22002_v60 = vld [vmem:[#allocation3 + $0xf8] ss:$60 sps:$4 sm:$0xff]   ;;  %617 = vst [vmem:[#allocation3 + $0x1b0] sm:$0xf] %v19050_v57  ;;  %329 = vst [vmem:[#allocation3 + $0x1e0] sm:$0xf] %v19050_v57  ;;  %3533 = vmatprep.mubr.bf16.mxu1 %v22000_v58  ;;  %20092 = vmatpush3.bf16.msra.mxu0 %v22022_v21 }
  0x40   : > { %807 = vst [vmem:[#allocation3 + $0x140] sm:$0xf] %v19033_v54  ;;  %808 = vst [vmem:[#allocation3 + $0x17c] sm:$0xf] %v19034_v56  ;;  %3534 = vmatmul.mubr.bf16.gmra.mxu1 %v22002_v60  ;;  %v345_v3 = vld [vmem:[%s23233_s6 + $0x81] sm:$0xff]  ;;  %v22023_v22 = vld [vmem:[%s26158_s1 + $0x1d8] sm:$0xff]  }
  0x41   : > { %905 = vst [vmem:[#allocation3 + $0x180] sm:$0xf] %v19050_v57  ;;  %v19019_v6 = vpack.c.bf16 %v345_v3, %v345_v3  ;;  %v441_v7 = vld [vmem:[%s23233_s6 + $0x82] sm:$0xff]  ;;  %330 = vst [vmem:[#allocation3 + $0x21c] sm:$0xf] %v19004_v4  ;;  %v22024_v23 = vld [vmem:[%s26158_s1 + $0x198] sm:$0xff]   ;;  %20155 = vmatprep.subr.bf16.mxu1 %v22023_v22 }
  0x42   : > { %v1733_v9 = vld [vmem:[#allocation3 + $0x168] sm:$0xff]  ;;  %v19035_v13 = vpack.c.bf16 %v441_v7, %v441_v7  ;;  %618 = vst [vmem:[#allocation3 + $0x1ec] sm:$0xf] %v19004_v4  ;;  %906 = vst [vmem:[#allocation3 + $0x1bc] sm:$0xf] %v19004_v4  ;;  %v16210_v18 = vld [vmem:[%s23233_s6 + $0xa0] sm:$0xff]  ;;  %20156 = vmatpush3.bf16.msra.mxu1 %v22024_v23 }
  0x43   : > { %v1741_v10 = vld [vmem:[#allocation3 + $0x1a4] sm:$0xff]  ;;  %425 = vst [vmem:[#allocation3 + $0x1e4] sm:$0xf] %v19019_v6  ;;  %713 = vst [vmem:[#allocation3 + $0x1b4] sm:$0xf] %v19019_v6  ;;  %v19052_v19 = vpack.c.bf16 %v16210_v18, %v16210_v18  ;;  %v252_v24 = vld [vmem:[%s23233_s6 + $0xb0] sm:$0xff] }
  0x44   : > { %v22007_v11 = vld [vmem:[#allocation3 + $0x16c] ss:$60 sps:$4 sm:$0xff]   ;;  %v16631_v16 = vcombine.low %v1733_v9, %v1741_v10  ;;  %1001 = vst [vmem:[#allocation3 + $0x184] sm:$0xf] %v19019_v6  ;;  %426 = vst [vmem:[#allocation3 + $0x220] sm:$0xf] %v19020_v12  ;;  %v19006_v25 = vpack.c.bf16 %v252_v24, %v252_v24 }
  0x45   : > { %3444 = vmatprep.mubr.bf16.mxu0 %v22007_v11  ;;  %v22011_v17 = vld [vmem:[#allocation3 + $0x170] ss:$60 sps:$4 sm:$0xff]   ;;  %521 = vst [vmem:[#allocation3 + $0x1e8] sm:$0xf] %v19035_v13  ;;  %522 = vst [vmem:[#allocation3 + $0x224] sm:$0xf] %v19036_v14 }
  0x46   : > { %v22009_v15 = vld [vmem:[#allocation3 + $0x174] ss:$60 sps:$4 sm:$0xff]   ;;  %809 = vst [vmem:[#allocation3 + $0x1b8] sm:$0xf] %v19035_v13  ;;  %1002 = vst [vmem:[#allocation3 + $0x1c0] sm:$0xf] %v19020_v12  ;;  %3445 = vmatmul.mubr.bf16.gmra.mxu0 %v16631_v16 }
  0x47   : > { %714 = vst [vmem:[#allocation3 + $0x1f0] sm:$0xf] %v19020_v12  ;;  %810 = vst [vmem:[#allocation3 + $0x1f4] sm:$0xf] %v19036_v14  ;;  %3541 = vmatprep.mubr.bf16.mxu1 %v22009_v15  ;;  %v347_v26 = vld [vmem:[%s23233_s6 + $0xa1] sm:$0xff]  ;;  %v348_v27 = vld [vmem:[%s23233_s6 + $0xb1] sm:$0xff] }
  0x48   : > { %3542 = vmatmul.mubr.bf16.gmra.mxu1 %v22011_v17  ;;  %619 = vst [vmem:[#allocation3 + $0x228] sm:$0xf] %v19052_v19  ;;  %331 = vst [vmem:[#allocation3 + $0x258] sm:$0xf] %v19052_v19  ;;  %v443_v28 = vld [vmem:[%s23233_s6 + $0xa2] sm:$0xff]  ;;  %v19021_v30 = vpack.c.bf16 %v347_v26, %v347_v26  ;;  %v19022_v31 = vpack.c.bf16 %v348_v27, %v348_v27  ;;  %v444_v32 = vld [vmem:[%s23233_s6 + $0xb2] sm:$0xff] }
  0x49   : > { %907 = vst [vmem:[#allocation3 + $0x1f8] sm:$0xf] %v19052_v19  ;;  %v19037_v33 = vpack.c.bf16 %v443_v28, %v443_v28  ;;  %v16212_v34 = vld [vmem:[%s23233_s6 + $0xc0] sm:$0xff]  ;;  %332 = vst [vmem:[#allocation3 + $0x294] sm:$0xf] %v19006_v25  ;;  %v19038_v37 = vpack.c.bf16 %v444_v32, %v444_v32  ;;  %v22030_v40 = vld [vmem:[%s26158_s1 + $0x150] sm:$0xff]  }
  0x4a   : > { %v1749_v29 = vld [vmem:[#allocation3 + $0x1e0] sm:$0xff]  ;;  %v19054_v38 = vpack.c.bf16 %v16212_v34, %v16212_v34  ;;  %620 = vst [vmem:[#allocation3 + $0x264] sm:$0xf] %v19006_v25  ;;  %908 = vst [vmem:[#allocation3 + $0x234] sm:$0xf] %v19006_v25  ;;  %v22031_v41 = vld [vmem:[%s26158_s1 + $0x110] sm:$0xff]   ;;  %20093 = vmatprep.subr.bf16.mxu0 %v22030_v40 }
  0x4b   : > { %v1757_v35 = vld [vmem:[#allocation3 + $0x21c] sm:$0xff]  ;;  %427 = vst [vmem:[#allocation3 + $0x25c] sm:$0xf] %v19021_v30  ;;  %428 = vst [vmem:[#allocation3 + $0x298] sm:$0xf] %v19022_v31  ;;  %20094 = vmatpush3.bf16.msra.mxu0 %v22031_v41  ;;  %v22032_v44 = vld [vmem:[%s26158_s1 + $0x1d0] sm:$0xff]  }
  0x4c   : > { %v22016_v36 = vld [vmem:[#allocation3 + $0x1e4] ss:$60 sps:$4 sm:$0xff]   ;;  %v16646_v39 = vcombine.low %v1749_v29, %v1757_v35  ;;  %523 = vst [vmem:[#allocation3 + $0x260] sm:$0xf] %v19037_v33  ;;  %715 = vst [vmem:[#allocation3 + $0x22c] sm:$0xf] %v19021_v30  ;;  %20157 = vmatprep.subr.bf16.mxu1 %v22032_v44 }
  0x4d   : > { %811 = vst [vmem:[#allocation3 + $0x230] sm:$0xf] %v19037_v33  ;;  %1003 = vst [vmem:[#allocation3 + $0x1fc] sm:$0xf] %v19021_v30  ;;  %3452 = vmatprep.mubr.bf16.mxu0 %v22016_v36  ;;  %v22020_v43 = vld [vmem:[#allocation3 + $0x1e8] ss:$60 sps:$4 sm:$0xff]  }
  0x4e   : > { %1004 = vst [vmem:[#allocation3 + $0x238] sm:$0xf] %v19022_v31  ;;  %716 = vst [vmem:[#allocation3 + $0x268] sm:$0xf] %v19022_v31  ;;  %3453 = vmatmul.mubr.bf16.gmra.mxu0 %v16646_v39  ;;  %v22033_v45 = vld [vmem:[%s26158_s1 + $0x190] sm:$0xff]   ;;  %v349_v47 = vld [vmem:[%s23233_s6 + $0xc1] sm:$0xff] }
  0x4f   : > { %524 = vst [vmem:[#allocation3 + $0x29c] sm:$0xf] %v19038_v37  ;;  %621 = vst [vmem:[#allocation3 + $0x2a0] sm:$0xf] %v19054_v38  ;;  %v22018_v42 = vld [vmem:[#allocation3 + $0x1ec] ss:$60 sps:$4 sm:$0xff]   ;;  %20158 = vmatpush3.bf16.msra.mxu1 %v22033_v45  ;;  %v19023_v50 = vpack.c.bf16 %v349_v47, %v349_v47 }
  0x50   : > { %333 = vst [vmem:[#allocation3 + $0x2d0] sm:$0xf] %v19054_v38  ;;  %812 = vst [vmem:[#allocation3 + $0x26c] sm:$0xf] %v19038_v37  ;;  %3549 = vmatprep.mubr.bf16.mxu1 %v22018_v42  ;;  %v254_v46 = vld [vmem:[%s23233_s6 + $0xd0] sm:$0xff]  ;;  %v445_v52 = vld [vmem:[%s23233_s6 + $0xc2] sm:$0xff] }
  0x51   : > { %909 = vst [vmem:[#allocation3 + $0x270] sm:$0xf] %v19054_v38  ;;  %3550 = vmatmul.mubr.bf16.gmra.mxu1 %v22020_v43  ;;  %v350_v48 = vld [vmem:[%s23233_s6 + $0xd1] sm:$0xff]  ;;  %v19008_v49 = vpack.c.bf16 %v254_v46, %v254_v46  ;;  %v16214_v54 = vld [vmem:[%s23233_s6 + $0xe0] sm:$0xff]  ;;  %v19039_v59 = vpack.c.bf16 %v445_v52, %v445_v52  ;;  %429 = vst [vmem:[#allocation3 + $0x2d4] sm:$0xf] %v19023_v50 }
  0x52   : > { %v19024_v51 = vpack.c.bf16 %v350_v48, %v350_v48  ;;  %v446_v53 = vld [vmem:[%s23233_s6 + $0xd2] sm:$0xff]  ;;  %v19056_v62 = vpack.c.bf16 %v16214_v54, %v16214_v54  ;;  %717 = vst [vmem:[#allocation3 + $0x2a4] sm:$0xf] %v19023_v50  ;;  %1005 = vst [vmem:[#allocation3 + $0x274] sm:$0xf] %v19023_v50  ;;  %v22039_v2 = vld [vmem:[%s26158_s1 + $0x148] sm:$0xff]  }
  0x53   : > { %v1765_v56 = vld [vmem:[#allocation3 + $0x258] sm:$0xff]  ;;  %v19040_v60 = vpack.c.bf16 %v446_v53, %v446_v53  ;;  %334 = vst [vmem:[#allocation3 + $0x30c] sm:$0xf] %v19008_v49  ;;  %622 = vst [vmem:[#allocation3 + $0x2dc] sm:$0xf] %v19008_v49  ;;  %v22040_v3 = vld [vmem:[%s26158_s1 + $0x108] sm:$0xff]   ;;  %20095 = vmatprep.subr.bf16.mxu0 %v22039_v2 }
  0x54   : > { %v1773_v57 = vld [vmem:[#allocation3 + $0x294] sm:$0xff]  ;;  %430 = vst [vmem:[#allocation3 + $0x310] sm:$0xf] %v19024_v51  ;;  %910 = vst [vmem:[#allocation3 + $0x2ac] sm:$0xf] %v19008_v49  ;;  %v22041_v4 = vld [vmem:[%s26158_s1 + $0x1c8] sm:$0xff]   ;;  %20096 = vmatpush3.bf16.msra.mxu0 %v22040_v3 }
  0x55   : > { %v22025_v58 = vld [vmem:[#allocation3 + $0x25c] ss:$60 sps:$4 sm:$0xff]   ;;  %v16661_v0 = vcombine.low %v1765_v56, %v1773_v57  ;;  %1006 = vst [vmem:[#allocation3 + $0x2b0] sm:$0xf] %v19024_v51  ;;  %718 = vst [vmem:[#allocation3 + $0x2e0] sm:$0xf] %v19024_v51  ;;  %20159 = vmatprep.subr.bf16.mxu1 %v22041_v4 }
  0x56   : > { %v22027_v63 = vld [vmem:[#allocation3 + $0x264] ss:$60 sps:$4 sm:$0xff]   ;;  %3460 = vmatprep.mubr.bf16.mxu0 %v22025_v58  ;;  %525 = vst [vmem:[#allocation3 + $0x2d8] sm:$0xf] %v19039_v59  ;;  %526 = vst [vmem:[#allocation3 + $0x314] sm:$0xf] %v19040_v60 }
  0x57   : > { %v22029_v1 = vld [vmem:[#allocation3 + $0x260] ss:$60 sps:$4 sm:$0xff]   ;;  %623 = vst [vmem:[#allocation3 + $0x318] sm:$0xf] %v19056_v62  ;;  %335 = vst [vmem:[#allocation3 + $0x348] sm:$0xf] %v19056_v62  ;;  %3557 = vmatprep.mubr.bf16.mxu1 %v22027_v63  ;;  %3461 = vmatmul.mubr.bf16.gmra.mxu0 %v16661_v0 }
  0x58   : > { %813 = vst [vmem:[#allocation3 + $0x2a8] sm:$0xf] %v19039_v59  ;;  %814 = vst [vmem:[#allocation3 + $0x2e4] sm:$0xf] %v19040_v60  ;;  %v22042_v5 = vld [vmem:[%s26158_s1 + $0x188] sm:$0xff]   ;;  %v256_v6 = vld [vmem:[%s23233_s6 + $0xf0] sm:$0xff] }
  0x59   : > { %911 = vst [vmem:[#allocation3 + $0x2e8] sm:$0xf] %v19056_v62  ;;  %3558 = vmatmul.mubr.bf16.gmra.mxu1 %v22029_v1  ;;  %v351_v7 = vld [vmem:[%s23233_s6 + $0xe1] sm:$0xff]  ;;  %v19010_v8 = vpack.c.bf16 %v256_v6, %v256_v6  ;;  %v352_v9 = vld [vmem:[%s23233_s6 + $0xf1] sm:$0xff]  ;;  %4661 = vst [vmem:[#allocation3 + $0x10] sm:$0xf] %v23255_v55 }
  0x5a   : > { %v19025_v10 = vpack.c.bf16 %v351_v7, %v351_v7  ;;  %v447_v11 = vld [vmem:[%s23233_s6 + $0xe2] sm:$0xff]  ;;  %v448_v12 = vld [vmem:[%s23233_s6 + $0xf2] sm:$0xff]  ;;  %20160 = vmatpush3.bf16.msra.mxu1 %v22042_v5  ;;  %v19026_v16 = vpack.c.bf16 %v352_v9, %v352_v9 }
  0x5b   : > { %v1781_v13 = vld [vmem:[#allocation3 + $0x2d0] sm:$0xff]  ;;  %v19041_v17 = vpack.c.bf16 %v447_v11, %v447_v11  ;;  %v19042_v18 = vpack.c.bf16 %v448_v12, %v448_v12  ;;  %336 = vst [vmem:[#allocation3 + $0x384] sm:$0xf] %v19010_v8  ;;  %624 = vst [vmem:[#allocation3 + $0x354] sm:$0xf] %v19010_v8  ;;  %v16216_v22 = vld [vmem:[%s23233_s6 + $0x100] sm:$0xff] }
  0x5c   : > { %v1789_v14 = vld [vmem:[#allocation3 + $0x30c] sm:$0xff]  ;;  %431 = vst [vmem:[#allocation3 + $0x34c] sm:$0xf] %v19025_v10  ;;  %719 = vst [vmem:[#allocation3 + $0x31c] sm:$0xf] %v19025_v10  ;;  %v19058_v23 = vpack.c.bf16 %v16216_v22, %v16216_v22  ;;  %v22048_v24 = vld [vmem:[%s26158_s1 + $0x140] sm:$0xff]  }
  0x5d   : > { %v22034_v15 = vld [vmem:[#allocation3 + $0x2d4] ss:$60 sps:$4 sm:$0xff]   ;;  %v16676_v20 = vcombine.low %v1781_v13, %v1789_v14  ;;  %912 = vst [vmem:[#allocation3 + $0x324] sm:$0xf] %v19010_v8  ;;  %1007 = vst [vmem:[#allocation3 + $0x2ec] sm:$0xf] %v19025_v10  ;;  %20097 = vmatprep.subr.bf16.mxu0 %v22048_v24 }
  0x5e   : > { %v22036_v19 = vld [vmem:[#allocation3 + $0x2dc] ss:$60 sps:$4 sm:$0xff]   ;;  %3468 = vmatprep.mubr.bf16.mxu0 %v22034_v15  ;;  %432 = vst [vmem:[#allocation3 + $0x388] sm:$0xf] %v19026_v16  ;;  %527 = vst [vmem:[#allocation3 + $0x350] sm:$0xf] %v19041_v17 }
  0x5f   : > { %v22038_v21 = vld [vmem:[#allocation3 + $0x2d8] ss:$60 sps:$4 sm:$0xff]   ;;  %528 = vst [vmem:[#allocation3 + $0x38c] sm:$0xf] %v19042_v18  ;;  %815 = vst [vmem:[#allocation3 + $0x320] sm:$0xf] %v19041_v17  ;;  %3565 = vmatprep.mubr.bf16.mxu1 %v22036_v19  ;;  %3469 = vmatmul.mubr.bf16.gmra.mxu0 %v16676_v20 }
  0x60   : > { %1008 = vst [vmem:[#allocation3 + $0x328] sm:$0xf] %v19026_v16  ;;  %720 = vst [vmem:[#allocation3 + $0x358] sm:$0xf] %v19026_v16  ;;  %v22049_v25 = vld [vmem:[%s26158_s1 + $0x100] sm:$0xff]   ;;  %v22057_v35 = vld [vmem:[%s26158_s1 + $0x278] sm:$0xff]  }
  0x61   : > { %816 = vst [vmem:[#allocation3 + $0x35c] sm:$0xf] %v19042_v18  ;;  %625 = vst [vmem:[#allocation3 + $0x390] sm:$0xf] %v19058_v23  ;;  %v22050_v26 = vld [vmem:[%s26158_s1 + $0x1c0] sm:$0xff]   ;;  %3566 = vmatmul.mubr.bf16.gmra.mxu1 %v22038_v21  ;;  %20098 = vmatpush3.bf16.msra.mxu0 %v22049_v25  ;;  %v1695_v38 = vld [vmem:[#allocation3 + $0x4c] sm:$0xff] }
  0x62   : > { %913 = vst [vmem:[#allocation3 + $0x360] sm:$0xf] %v19058_v23  ;;  %v22051_v27 = vld [vmem:[%s26158_s1 + $0x180] sm:$0xff]   ;;  %20161 = vmatprep.subr.bf16.mxu1 %v22050_v26  ;;  %v22052_v28 = vld [vmem:[#allocation3 + $0x14] ss:$60 sps:$4 sm:$0xff]   ;;  %20211 = vmatprep.subr.bf16.mxu0 %v22057_v35  ;;  %v22059_v55 = vld [vmem:[%s26158_s1 + $0x2f8] sm:$0xff]  }
  0x63   : > { %v1797_v29 = vld [vmem:[#allocation3 + $0x348] sm:$0xff]  ;;  %20162 = vmatpush3.bf16.msra.mxu1 %v22051_v27  ;;  %4757 = vst [vmem:[#allocation3 + $0x14] sm:$0xf] %v23260_v61  ;;  %v22054_v33 = vld [vmem:[#allocation3 + $0x1c] ss:$60 sps:$4 sm:$0xff]   ;;  %v22066_v43 = vld [vmem:[%s26158_s1 + $0x270] sm:$0xff]  }
  0x64   : > { %20275 = vmatprep.subr.bf16.mxu1 %v22059_v55  ;;  %v22056_v39 = vld [vmem:[#allocation3 + $0x18] ss:$60 sps:$4 sm:$0xff]   ;;  %v22061_v41 = vld [vmem:[#allocation3 + $0x8c] ss:$60 sps:$4 sm:$0xff]   ;;  %v22070_v50 = vld [vmem:[#allocation3 + $0x104] ss:$60 sps:$4 sm:$0xff]  }
  0x65   : > { %v1805_v30 = vld [vmem:[#allocation3 + $0x384] sm:$0xff]  ;;  %v22058_v40 = vld [vmem:[%s26158_s1 + $0x238] sm:$0xff]   ;;  %v22063_v46 = vld [vmem:[#allocation3 + $0x94] ss:$60 sps:$4 sm:$0xff]  }
  0x66   : > { %v22043_v31 = vld [vmem:[#allocation3 + $0x34c] ss:$60 sps:$4 sm:$0xff]   ;;  %v16691_v32 = vcombine.low %v1797_v29, %v1805_v30  ;;  %v22060_v42 = vld [vmem:[%s26158_s1 + $0x2b8] sm:$0xff]   ;;  %v22067_v47 = vld [vmem:[%s26158_s1 + $0x230] sm:$0xff]  }
  0x67   : > { %3476 = vmatprep.mubr.bf16.mxu0 %v22043_v31  ;;  %v22047_v37 = vld [vmem:[#allocation3 + $0x350] ss:$60 sps:$4 sm:$0xff]   ;;  %v1711_v45 = vld [vmem:[#allocation3 + $0xc4] sm:$0xff]  ;;  %v1727_v60 = vld [vmem:[#allocation3 + $0x13c] sm:$0xff] }
  0x68   : > { %v22045_v36 = vld [vmem:[#allocation3 + $0x354] ss:$60 sps:$4 sm:$0xff]   ;;  %3477 = vmatmul.mubr.bf16.gmra.mxu0 %v16691_v32  ;;  %v1703_v44 = vld [vmem:[#allocation3 + $0x88] sm:$0xff]  ;;  %v1719_v57 = vld [vmem:[#allocation3 + $0x100] sm:$0xff] }
  0x69   : > { %3614 = vmatprep.mubr.bf16.mxu0 %v22052_v28  ;;  %3573 = vmatprep.mubr.bf16.mxu1 %v22045_v36  ;;  %v22068_v48 = vld [vmem:[%s26158_s1 + $0x2f0] sm:$0xff]   ;;  %v16605_v51 = vcombine.low %v1703_v44, %v1711_v45  ;;  %v22075_v52 = vld [vmem:[%s26158_s1 + $0x268] sm:$0xff]   ;;  %v22079_v62 = vld [vmem:[#allocation3 + $0x17c] ss:$60 sps:$4 sm:$0xff]   ;;  %v16620_v0 = vcombine.low %v1719_v57, %v1727_v60 }
  0x6a   : > { %v1687_v34 = vld [vmem:[#allocation3 + $0x10] sm:$0xff]  ;;  %3574 = vmatmul.mubr.bf16.gmra.mxu1 %v22047_v37  ;;  %v22076_v53 = vld [vmem:[%s26158_s1 + $0x228] sm:$0xff]   ;;  %v22084_v63 = vld [vmem:[%s26158_s1 + $0x260] sm:$0xff]  }
  0x6b   : > { %3711 = vmatprep.mubr.bf16.mxu1 %v22054_v33  ;;  %v16590_v61 = vcombine.low %v1687_v34, %v1695_v38  ;;  %v22069_v49 = vld [vmem:[%s26158_s1 + $0x2b0] sm:$0xff]   ;;  %v22077_v54 = vld [vmem:[%s26158_s1 + $0x2e8] sm:$0xff]   ;;  %v22085_v1 = vld [vmem:[%s26158_s1 + $0x220] sm:$0xff]  }
  0x6c   : > { %v22065_v56 = vld [vmem:[#allocation3 + $0x90] ss:$60 sps:$4 sm:$0xff]   ;;  %v22086_v2 = vld [vmem:[%s26158_s1 + $0x2e0] sm:$0xff]   ;;  %v1735_v5 = vld [vmem:[#allocation3 + $0x178] sm:$0xff] }
  0x6d   : > { %v22072_v58 = vld [vmem:[#allocation3 + $0x10c] ss:$60 sps:$4 sm:$0xff]   ;;  %v22087_v4 = vld [vmem:[%s26158_s1 + $0x2a0] sm:$0xff]   ;;  %v1743_v6 = vld [vmem:[#allocation3 + $0x1b4] sm:$0xff] }
  0x6e   : > { %v22078_v59 = vld [vmem:[%s26158_s1 + $0x2a8] sm:$0xff]   ;;  %v22081_v7 = vld [vmem:[#allocation3 + $0x184] ss:$60 sps:$4 sm:$0xff]   ;;  %v22093_v8 = vld [vmem:[%s26158_s1 + $0x258] sm:$0xff]   ;;  %v16635_v11 = vcombine.low %v1735_v5, %v1743_v6 }
  0x6f   : > { %v22074_v3 = vld [vmem:[#allocation3 + $0x108] ss:$60 sps:$4 sm:$0xff]   ;;  %v22094_v9 = vld [vmem:[%s26158_s1 + $0x218] sm:$0xff]   ;;  %v22088_v13 = vld [vmem:[#allocation3 + $0x1f4] ss:$60 sps:$4 sm:$0xff]  }
  0x70   : > { %3615 = vmatmul.mubr.bf16.vlgmr.msra.gmra.mxu0 %v16590_v61  ;;  %v22095_v10 = vld [vmem:[%s26158_s1 + $0x2d8] sm:$0xff]   ;;  %v1751_v16 = vld [vmem:[#allocation3 + $0x1f0] sm:$0xff]  ;;  %v22097_v24 = vld [vmem:[#allocation3 + $0x26c] ss:$60 sps:$4 sm:$0xff]  }
  0x71   : > { %20212 = vmatpush3.bf16.msra.mxu0 %v22058_v40  ;;  %3622 = vmatprep.mubr.bf16.mxu0 %v22061_v41  ;;  %v22096_v12 = vld [vmem:[%s26158_s1 + $0x298] sm:$0xff]   ;;  %v1759_v17 = vld [vmem:[#allocation3 + $0x22c] sm:$0xff]  ;;  %v1775_v28 = vld [vmem:[#allocation3 + $0x2a4] sm:$0xff] }
  0x72   : > { %20213 = vmatprep.subr.bf16.mxu0 %v22066_v43  ;;  %3712 = vmatmul.mubr.bf16.vlgmr.msra.gmra.mxu1 %v22056_v39  ;;  %v22083_v14 = vld [vmem:[#allocation3 + $0x180] ss:$60 sps:$4 sm:$0xff]   ;;  %v22102_v18 = vld [vmem:[%s26158_s1 + $0x250] sm:$0xff]   ;;  %v16650_v22 = vcombine.low %v1751_v16, %v1759_v17  ;;  %v22111_v26 = vld [vmem:[%s26158_s1 + $0x248] sm:$0xff]  }
  0x73   : > { %20276 = vmatpush3.bf16.msra.mxu1 %v22060_v42  ;;  %3719 = vmatprep.mubr.bf16.mxu1 %v22063_v46  ;;  %v22090_v15 = vld [vmem:[#allocation3 + $0x1fc] ss:$60 sps:$4 sm:$0xff]   ;;  %v22103_v19 = vld [vmem:[%s26158_s1 + $0x210] sm:$0xff]   ;;  %v1767_v27 = vld [vmem:[#allocation3 + $0x268] sm:$0xff] }
  0x74   : > { %20277 = vmatprep.subr.bf16.mxu1 %v22068_v48  ;;  %v22104_v20 = vld [vmem:[%s26158_s1 + $0x2d0] sm:$0xff]   ;;  %v22112_v29 = vld [vmem:[%s26158_s1 + $0x208] sm:$0xff]   ;;  %v22106_v38 = vld [vmem:[#allocation3 + $0x2e4] ss:$60 sps:$4 sm:$0xff]   ;;  %v16665_v40 = vcombine.low %v1767_v27, %v1775_v28 }
  0x75   : > { %20214 = vmatpush3.bf16.msra.mxu0 %v22067_v47  ;;  %v22105_v21 = vld [vmem:[%s26158_s1 + $0x290] sm:$0xff]   ;;  %v22113_v30 = vld [vmem:[%s26158_s1 + $0x2c8] sm:$0xff]   ;;  %v22120_v39 = vld [vmem:[%s26158_s1 + $0x240] sm:$0xff]  }
  0x76   : > { %20215 = vmatprep.subr.bf16.mxu0 %v22075_v52  ;;  %v22092_v23 = vld [vmem:[#allocation3 + $0x1f8] ss:$60 sps:$4 sm:$0xff]   ;;  %v22114_v31 = vld [vmem:[%s26158_s1 + $0x288] sm:$0xff]   ;;  %v22121_v41 = vld [vmem:[%s26158_s1 + $0x200] sm:$0xff]  }
  0x77   : > { %20278 = vmatpush3.bf16.msra.mxu1 %v22069_v49  ;;  %v22099_v25 = vld [vmem:[#allocation3 + $0x274] ss:$60 sps:$4 sm:$0xff]   ;;  %v16248_v32 = vld [vmem:[%s23233_s6 + $0x101] sm:$0xff]  ;;  %v23507_v5 = vld [vmem:[%s26158_s1 + $0x3b8] sm:$0xff]  }
  0x78   : > { %3623 = vmatmul.mubr.bf16.gmra.mxu0 %v16605_v51  ;;  %20279 = vmatprep.subr.bf16.mxu1 %v22077_v54  ;;  %v16280_v33 = vld [vmem:[%s23233_s6 + $0x102] sm:$0xff]  ;;  %v19074_v34 = vpack.c.bf16 %v16248_v32, %v16248_v32  ;;  %v16312_v36 = vld [vmem:[%s23233_s6 + $0x110] sm:$0xff]  ;;  %v1799_v17 = vld [vmem:[#allocation3 + $0x358] sm:$0xff] }
  0x79   : > { %3630 = vmatprep.mubr.bf16.mxu0 %v22070_v50  ;;  %20216 = vmatpush3.bf16.msra.mxu0 %v22076_v53  ;;  %v19090_v35 = vpack.c.bf16 %v16280_v33, %v16280_v33  ;;  %v16344_v37 = vld [vmem:[%s23233_s6 + $0x111] sm:$0xff]  ;;  %v19106_v55 = vpack.c.bf16 %v16312_v36, %v16312_v36  ;;  %v22122_v43 = vld [vmem:[%s26158_s1 + $0x2c0] sm:$0xff]   ;;  %v22108_v44 = vld [vmem:[#allocation3 + $0x2ec] ss:$60 sps:$4 sm:$0xff]  }
  0x7a   : > { %3720 = vmatmul.mubr.bf16.gmra.mxu1 %v22065_v56  ;;  %20217 = vmatprep.subr.bf16.mxu0 %v22084_v63  ;;  %v19122_v61 = vpack.c.bf16 %v16344_v37, %v16344_v37  ;;  %721 = vst [vmem:[#allocation3 + $0x394] sm:$0xf] %v19074_v34  ;;  %1009 = vst [vmem:[#allocation3 + $0x364] sm:$0xf] %v19074_v34  ;;  %v22101_v42 = vld [vmem:[#allocation3 + $0x270] ss:$60 sps:$4 sm:$0xff]  }
  0x7b   : > { %3727 = vmatprep.mubr.bf16.mxu1 %v22072_v58  ;;  %20280 = vmatpush3.bf16.msra.mxu1 %v22078_v59  ;;  %817 = vst [vmem:[#allocation3 + $0x398] sm:$0xf] %v19090_v35  ;;  %1297 = vst [vmem:[#allocation3 + $0x334] sm:$0xf] %v19074_v34  ;;  %v22123_v45 = vld [vmem:[%s26158_s1 + $0x280] sm:$0xff]   ;;  %v16362_v49 = vld [vmem:[%s23233_s6 + $0x32] sm:$0xff] }
  0x7c   : > { %20281 = vmatprep.subr.bf16.mxu1 %v22086_v2  ;;  %1393 = vst [vmem:[#allocation3 + $0x338] sm:$0xf] %v19090_v35  ;;  %1105 = vst [vmem:[#allocation3 + $0x368] sm:$0xf] %v19090_v35  ;;  %v1783_v46 = vld [vmem:[#allocation3 + $0x2e0] sm:$0xff]  ;;  %v16393_v50 = vld [vmem:[%s23233_s6 + $0x30] sm:$0xff]  ;;  %v19124_v52 = vpack.c.bf16 %v16362_v49, %v16362_v49 }
  0x7d   : > { %20218 = vmatpush3.bf16.msra.mxu0 %v22085_v1  ;;  %914 = vst [vmem:[#allocation3 + $0x39c] sm:$0xf] %v19106_v55  ;;  %1010 = vst [vmem:[#allocation3 + $0x3a0] sm:$0xf] %v19122_v61  ;;  %v1791_v47 = vld [vmem:[#allocation3 + $0x31c] sm:$0xff]  ;;  %v19139_v54 = vpack.c.bf16 %v16393_v50, %v16393_v50  ;;  %v16425_v56 = vld [vmem:[%s23233_s6 + $0x31] sm:$0xff] }
  0x7e   : > { %20219 = vmatprep.subr.bf16.mxu0 %v22093_v8  ;;  %1202 = vst [vmem:[#allocation3 + $0x36c] sm:$0xf] %v19106_v55  ;;  %1298 = vst [vmem:[#allocation3 + $0x370] sm:$0xf] %v19122_v61  ;;  %v16361_v48 = vld [vmem:[%s23233_s6 + $0x22] sm:$0xff]  ;;  %v19155_v59 = vpack.c.bf16 %v16425_v56, %v16425_v56  ;;  %v16680_v1 = vcombine.low %v1783_v46, %v1791_v47  ;;  %v16364_v6 = vld [vmem:[%s23233_s6 + $0x52] sm:$0xff] }
  0x7f   : > { %20282 = vmatpush3.bf16.msra.mxu1 %v22087_v4  ;;  %v19123_v51 = vpack.c.bf16 %v16361_v48, %v16361_v48  ;;  %v16394_v53 = vld [vmem:[%s23233_s6 + $0x40] sm:$0xff]  ;;  %1092 = vst [vmem:[#allocation3 + $0x5c] sm:$0xf] %v19124_v52  ;;  %1188 = vst [vmem:[#allocation3 + $0x24] sm:$0xf] %v19139_v54  ;;  %v19126_v8 = vpack.c.bf16 %v16364_v6, %v16364_v6  ;;  %v16429_v27 = vld [vmem:[%s23233_s6 + $0x71] sm:$0xff] }
  0x80   : > { %3631 = vmatmul.mubr.bf16.gmra.mxu0 %v16620_v0  ;;  %20283 = vmatprep.subr.bf16.mxu1 %v22095_v10  ;;  %v16426_v57 = vld [vmem:[%s23233_s6 + $0x41] sm:$0xff]  ;;  %v19140_v58 = vpack.c.bf16 %v16394_v53, %v16394_v53  ;;  %1380 = vst [vmem:[#allocation3 + $0x2c] sm:$0xf] %v19124_v52  ;;  %v22129_v0 = vld [vmem:[%s26158_s1 + $0x378] sm:$0xff]   ;;  %1284 = vst [vmem:[#allocation3 + $0x28] sm:$0xf] %v19155_v59 }
  0x81   : > { %3638 = vmatprep.mubr.bf16.mxu0 %v22079_v62  ;;  %20220 = vmatpush3.bf16.msra.mxu0 %v22094_v9  ;;  %v19156_v60 = vpack.c.bf16 %v16426_v57, %v16426_v57  ;;  %v16458_v62 = vld [vmem:[%s23233_s6 + $0x42] sm:$0xff]  ;;  %1091 = vst [vmem:[#allocation3 + $0x20] sm:$0xf] %v19123_v51  ;;  %1094 = vst [vmem:[#allocation3 + $0xd4] sm:$0xf] %v19126_v8  ;;  %v16431_v47 = vld [vmem:[%s23233_s6 + $0x91] sm:$0xff] }
  0x82   : > { %3728 = vmatmul.mubr.bf16.gmra.mxu1 %v22074_v3  ;;  %20221 = vmatprep.subr.bf16.mxu0 %v22102_v18  ;;  %v19172_v63 = vpack.c.bf16 %v16458_v62, %v16458_v62  ;;  %1189 = vst [vmem:[#allocation3 + $0x60] sm:$0xf] %v19140_v58  ;;  %1477 = vst [vmem:[#allocation3 + $0x30] sm:$0xf] %v19140_v58  ;;  %v22110_v2 = vld [vmem:[#allocation3 + $0x2e8] ss:$60 sps:$4 sm:$0xff]   ;;  %v19161_v51 = vpack.c.bf16 %v16431_v47, %v16431_v47 }
  0x83   : > { %3735 = vmatprep.mubr.bf16.mxu1 %v22081_v7  ;;  %20284 = vmatpush3.bf16.msra.mxu1 %v22096_v12  ;;  %1285 = vst [vmem:[#allocation3 + $0x64] sm:$0xf] %v19156_v60  ;;  %1573 = vst [vmem:[#allocation3 + $0x34] sm:$0xf] %v19156_v60  ;;  %v22115_v3 = vld [vmem:[#allocation3 + $0x35c] ss:$60 sps:$4 sm:$0xff]  }
  0x84   : > { %20285 = vmatprep.subr.bf16.mxu1 %v22104_v20  ;;  %1381 = vst [vmem:[#allocation3 + $0x68] sm:$0xf] %v19172_v63  ;;  %1093 = vst [vmem:[#allocation3 + $0x98] sm:$0xf] %v19172_v63  ;;  %v22117_v4 = vld [vmem:[#allocation3 + $0x364] ss:$60 sps:$4 sm:$0xff]  }
  0x85   : > { %20222 = vmatpush3.bf16.msra.mxu0 %v22103_v19  ;;  %1669 = vst [vmem:[#allocation3 + $0x38] sm:$0xf] %v19172_v63  ;;  %v16395_v7 = vld [vmem:[%s23233_s6 + $0x50] sm:$0xff]  ;;  %v16396_v9 = vld [vmem:[%s23233_s6 + $0x60] sm:$0xff]  ;;  %1382 = vst [vmem:[#allocation3 + $0xa4] sm:$0xf] %v19126_v8 }
  0x86   : > { %20223 = vmatprep.subr.bf16.mxu0 %v22111_v26  ;;  %v19141_v10 = vpack.c.bf16 %v16395_v7, %v16395_v7  ;;  %v16428_v12 = vld [vmem:[%s23233_s6 + $0x61] sm:$0xff]  ;;  %v1807_v18 = vld [vmem:[#allocation3 + $0x394] sm:$0xff]  ;;  %1670 = vst [vmem:[#allocation3 + $0x74] sm:$0xf] %v19126_v8  ;;  %1290 = vst [vmem:[#allocation3 + $0x190] sm:$0xf] %v19161_v51 }
  0x87   : > { %20286 = vmatpush3.bf16.msra.mxu1 %v22105_v21  ;;  %v16460_v16 = vld [vmem:[%s23233_s6 + $0x62] sm:$0xff]  ;;  %v16695_v20 = vcombine.low %v1799_v17, %v1807_v18  ;;  %v22138_v50 = vld [vmem:[%s26158_s1 + $0x330] sm:$0xff]   ;;  %1578 = vst [vmem:[#allocation3 + $0x160] sm:$0xf] %v19161_v51 }
  0x88   : > { %3639 = vmatmul.mubr.bf16.gmra.mxu0 %v16635_v11  ;;  %20287 = vmatprep.subr.bf16.mxu1 %v22113_v30  ;;  %v16427_v11 = vld [vmem:[%s23233_s6 + $0x51] sm:$0xff]  ;;  %1190 = vst [vmem:[#allocation3 + $0x9c] sm:$0xf] %v19141_v10  ;;  %v19174_v19 = vpack.c.bf16 %v16460_v16, %v16460_v16  ;;  %1478 = vst [vmem:[#allocation3 + $0x6c] sm:$0xf] %v19141_v10  ;;  %v16398_v26 = vld [vmem:[%s23233_s6 + $0x80] sm:$0xff] }
  0x89   : > { %3646 = vmatprep.mubr.bf16.mxu0 %v22088_v13  ;;  %20224 = vmatpush3.bf16.msra.mxu0 %v22112_v29  ;;  %v19142_v13 = vpack.c.bf16 %v16396_v9, %v16396_v9  ;;  %v22119_v21 = vld [vmem:[#allocation3 + $0x360] ss:$60 sps:$4 sm:$0xff]   ;;  %v19144_v29 = vpack.c.bf16 %v16398_v26, %v16398_v26  ;;  %v22139_v57 = vld [vmem:[%s26158_s1 + $0x3b0] sm:$0xff]   ;;  %v22145_v59 = vld [vmem:[%s26158_s1 + $0x368] sm:$0xff]  }
  0x8a   : > { %3736 = vmatmul.mubr.bf16.gmra.mxu1 %v22083_v14  ;;  %20225 = vmatprep.subr.bf16.mxu0 %v22120_v39  ;;  %v19157_v14 = vpack.c.bf16 %v16427_v11, %v16427_v11  ;;  %1383 = vst [vmem:[#allocation3 + $0xe0] sm:$0xf] %v19174_v19  ;;  %1095 = vst [vmem:[#allocation3 + $0x110] sm:$0xf] %v19174_v19  ;;  %v16430_v30 = vld [vmem:[%s23233_s6 + $0x81] sm:$0xff]  ;;  %v22137_v39 = vld [vmem:[%s26158_s1 + $0x370] sm:$0xff]  }
  0x8b   : > { %3743 = vmatprep.mubr.bf16.mxu1 %v22090_v15  ;;  %20288 = vmatpush3.bf16.msra.mxu1 %v22114_v31  ;;  %v19158_v15 = vpack.c.bf16 %v16428_v12, %v16428_v12  ;;  %1191 = vst [vmem:[#allocation3 + $0xd8] sm:$0xf] %v19142_v13  ;;  %1479 = vst [vmem:[#allocation3 + $0xa8] sm:$0xf] %v19142_v13  ;;  %v19159_v31 = vpack.c.bf16 %v16429_v27, %v16429_v27  ;;  %v16462_v32 = vld [vmem:[%s23233_s6 + $0x82] sm:$0xff]  ;;  %v16403_v26 = vld [vmem:[%s23233_s6 + $0xd0] sm:$0xff] }
  0x8c   : > { %20289 = vmatprep.subr.bf16.mxu1 %v22122_v43  ;;  %1286 = vst [vmem:[#allocation3 + $0xa0] sm:$0xf] %v19157_v14  ;;  %1574 = vst [vmem:[#allocation3 + $0x70] sm:$0xf] %v19157_v14  ;;  %v22126_v33 = vld [vmem:[#allocation3 + $0x2c] ss:$60 sps:$4 sm:$0xff]   ;;  %v19160_v34 = vpack.c.bf16 %v16430_v30, %v16430_v30  ;;  %v19176_v35 = vpack.c.bf16 %v16462_v32, %v16462_v32 }
  0x8d   : > { %20226 = vmatpush3.bf16.msra.mxu0 %v22121_v41  ;;  %1287 = vst [vmem:[#allocation3 + $0xdc] sm:$0xf] %v19158_v15  ;;  %1575 = vst [vmem:[#allocation3 + $0xac] sm:$0xf] %v19158_v15  ;;  %v1689_v36 = vld [vmem:[#allocation3 + $0x20] sm:$0xff]  ;;  %v16368_v41 = vld [vmem:[%s23233_s6 + $0x92] sm:$0xff] }
  0x8e   : > { %20339 = vmatprep.subr.bf16.mxu0 %v22129_v0  ;;  %1671 = vst [vmem:[#allocation3 + $0xb0] sm:$0xf] %v19174_v19  ;;  %v1697_v37 = vld [vmem:[#allocation3 + $0x5c] sm:$0xff]  ;;  %1193 = vst [vmem:[#allocation3 + $0x150] sm:$0xf] %v19144_v29  ;;  %v22146_v60 = vld [vmem:[%s26158_s1 + $0x328] sm:$0xff]  }
  0x8f   : > { %20290 = vmatpush3.bf16.msra.mxu1 %v22123_v45  ;;  %1288 = vst [vmem:[#allocation3 + $0x118] sm:$0xf] %v19159_v31  ;;  %1576 = vst [vmem:[#allocation3 + $0xe8] sm:$0xf] %v19159_v31  ;;  %v16594_v55 = vcombine.low %v1689_v36, %v1697_v37  ;;  %v16400_v43 = vld [vmem:[%s23233_s6 + $0xa0] sm:$0xff]  ;;  %v1705_v54 = vld [vmem:[#allocation3 + $0x98] sm:$0xff] }
  0x90   : > { %3647 = vmatmul.mubr.bf16.gmra.mxu0 %v16650_v22  ;;  %21811 = vmatprep.subr.bf16.mxu1 %v23507_v5  ;;  %v22124_v22 = vld [vmem:[#allocation3 + $0x24] ss:$60 sps:$4 sm:$0xff]   ;;  %1481 = vst [vmem:[#allocation3 + $0x120] sm:$0xf] %v19144_v29  ;;  %1289 = vst [vmem:[#allocation3 + $0x154] sm:$0xf] %v19160_v34  ;;  %v19146_v46 = vpack.c.bf16 %v16400_v43, %v16400_v43  ;;  %v19149_v29 = vpack.c.bf16 %v16403_v26, %v16403_v26 }
  0x91   : > { %3654 = vmatprep.mubr.bf16.mxu0 %v22097_v24  ;;  %1385 = vst [vmem:[#allocation3 + $0x158] sm:$0xf] %v19176_v35  ;;  %1097 = vst [vmem:[#allocation3 + $0x188] sm:$0xf] %v19176_v35  ;;  %v16432_v48 = vld [vmem:[%s23233_s6 + $0xa1] sm:$0xff]  ;;  %v22169_v37 = vld [vmem:[%s26158_s1 + $0x350] sm:$0xff]  }
  0x92   : > { %3744 = vmatmul.mubr.bf16.gmra.mxu1 %v22092_v23  ;;  %v16366_v23 = vld [vmem:[%s23233_s6 + $0x72] sm:$0xff]  ;;  %1673 = vst [vmem:[#allocation3 + $0x128] sm:$0xf] %v19176_v35  ;;  %1577 = vst [vmem:[#allocation3 + $0x124] sm:$0xf] %v19160_v34  ;;  %v16464_v49 = vld [vmem:[%s23233_s6 + $0xa2] sm:$0xff]  ;;  %v19162_v52 = vpack.c.bf16 %v16432_v48, %v16432_v48 }
  0x93   : > { %3751 = vmatprep.mubr.bf16.mxu1 %v22099_v25  ;;  %v19128_v24 = vpack.c.bf16 %v16366_v23, %v16366_v23  ;;  %v16397_v25 = vld [vmem:[%s23233_s6 + $0x70] sm:$0xff]  ;;  %v22132_v61 = vld [vmem:[#allocation3 + $0x9c] ss:$60 sps:$4 sm:$0xff]   ;;  %v19178_v53 = vpack.c.bf16 %v16464_v49, %v16464_v49  ;;  %v22134_v56 = vld [vmem:[#allocation3 + $0xa4] ss:$60 sps:$4 sm:$0xff]  }
  0x94   : > { %v19143_v28 = vpack.c.bf16 %v16397_v25, %v16397_v25  ;;  %1195 = vst [vmem:[#allocation3 + $0x1c8] sm:$0xf] %v19146_v46  ;;  %1483 = vst [vmem:[#allocation3 + $0x198] sm:$0xf] %v19146_v46  ;;  %v1713_v58 = vld [vmem:[#allocation3 + $0xd4] sm:$0xff]  ;;  %v22147_v0 = vld [vmem:[%s26158_s1 + $0x3a8] sm:$0xff]  }
  0x95   : > { %1096 = vst [vmem:[#allocation3 + $0x14c] sm:$0xf] %v19128_v24  ;;  %1384 = vst [vmem:[#allocation3 + $0x11c] sm:$0xf] %v19128_v24  ;;  %v16609_v62 = vcombine.low %v1705_v54, %v1713_v58  ;;  %v16402_v6 = vld [vmem:[%s23233_s6 + $0xc0] sm:$0xff]  ;;  %v16372_v23 = vld [vmem:[%s23233_s6 + $0xd2] sm:$0xff] }
  0x96   : > { %1672 = vst [vmem:[#allocation3 + $0xec] sm:$0xf] %v19128_v24  ;;  %1192 = vst [vmem:[#allocation3 + $0x114] sm:$0xf] %v19143_v28  ;;  %v16434_v8 = vld [vmem:[%s23233_s6 + $0xc1] sm:$0xff]  ;;  %v19148_v9 = vpack.c.bf16 %v16402_v6, %v16402_v6  ;;  %v19134_v25 = vpack.c.bf16 %v16372_v23, %v16372_v23  ;;  %v22163_v34 = vld [vmem:[%s26158_s1 + $0x398] sm:$0xff]  }
  0x97   : > { %1480 = vst [vmem:[#allocation3 + $0xe4] sm:$0xf] %v19143_v28  ;;  %1291 = vst [vmem:[#allocation3 + $0x1cc] sm:$0xf] %v19162_v52  ;;  %v19164_v11 = vpack.c.bf16 %v16434_v8, %v16434_v8  ;;  %v16466_v12 = vld [vmem:[%s23233_s6 + $0xc2] sm:$0xff]  ;;  %v16435_v28 = vld [vmem:[%s23233_s6 + $0xd1] sm:$0xff] }
  0x98   : > { %3655 = vmatmul.mubr.bf16.gmra.mxu0 %v16665_v40  ;;  %v22128_v40 = vld [vmem:[#allocation3 + $0x28] ss:$60 sps:$4 sm:$0xff]   ;;  %1387 = vst [vmem:[#allocation3 + $0x1d0] sm:$0xf] %v19178_v53  ;;  %1099 = vst [vmem:[#allocation3 + $0x200] sm:$0xf] %v19178_v53  ;;  %v19180_v16 = vpack.c.bf16 %v16466_v12, %v16466_v12  ;;  %v19165_v32 = vpack.c.bf16 %v16435_v28, %v16435_v28 }
  0x99   : > { %3662 = vmatprep.mubr.bf16.mxu0 %v22106_v38  ;;  %v22130_v38 = vld [vmem:[%s26158_s1 + $0x338] sm:$0xff]   ;;  %1675 = vst [vmem:[#allocation3 + $0x1a0] sm:$0xf] %v19178_v53  ;;  %1579 = vst [vmem:[#allocation3 + $0x19c] sm:$0xf] %v19162_v52  ;;  %v22154_v18 = vld [vmem:[%s26158_s1 + $0x320] sm:$0xff]  }
  0x9a   : > { %3752 = vmatmul.mubr.bf16.gmra.mxu1 %v22101_v42  ;;  %v16399_v42 = vld [vmem:[%s23233_s6 + $0x90] sm:$0xff]  ;;  %v22136_v13 = vld [vmem:[#allocation3 + $0xa0] ss:$60 sps:$4 sm:$0xff]   ;;  %1197 = vst [vmem:[#allocation3 + $0x240] sm:$0xf] %v19148_v9  ;;  %v22177_v52 = vld [vmem:[%s26158_s1 + $0x348] sm:$0xff]  }
  0x9b   : > { %3759 = vmatprep.mubr.bf16.mxu1 %v22108_v44  ;;  %v19130_v44 = vpack.c.bf16 %v16368_v41, %v16368_v41  ;;  %v19145_v45 = vpack.c.bf16 %v16399_v42, %v16399_v42  ;;  %1293 = vst [vmem:[#allocation3 + $0x244] sm:$0xf] %v19164_v11  ;;  %1485 = vst [vmem:[#allocation3 + $0x210] sm:$0xf] %v19148_v9  ;;  %v22155_v19 = vld [vmem:[%s26158_s1 + $0x3a0] sm:$0xff]   ;;  %v22171_v41 = vld [vmem:[%s26158_s1 + $0x390] sm:$0xff]  }
  0x9c   : > { %v1729_v15 = vld [vmem:[#allocation3 + $0x14c] sm:$0xff]  ;;  %v22142_v17 = vld [vmem:[#allocation3 + $0x11c] ss:$60 sps:$4 sm:$0xff]   ;;  %1581 = vst [vmem:[#allocation3 + $0x214] sm:$0xf] %v19164_v11  ;;  %v16404_v27 = vld [vmem:[%s23233_s6 + $0xe0] sm:$0xff] }
  0x9d   : > { %1098 = vst [vmem:[#allocation3 + $0x1c4] sm:$0xf] %v19130_v44  ;;  %1194 = vst [vmem:[#allocation3 + $0x18c] sm:$0xf] %v19145_v45  ;;  %v22140_v63 = vld [vmem:[#allocation3 + $0x114] ss:$60 sps:$4 sm:$0xff]   ;;  %v19150_v30 = vpack.c.bf16 %v16404_v27, %v16404_v27 }
  0x9e   : > { %1386 = vst [vmem:[#allocation3 + $0x194] sm:$0xf] %v19130_v44  ;;  %1674 = vst [vmem:[#allocation3 + $0x164] sm:$0xf] %v19130_v44  ;;  %v1721_v14 = vld [vmem:[#allocation3 + $0x110] sm:$0xff]  ;;  %v16436_v31 = vld [vmem:[%s23233_s6 + $0xe1] sm:$0xff] }
  0x9f   : > { %1482 = vst [vmem:[#allocation3 + $0x15c] sm:$0xf] %v19145_v45  ;;  %1389 = vst [vmem:[#allocation3 + $0x248] sm:$0xf] %v19180_v16  ;;  %v16624_v24 = vcombine.low %v1721_v14, %v1729_v15  ;;  %v19166_v35 = vpack.c.bf16 %v16436_v31, %v16436_v31  ;;  %v16374_v44 = vld [vmem:[%s23233_s6 + $0xf2] sm:$0xff]  ;;  %v16406_v46 = vld [vmem:[%s23233_s6 + $0x100] sm:$0xff] }
  0xa0   : > { %3663 = vmatmul.mubr.bf16.gmra.mxu0 %v16680_v1  ;;  %v22153_v1 = vld [vmem:[%s26158_s1 + $0x360] sm:$0xff]   ;;  %1101 = vst [vmem:[#allocation3 + $0x278] sm:$0xf] %v19180_v16  ;;  %1677 = vst [vmem:[#allocation3 + $0x218] sm:$0xf] %v19180_v16  ;;  %v16405_v45 = vld [vmem:[%s23233_s6 + $0xf0] sm:$0xff]  ;;  %v19136_v47 = vpack.c.bf16 %v16374_v44, %v16374_v44  ;;  %v19152_v49 = vpack.c.bf16 %v16406_v46, %v16406_v46 }
  0xa1   : > { %3670 = vmatprep.mubr.bf16.mxu0 %v22115_v3  ;;  %v16401_v3 = vld [vmem:[%s23233_s6 + $0xb0] sm:$0xff]  ;;  %1102 = vst [vmem:[#allocation3 + $0x2b4] sm:$0xf] %v19134_v25  ;;  %1390 = vst [vmem:[#allocation3 + $0x284] sm:$0xf] %v19134_v25  ;;  %v19151_v48 = vpack.c.bf16 %v16405_v45, %v16405_v45  ;;  %v22178_v58 = vld [vmem:[%s26158_s1 + $0x308] sm:$0xff]  }
  0xa2   : > { %3760 = vmatmul.mubr.bf16.gmra.mxu1 %v22110_v2  ;;  %v16370_v2 = vld [vmem:[%s23233_s6 + $0xb2] sm:$0xff]  ;;  %v19147_v7 = vpack.c.bf16 %v16401_v3, %v16401_v3  ;;  %1678 = vst [vmem:[#allocation3 + $0x254] sm:$0xf] %v19134_v25  ;;  %1198 = vst [vmem:[#allocation3 + $0x27c] sm:$0xf] %v19149_v29  ;;  %v22184_v11 = vld [vmem:[%s26158_s1 + $0x340] sm:$0xff]  }
  0xa3   : > { %3767 = vmatprep.mubr.bf16.mxu1 %v22117_v4  ;;  %v19132_v4 = vpack.c.bf16 %v16370_v2, %v16370_v2  ;;  %1199 = vst [vmem:[#allocation3 + $0x2b8] sm:$0xf] %v19150_v30  ;;  %1294 = vst [vmem:[#allocation3 + $0x280] sm:$0xf] %v19165_v32  ;;  %v22152_v53 = vld [vmem:[#allocation3 + $0x190] ss:$60 sps:$4 sm:$0xff]  }
  0xa4   : > { %1196 = vst [vmem:[#allocation3 + $0x204] sm:$0xf] %v19147_v7  ;;  %1484 = vst [vmem:[#allocation3 + $0x1d4] sm:$0xf] %v19147_v7  ;;  %v16472_v2 = vld [vmem:[%s23233_s6 + $0x122] sm:$0xff]  ;;  %v5173_v9 = vld [vmem:[#allocation2 + $0x1b8] sm:$0xff] }
  0xa5   : > { %1100 = vst [vmem:[#allocation3 + $0x23c] sm:$0xf] %v19132_v4  ;;  %1388 = vst [vmem:[#allocation3 + $0x20c] sm:$0xf] %v19132_v4  ;;  %v19186_v6 = vpack.c.bf16 %v16472_v2, %v16472_v2  ;;  %v22185_v12 = vld [vmem:[%s26158_s1 + $0x300] sm:$0xff]   ;;  %v16536_v46 = vld [vmem:[%s23233_s6 + $0x131] sm:$0xff] }
  0xa6   : > { %1676 = vst [vmem:[#allocation3 + $0x1dc] sm:$0xf] %v19132_v4  ;;  %1486 = vst [vmem:[#allocation3 + $0x24c] sm:$0xf] %v19149_v29  ;;  %v23088_v15 = vld [vmem:[#allocation2 + $0x7] sm:$0xff] }
  0xa7   : > { %1582 = vst [vmem:[#allocation3 + $0x250] sm:$0xf] %v19165_v32  ;;  %1487 = vst [vmem:[#allocation3 + $0x288] sm:$0xf] %v19150_v30  ;;  %v23612_v16 = vpack.c.bf16 %v23088_v15, %v23088_v15  ;;  %v1801_v30 = vld [vmem:[#allocation3 + $0x368] sm:$0xff] }
  0xa8   : > { %3671 = vmatmul.mubr.bf16.gmra.mxu0 %v16695_v20  ;;  %v22161_v20 = vld [vmem:[%s26158_s1 + $0x358] sm:$0xff]   ;;  %1295 = vst [vmem:[#allocation3 + $0x2bc] sm:$0xf] %v19166_v35  ;;  %1583 = vst [vmem:[#allocation3 + $0x28c] sm:$0xf] %v19166_v35  ;;  %v16565_v32 = vld [vmem:[%s23233_s6 + $0x102] sm:$0xff] }
  0xa9   : > { %3808 = vmatprep.mubr.bf16.mxu0 %v22124_v22  ;;  %v22162_v22 = vld [vmem:[%s26158_s1 + $0x318] sm:$0xff]   ;;  %1104 = vst [vmem:[#allocation3 + $0x32c] sm:$0xf] %v19136_v47  ;;  %1200 = vst [vmem:[#allocation3 + $0x2f4] sm:$0xf] %v19151_v48 }
  0xaa   : > { %3768 = vmatmul.mubr.bf16.gmra.mxu1 %v22119_v21  ;;  %v22148_v21 = vld [vmem:[#allocation3 + $0x18c] ss:$60 sps:$4 sm:$0xff]   ;;  %1201 = vst [vmem:[#allocation3 + $0x330] sm:$0xf] %v19152_v49  ;;  %1392 = vst [vmem:[#allocation3 + $0x2fc] sm:$0xf] %v19136_v47 }
  0xab   : > { %3905 = vmatprep.mubr.bf16.mxu1 %v22126_v33  ;;  %v16468_v33 = vld [vmem:[%s23233_s6 + $0xe2] sm:$0xff]  ;;  %1680 = vst [vmem:[#allocation3 + $0x2cc] sm:$0xf] %v19136_v47  ;;  %1488 = vst [vmem:[#allocation3 + $0x2c4] sm:$0xf] %v19151_v48  ;;  %v1777_v14 = vld [vmem:[#allocation3 + $0x2b4] sm:$0xff]  ;;  %v19218_v48 = vpack.c.bf16 %v16536_v46, %v16536_v46 }
  0xac   : > { %v19182_v36 = vpack.c.bf16 %v16468_v33, %v16468_v33  ;;  %v22156_v43 = vld [vmem:[#allocation3 + $0x204] ss:$60 sps:$4 sm:$0xff]   ;;  %1489 = vst [vmem:[#allocation3 + $0x300] sm:$0xf] %v19152_v49  ;;  %1395 = vst [vmem:[#allocation3 + $0x3b0] sm:$0xf] %v19186_v6 }
  0xad   : > { %v1753_v54 = vld [vmem:[#allocation3 + $0x200] sm:$0xff]  ;;  %1683 = vst [vmem:[#allocation3 + $0x380] sm:$0xf] %v19186_v6  ;;  %v16502_v33 = vld [vmem:[%s23233_s6 + $0x110] sm:$0xff]  ;;  %1588 = vst [vmem:[#allocation3 + $0x3b8] sm:$0xf] %v19218_v48 }
  0xae   : > { %1391 = vst [vmem:[#allocation3 + $0x2c0] sm:$0xf] %v19182_v36  ;;  %1103 = vst [vmem:[#allocation3 + $0x2f0] sm:$0xf] %v19182_v36  ;;  %v19200_v35 = vpack.c.bf16 %v16502_v33, %v16502_v33  ;;  %v5558_v47 = vld [vmem:[#allocation2 + $0x1d1] sm:$0xff] }
  0xaf   : > { %1679 = vst [vmem:[#allocation3 + $0x290] sm:$0xf] %v19182_v36  ;;  %v16533_v36 = vld [vmem:[%s23233_s6 + $0x101] sm:$0xff]  ;;  %v22189_v49 = vld [vmem:[#allocation3 + $0x38] ss:$60 sps:$4 sm:$0xff]  }
  0xb0   : > { %3809 = vmatmul.mubr.bf16.vlgmr.msra.gmra.mxu0 %v16594_v55  ;;  %v1737_v55 = vld [vmem:[#allocation3 + $0x188] sm:$0xff]  ;;  %1490 = vst [vmem:[#allocation3 + $0x33c] sm:$0xf] %v19200_v35 }
  0xb1   : > { %20340 = vmatpush3.bf16.msra.mxu0 %v22130_v38  ;;  %3816 = vmatprep.mubr.bf16.mxu0 %v22132_v61  ;;  %v22144_v38 = vld [vmem:[#allocation3 + $0x118] ss:$60 sps:$4 sm:$0xff]   ;;  %v1745_v61 = vld [vmem:[#allocation3 + $0x1c4] sm:$0xff]  ;;  %v1793_v27 = vld [vmem:[#allocation3 + $0x32c] sm:$0xff] }
  0xb2   : > { %20341 = vmatprep.subr.bf16.mxu0 %v22137_v39  ;;  %3906 = vmatmul.mubr.bf16.vlgmr.msra.gmra.mxu1 %v22128_v40  ;;  %v22150_v39 = vld [vmem:[#allocation3 + $0x194] ss:$60 sps:$4 sm:$0xff]   ;;  %v16639_v42 = vcombine.low %v1737_v55, %v1745_v61  ;;  %v22174_v26 = vld [vmem:[#allocation3 + $0x2fc] ss:$60 sps:$4 sm:$0xff]   ;;  %v19215_v61 = vpack.c.bf16 %v16533_v36, %v16533_v36 }
  0xb3   : > { %21812 = vmatpush3.bf16.msra.mxu1 %v23507_v5  ;;  %3913 = vmatprep.mubr.bf16.mxu1 %v22134_v56  ;;  %v16433_v5 = vld [vmem:[%s23233_s6 + $0xb1] sm:$0xff]  ;;  %v1761_v56 = vld [vmem:[#allocation3 + $0x23c] sm:$0xff] }
  0xb4   : > { %21813 = vmatprep.subr.bf16.mxu1 %v22139_v57  ;;  %v19163_v10 = vpack.c.bf16 %v16433_v5, %v16433_v5  ;;  %v22170_v40 = vld [vmem:[%s26158_s1 + $0x310] sm:$0xff]   ;;  %v16654_v3 = vcombine.low %v1753_v54, %v1761_v56  ;;  %v22164_v5 = vld [vmem:[#allocation3 + $0x27c] ss:$60 sps:$4 sm:$0xff]   ;;  %1585 = vst [vmem:[#allocation3 + $0x304] sm:$0xf] %v19215_v61  ;;  %v19474_v54 = vpack.c.bf16 %v5558_v47, %v5558_v47 }
  0xb5   : > { %20342 = vmatpush3.bf16.msra.mxu0 %v22138_v50  ;;  %v16437_v50 = vld [vmem:[%s23233_s6 + $0xf1] sm:$0xff]  ;;  %v22166_v8 = vld [vmem:[#allocation3 + $0x284] ss:$60 sps:$4 sm:$0xff]  }
  0xb6   : > { %20343 = vmatprep.subr.bf16.mxu0 %v22145_v59  ;;  %1292 = vst [vmem:[#allocation3 + $0x208] sm:$0xf] %v19163_v10  ;;  %1580 = vst [vmem:[#allocation3 + $0x1d8] sm:$0xf] %v19163_v10  ;;  %v19167_v51 = vpack.c.bf16 %v16437_v50, %v16437_v50  ;;  %v22179_v59 = vld [vmem:[%s26158_s1 + $0x388] sm:$0xff]   ;;  %v5269_v10 = vld [vmem:[#allocation2 + $0x1b9] sm:$0xff] }
  0xb7   : > { %21814 = vmatpush3.bf16.msra.mxu1 %v22139_v57  ;;  %v22158_v57 = vld [vmem:[#allocation3 + $0x20c] ss:$60 sps:$4 sm:$0xff]   ;;  %v1785_v25 = vld [vmem:[#allocation3 + $0x2f0] sm:$0xff] }
  0xb8   : > { %3817 = vmatmul.mubr.bf16.gmra.mxu0 %v16609_v62  ;;  %21815 = vmatprep.subr.bf16.mxu1 %v22147_v0  ;;  %1296 = vst [vmem:[#allocation3 + $0x2f8] sm:$0xf] %v19167_v51  ;;  %1584 = vst [vmem:[#allocation3 + $0x2c8] sm:$0xf] %v19167_v51  ;;  %v16408_v62 = vld [vmem:[%s23233_s6 + $0x120] sm:$0xff]  ;;  %v16684_v28 = vcombine.low %v1785_v25, %v1793_v27  ;;  %v5462_v50 = vld [vmem:[#allocation2 + $0x1d0] sm:$0xff] }
  0xb9   : > { %3824 = vmatprep.mubr.bf16.mxu0 %v22140_v63  ;;  %20344 = vmatpush3.bf16.msra.mxu0 %v22146_v60  ;;  %v16376_v60 = vld [vmem:[%s23233_s6 + $0x112] sm:$0xff]  ;;  %v19458_v56 = vpack.c.bf16 %v5462_v50, %v5462_v50 }
  0xba   : > { %20345 = vmatprep.subr.bf16.mxu0 %v22153_v1  ;;  %3914 = vmatmul.mubr.bf16.gmra.mxu1 %v22136_v13  ;;  %v19138_v63 = vpack.c.bf16 %v16376_v60, %v16376_v60  ;;  %v16440_v1 = vld [vmem:[%s23233_s6 + $0x121] sm:$0xff]  ;;  %v1769_v13 = vld [vmem:[#allocation3 + $0x278] sm:$0xff]  ;;  %v22187_v55 = vld [vmem:[#allocation3 + $0x34] ss:$60 sps:$4 sm:$0xff]  }
  0xbb   : > { %3921 = vmatprep.mubr.bf16.mxu1 %v22142_v17  ;;  %21816 = vmatpush3.bf16.msra.mxu1 %v22147_v0  ;;  %v19154_v0 = vpack.c.bf16 %v16408_v62, %v16408_v62  ;;  %v19170_v4 = vpack.c.bf16 %v16440_v1, %v16440_v1  ;;  %v22186_v17 = vld [vmem:[%s26158_s1 + $0x380] sm:$0xff]   ;;  %v22205_v33 = vld [vmem:[#allocation3 + $0x290] ss:$60 sps:$4 sm:$0xff]  }
  0xbc   : > { %21817 = vmatprep.subr.bf16.mxu1 %v22155_v19  ;;  %1106 = vst [vmem:[#allocation3 + $0x3a4] sm:$0xf] %v19138_v63  ;;  %1394 = vst [vmem:[#allocation3 + $0x374] sm:$0xf] %v19138_v63  ;;  %v22194_v62 = vld [vmem:[#allocation3 + $0x128] ss:$60 sps:$4 sm:$0xff]  }
  0xbd   : > { %20346 = vmatpush3.bf16.msra.mxu0 %v22154_v18  ;;  %v22160_v7 = vld [vmem:[#allocation3 + $0x208] ss:$60 sps:$4 sm:$0xff]   ;;  %1203 = vst [vmem:[#allocation3 + $0x3a8] sm:$0xf] %v19154_v0  ;;  %1682 = vst [vmem:[#allocation3 + $0x344] sm:$0xf] %v19138_v63  ;;  %v23617_v18 = vpack.c.bf16 %v5173_v9, %v5173_v9 }
  0xbe   : > { %20347 = vmatprep.subr.bf16.mxu0 %v22161_v20  ;;  %1491 = vst [vmem:[#allocation3 + $0x378] sm:$0xf] %v19154_v0  ;;  %1299 = vst [vmem:[#allocation3 + $0x3ac] sm:$0xf] %v19170_v4  ;;  %v16669_v20 = vcombine.low %v1769_v13, %v1777_v14  ;;  %v23639_v1 = vld [vmem:[%s26159_s2] ss:$0 sm:$0xff] }
  0xbf   : > { %21818 = vmatpush3.bf16.msra.mxu1 %v22155_v19  ;;  %1587 = vst [vmem:[#allocation3 + $0x37c] sm:$0xf] %v19170_v4  ;;  %v23619_v19 = vpack.c.bf16 %v5269_v10, %v5269_v10  ;;  %5253 = vst [vmem:[#allocation3 + $0x3ac] sm:$0xf] %v23617_v18  ;;  %v22176_v29 = vld [vmem:[#allocation3 + $0x2f8] ss:$60 sps:$4 sm:$0xff]  }
  0xc0   : > { %3825 = vmatmul.mubr.bf16.gmra.mxu0 %v16624_v24  ;;  %21819 = vmatprep.subr.bf16.mxu1 %v22163_v34  ;;  %v22168_v24 = vld [vmem:[#allocation3 + $0x280] ss:$60 sps:$4 sm:$0xff]   ;;  %5445 = vst [vmem:[#allocation3 + $0x378] sm:$0xf] %v23612_v16  ;;  %v22203_v47 = vld [vmem:[#allocation3 + $0x214] ss:$60 sps:$4 sm:$0xff]  }
  0xc1   : > { %3832 = vmatprep.mubr.bf16.mxu0 %v22148_v21  ;;  %20348 = vmatpush3.bf16.msra.mxu0 %v22162_v22  ;;  %v22172_v22 = vld [vmem:[#allocation3 + $0x2f4] ss:$60 sps:$4 sm:$0xff]   ;;  %v22195_v9 = vld [vmem:[#allocation3 + $0x124] ss:$60 sps:$4 sm:$0xff]  }
  0xc2   : > { %20349 = vmatprep.subr.bf16.mxu0 %v22169_v37  ;;  %3922 = vmatmul.mubr.bf16.gmra.mxu1 %v22144_v38  ;;  %v16534_v37 = vld [vmem:[%s23233_s6 + $0x111] sm:$0xff]  ;;  %v22197_v13 = vld [vmem:[#allocation3 + $0x1a0] ss:$60 sps:$4 sm:$0xff]  }
  0xc3   : > { %3929 = vmatprep.mubr.bf16.mxu1 %v22150_v39  ;;  %21820 = vmatpush3.bf16.msra.mxu1 %v22163_v34  ;;  %v22182_v23 = vld [vmem:[#allocation3 + $0x374] ss:$60 sps:$4 sm:$0xff]   ;;  %v19231_v34 = vpack.c.bf16 %v16565_v32, %v16565_v32  ;;  %v19216_v39 = vpack.c.bf16 %v16534_v37, %v16534_v37 }
  0xc4   : > { %21821 = vmatprep.subr.bf16.mxu1 %v22171_v41  ;;  %v22180_v21 = vld [vmem:[#allocation3 + $0x36c] ss:$60 sps:$4 sm:$0xff]   ;;  %5349 = vst [vmem:[#allocation3 + $0x3b0] sm:$0xf] %v23619_v19  ;;  %v16568_v38 = vld [vmem:[%s23233_s6 + $0x132] sm:$0xff] }
  0xc5   : > { %20350 = vmatpush3.bf16.msra.mxu0 %v22170_v40  ;;  %5157 = vst [vmem:[#allocation3 + $0x3a8] sm:$0xf] %v23612_v16  ;;  %v19234_v40 = vpack.c.bf16 %v16568_v38, %v16568_v38  ;;  %1681 = vst [vmem:[#allocation3 + $0x308] sm:$0xf] %v19231_v34 }
  0xc6   : > { %20351 = vmatprep.subr.bf16.mxu0 %v22177_v52  ;;  %1586 = vst [vmem:[#allocation3 + $0x340] sm:$0xf] %v19216_v39  ;;  %v1691_v52 = vld [vmem:[#allocation3 + $0x30] sm:$0xff]  ;;  %v23634_v63 = vld [vmem:[#allocation3 + $0x37c] ss:$60 sps:$4 sm:$0xff]  }
  0xc7   : > { %21822 = vmatpush3.bf16.msra.mxu1 %v22171_v41  ;;  %v16504_v41 = vld [vmem:[%s23233_s6 + $0x130] sm:$0xff]  ;;  %1684 = vst [vmem:[#allocation3 + $0x3bc] sm:$0xf] %v19234_v40  ;;  %5541 = vst [vmem:[#allocation3 + $0x37c] sm:$0xf] %v23617_v18 }
  0xc8   : > { %3833 = vmatmul.mubr.bf16.gmra.mxu0 %v16639_v42  ;;  %21823 = vmatprep.subr.bf16.mxu1 %v22179_v59  ;;  %v1802_v42 = vld [vmem:[#allocation3 + $0x370] sm:$0xff]  ;;  %v19202_v45 = vpack.c.bf16 %v16504_v41, %v16504_v41  ;;  %5542 = vst [vmem:[#allocation3 + $0x3b8] sm:$0xf] %v19458_v56 }
  0xc9   : > { %3840 = vmatprep.mubr.bf16.mxu0 %v22156_v43  ;;  %20352 = vmatpush3.bf16.msra.mxu0 %v22178_v58  ;;  %v22190_v58 = vld [vmem:[#allocation3 + $0xb0] ss:$60 sps:$4 sm:$0xff]  }
  0xca   : > { %3930 = vmatmul.mubr.bf16.gmra.mxu1 %v22152_v53  ;;  %20353 = vmatprep.subr.bf16.mxu0 %v22184_v11  ;;  %1492 = vst [vmem:[#allocation3 + $0x3b4] sm:$0xf] %v19202_v45  ;;  %v1699_v53 = vld [vmem:[#allocation3 + $0x6c] sm:$0xff] }
  0xcb   : > { %3937 = vmatprep.mubr.bf16.mxu1 %v22158_v57  ;;  %21824 = vmatpush3.bf16.msra.mxu1 %v22179_v59  ;;  %v1810_v43 = vld [vmem:[#allocation3 + $0x3ac] sm:$0xff]  ;;  %v16598_v57 = vcombine.low %v1691_v52, %v1699_v53  ;;  %5446 = vst [vmem:[#allocation3 + $0x3b4] sm:$0xf] %v23612_v16 }
  0xcc   : > { %21825 = vmatprep.subr.bf16.mxu1 %v22186_v17  ;;  %v1809_v31 = vld [vmem:[#allocation3 + $0x3a4] sm:$0xff]  ;;  %v16701_v51 = vcombine.low %v1802_v42, %v1810_v43 }
  0xcd   : > { %20354 = vmatpush3.bf16.msra.mxu0 %v22185_v12  ;;  %v16699_v44 = vcombine.low %v1801_v30, %v1809_v31  ;;  %v22191_v59 = vld [vmem:[#allocation3 + $0xac] ss:$60 sps:$4 sm:$0xff]  }
  0xce   : > { %v23631_v60 = vld [vmem:[#allocation3 + $0x380] ss:$60 sps:$4 sm:$0xff]   ;;  %v22210_v37 = vld [vmem:[#allocation3 + $0x308] ss:$60 sps:$4 sm:$0xff]  }
  0xcf   : > { %21826 = vmatpush3.bf16.msra.mxu1 %v22186_v17  ;;  %5637 = vst [vmem:[#allocation3 + $0x380] sm:$0xf] %v23619_v19  ;;  %5638 = vst [vmem:[#allocation3 + $0x3bc] sm:$0xf] %v19474_v54  ;;  %v22202_v17 = vld [vmem:[#allocation3 + $0x218] ss:$60 sps:$4 sm:$0xff]  }
  0xd0   : > { %3841 = vmatmul.mubr.bf16.gmra.mxu0 %v16654_v3 }
  0xd1   : > { %3848 = vmatprep.mubr.bf16.mxu0 %v22164_v5 }
  0xd2   : > { %3938 = vmatmul.mubr.bf16.gmra.mxu1 %v22160_v7  ;;  %v22193_v7 = vld [vmem:[#allocation3 + $0xa8] ss:$60 sps:$4 sm:$0xff]  }
  0xd3   : > { %3945 = vmatprep.mubr.bf16.mxu1 %v22166_v8 }
  0xd8   : > { %3849 = vmatmul.mubr.bf16.gmra.mxu0 %v16669_v20 }
  0xd9   : > { %3856 = vmatprep.mubr.bf16.mxu0 %v22172_v22 }
  0xda   : > { %3946 = vmatmul.mubr.bf16.gmra.mxu1 %v22168_v24 }
  0xdb   : > { %3953 = vmatprep.mubr.bf16.mxu1 %v22174_v26  ;;  %v22198_v26 = vld [vmem:[#allocation3 + $0x120] ss:$60 sps:$4 sm:$0xff]  }
  0xe0   : > { %3857 = vmatmul.mubr.bf16.gmra.mxu0 %v16684_v28 }
  0xe1   : > { %3864 = vmatprep.mubr.bf16.mxu0 %v22180_v21 }
  0xe2   : > { %3954 = vmatmul.mubr.bf16.gmra.mxu1 %v22176_v29  ;;  %v22199_v29 = vld [vmem:[#allocation3 + $0x19c] ss:$60 sps:$4 sm:$0xff]  }
  0xe3   : > { %3961 = vmatprep.mubr.bf16.mxu1 %v22182_v23 }
  0xe8   : > { %3865 = vmatmul.mubr.bf16.gmra.mxu0 %v16699_v44  ;;  %v22201_v44 = vld [vmem:[#allocation3 + $0x198] ss:$60 sps:$4 sm:$0xff]  }
  0xe9   : > { %4002 = vmatprep.mubr.bf16.mxu0 %v22187_v55 }
  0xea   : > { %3962 = vmatmul.mubr.bf16.gmra.mxu1 %v16701_v51 }
  0xeb   : > { %21827 = vmatprep.mubr.bf16.mxu1 %v22189_v49 }
  0xed   : > { %v19971_v0 = vpop.f32.mrf.mxu0 }
  0xef   : > { %v20035_v2 = vpop.f32.mrf.mxu1  ;;  %v19972_v3 = vpop.f32.mrf.mxu0 }
  0xf0   : > { %4003 = vmatmul.mubr.bf16.vlgmr.msra.gmra.mxu0 %v16598_v57  ;;  %v19973_v4 = vadd.f32 %v19972_v3, %v19971_v0  ;;  %v22206_v3 = vld [vmem:[#allocation3 + $0x210] ss:$60 sps:$4 sm:$0xff]  }
  0xf1   : > { %4010 = vmatprep.mubr.bf16.mxu0 %v22191_v59  ;;  %v20036_v6 = vpop.f32.mrf.mxu1  ;;  %v19974_v8 = vpop.f32.mrf.mxu0 }
  0xf2   : > { %21828 = vmatmul.mubr.bf16.vlgmr.msra.gmra.mxu1 %v22190_v58  ;;  %v20037_v5 = vadd.f32 %v20036_v6, %v20035_v2  ;;  %v3423_v10 = vadd.f32 %v19973_v4, %v23639_v1 }
  0xf3   : > { %v20038_v11 = vpop.f32.mrf.mxu1  ;;  %21831 = vmatprep.mubr.bf16.mxu1 %v22194_v62  ;;  %v19975_v12 = vpop.f32.mrf.mxu0 }
  0xf4   : > { %v23645_v14 = vadd.f32 %v20037_v5, %v3423_v10  ;;  %v19976_v15 = vadd.f32 %v19975_v12, %v19974_v8 }
  0xf5   : > { %v20039_v16 = vpop.f32.mrf.mxu1  ;;  %v19977_v18 = vpop.f32.mrf.mxu0 }
  0xf6   : > { %v3426_v19 = vadd.f32 %v19976_v15, %v23639_v1  ;;  %v20040_v20 = vadd.f32 %v20039_v16, %v20038_v11 }
  0xf7   : > { %v20041_v21 = vpop.f32.mrf.mxu1  ;;  %v19978_v22 = vpop.f32.mrf.mxu0 }
  0xf8   : > { %4011 = vmatmul.mubr.bf16.gmra.mxu0 %v22193_v7  ;;  %v23648_v23 = vadd.f32 %v20040_v20, %v3426_v19  ;;  %v19979_v24 = vadd.f32 %v19978_v22, %v19977_v18  ;;  %v22207_v7 = vld [vmem:[#allocation3 + $0x28c] ss:$60 sps:$4 sm:$0xff]   ;;  %v22211_v22 = vld [vmem:[#allocation3 + $0x304] ss:$60 sps:$4 sm:$0xff]  }
  0xf9   : > { %4018 = vmatprep.mubr.bf16.mxu0 %v22195_v9  ;;  %v20042_v25 = vpop.f32.mrf.mxu1  ;;  %v19980_v28 = vpop.f32.mrf.mxu0 }
  0xfa   : > { %v20043_v27 = vadd.f32 %v20042_v25, %v20041_v21  ;;  %21832 = vmatmul.mubr.bf16.gmra.mxu1 %v22197_v13  ;;  %v3431_v30 = vadd.f32 %v19979_v24, %v23639_v1 }
  0xfb   : > { %v20044_v31 = vpop.f32.mrf.mxu1  ;;  %21835 = vmatprep.mubr.bf16.mxu1 %v22202_v17  ;;  %v19981_v32 = vpop.f32.mrf.mxu0 }
  0xfc   : > { %v23651_v34 = vadd.f32 %v20043_v27, %v3431_v30  ;;  %v19982_v35 = vadd.f32 %v19981_v32, %v19980_v28  ;;  %v22218_v27 = vld [vmem:[%s26158_s1 + $0x478] sm:$0xff]  }
  0xfd   : > { %v20045_v36 = vpop.f32.mrf.mxu1 }
  0xfe   : > { %v19983_v38 = vpop.f32.mrf.mxu0  ;;  %v3434_v55 = vadd.f32 %v19982_v35, %v23639_v1  ;;  %v20046_v61 = vadd.f32 %v20045_v36, %v20044_v31 }
 0x100   : > { %v20047_v39 = vpop.f32.mrf.mxu1  ;;  %4019 = vmatmul.mubr.bf16.gmra.mxu0 %v22198_v26  ;;  %v19984_v40 = vpop.f32.mrf.mxu0  ;;  %v23654_v41 = vadd.f32 %v20046_v61, %v3434_v55  ;;  %v22217_v26 = vld [vmem:[%s26158_s1 + $0x4b8] sm:$0xff]  }
 0x101   : > { %4026 = vmatprep.mubr.bf16.mxu0 %v22199_v29  ;;  %v19985_v42 = vadd.f32 %v19984_v40, %v19983_v38  ;;  %20483 = vmatprep.subr.bf16.mxu0 %v22217_v26 }
 0x102   : > { %v20048_v43 = vpop.f32.mrf.mxu1  ;;  %v19986_v46 = vpop.f32.mrf.mxu0  ;;  %21836 = vmatmul.mubr.bf16.gmra.mxu1 %v22205_v33  ;;  %20484 = vmatpush3.bf16.msra.mxu0 %v22218_v27 }
 0x103   : > { %v20049_v45 = vadd.f32 %v20048_v43, %v20047_v39  ;;  %v3439_v48 = vadd.f32 %v19985_v42, %v23639_v1  ;;  %21839 = vmatprep.mubr.bf16.mxu1 %v22210_v37  ;;  %v22214_v39 = vld [vmem:[#allocation3 + $0x300] ss:$60 sps:$4 sm:$0xff]  }
 0x104   : > { %v20050_v49 = vpop.f32.mrf.mxu1  ;;  %v19987_v50 = vpop.f32.mrf.mxu0 }
 0x105   : > { %v23657_v51 = vadd.f32 %v20049_v45, %v3439_v48  ;;  %v19988_v52 = vadd.f32 %v19987_v50, %v19986_v46  ;;  %v22219_v45 = vld [vmem:[%s26158_s1 + $0x4b0] sm:$0xff]  }
 0x106   : > { %v20051_v53 = vpop.f32.mrf.mxu1  ;;  %v19989_v54 = vpop.f32.mrf.mxu0  ;;  %v22220_v46 = vld [vmem:[%s26158_s1 + $0x470] sm:$0xff]   ;;  %20485 = vmatprep.subr.bf16.mxu0 %v22219_v45 }
 0x107   : > { %v3442_v56 = vadd.f32 %v19988_v52, %v23639_v1  ;;  %v20052_v57 = vadd.f32 %v20051_v53, %v20050_v49  ;;  %20486 = vmatpush3.bf16.msra.mxu0 %v22220_v46 }
 0x108   : > { %v20053_v58 = vpop.f32.mrf.mxu1  ;;  %4027 = vmatmul.mubr.bf16.gmra.mxu0 %v22201_v44  ;;  %v19990_v59 = vpop.f32.mrf.mxu0 }
 0x109   : > { %4034 = vmatprep.mubr.bf16.mxu0 %v22203_v47  ;;  %v23660_v62 = vadd.f32 %v20052_v57, %v3442_v56  ;;  %v19991_v0 = vadd.f32 %v19990_v59, %v19989_v54  ;;  %v1803_v54 = vld [vmem:[#allocation3 + $0x378] sm:$0xff] }
 0x10a   : > { %v20054_v2 = vpop.f32.mrf.mxu1  ;;  %v19992_v6 = vpop.f32.mrf.mxu0  ;;  %21840 = vmatmul.mubr.bf16.gmra.mxu1 %v23631_v60  ;;  %v22209_v60 = vld [vmem:[#allocation3 + $0x288] ss:$60 sps:$4 sm:$0xff]   ;;  %v1811_v56 = vld [vmem:[#allocation3 + $0x3b4] sm:$0xff] }
 0x10b   : > { %v20055_v4 = vadd.f32 %v20054_v2, %v20053_v58  ;;  %v3447_v5 = vadd.f32 %v19991_v0, %v23639_v1 }
 0x10c   : > { %v20056_v8 = vpop.f32.mrf.mxu1  ;;  %v19993_v9 = vpop.f32.mrf.mxu0 }
 0x10d   : > { %v23664_v10 = vadd.f32 %v20055_v4, %v3447_v5  ;;  %v19994_v11 = vadd.f32 %v19993_v9, %v19992_v6  ;;  %v22221_v9 = vld [vmem:[%s26158_s1 + $0x4a8] sm:$0xff]  }
 0x10e   : > { %v20057_v12 = vpop.f32.mrf.mxu1  ;;  %v19995_v13 = vpop.f32.mrf.mxu0  ;;  %20487 = vmatprep.subr.bf16.mxu0 %v22221_v9 }
 0x10f   : > { %v3450_v15 = vadd.f32 %v19994_v11, %v23639_v1  ;;  %v20058_v16 = vadd.f32 %v20057_v12, %v20056_v8  ;;  %v16703_v8 = vcombine.low %v1803_v54, %v1811_v56  ;;  %v22222_v11 = vld [vmem:[%s26158_s1 + $0x468] sm:$0xff]   ;;  %v22234_v54 = vld [vmem:[%s26158_s1 + $0x3e0] sm:$0xff]  }
 0x110   : > { %4035 = vmatmul.mubr.bf16.gmra.mxu0 %v22206_v3  ;;  %v19996_v17 = vpop.f32.mrf.mxu0 }
 0x111   : > { %4042 = vmatprep.mubr.bf16.mxu0 %v22207_v7  ;;  %v23667_v18 = vadd.f32 %v20058_v16, %v3450_v15  ;;  %v20059_v19 = vpop.f32.mrf.mxu1  ;;  %v19997_v20 = vadd.f32 %v19996_v17, %v19995_v13  ;;  %v22223_v16 = vld [vmem:[%s26158_s1 + $0x438] sm:$0xff]   ;;  %20488 = vmatpush3.bf16.msra.mxu0 %v22222_v11 }
 0x112   : > { %v19998_v21 = vpop.f32.mrf.mxu0  ;;  %20419 = vmatprep.subr.bf16.mxu1 %v22223_v16 }
 0x113   : > { %v3455_v24 = vadd.f32 %v19997_v20, %v23639_v1  ;;  %v20060_v25 = vpop.f32.mrf.mxu1 }
 0x114   : > { %v20061_v28 = vadd.f32 %v20060_v25, %v20059_v19  ;;  %v19999_v29 = vpop.f32.mrf.mxu0  ;;  %v22224_v19 = vld [vmem:[%s26158_s1 + $0x3f8] sm:$0xff]   ;;  %v22227_v25 = vld [vmem:[%s26158_s1 + $0x430] sm:$0xff]  }
 0x115   : > { %v20062_v30 = vpop.f32.mrf.mxu1  ;;  %v20000_v31 = vadd.f32 %v19999_v29, %v19998_v21  ;;  %20420 = vmatpush3.bf16.msra.mxu1 %v22224_v19  ;;  %v22228_v29 = vld [vmem:[%s26158_s1 + $0x3f0] sm:$0xff]  }
 0x116   : > { %v23676_v32 = vadd.f32 %v20061_v28, %v3455_v24  ;;  %20421 = vmatprep.subr.bf16.mxu1 %v22227_v25 }
 0x117   : > { %v20001_v33 = vpop.f32.mrf.mxu0  ;;  %v3458_v35 = vadd.f32 %v20000_v31, %v23639_v1  ;;  %v20063_v36 = vpop.f32.mrf.mxu1  ;;  %v22225_v31 = vld [vmem:[%s26158_s1 + $0x4a0] sm:$0xff]  }
 0x118   : > { %4043 = vmatmul.mubr.bf16.gmra.mxu0 %v22209_v60  ;;  %v20064_v37 = vadd.f32 %v20063_v36, %v20062_v30  ;;  %20489 = vmatprep.subr.bf16.mxu0 %v22225_v31 }
 0x119   : > { %v20002_v38 = vpop.f32.mrf.mxu0  ;;  %4050 = vmatprep.mubr.bf16.mxu0 %v22211_v22  ;;  %v20065_v55 = vpop.f32.mrf.mxu1  ;;  %20422 = vmatpush3.bf16.msra.mxu1 %v22228_v29 }
 0x11a   : > { %v20003_v61 = vadd.f32 %v20002_v38, %v20001_v33  ;;  %v23679_v40 = vadd.f32 %v20064_v37, %v3458_v35  ;;  %v22226_v33 = vld [vmem:[%s26158_s1 + $0x460] sm:$0xff]  }
 0x11b   : > { %v20004_v42 = vpop.f32.mrf.mxu0  ;;  %v20066_v44 = vpop.f32.mrf.mxu1  ;;  %20490 = vmatpush3.bf16.msra.mxu0 %v22226_v33 }
 0x11c   : > { %v3463_v43 = vadd.f32 %v20003_v61, %v23639_v1  ;;  %v20067_v47 = vadd.f32 %v20066_v44, %v20065_v55  ;;  %v22229_v55 = vld [vmem:[%s26158_s1 + $0x428] sm:$0xff]  }
 0x11d   : > { %v20005_v48 = vpop.f32.mrf.mxu0  ;;  %v20068_v49 = vpop.f32.mrf.mxu1  ;;  %20423 = vmatprep.subr.bf16.mxu1 %v22229_v55 }
 0x11e   : > { %v20006_v50 = vadd.f32 %v20005_v48, %v20004_v42  ;;  %v23688_v52 = vadd.f32 %v20067_v47, %v3463_v43  ;;  %v22230_v42 = vld [vmem:[%s26158_s1 + $0x3e8] sm:$0xff]  }
 0x11f   : > { %v20007_v53 = vpop.f32.mrf.mxu0  ;;  %v20069_v58 = vpop.f32.mrf.mxu1  ;;  %20424 = vmatpush3.bf16.msra.mxu1 %v22230_v42 }
 0x120   : > { %v3466_v57 = vadd.f32 %v20006_v50, %v23639_v1  ;;  %4051 = vmatmul.mubr.bf16.gmra.mxu0 %v22214_v39  ;;  %v20070_v59 = vadd.f32 %v20069_v58, %v20068_v49  ;;  %v22233_v49 = vld [vmem:[%s26158_s1 + $0x420] sm:$0xff]   ;;  %v22232_v58 = vld [vmem:[%s26158_s1 + $0x458] sm:$0xff]  }
 0x121   : > { %v20008_v0 = vpop.f32.mrf.mxu0  ;;  %4058 = vmatprep.mubr.bf16.mxu0 %v23634_v63  ;;  %v20071_v2 = vpop.f32.mrf.mxu1  ;;  %20425 = vmatprep.subr.bf16.mxu1 %v22233_v49 }
 0x122   : > { %v20009_v3 = vadd.f32 %v20008_v0, %v20007_v53  ;;  %v23692_v4 = vadd.f32 %v20070_v59, %v3466_v57 }
 0x123   : > { %v20010_v6 = vpop.f32.mrf.mxu0  ;;  %v20072_v5 = vpop.f32.mrf.mxu1  ;;  %20426 = vmatpush3.bf16.msra.mxu1 %v22234_v54 }
 0x124   : > { %v3471_v7 = vadd.f32 %v20009_v3, %v23639_v1  ;;  %v20073_v12 = vadd.f32 %v20072_v5, %v20071_v2 }
 0x125   : > { %v20011_v13 = vpop.f32.mrf.mxu0  ;;  %v20074_v63 = vpop.f32.mrf.mxu1 }
 0x126   : > { %v20012_v15 = vadd.f32 %v20011_v13, %v20010_v6  ;;  %v23704_v17 = vadd.f32 %v20073_v12, %v3471_v7  ;;  %v22235_v6 = vld [vmem:[%s26158_s1 + $0x418] sm:$0xff]  }
 0x127   : > { %v20075_v60 = vpop.f32.mrf.mxu1  ;;  %20427 = vmatprep.subr.bf16.mxu1 %v22235_v6 }
 0x128   : > { %v3474_v20 = vadd.f32 %v20012_v15, %v23639_v1  ;;  %v20013_v21 = vpop.f32.mrf.mxu0  ;;  %4059 = vmatmul.mubr.bf16.gmra.mxu0 %v16703_v8  ;;  %v20076_v22 = vadd.f32 %v20075_v60, %v20074_v63  ;;  %v22236_v8 = vld [vmem:[%s26158_s1 + $0x3d8] sm:$0xff]   ;;  %v22239_v15 = vld [vmem:[%s26158_s1 + $0x410] sm:$0xff]  }
 0x129   : > { %20428 = vmatpush3.bf16.msra.mxu1 %v22236_v8 }
 0x12a   : > { %v20014_v24 = vpop.f32.mrf.mxu0  ;;  %v23713_v26 = vadd.f32 %v20076_v22, %v3474_v20  ;;  %v20077_v27 = vpop.f32.mrf.mxu1  ;;  %v22240_v20 = vld [vmem:[%s26158_s1 + $0x3d0] sm:$0xff]   ;;  %20429 = vmatprep.subr.bf16.mxu1 %v22239_v15 }
 0x12b   : > { %v20015_v28 = vadd.f32 %v20014_v24, %v20013_v21 }
 0x12c   : > { %v20016_v30 = vpop.f32.mrf.mxu0  ;;  %v20078_v36 = vpop.f32.mrf.mxu1 }
 0x12d   : > { %v3479_v35 = vadd.f32 %v20015_v28, %v23639_v1  ;;  %v20079_v37 = vadd.f32 %v20078_v36, %v20077_v27  ;;  %20430 = vmatpush3.bf16.msra.mxu1 %v22240_v20  ;;  %v22241_v27 = vld [vmem:[%s26158_s1 + $0x408] sm:$0xff]  }
 0x12e   : > { %v20017_v38 = vpop.f32.mrf.mxu0  ;;  %v20080_v61 = vpop.f32.mrf.mxu1  ;;  %20431 = vmatprep.subr.bf16.mxu1 %v22241_v27 }
 0x12f   : > { %v20018_v39 = vadd.f32 %v20017_v38, %v20016_v30  ;;  %v23731_v43 = vadd.f32 %v20079_v37, %v3479_v35  ;;  %v22242_v30 = vld [vmem:[%s26158_s1 + $0x3c8] sm:$0xff]   ;;  %v22245_v38 = vld [vmem:[%s26158_s1 + $0x400] sm:$0xff]  }
 0x130   : > { %v20099_v44 = vpop.f32.mrf.mxu0  ;;  %v20081_v46 = vpop.f32.mrf.mxu1 }
 0x131   : > { %v3482_v45 = vadd.f32 %v20018_v39, %v23639_v1  ;;  %v20082_v47 = vadd.f32 %v20081_v46, %v20080_v61  ;;  %v22231_v1 = vld [vmem:[%s26158_s1 + $0x498] sm:$0xff]   ;;  %20432 = vmatpush3.bf16.msra.mxu1 %v22242_v30  ;;  %v22246_v39 = vld [vmem:[%s26158_s1 + $0x3c0] sm:$0xff]  }
 0x132   : > { %v20100_v48 = vpop.f32.mrf.mxu0  ;;  %v20163_v50 = vpop.f32.mrf.mxu1  ;;  %20491 = vmatprep.subr.bf16.mxu0 %v22231_v1  ;;  %20433 = vmatprep.subr.bf16.mxu1 %v22245_v38 }
 0x133   : > { %v20101_v53 = vadd.f32 %v20100_v48, %v20099_v44  ;;  %v23740_v56 = vadd.f32 %v20082_v47, %v3482_v45  ;;  %20492 = vmatpush3.bf16.msra.mxu0 %v22232_v58  ;;  %v22238_v47 = vld [vmem:[%s26158_s1 + $0x450] sm:$0xff]   ;;  %v22247_v48 = vld [vmem:[#allocation3 + $0x4] ss:$60 sps:$4 sm:$0xff]  }
 0x134   : > { %v20102_v57 = vpop.f32.mrf.mxu0  ;;  %v20164_v0 = vpop.f32.mrf.mxu1  ;;  %7376 = vmatprep.mubr.bf16.mxu1 %v22247_v48 }
 0x135   : > { %v3617_v59 = vadd.f32 %v20101_v53, %v23645_v14  ;;  %v20165_v2 = vadd.f32 %v20164_v0, %v20163_v50  ;;  %20434 = vmatpush3.bf16.msra.mxu1 %v22246_v39  ;;  %v22249_v53 = vld [vmem:[#allocation3] ss:$60 sps:$4 sm:$0xff]  }
 0x136   : > { %v20103_v3 = vpop.f32.mrf.mxu0  ;;  %v20166_v7 = vpop.f32.mrf.mxu1 }
 0x137   : > { %v20104_v5 = vadd.f32 %v20103_v3, %v20102_v57  ;;  %v23755_v9 = vadd.f32 %v20165_v2, %v3617_v59  ;;  %v22244_v2 = vld [vmem:[%s26158_s1 + $0x448] sm:$0xff]  }
 0x138   : > { %v20105_v11 = vpop.f32.mrf.mxu0  ;;  %v20167_v12 = vpop.f32.mrf.mxu1  ;;  %7377 = vmatmul.mubr.bf16.vlgmr.msra.gmra.mxu1 %v22249_v53 }
 0x139   : > { %v3620_v14 = vadd.f32 %v20104_v5, %v23648_v23  ;;  %v20168_v13 = vadd.f32 %v20167_v12, %v20166_v7 }
 0x13a   : > { %v20106_v63 = vpop.f32.mrf.mxu0  ;;  %v20169_v16 = vpop.f32.mrf.mxu1 }
 0x13b   : > { %v20107_v19 = vadd.f32 %v20106_v63, %v20105_v11  ;;  %v23764_v60 = vadd.f32 %v20168_v13, %v3620_v14  ;;  %v22250_v14 = vld [vmem:[%s26158_s1 + $0x480] sm:$0xff]  }
 0x13c   : > { %v20108_v21 = vpop.f32.mrf.mxu0  ;;  %v20170_v22 = vpop.f32.mrf.mxu1  ;;  %v22251_v13 = vld [vmem:[%s26158_s1 + $0x440] sm:$0xff]  }
 0x13d   : > { %v3625_v23 = vadd.f32 %v20107_v19, %v23651_v34  ;;  %v20171_v24 = vadd.f32 %v20170_v22, %v20169_v16 }
 0x13e   : > { %v20109_v25 = vpop.f32.mrf.mxu0  ;;  %v20172_v28 = vpop.f32.mrf.mxu1 }
 0x13f   : > { %v20110_v29 = vadd.f32 %v20109_v25, %v20108_v21  ;;  %v23773_v31 = vadd.f32 %v20171_v24, %v3625_v23 }
 0x140   : > { %v20111_v33 = vpop.f32.mrf.mxu0  ;;  %v20173_v35 = vpop.f32.mrf.mxu1 }
 0x141   : > { %v3628_v34 = vadd.f32 %v20110_v29, %v23654_v41  ;;  %v20174_v36 = vadd.f32 %v20173_v35, %v20172_v28  ;;  %v22237_v41 = vld [vmem:[%s26158_s1 + $0x490] sm:$0xff]  }
 0x142   : > { %v20112_v37 = vpop.f32.mrf.mxu0  ;;  %v20175_v55 = vpop.f32.mrf.mxu1  ;;  %20493 = vmatprep.subr.bf16.mxu0 %v22237_v41 }
 0x143   : > { %v20113_v61 = vadd.f32 %v20112_v37, %v20111_v33  ;;  %v23782_v42 = vadd.f32 %v20174_v36, %v3628_v34  ;;  %20494 = vmatpush3.bf16.msra.mxu0 %v22238_v47 }
 0x144   : > { %v20114_v44 = vpop.f32.mrf.mxu0  ;;  %v20176_v46 = vpop.f32.mrf.mxu1 }
 0x145   : > { %v3633_v45 = vadd.f32 %v20113_v61, %v23657_v51  ;;  %v20177_v49 = vadd.f32 %v20176_v46, %v20175_v55  ;;  %v22243_v51 = vld [vmem:[%s26158_s1 + $0x488] sm:$0xff]  }
 0x146   : > { %v20115_v50 = vpop.f32.mrf.mxu0  ;;  %v20178_v54 = vpop.f32.mrf.mxu1  ;;  %20495 = vmatprep.subr.bf16.mxu0 %v22243_v51 }
 0x147   : > { %v20116_v57 = vadd.f32 %v20115_v50, %v20114_v44  ;;  %v23791_v1 = vadd.f32 %v20177_v49, %v3633_v45  ;;  %20496 = vmatpush3.bf16.msra.mxu0 %v22244_v2  ;;  %v22252_v49 = vld [vmem:[%s26158_s1 + $0x538] sm:$0xff]  }
 0x148   : > { %v20117_v58 = vpop.f32.mrf.mxu0  ;;  %v20179_v0 = vpop.f32.mrf.mxu1  ;;  %20497 = vmatprep.subr.bf16.mxu0 %v22250_v14  ;;  %v22253_v50 = vld [vmem:[%s26158_s1 + $0x4f8] sm:$0xff]   ;;  %20547 = vmatprep.subr.bf16.mxu1 %v22252_v49  ;;  %v22282_v49 = vld [vmem:[%s26158_s1 + $0x520] sm:$0xff]  }
 0x149   : > { %v3636_v59 = vadd.f32 %v20116_v57, %v23660_v62  ;;  %v20180_v3 = vadd.f32 %v20179_v0, %v20178_v54  ;;  %20548 = vmatpush3.bf16.msra.mxu1 %v22253_v50 }
 0x14a   : > { %v20118_v6 = vpop.f32.mrf.mxu0  ;;  %v20181_v7 = vpop.f32.mrf.mxu1 }
 0x14b   : > { %v20119_v5 = vadd.f32 %v20118_v6, %v20117_v58  ;;  %v23800_v8 = vadd.f32 %v20180_v3, %v3636_v59  ;;  %20498 = vmatpush3.bf16.msra.mxu0 %v22251_v13  ;;  %v22257_v3 = vld [vmem:[%s26158_s1 + $0x5b8] sm:$0xff]  }
 0x14c   : > { %v20120_v11 = vpop.f32.mrf.mxu0  ;;  %v20182_v12 = vpop.f32.mrf.mxu1  ;;  %20611 = vmatprep.subr.bf16.mxu0 %v22257_v3 }
 0x14d   : > { %v3641_v62 = vadd.f32 %v20119_v5, %v23664_v10  ;;  %v20183_v63 = vadd.f32 %v20182_v12, %v20181_v7  ;;  %v22263_v12 = vld [vmem:[%s26158_s1 + $0x4f0] sm:$0xff]  }
 0x14e   : > { %v20121_v15 = vpop.f32.mrf.mxu0  ;;  %v20184_v16 = vpop.f32.mrf.mxu1 }
 0x14f   : > { %v20122_v19 = vadd.f32 %v20121_v15, %v20120_v11  ;;  %v23809_v20 = vadd.f32 %v20183_v63, %v3641_v62 }
 0x150   : > { %v20123_v21 = vpop.f32.mrf.mxu0  ;;  %v20185_v22 = vpop.f32.mrf.mxu1 }
 0x151   : > { %v3644_v23 = vadd.f32 %v20122_v19, %v23667_v18  ;;  %v20186_v24 = vadd.f32 %v20185_v22, %v20184_v16 }
 0x152   : > { %v20124_v25 = vpop.f32.mrf.mxu0  ;;  %v20187_v10 = vpop.f32.mrf.mxu1 }
 0x153   : > { %v20125_v27 = vadd.f32 %v20124_v25, %v20123_v21  ;;  %v23812_v28 = vadd.f32 %v20186_v24, %v3644_v23 }
 0x154   : > { %v20126_v29 = vpop.f32.mrf.mxu0  ;;  %v20188_v33 = vpop.f32.mrf.mxu1 }
 0x155   : > { %v3649_v30 = vadd.f32 %v20125_v27, %v23676_v32  ;;  %v20189_v34 = vadd.f32 %v20188_v33, %v20187_v10 }
 0x156   : > { %v20127_v35 = vpop.f32.mrf.mxu0  ;;  %v20190_v36 = vpop.f32.mrf.mxu1 }
 0x157   : > { %v20128_v37 = vadd.f32 %v20127_v35, %v20126_v29  ;;  %v23815_v38 = vadd.f32 %v20189_v34, %v3649_v30 }
 0x158   : > { %v20129_v55 = vpop.f32.mrf.mxu0  ;;  %v20191_v61 = vpop.f32.mrf.mxu1 }
 0x159   : > { %v3652_v18 = vadd.f32 %v20128_v37, %v23679_v40  ;;  %v20192_v39 = vadd.f32 %v20191_v61, %v20190_v36  ;;  %v22272_v36 = vld [vmem:[%s26158_s1 + $0x528] sm:$0xff]  }
 0x15a   : > { %v20130_v44 = vpop.f32.mrf.mxu0  ;;  %v20193_v41 = vpop.f32.mrf.mxu1 }
 0x15b   : > { %v20131_v45 = vadd.f32 %v20130_v44, %v20129_v55  ;;  %v23818_v46 = vadd.f32 %v20192_v39, %v3652_v18 }
 0x15c   : > { %v20132_v47 = vpop.f32.mrf.mxu0  ;;  %v20194_v48 = vpop.f32.mrf.mxu1 }
 0x15d   : > { %v3657_v32 = vadd.f32 %v20131_v45, %v23688_v52  ;;  %v20195_v40 = vadd.f32 %v20194_v48, %v20193_v41 }
 0x15e   : > { %v20133_v53 = vpop.f32.mrf.mxu0  ;;  %v20196_v54 = vpop.f32.mrf.mxu1 }
 0x15f   : > { %v20134_v57 = vadd.f32 %v20133_v53, %v20132_v47  ;;  %v23827_v58 = vadd.f32 %v20195_v40, %v3657_v32 }
 0x160   : > { %v20135_v51 = vpop.f32.mrf.mxu0  ;;  %v20197_v59 = vpop.f32.mrf.mxu1 }
 0x161   : > { %26162 = vst [vmem:[#allocation4_spill] sm:$0xff] %v23827_v58  ;;  %v3660_v52 = vadd.f32 %v20134_v57, %v23692_v4  ;;  %v20198_v0 = vadd.f32 %v20197_v59, %v20196_v54  ;;  %v22262_v4 = vld [vmem:[%s26158_s1 + $0x530] sm:$0xff]   ;;  %v22292_v59 = vld [vmem:[%s26158_s1 + $0x518] sm:$0xff]  }
 0x162   : > { %v20136_v2 = vpop.f32.mrf.mxu0  ;;  %v20199_v6 = vpop.f32.mrf.mxu1  ;;  %20549 = vmatprep.subr.bf16.mxu1 %v22262_v4 }
 0x163   : > { %v20137_v7 = vadd.f32 %v20136_v2, %v20135_v51  ;;  %v23833_v5 = vadd.f32 %v20198_v0, %v3660_v52  ;;  %20550 = vmatpush3.bf16.msra.mxu1 %v22263_v12  ;;  %v22293_v2 = vld [vmem:[%s26158_s1 + $0x4d8] sm:$0xff]   ;;  %v22312_v12 = vld [vmem:[%s26158_s1 + $0x508] sm:$0xff]  }
 0x164   : > { %v20138_v11 = vpop.f32.mrf.mxu0  ;;  %v20200_v62 = vpop.f32.mrf.mxu1  ;;  %20551 = vmatprep.subr.bf16.mxu1 %v22272_v36 }
 0x165   : > { %26163 = vst [vmem:[#allocation5_spill] sm:$0xff] %v23833_v5  ;;  %v3665_v14 = vadd.f32 %v20137_v7, %v23704_v17  ;;  %v20201_v13 = vadd.f32 %v20200_v62, %v20199_v6  ;;  %v22303_v62 = vld [vmem:[%s26158_s1 + $0x4d0] sm:$0xff]  }
 0x166   : > { %v20139_v63 = vpop.f32.mrf.mxu0  ;;  %v20202_v15 = vpop.f32.mrf.mxu1 }
 0x167   : > { %v20140_v16 = vadd.f32 %v20139_v63, %v20138_v11  ;;  %v23842_v19 = vadd.f32 %v20201_v13, %v3665_v14  ;;  %v22302_v11 = vld [vmem:[%s26158_s1 + $0x510] sm:$0xff]   ;;  %v22313_v63 = vld [vmem:[%s26158_s1 + $0x4c8] sm:$0xff]  }
 0x168   : > { %v20141_v21 = vpop.f32.mrf.mxu0  ;;  %v20203_v23 = vpop.f32.mrf.mxu1 }
 0x169   : > { %26164 = vst [vmem:[#allocation6_spill] sm:$0xff] %v23842_v19  ;;  %v3668_v17 = vadd.f32 %v20140_v16, %v23713_v26  ;;  %v20204_v22 = vadd.f32 %v20203_v23, %v20202_v15  ;;  %v22273_v26 = vld [vmem:[%s26158_s1 + $0x4e8] sm:$0xff]   ;;  %v22322_v16 = vld [vmem:[%s26158_s1 + $0x500] sm:$0xff]  }
 0x16a   : > { %v20142_v24 = vpop.f32.mrf.mxu0  ;;  %v20205_v25 = vpop.f32.mrf.mxu1  ;;  %20552 = vmatpush3.bf16.msra.mxu1 %v22273_v26 }
 0x16b   : > { %v20143_v10 = vadd.f32 %v20142_v24, %v20141_v21  ;;  %v23845_v27 = vadd.f32 %v20204_v22, %v3668_v17  ;;  %20553 = vmatprep.subr.bf16.mxu1 %v22282_v49  ;;  %v22323_v17 = vld [vmem:[%s26158_s1 + $0x4c0] sm:$0xff]  }
 0x16c   : > { %v20144_v29 = vpop.f32.mrf.mxu0  ;;  %v20206_v33 = vpop.f32.mrf.mxu1 }
 0x16d   : > { %26165 = vst [vmem:[#allocation7_spill] sm:$0xff] %v23845_v27  ;;  %v3673_v30 = vadd.f32 %v20143_v10, %v23731_v43  ;;  %v20207_v34 = vadd.f32 %v20206_v33, %v20205_v25  ;;  %v22334_v33 = vld [vmem:[%s26158_s1 + $0x638] sm:$0xff]  }
 0x16e   : > { %v20145_v35 = vpop.f32.mrf.mxu0  ;;  %v20208_v37 = vpop.f32.mrf.mxu1 }
 0x16f   : > { %v20146_v55 = vadd.f32 %v20145_v35, %v20144_v29  ;;  %v23854_v18 = vadd.f32 %v20207_v34, %v3673_v30 }
 0x170   : > { %v23856_v61 = vpop.f32.mrf.mxu0  ;;  %v20209_v39 = vpop.f32.mrf.mxu1 }
 0x171   : > { %26166 = vst [vmem:[#allocation8_spill] sm:$0xff] %v23854_v18  ;;  %v3676_v43 = vadd.f32 %v20146_v55, %v23740_v56  ;;  %v20210_v44 = vadd.f32 %v20209_v39, %v20208_v37  ;;  %v22283_v56 = vld [vmem:[%s26158_s1 + $0x4e0] sm:$0xff]  }
 0x172   : > { %v23859_v41 = vpop.f32.mrf.mxu0  ;;  %v23861_v45 = vpop.f32.mrf.mxu1  ;;  %20554 = vmatpush3.bf16.msra.mxu1 %v22283_v56 }
 0x173   : > { %v23863_v47 = vadd.f32 %v20210_v44, %v3676_v43  ;;  %20555 = vmatprep.subr.bf16.mxu1 %v22292_v59 }
 0x174   : > { %v23865_v32 = vpop.f32.mrf.mxu0  ;;  %v23867_v48 = vpop.f32.mrf.mxu1 }
 0x175   : > { %26167 = vst [vmem:[#allocation9_spill] sm:$0xff] %v23863_v47 }
 0x176   : > { %v23875_v50 = vpop.f32.mrf.mxu0  ;;  %v23877_v40 = vpop.f32.mrf.mxu1  ;;  %20556 = vmatpush3.bf16.msra.mxu1 %v22293_v2 }
 0x177   : > { %20557 = vmatprep.subr.bf16.mxu1 %v22302_v11 }
 0x178   : > { %v23879_v53 = vpop.f32.mrf.mxu0  ;;  %v23881_v54 = vpop.f32.mrf.mxu1 }
 0x17a   : > { %v23883_v57 = vpop.f32.mrf.mxu0  ;;  %v23885_v51 = vpop.f32.mrf.mxu1  ;;  %20558 = vmatpush3.bf16.msra.mxu1 %v22303_v62 }
 0x17b   : > { %20559 = vmatprep.subr.bf16.mxu1 %v22312_v12 }
 0x17c   : > { %v23887_v52 = vpop.f32.mrf.mxu0  ;;  %v23892_v0 = vpop.f32.mrf.mxu1 }
 0x17e   : > { %v23897_v3 = vpop.f32.mrf.mxu0  ;;  %v23899_v6 = vpop.f32.mrf.mxu1  ;;  %20560 = vmatpush3.bf16.msra.mxu1 %v22313_v63 }
 0x17f   : > { %20561 = vmatprep.subr.bf16.mxu1 %v22322_v16 }
 0x180   : > { %v23901_v7 = vpop.f32.mrf.mxu0  ;;  %v23906_v14 = vpop.f32.mrf.mxu1 }
 0x182   : > { %v23911_v4 = vpop.f32.mrf.mxu0  ;;  %v23916_v13 = vpop.f32.mrf.mxu1  ;;  %20562 = vmatpush3.bf16.msra.mxu1 %v22323_v17 }
 0x183   : > { %20675 = vmatprep.subr.bf16.mxu1 %v22334_v33 }
 0x184   : > { %v23921_v15 = vpop.f32.mrf.mxu0  ;;  %v23926_v21 = vpop.f32.mrf.mxu1 }
 0x186   : > { %v23931_v23 = vpop.f32.mrf.mxu0  ;;  %v23933_v22 = vpop.f32.mrf.mxu1 }
 0x188   : > { %v23935_v24 = vpop.f32.mrf.mxu0  ;;  %v23937_v25 = vpop.f32.mrf.mxu1 }
 0x18a   : > { %v23939_v10 = vpop.f32.mrf.mxu0  ;;  %v23941_v29 = vpop.f32.mrf.mxu1 }
 0x18c   : > { %v23943_v30 = vpop.f32.mrf.mxu0  ;;  %v23948_v34 = vpop.f32.mrf.mxu1 }
 0x18e   : > { %v23950_v35 = vpop.f32.mrf.mxu0  ;;  %v23952_v36 = vpop.f32.mrf.mxu1 }
 0x190   : > { %v23954_v26 = vpop.f32.mrf.mxu0  ;;  %v23956_v37 = vpop.f32.mrf.mxu1 }
 0x192   : > { %v23958_v55 = vpop.f32.mrf.mxu0  ;;  %v23960_v43 = vpop.f32.mrf.mxu1 }
 0x194   : > { %v23962_v39 = vpop.f32.mrf.mxu0  ;;  %v23964_v44 = vpop.f32.mrf.mxu1 }
 0x196   : > { %v23966_v49 = vpop.f32.mrf.mxu0  ;;  %v23968_v56 = vpop.f32.mrf.mxu1 }
 0x198   : > { %v23970_v59 = vpop.f32.mrf.mxu0  ;;  %v23972_v2 = vpop.f32.mrf.mxu1 }
 0x19a   : > { %v23974_v11 = vpop.f32.mrf.mxu0  ;;  %v23976_v62 = vpop.f32.mrf.mxu1 }
 0x19b   : > { %26168 = vst [vmem:[#allocation10_spill] sm:$0xff] %v23976_v62 }
 0x19c   : > { %v23978_v12 = vpop.f32.mrf.mxu0  ;;  %v23980_v63 = vpop.f32.mrf.mxu1 }
 0x19d   : > { %26169 = vst [vmem:[#allocation11_spill] sm:$0xff] %v23980_v63 }
 0x19e   : > { %v23982_v16 = vpop.f32.mrf.mxu0  ;;  %v23984_v17 = vpop.f32.mrf.mxu1 }
 0x19f   : > { %26170 = vst [vmem:[#allocation12_spill] sm:$0xff] %v23982_v16  ;;  %26171 = vst [vmem:[#allocation13_spill] sm:$0xff] %v23984_v17 }
 0x1a0   : > { %v23986_v33 = vpop.f32.mrf.mxu0  ;;  %v23988_v47 = vpop.f32.mrf.mxu1 }
 0x1a1   : > { %26172 = vst [vmem:[#allocation14_spill] sm:$0xff] %v23986_v33  ;;  %26173 = vst [vmem:[#allocation15_spill] sm:$0xff] %v23988_v47  ;;  %v20229_v47 = vadd.f32 %v23859_v41, %v23856_v61  ;;  %v20235_v41 = vadd.f32 %v23883_v57, %v23879_v53 }
 0x1a2   : > { %v23990_v18 = vpop.f32.mrf.mxu0  ;;  %v23992_v27 = vpop.f32.mrf.mxu1 }
 0x1a3   : > { %26174 = vst [vmem:[#allocation16_spill] sm:$0xff] %v23990_v18  ;;  %26175 = vst [vmem:[#allocation17_spill] sm:$0xff] %v23992_v27 }
 0x1a4   : > { %v23994_v19 = vpop.f32.mrf.mxu0  ;;  %v23996_v5 = vpop.f32.mrf.mxu1 }
 0x1a5   : > { %26176 = vst [vmem:[#allocation18_spill] sm:$0xff] %v23994_v19  ;;  %26177 = vst [vmem:[#allocation19_spill] sm:$0xff] %v23996_v5 }
 0x1a6   : > { %v23998_v62 = vpop.f32.mrf.mxu0  ;;  %v24000_v58 = vpop.f32.mrf.mxu1 }
 0x1a7   : > { %26178 = vst [vmem:[#allocation20_spill] sm:$0xff] %v23998_v62  ;;  %26179 = vst [vmem:[#allocation21_spill] sm:$0xff] %v24000_v58  ;;  %v3811_v62 = vadd.f32 %v20229_v47, %v23755_v9  ;;  %v20293_v58 = vadd.f32 %v23867_v48, %v23861_v45  ;;  %v20296_v45 = vadd.f32 %v23881_v54, %v23877_v40 }
 0x1a8   : > { %v24002_v63 = vpop.f32.mrf.mxu0  ;;  %v24004_v16 = vpop.f32.mrf.mxu1 }
 0x1a9   : > { %26180 = vst [vmem:[#allocation22_spill] sm:$0xff] %v24002_v63  ;;  %26181 = vst [vmem:[#allocation23_spill] sm:$0xff] %v24004_v16  ;;  %v20232_v16 = vadd.f32 %v23875_v50, %v23865_v32  ;;  %v3819_v50 = vadd.f32 %v20235_v41, %v23773_v31 }
 0x1aa   : > { %v24006_v17 = vpop.f32.mrf.mxu0  ;;  %v24010_v18 = vpop.f32.mrf.mxu1 }
 0x1ab   : > { %26182 = vst [vmem:[#allocation24_spill] sm:$0xff] %v24006_v17  ;;  %26183 = vst [vmem:[#allocation25_spill] sm:$0xff] %v24010_v18 }
 0x1ac   : > { %v24012_v27 = vpop.f32.mrf.mxu0  ;;  %v24014_v19 = vpop.f32.mrf.mxu1 }
 0x1ad   : > { %26184 = vst [vmem:[#allocation26_spill] sm:$0xff] %v24012_v27  ;;  %26185 = vst [vmem:[#allocation27_spill] sm:$0xff] %v24014_v19  ;;  %v3908_v19 = vadd.f32 %v20293_v58, %v3811_v62  ;;  %v20238_v58 = vadd.f32 %v23897_v3, %v23887_v52  ;;  %v20302_v52 = vadd.f32 %v23906_v14, %v23899_v6 }
 0x1ae   : > { %v24016_v5 = vpop.f32.mrf.mxu0  ;;  %v24023_v17 = vpop.f32.mrf.mxu1  ;;  %v20305_v6 = vadd.f32 %v23926_v21, %v23916_v13 }
 0x1af   : > { %26186 = vst [vmem:[#allocation28_spill] sm:$0xff] %v24016_v5  ;;  %26187 = vst [vmem:[#allocation29_spill] sm:$0xff] %v24023_v17  ;;  %v3814_v5 = vadd.f32 %v20232_v16, %v23764_v60  ;;  %v3822_v54 = vadd.f32 %v20238_v58, %v23782_v42 }
 0x1b0   : > { %v20355_v63 = vpop.f32.mrf.mxu0  ;;  %v24025_v61 = vpop.f32.mrf.mxu1 }
 0x1b1   : > { %26188 = vst [vmem:[#allocation30_spill] sm:$0xff] %v24025_v61  ;;  %v20299_v61 = vadd.f32 %v23892_v0, %v23885_v51  ;;  %v3911_v33 = vadd.f32 %v20296_v45, %v3814_v5  ;;  %v20241_v5 = vadd.f32 %v23911_v4, %v23901_v7 }
 0x1b2   : > { %v20356_v27 = vpop.f32.mrf.mxu0  ;;  %v21829_v18 = vpop.f32.mrf.mxu1 }
 0x1b3   : > { %v20357_v9 = vadd.f32 %v20356_v27, %v20355_v63  ;;  %v3916_v16 = vadd.f32 %v20299_v61, %v3819_v50  ;;  %v3827_v4 = vadd.f32 %v20241_v5, %v23791_v1 }
 0x1b4   : > { %v20358_v47 = vpop.f32.mrf.mxu0  ;;  %v4101_v32 = vpop.f32.mrf.mxu1 }
 0x1b5   : > { %v4005_v48 = vadd.f32 %v20357_v9, %v3908_v19  ;;  %v3919_v9 = vadd.f32 %v20302_v52, %v3822_v54 }
 0x1b6   : > { %v20359_v17 = vpop.f32.mrf.mxu0  ;;  %v21830_v60 = vpop.f32.mrf.mxu1 }
 0x1b7   : > { %v4102_v53 = vadd.f32 %v4101_v32, %v4005_v48  ;;  %v20360_v57 = vadd.f32 %v20359_v17, %v20358_v47  ;;  %v20247_v32 = vadd.f32 %v23939_v10, %v23935_v24 }
 0x1b8   : > { %v20361_v27 = vpop.f32.mrf.mxu0  ;;  %v4104_v40 = vpop.f32.mrf.mxu1 }
 0x1b9   : > { %v4164_v62 = vmax.f32 %v4102_v53, 0.0  ;;  %v4008_v63 = vadd.f32 %v20360_v57, %v3911_v33  ;;  %v20244_v33 = vadd.f32 %v23931_v23, %v23921_v15  ;;  %v3835_v10 = vadd.f32 %v20247_v32, %v23809_v20 }
 0x1ba   : > { %v20362_v19 = vpop.f32.mrf.mxu0  ;;  %v24044_v61 = vpop.f32.mrf.mxu1  ;;  %v20314_v32 = vadd.f32 %v23956_v37, %v23952_v36 }
 0x1bb   : > { %4180 = vst [vmem:[#allocation2 + $0x38] sm:$0xff] %v4164_v62  ;;  %v19253_v31 = vpack.c.bf16 %v4164_v62, %v4164_v62  ;;  %v4105_v41 = vadd.f32 %v4104_v40, %v4008_v63  ;;  %v20363_v51 = vadd.f32 %v20362_v19, %v20361_v27  ;;  %v3830_v23 = vadd.f32 %v20244_v33, %v23800_v8 }
 0x1bc   : > { %v20364_v0 = vpop.f32.mrf.mxu0  ;;  %v4117_v58 = vpop.f32.mrf.mxu1  ;;  %v3924_v27 = vadd.f32 %v20305_v6, %v3827_v4  ;;  %v20308_v62 = vadd.f32 %v23937_v25, %v23933_v22  ;;  %v20311_v22 = vadd.f32 %v23948_v34, %v23941_v29 }
 0x1bd   : > { %4374 = vst [vmem:[#allocation3 + $0x7c] sm:$0xf] %v19253_v31  ;;  %4662 = vst [vmem:[#allocation3 + $0x4c] sm:$0xf] %v19253_v31  ;;  %v4165_v3 = vmax.f32 %v4105_v41, 0.0  ;;  %v4013_v17 = vadd.f32 %v20363_v51, %v3916_v16 }
 0x1be   : > { %4949 = vst [vmem:[#allocation3 + $0x1c] sm:$0xf] %v19253_v31  ;;  %v20365_v42 = vpop.f32.mrf.mxu0  ;;  %v3927_v24 = vadd.f32 %v20308_v62, %v3830_v23  ;;  %v24057_v19 = vpop.f32.mrf.mxu1  ;;  %v3932_v29 = vadd.f32 %v20311_v22, %v3835_v10  ;;  %v22278_v22 = vld [vmem:[%s26158_s1 + $0x568] sm:$0xff]  }
 0x1bf   : > { %4181 = vst [vmem:[#allocation2 + $0x50] sm:$0xff] %v4165_v3  ;;  %v19254_v47 = vpack.c.bf16 %v4165_v3, %v4165_v3  ;;  %v4110_v45 = vadd.f32 %v21829_v18, %v4013_v17  ;;  %v20366_v7 = vadd.f32 %v20365_v42, %v20364_v0  ;;  %v20250_v0 = vadd.f32 %v23950_v35, %v23943_v30 }
 0x1c0   : > { %v20367_v14 = vpop.f32.mrf.mxu0  ;;  %v20253_v30 = vadd.f32 %v23958_v55, %v23954_v26  ;;  %v4120_v33 = vpop.f32.mrf.mxu1  ;;  %v22256_v26 = vld [vmem:[#allocation3 + $0x8] ss:$60 sps:$4 sm:$0xff]  }
 0x1c1   : > { %4375 = vst [vmem:[#allocation3 + $0xb8] sm:$0xf] %v19254_v47  ;;  %4663 = vst [vmem:[#allocation3 + $0x88] sm:$0xf] %v19254_v47  ;;  %v4166_v48 = vmax.f32 %v4110_v45, 0.0  ;;  %v4016_v15 = vadd.f32 %v20366_v7, %v3919_v9  ;;  %v22258_v9 = vld [vmem:[%s26158_s1 + $0x578] sm:$0xff]   ;;  %v3838_v6 = vadd.f32 %v20250_v0, %v23812_v28 }
 0x1c2   : > { %4950 = vst [vmem:[#allocation3 + $0x58] sm:$0xf] %v19254_v47  ;;  %5238 = vst [vmem:[#allocation3 + $0x28] sm:$0xf] %v19254_v47  ;;  %v4198_v50 = vld [vmem:[#allocation2 + $0x37] sm:$0xff]  ;;  %v20368_v53 = vpop.f32.mrf.mxu0 }
 0x1c3   : > { %v4390_v18 = vld [vmem:[#allocation2 + $0x39] sm:$0xff]  ;;  %v19237_v1 = vpack.c.bf16 %v4198_v50, %v4198_v50  ;;  %4182 = vst [vmem:[#allocation2 + $0x68] sm:$0xff] %v4166_v48  ;;  %v19255_v13 = vpack.c.bf16 %v4166_v48, %v4166_v48  ;;  %v4113_v21 = vadd.f32 %v21830_v60, %v4016_v15  ;;  %v20369_v63 = vadd.f32 %v20368_v53, %v20367_v14  ;;  %v22267_v28 = vld [vmem:[%s26158_s1 + $0x5b0] sm:$0xff]  }
 0x1c4   : > { %v19269_v57 = vpack.c.bf16 %v4390_v18, %v4390_v18  ;;  %v20370_v16 = vpop.f32.mrf.mxu0  ;;  %v3843_v50 = vadd.f32 %v20253_v30, %v23815_v38  ;;  %v20317_v18 = vadd.f32 %v23964_v44, %v23960_v43  ;;  %v3935_v44 = vadd.f32 %v20314_v32, %v3838_v6  ;;  %v26192_v6 = vld [vmem:[#allocation11_spill] sm:$0xff] }
 0x1c5   : > { %4278 = vst [vmem:[#allocation3 + $0x78] sm:$0xf] %v19237_v1  ;;  %4566 = vst [vmem:[#allocation3 + $0x48] sm:$0xf] %v19237_v1  ;;  %v4167_v8 = vmax.f32 %v4113_v21, 0.0  ;;  %v4021_v40 = vadd.f32 %v20369_v63, %v3924_v27  ;;  %v22277_v63 = vld [vmem:[%s26158_s1 + $0x5a8] sm:$0xff]  }
 0x1c6   : > { %4470 = vst [vmem:[#allocation3 + $0x80] sm:$0xf] %v19269_v57  ;;  %4758 = vst [vmem:[#allocation3 + $0x50] sm:$0xf] %v19269_v57  ;;  %v4199_v25 = vld [vmem:[#allocation2 + $0x4f] sm:$0xff]  ;;  %v20371_v54 = vpop.f32.mrf.mxu0  ;;  %v22297_v32 = vld [vmem:[%s26158_s1 + $0x598] sm:$0xff]  }
 0x1c7   : > { %4853 = vst [vmem:[#allocation3 + $0x18] sm:$0xf] %v19237_v1  ;;  %5045 = vst [vmem:[#allocation3 + $0x20] sm:$0xf] %v19269_v57  ;;  %v4391_v60 = vld [vmem:[#allocation2 + $0x51] sm:$0xff]  ;;  %v19238_v31 = vpack.c.bf16 %v4199_v25, %v4199_v25  ;;  %v19256_v51 = vpack.c.bf16 %v4167_v8, %v4167_v8  ;;  %v20372_v5 = vadd.f32 %v20371_v54, %v20370_v16 }
 0x1c8   : > { %4376 = vst [vmem:[#allocation3 + $0xf4] sm:$0xf] %v19255_v13  ;;  %4664 = vst [vmem:[#allocation3 + $0xc4] sm:$0xf] %v19255_v13  ;;  %v19270_v41 = vpack.c.bf16 %v4391_v60, %v4391_v60  ;;  %v4118_v52 = vadd.f32 %v4117_v58, %v4021_v40  ;;  %v20373_v3 = vpop.f32.mrf.mxu0  ;;  %v20256_v58 = vadd.f32 %v23966_v49, %v23962_v39  ;;  %v22268_v39 = vld [vmem:[%s26158_s1 + $0x570] sm:$0xff]  }
 0x1c9   : > { %4951 = vst [vmem:[#allocation3 + $0x94] sm:$0xf] %v19255_v13  ;;  %5239 = vst [vmem:[#allocation3 + $0x64] sm:$0xf] %v19255_v13  ;;  %v4024_v20 = vadd.f32 %v20372_v5, %v3927_v24  ;;  %v22259_v27 = vld [vmem:[#allocation3 + $0x7c] ss:$60 sps:$4 sm:$0xff]   ;;  %v3940_v25 = vadd.f32 %v20317_v18, %v3843_v50  ;;  %v20320_v60 = vadd.f32 %v23972_v2, %v23968_v56 }
 0x1ca   : > { %5527 = vst [vmem:[#allocation3 + $0x34] sm:$0xf] %v19255_v13  ;;  %4183 = vst [vmem:[#allocation2 + $0x80] sm:$0xff] %v4167_v8  ;;  %v4200_v34 = vld [vmem:[#allocation2 + $0x67] sm:$0xff]  ;;  %v4168_v17 = vmax.f32 %v4118_v52, 0.0  ;;  %v20374_v42 = vpop.f32.mrf.mxu0  ;;  %v24077_v13 = vpop.f32.mrf.mxu1  ;;  %v3846_v16 = vadd.f32 %v20256_v58, %v23818_v46  ;;  %7384 = vmatprep.mubr.bf16.mxu1 %v22259_v27  ;;  %v20259_v46 = vadd.f32 %v23974_v11, %v23970_v59  ;;  %v26194_v58 = vld [vmem:[#allocation14_spill] sm:$0xff] }
 0x1cb   : > { %4279 = vst [vmem:[#allocation3 + $0xb4] sm:$0xf] %v19238_v31  ;;  %4471 = vst [vmem:[#allocation3 + $0xbc] sm:$0xf] %v19270_v41  ;;  %v4392_v35 = vld [vmem:[#allocation2 + $0x69] sm:$0xff]  ;;  %v19239_v47 = vpack.c.bf16 %v4200_v34, %v4200_v34  ;;  %v4121_v7 = vadd.f32 %v4120_v33, %v4024_v20  ;;  %v20375_v4 = vadd.f32 %v20374_v42, %v20373_v3  ;;  %v22287_v2 = vld [vmem:[%s26158_s1 + $0x5a0] sm:$0xff]  }
 0x1cc   : > { %4567 = vst [vmem:[#allocation3 + $0x84] sm:$0xf] %v19238_v31  ;;  %4759 = vst [vmem:[#allocation3 + $0x8c] sm:$0xf] %v19270_v41  ;;  %v19271_v45 = vpack.c.bf16 %v4392_v35, %v4392_v35  ;;  %v19257_v14 = vpack.c.bf16 %v4168_v17, %v4168_v17  ;;  %v20376_v48 = vpop.f32.mrf.mxu0  ;;  %v22254_v15 = vld [vmem:[#allocation3 + $0xc] ss:$60 sps:$4 sm:$0xff]   ;;  %v4133_v24 = vpop.f32.mrf.mxu1  ;;  %v3943_v59 = vadd.f32 %v20320_v60, %v3846_v16 }
 0x1cd   : > { %4854 = vst [vmem:[#allocation3 + $0x54] sm:$0xf] %v19238_v31  ;;  %5046 = vst [vmem:[#allocation3 + $0x5c] sm:$0xf] %v19270_v41  ;;  %v4169_v55 = vmax.f32 %v4121_v7, 0.0  ;;  %v4029_v23 = vadd.f32 %v20375_v4, %v3932_v29  ;;  %7473 = vmatprep.mubr.bf16.mxu0 %v22254_v15  ;;  %v26189_v11 = vld [vmem:[#allocation12_spill] sm:$0xff] }
 0x1ce   : > { %5142 = vst [vmem:[#allocation3 + $0x24] sm:$0xf] %v19238_v31  ;;  %5334 = vst [vmem:[#allocation3 + $0x2c] sm:$0xf] %v19270_v41  ;;  %v20377_v57 = vpop.f32.mrf.mxu0  ;;  %7474 = vmatmul.mubr.bf16.vlgmr.msra.gmra.mxu0 %v22256_v26  ;;  %v20262_v29 = vadd.f32 %v26189_v11, %v23978_v12  ;;  %v24100_v35 = vpop.f32.mrf.mxu1  ;;  %v26191_v4 = vld [vmem:[#allocation10_spill] sm:$0xff]  ;;  %v26193_v50 = vld [vmem:[#allocation5_spill] sm:$0xff] }
 0x1cf   : > { %4377 = vst [vmem:[#allocation3 + $0x130] sm:$0xf] %v19256_v51  ;;  %4665 = vst [vmem:[#allocation3 + $0x100] sm:$0xf] %v19256_v51  ;;  %v19258_v38 = vpack.c.bf16 %v4169_v55, %v4169_v55  ;;  %v4126_v43 = vadd.f32 %v24044_v61, %v4029_v23  ;;  %v20378_v49 = vadd.f32 %v20377_v57, %v20376_v48  ;;  %20612 = vmatpush3.bf16.msra.mxu0 %v22258_v9  ;;  %v26197_v16 = vld [vmem:[#allocation15_spill] sm:$0xff] }
 0x1d0   : > { %4952 = vst [vmem:[#allocation3 + $0xd0] sm:$0xf] %v19256_v51  ;;  %5240 = vst [vmem:[#allocation3 + $0xa0] sm:$0xf] %v19256_v51  ;;  %v20379_v21 = vpop.f32.mrf.mxu0  ;;  %20613 = vmatprep.subr.bf16.mxu0 %v22267_v28  ;;  %v3854_v18 = vadd.f32 %v20262_v29, %v26193_v50  ;;  %v26205_v50 = vld [vmem:[#allocation7_spill] sm:$0xff] }
 0x1d1   : > { %5528 = vst [vmem:[#allocation3 + $0x70] sm:$0xf] %v19256_v51  ;;  %4184 = vst [vmem:[#allocation2 + $0x98] sm:$0xff] %v4168_v17  ;;  %v4201_v53 = vld [vmem:[#allocation2 + $0x7f] sm:$0xff]  ;;  %v4170_v61 = vmax.f32 %v4126_v43, 0.0  ;;  %v4032_v8 = vadd.f32 %v20378_v49, %v3935_v44 }
 0x1d2   : > { %4280 = vst [vmem:[#allocation3 + $0xf0] sm:$0xf] %v19239_v47  ;;  %4472 = vst [vmem:[#allocation3 + $0xf8] sm:$0xf] %v19271_v45  ;;  %v4393_v1 = vld [vmem:[#allocation2 + $0x81] sm:$0xff]  ;;  %v19240_v36 = vpack.c.bf16 %v4201_v53, %v4201_v53  ;;  %v20380_v10 = vpop.f32.mrf.mxu0 }
 0x1d3   : > { %4568 = vst [vmem:[#allocation3 + $0xc0] sm:$0xf] %v19239_v47  ;;  %4760 = vst [vmem:[#allocation3 + $0xc8] sm:$0xf] %v19271_v45  ;;  %v19272_v37 = vpack.c.bf16 %v4393_v1, %v4393_v1  ;;  %v22261_v62 = vld [vmem:[#allocation3 + $0x78] ss:$60 sps:$4 sm:$0xff]   ;;  %v19259_v31 = vpack.c.bf16 %v4170_v61, %v4170_v61  ;;  %v20381_v41 = vadd.f32 %v20380_v10, %v20379_v21  ;;  %20614 = vmatpush3.bf16.msra.mxu0 %v22268_v39 }
 0x1d4   : > { %4855 = vst [vmem:[#allocation3 + $0x90] sm:$0xf] %v19239_v47  ;;  %5047 = vst [vmem:[#allocation3 + $0x98] sm:$0xf] %v19271_v45  ;;  %7385 = vmatmul.mubr.bf16.gmra.mxu1 %v22261_v62  ;;  %v4129_v0 = vadd.f32 %v24057_v19, %v4032_v8  ;;  %v20382_v52 = vpop.f32.mrf.mxu0  ;;  %v22266_v20 = vld [vmem:[#allocation3 + $0x80] ss:$60 sps:$4 sm:$0xff]   ;;  %20615 = vmatprep.subr.bf16.mxu0 %v22277_v63 }
 0x1d5   : > { %5143 = vst [vmem:[#allocation3 + $0x60] sm:$0xf] %v19239_v47  ;;  %5335 = vst [vmem:[#allocation3 + $0x68] sm:$0xf] %v19271_v45  ;;  %v4037_v56 = vadd.f32 %v20381_v41, %v3940_v25  ;;  %v26195_v53 = vld [vmem:[#allocation16_spill] sm:$0xff]  ;;  %v26196_v63 = vld [vmem:[#allocation13_spill] sm:$0xff] }
 0x1d6   : > { %5431 = vst [vmem:[#allocation3 + $0x30] sm:$0xf] %v19239_v47  ;;  %5623 = vst [vmem:[#allocation3 + $0x38] sm:$0xf] %v19271_v45  ;;  %v4171_v34 = vmax.f32 %v4129_v0, 0.0  ;;  %v20383_v17 = vpop.f32.mrf.mxu0  ;;  %v22288_v47 = vld [vmem:[%s26158_s1 + $0x560] sm:$0xff]   ;;  %v20265_v1 = vadd.f32 %v26195_v53, %v26194_v58  ;;  %v20326_v8 = vadd.f32 %v26197_v16, %v26196_v63 }
 0x1d7   : > { %4378 = vst [vmem:[#allocation3 + $0x16c] sm:$0xf] %v19257_v14  ;;  %4666 = vst [vmem:[#allocation3 + $0x13c] sm:$0xf] %v19257_v14  ;;  %v4134_v12 = vadd.f32 %v4133_v24, %v4037_v56  ;;  %v20384_v9 = vadd.f32 %v20383_v17, %v20382_v52  ;;  %v26190_v45 = vld [vmem:[#allocation4_spill] sm:$0xff]  ;;  %20616 = vmatpush3.bf16.msra.mxu0 %v22278_v22  ;;  %v26198_v25 = vld [vmem:[#allocation6_spill] sm:$0xff] }
 0x1d8   : > { %4953 = vst [vmem:[#allocation3 + $0x10c] sm:$0xf] %v19257_v14  ;;  %5241 = vst [vmem:[#allocation3 + $0xdc] sm:$0xf] %v19257_v14  ;;  %v4202_v40 = vld [vmem:[#allocation2 + $0x97] sm:$0xff]  ;;  %v3851_v7 = vadd.f32 %v20259_v46, %v26190_v45  ;;  %v19260_v48 = vpack.c.bf16 %v4171_v34, %v4171_v34  ;;  %v20385_v15 = vpop.f32.mrf.mxu0  ;;  %20617 = vmatprep.subr.bf16.mxu0 %v22287_v2  ;;  %v3859_v60 = vadd.f32 %v20265_v1, %v26198_v25  ;;  %v26204_v45 = vld [vmem:[#allocation24_spill] sm:$0xff] }
 0x1d9   : > { %5529 = vst [vmem:[#allocation3 + $0xac] sm:$0xf] %v19257_v14  ;;  %4185 = vst [vmem:[#allocation2 + $0xb0] sm:$0xff] %v4169_v55  ;;  %v4394_v54 = vld [vmem:[#allocation2 + $0x99] sm:$0xff]  ;;  %v19241_v51 = vpack.c.bf16 %v4202_v40, %v4202_v40  ;;  %v20323_v14 = vadd.f32 %v26192_v6, %v26191_v4  ;;  %v22269_v26 = vld [vmem:[#allocation3 + $0xf4] ss:$60 sps:$4 sm:$0xff]   ;;  %v4040_v28 = vadd.f32 %v20384_v9, %v3943_v59 }
 0x1da   : > { %4281 = vst [vmem:[#allocation3 + $0x12c] sm:$0xf] %v19240_v36  ;;  %4473 = vst [vmem:[#allocation3 + $0x134] sm:$0xf] %v19272_v37  ;;  %v19273_v5 = vpack.c.bf16 %v4394_v54, %v4394_v54  ;;  %v22264_v3 = vld [vmem:[#allocation3 + $0x84] ss:$60 sps:$4 sm:$0xff]   ;;  %7392 = vmatprep.mubr.bf16.mxu1 %v22269_v26 }
 0x1db   : > { %4569 = vst [vmem:[#allocation3 + $0xfc] sm:$0xf] %v19240_v36  ;;  %4761 = vst [vmem:[#allocation3 + $0x104] sm:$0xf] %v19272_v37  ;;  %7481 = vmatprep.mubr.bf16.mxu0 %v22264_v3  ;;  %v4172_v23 = vmax.f32 %v4134_v12, 0.0  ;;  %v3948_v21 = vadd.f32 %v20323_v14, %v3851_v7  ;;  %20618 = vmatpush3.bf16.msra.mxu0 %v22288_v47  ;;  %v26199_v40 = vld [vmem:[#allocation17_spill] sm:$0xff] }
 0x1dc   : > { %4856 = vst [vmem:[#allocation3 + $0xcc] sm:$0xf] %v19240_v36  ;;  %5048 = vst [vmem:[#allocation3 + $0xd4] sm:$0xf] %v19272_v37  ;;  %7482 = vmatmul.mubr.bf16.gmra.mxu0 %v22266_v20  ;;  %20619 = vmatprep.subr.bf16.mxu0 %v22297_v32  ;;  %v26200_v54 = vld [vmem:[#allocation19_spill] sm:$0xff]  ;;  %v26201_v2 = vld [vmem:[#allocation18_spill] sm:$0xff] }
 0x1dd   : > { %5144 = vst [vmem:[#allocation3 + $0x9c] sm:$0xf] %v19240_v36  ;;  %5336 = vst [vmem:[#allocation3 + $0xa4] sm:$0xf] %v19272_v37  ;;  %v19261_v44 = vpack.c.bf16 %v4172_v23, %v4172_v23  ;;  %v26202_v59 = vld [vmem:[#allocation20_spill] sm:$0xff]  ;;  %v22308_v12 = vld [vmem:[%s26158_s1 + $0x550] sm:$0xff]  }
 0x1de   : > { %5432 = vst [vmem:[#allocation3 + $0x6c] sm:$0xf] %v19240_v36  ;;  %5624 = vst [vmem:[#allocation3 + $0x74] sm:$0xf] %v19272_v37  ;;  %v4136_v37 = vpop.f32.mrf.mxu1  ;;  %v20268_v11 = vadd.f32 %v26202_v59, %v26201_v2  ;;  %v26203_v47 = vld [vmem:[#allocation22_spill] sm:$0xff]  ;;  %v24142_v32 = vld [vmem:[%s26158_s1 + $0x548] sm:$0xff]  }
 0x1df   : > { %4379 = vst [vmem:[#allocation3 + $0x1a8] sm:$0xf] %v19258_v38  ;;  %4667 = vst [vmem:[#allocation3 + $0x178] sm:$0xf] %v19258_v38  ;;  %v4137_v49 = vadd.f32 %v4136_v37, %v4040_v28  ;;  %v20271_v7 = vadd.f32 %v26204_v45, %v26203_v47  ;;  %v26207_v37 = vld [vmem:[#allocation23_spill] sm:$0xff]  ;;  %v26212_v63 = vld [vmem:[#allocation28_spill] sm:$0xff] }
 0x1e0   : > { %4954 = vst [vmem:[#allocation3 + $0x148] sm:$0xf] %v19258_v38  ;;  %5242 = vst [vmem:[#allocation3 + $0x118] sm:$0xf] %v19258_v38  ;;  %v4203_v19 = vld [vmem:[#allocation2 + $0xaf] sm:$0xff]  ;;  %v24125_v56 = vpop.f32.mrf.mxu1 }
 0x1e1   : > { %5530 = vst [vmem:[#allocation3 + $0xe8] sm:$0xf] %v19258_v38  ;;  %4186 = vst [vmem:[#allocation2 + $0xc8] sm:$0xff] %v4170_v61  ;;  %v4395_v30 = vld [vmem:[#allocation2 + $0xb1] sm:$0xff]  ;;  %v19242_v33 = vpack.c.bf16 %v4203_v19, %v4203_v19  ;;  %v20386_v38 = vpop.f32.mrf.mxu0  ;;  %v4173_v24 = vmax.f32 %v4137_v49, 0.0 }
 0x1e2   : > { %4380 = vst [vmem:[#allocation3 + $0x1e4] sm:$0xf] %v19259_v31  ;;  %4668 = vst [vmem:[#allocation3 + $0x1b4] sm:$0xf] %v19259_v31  ;;  %v19274_v42 = vpack.c.bf16 %v4395_v30, %v4395_v30  ;;  %v22271_v55 = vld [vmem:[#allocation3 + $0xf0] ss:$60 sps:$4 sm:$0xff]   ;;  %v20387_v27 = vadd.f32 %v20386_v38, %v20385_v15 }
 0x1e3   : > { %4955 = vst [vmem:[#allocation3 + $0x184] sm:$0xf] %v19259_v31  ;;  %5243 = vst [vmem:[#allocation3 + $0x154] sm:$0xf] %v19259_v31  ;;  %7393 = vmatmul.mubr.bf16.gmra.mxu1 %v22271_v55  ;;  %v20388_v62 = vpop.f32.mrf.mxu0  ;;  %v22298_v61 = vld [vmem:[%s26158_s1 + $0x558] sm:$0xff]   ;;  %v19262_v3 = vpack.c.bf16 %v4173_v24, %v4173_v24 }
 0x1e4   : > { %5531 = vst [vmem:[#allocation3 + $0x124] sm:$0xf] %v19259_v31  ;;  %4282 = vst [vmem:[#allocation3 + $0x168] sm:$0xf] %v19241_v51  ;;  %v22276_v22 = vld [vmem:[#allocation3 + $0xf8] ss:$60 sps:$4 sm:$0xff]   ;;  %v20329_v31 = vadd.f32 %v26200_v54, %v26199_v40  ;;  %v4045_v41 = vadd.f32 %v20387_v27, %v3948_v21  ;;  %20620 = vmatpush3.bf16.msra.mxu0 %v22298_v61 }
 0x1e5   : > { %4474 = vst [vmem:[#allocation3 + $0x170] sm:$0xf] %v19273_v5  ;;  %4570 = vst [vmem:[#allocation3 + $0x138] sm:$0xf] %v19241_v51  ;;  %v20389_v46 = vpop.f32.mrf.mxu0  ;;  %v26209_v21 = vld [vmem:[#allocation25_spill] sm:$0xff]  ;;  %v26210_v27 = vld [vmem:[#allocation27_spill] sm:$0xff] }
 0x1e6   : > { %4762 = vst [vmem:[#allocation3 + $0x140] sm:$0xf] %v19273_v5  ;;  %4857 = vst [vmem:[#allocation3 + $0x108] sm:$0xf] %v19241_v51  ;;  %v20390_v20 = vadd.f32 %v20389_v46, %v20388_v62  ;;  %v4142_v30 = vadd.f32 %v24077_v13, %v4045_v41  ;;  %v22279_v17 = vld [vmem:[#allocation3 + $0x16c] ss:$60 sps:$4 sm:$0xff]   ;;  %v3956_v9 = vadd.f32 %v20329_v31, %v3859_v60 }
 0x1e7   : > { %5049 = vst [vmem:[#allocation3 + $0x110] sm:$0xf] %v19273_v5  ;;  %5145 = vst [vmem:[#allocation3 + $0xd8] sm:$0xf] %v19241_v51  ;;  %7400 = vmatprep.mubr.bf16.mxu1 %v22279_v17  ;;  %v20335_v62 = vadd.f32 %v26210_v27, %v26209_v21  ;;  %v26211_v61 = vld [vmem:[#allocation26_spill] sm:$0xff] }
 0x1e8   : > { %5337 = vst [vmem:[#allocation3 + $0xe0] sm:$0xf] %v19273_v5  ;;  %5433 = vst [vmem:[#allocation3 + $0xa8] sm:$0xf] %v19241_v51  ;;  %v4204_v57 = vld [vmem:[#allocation2 + $0xc7] sm:$0xff]  ;;  %v22307_v51 = vld [vmem:[%s26158_s1 + $0x590] sm:$0xff]   ;;  %v20274_v16 = vadd.f32 %v26212_v63, %v26211_v61 }
 0x1e9   : > { %5625 = vst [vmem:[#allocation3 + $0xb0] sm:$0xf] %v19273_v5  ;;  %4187 = vst [vmem:[#allocation2 + $0xe0] sm:$0xff] %v4171_v34  ;;  %v4396_v36 = vld [vmem:[#allocation2 + $0xc9] sm:$0xff]  ;;  %v19243_v43 = vpack.c.bf16 %v4204_v57, %v4204_v57  ;;  %v3951_v5 = vadd.f32 %v20326_v8, %v3854_v18  ;;  %v20391_v34 = vpop.f32.mrf.mxu0  ;;  %v4174_v6 = vmax.f32 %v4142_v30, 0.0  ;;  %20621 = vmatprep.subr.bf16.mxu0 %v22307_v51  ;;  %v22330_v51 = vld [vmem:[%s26158_s1 + $0x540] sm:$0xff]  }
 0x1ea   : > { %5626 = vst [vmem:[#allocation3 + $0xec] sm:$0xf] %v19274_v42  ;;  %4283 = vst [vmem:[#allocation3 + $0x1a4] sm:$0xf] %v19242_v33  ;;  %v19275_v39 = vpack.c.bf16 %v4396_v36, %v4396_v36  ;;  %v3862_v18 = vadd.f32 %v20268_v11, %v26205_v50  ;;  %v26206_v36 = vld [vmem:[#allocation21_spill] sm:$0xff]  ;;  %20622 = vmatpush3.bf16.msra.mxu0 %v22308_v12  ;;  %v22339_v11 = vld [vmem:[%s26158_s1 + $0x6b8] sm:$0xff]  }
 0x1eb   : > { %4475 = vst [vmem:[#allocation3 + $0x1ac] sm:$0xf] %v19274_v42  ;;  %4571 = vst [vmem:[#allocation3 + $0x174] sm:$0xf] %v19242_v33  ;;  %v20392_v14 = vpop.f32.mrf.mxu0  ;;  %v19263_v58 = vpack.c.bf16 %v4174_v6, %v4174_v6  ;;  %v20332_v38 = vadd.f32 %v26207_v37, %v26206_v36  ;;  %v26215_v12 = vld [vmem:[#allocation30_spill] sm:$0xff] }
 0x1ec   : > { %4763 = vst [vmem:[#allocation3 + $0x17c] sm:$0xf] %v19274_v42  ;;  %4858 = vst [vmem:[#allocation3 + $0x144] sm:$0xf] %v19242_v33  ;;  %v22274_v10 = vld [vmem:[#allocation3 + $0xfc] ss:$60 sps:$4 sm:$0xff]   ;;  %v20393_v28 = vadd.f32 %v20392_v14, %v20391_v34 }
 0x1ed   : > { %5050 = vst [vmem:[#allocation3 + $0x14c] sm:$0xf] %v19274_v42  ;;  %5146 = vst [vmem:[#allocation3 + $0x114] sm:$0xf] %v19242_v33  ;;  %7489 = vmatprep.mubr.bf16.mxu0 %v22274_v10  ;;  %v20394_v53 = vpop.f32.mrf.mxu0  ;;  %v3959_v31 = vadd.f32 %v20332_v38, %v3862_v18 }
 0x1ee   : > { %5338 = vst [vmem:[#allocation3 + $0x11c] sm:$0xf] %v19274_v42  ;;  %5434 = vst [vmem:[#allocation3 + $0xe4] sm:$0xf] %v19242_v33  ;;  %7490 = vmatmul.mubr.bf16.gmra.mxu0 %v22276_v22  ;;  %v4048_v42 = vadd.f32 %v20390_v20, %v3951_v5 }
 0x1ef   : > { %4381 = vst [vmem:[#allocation3 + $0x220] sm:$0xf] %v19260_v48  ;;  %4669 = vst [vmem:[#allocation3 + $0x1f0] sm:$0xf] %v19260_v48  ;;  %v20395_v10 = vpop.f32.mrf.mxu0 }
 0x1f0   : > { %4956 = vst [vmem:[#allocation3 + $0x1c0] sm:$0xf] %v19260_v48  ;;  %5244 = vst [vmem:[#allocation3 + $0x190] sm:$0xf] %v19260_v48  ;;  %v4205_v0 = vld [vmem:[#allocation2 + $0xdf] sm:$0xff]  ;;  %v4145_v55 = vadd.f32 %v24100_v35, %v4048_v42  ;;  %v20396_v41 = vadd.f32 %v20395_v10, %v20394_v53  ;;  %v26214_v42 = vld [vmem:[#allocation29_spill] sm:$0xff] }
 0x1f1   : > { %5532 = vst [vmem:[#allocation3 + $0x160] sm:$0xf] %v19260_v48  ;;  %4188 = vst [vmem:[#allocation2 + $0xf8] sm:$0xff] %v4172_v23  ;;  %v4397_v52 = vld [vmem:[#allocation2 + $0xe1] sm:$0xff]  ;;  %v19244_v29 = vpack.c.bf16 %v4205_v0, %v4205_v0  ;;  %v4149_v23 = vpop.f32.mrf.mxu1  ;;  %v20397_v46 = vpop.f32.mrf.mxu0 }
 0x1f2   : > { %4284 = vst [vmem:[#allocation3 + $0x1e0] sm:$0xf] %v19243_v43  ;;  %4476 = vst [vmem:[#allocation3 + $0x1e8] sm:$0xf] %v19275_v39  ;;  %v19276_v19 = vpack.c.bf16 %v4397_v52, %v4397_v52  ;;  %v22281_v33 = vld [vmem:[#allocation3 + $0x168] ss:$60 sps:$4 sm:$0xff]   ;;  %v4056_v2 = vadd.f32 %v20396_v41, %v3959_v31 }
 0x1f3   : > { %4572 = vst [vmem:[#allocation3 + $0x1b0] sm:$0xf] %v19243_v43  ;;  %4764 = vst [vmem:[#allocation3 + $0x1b8] sm:$0xf] %v19275_v39  ;;  %v22317_v48 = vld [vmem:[%s26158_s1 + $0x588] sm:$0xff]   ;;  %7401 = vmatmul.mubr.bf16.gmra.mxu1 %v22281_v33  ;;  %v4175_v35 = vmax.f32 %v4145_v55, 0.0  ;;  %v24155_v54 = vpop.f32.mrf.mxu1  ;;  %v20398_v59 = vpop.f32.mrf.mxu0 }
 0x1f4   : > { %4859 = vst [vmem:[#allocation3 + $0x180] sm:$0xf] %v19243_v43  ;;  %5051 = vst [vmem:[#allocation3 + $0x188] sm:$0xf] %v19275_v39  ;;  %v22286_v57 = vld [vmem:[#allocation3 + $0x170] ss:$60 sps:$4 sm:$0xff]   ;;  %20623 = vmatprep.subr.bf16.mxu0 %v22317_v48  ;;  %v20399_v33 = vadd.f32 %v20398_v59, %v20397_v46 }
 0x1f5   : > { %5147 = vst [vmem:[#allocation3 + $0x150] sm:$0xf] %v19243_v43  ;;  %5339 = vst [vmem:[#allocation3 + $0x158] sm:$0xf] %v19275_v39  ;;  %v19264_v60 = vpack.c.bf16 %v4175_v35, %v4175_v35  ;;  %20624 = vmatpush3.bf16.msra.mxu0 %v24142_v32  ;;  %v4152_v17 = vpop.f32.mrf.mxu1 }
 0x1f6   : > { %5435 = vst [vmem:[#allocation3 + $0x120] sm:$0xf] %v19243_v43  ;;  %5627 = vst [vmem:[#allocation3 + $0x128] sm:$0xf] %v19275_v39  ;;  %v4053_v43 = vadd.f32 %v20393_v28, %v3956_v9  ;;  %v22329_v39 = vld [vmem:[%s26158_s1 + $0x580] sm:$0xff]   ;;  %v20338_v9 = vadd.f32 %v26215_v12, %v26214_v42  ;;  %v22347_v42 = vld [vmem:[%s26158_s1 + $0x5f0] sm:$0xff]  }
 0x1f7   : > { %4382 = vst [vmem:[#allocation3 + $0x25c] sm:$0xf] %v19261_v44  ;;  %4670 = vst [vmem:[#allocation3 + $0x22c] sm:$0xf] %v19261_v44  ;;  %v22289_v0 = vld [vmem:[#allocation3 + $0x1e4] ss:$60 sps:$4 sm:$0xff]   ;;  %20625 = vmatprep.subr.bf16.mxu0 %v22329_v39 }
 0x1f8   : > { %4957 = vst [vmem:[#allocation3 + $0x1fc] sm:$0xf] %v19261_v44  ;;  %5245 = vst [vmem:[#allocation3 + $0x1cc] sm:$0xf] %v19261_v44  ;;  %v4206_v13 = vld [vmem:[#allocation2 + $0xf7] sm:$0xff]  ;;  %v4150_v40 = vadd.f32 %v4149_v23, %v4053_v43  ;;  %7408 = vmatprep.mubr.bf16.mxu1 %v22289_v0  ;;  %v20435_v59 = vpop.f32.mrf.mxu1 }
 0x1f9   : > { %5533 = vst [vmem:[#allocation3 + $0x19c] sm:$0xf] %v19261_v44  ;;  %4189 = vst [vmem:[#allocation2 + $0x110] sm:$0xff] %v4173_v24  ;;  %v4398_v4 = vld [vmem:[#allocation2 + $0xf9] sm:$0xff]  ;;  %v19245_v15 = vpack.c.bf16 %v4206_v13, %v4206_v13  ;;  %v20400_v13 = vpop.f32.mrf.mxu0  ;;  %20626 = vmatpush3.bf16.msra.mxu0 %v22330_v51 }
 0x1fa   : > { %4383 = vst [vmem:[#allocation3 + $0x298] sm:$0xf] %v19262_v3  ;;  %4671 = vst [vmem:[#allocation3 + $0x268] sm:$0xf] %v19262_v3  ;;  %v19277_v26 = vpack.c.bf16 %v4398_v4, %v4398_v4  ;;  %v22284_v1 = vld [vmem:[#allocation3 + $0x174] ss:$60 sps:$4 sm:$0xff]   ;;  %20739 = vmatprep.subr.bf16.mxu0 %v22339_v11 }
 0x1fb   : > { %4958 = vst [vmem:[#allocation3 + $0x238] sm:$0xf] %v19262_v3  ;;  %5246 = vst [vmem:[#allocation3 + $0x208] sm:$0xf] %v19262_v3  ;;  %v26208_v44 = vld [vmem:[#allocation8_spill] sm:$0xff]  ;;  %7497 = vmatprep.mubr.bf16.mxu0 %v22284_v1  ;;  %v4176_v5 = vmax.f32 %v4150_v40, 0.0  ;;  %v20401_v23 = vpop.f32.mrf.mxu0 }
 0x1fc   : > { %5534 = vst [vmem:[#allocation3 + $0x1d8] sm:$0xf] %v19262_v3  ;;  %4285 = vst [vmem:[#allocation3 + $0x21c] sm:$0xf] %v19244_v29  ;;  %v3867_v49 = vadd.f32 %v20271_v7, %v26208_v44  ;;  %7498 = vmatmul.mubr.bf16.gmra.mxu0 %v22286_v57  ;;  %v26213_v3 = vld [vmem:[#allocation9_spill] sm:$0xff]  ;;  %v4153_v7 = vadd.f32 %v4152_v17, %v4056_v2  ;;  %v20402_v18 = vadd.f32 %v20401_v23, %v20400_v13  ;;  %v22337_v11 = vld [vmem:[%s26158_s1 + $0x5f8] sm:$0xff]  }
 0x1fd   : > { %4477 = vst [vmem:[#allocation3 + $0x224] sm:$0xf] %v19276_v19  ;;  %4573 = vst [vmem:[#allocation3 + $0x1ec] sm:$0xf] %v19244_v29  ;;  %v3870_v20 = vadd.f32 %v20274_v16, %v26213_v3  ;;  %v19265_v34 = vpack.c.bf16 %v4176_v5, %v4176_v5  ;;  %v22331_v2 = vld [vmem:[#allocation3 + $0x1c] ss:$60 sps:$4 sm:$0xff]  }
 0x1fe   : > { %4765 = vst [vmem:[#allocation3 + $0x1f4] sm:$0xf] %v19276_v19  ;;  %4860 = vst [vmem:[#allocation3 + $0x1bc] sm:$0xf] %v19244_v29  ;;  %v4177_v55 = vmax.f32 %v4153_v7, 0.0  ;;  %v22352_v7 = vld [vmem:[%s26158_s1 + $0x670] sm:$0xff]  }
 0x1ff   : > { %5052 = vst [vmem:[#allocation3 + $0x1c4] sm:$0xf] %v19276_v19  ;;  %5148 = vst [vmem:[#allocation3 + $0x18c] sm:$0xf] %v19244_v29  ;;  %v3967_v48 = vadd.f32 %v20338_v9, %v3870_v20  ;;  %v22338_v12 = vld [vmem:[#allocation3 + $0x18] ss:$60 sps:$4 sm:$0xff]  }
 0x200   : > { %5340 = vst [vmem:[#allocation3 + $0x194] sm:$0xf] %v19276_v19  ;;  %5436 = vst [vmem:[#allocation3 + $0x15c] sm:$0xf] %v19244_v29  ;;  %v4207_v8 = vld [vmem:[#allocation2 + $0x10f] sm:$0xff]  ;;  %v3964_v29 = vadd.f32 %v20335_v62, %v3867_v49 }
 0x201   : > { %5628 = vst [vmem:[#allocation3 + $0x164] sm:$0xf] %v19276_v19  ;;  %4190 = vst [vmem:[#allocation2 + $0x128] sm:$0xff] %v4174_v6  ;;  %v4399_v24 = vld [vmem:[#allocation2 + $0x111] sm:$0xff]  ;;  %v19246_v22 = vpack.c.bf16 %v4207_v8, %v4207_v8  ;;  %v4064_v36 = vadd.f32 %v20402_v18, %v3967_v48  ;;  %v22357_v13 = vld [vmem:[%s26158_s1 + $0x5e8] sm:$0xff]  }
 0x202   : > { %4286 = vst [vmem:[#allocation3 + $0x258] sm:$0xf] %v19245_v15  ;;  %4478 = vst [vmem:[#allocation3 + $0x260] sm:$0xf] %v19277_v26  ;;  %v19278_v25 = vpack.c.bf16 %v4399_v24, %v4399_v24  ;;  %v4061_v14 = vadd.f32 %v20399_v33, %v3964_v29  ;;  %v22299_v53 = vld [vmem:[#allocation3 + $0x25c] ss:$60 sps:$4 sm:$0xff]  }
 0x203   : > { %4574 = vst [vmem:[#allocation3 + $0x228] sm:$0xf] %v19245_v15  ;;  %4766 = vst [vmem:[#allocation3 + $0x230] sm:$0xf] %v19277_v26  ;;  %v22291_v52 = vld [vmem:[#allocation3 + $0x1e0] ss:$60 sps:$4 sm:$0xff]   ;;  %v4161_v39 = vadd.f32 %v24155_v54, %v4064_v36 }
 0x204   : > { %4861 = vst [vmem:[#allocation3 + $0x1f8] sm:$0xf] %v19245_v15  ;;  %5053 = vst [vmem:[#allocation3 + $0x200] sm:$0xf] %v19277_v26  ;;  %7409 = vmatmul.mubr.bf16.gmra.mxu1 %v22291_v52  ;;  %v22296_v6 = vld [vmem:[#allocation3 + $0x1e8] ss:$60 sps:$4 sm:$0xff]   ;;  %v4158_v50 = vadd.f32 %v24125_v56, %v4061_v14 }
 0x205   : > { %5149 = vst [vmem:[#allocation3 + $0x1c8] sm:$0xf] %v19245_v15  ;;  %5341 = vst [vmem:[#allocation3 + $0x1d0] sm:$0xf] %v19277_v26  ;;  %7416 = vmatprep.mubr.bf16.mxu1 %v22299_v53  ;;  %v4179_v44 = vmax.f32 %v4161_v39, 0.0  ;;  %v22342_v33 = vld [vmem:[%s26158_s1 + $0x678] sm:$0xff]  }
 0x206   : > { %5437 = vst [vmem:[#allocation3 + $0x198] sm:$0xf] %v19245_v15  ;;  %5629 = vst [vmem:[#allocation3 + $0x1a0] sm:$0xf] %v19277_v26  ;;  %v4178_v57 = vmax.f32 %v4158_v50, 0.0  ;;  %v22349_v9 = vld [vmem:[%s26158_s1 + $0x6b0] sm:$0xff]  }
 0x207   : > { %4384 = vst [vmem:[#allocation3 + $0x2d4] sm:$0xf] %v19263_v58  ;;  %4672 = vst [vmem:[#allocation3 + $0x2a4] sm:$0xf] %v19263_v58  ;;  %v19362_v61 = vpack.c.bf16 %v4179_v44, %v4179_v44  ;;  %v22324_v52 = vld [vmem:[#allocation3 + $0x14] ss:$60 sps:$4 sm:$0xff]  }
 0x208   : > { %4959 = vst [vmem:[#allocation3 + $0x274] sm:$0xf] %v19263_v58  ;;  %5247 = vst [vmem:[#allocation3 + $0x244] sm:$0xf] %v19263_v58  ;;  %v4208_v19 = vld [vmem:[#allocation2 + $0x127] sm:$0xff]  ;;  %v19314_v43 = vpack.c.bf16 %v4178_v57, %v4178_v57  ;;  %v22377_v18 = vld [vmem:[%s26158_s1 + $0x5d8] sm:$0xff]  }
 0x209   : > { %5535 = vst [vmem:[#allocation3 + $0x214] sm:$0xf] %v19263_v58  ;;  %4191 = vst [vmem:[#allocation2 + $0x140] sm:$0xff] %v4175_v35  ;;  %v4400_v30 = vld [vmem:[#allocation2 + $0x129] sm:$0xff]  ;;  %v19247_v47 = vpack.c.bf16 %v4208_v19, %v4208_v19  ;;  %v19266_v58 = vpack.c.bf16 %v4177_v55, %v4177_v55  ;;  %v22345_v14 = vld [vmem:[#allocation3 + $0x104] ss:$60 sps:$4 sm:$0xff]  }
 0x20a   : > { %4287 = vst [vmem:[#allocation3 + $0x294] sm:$0xf] %v19246_v22  ;;  %4479 = vst [vmem:[#allocation3 + $0x29c] sm:$0xf] %v19278_v25  ;;  %v19279_v45 = vpack.c.bf16 %v4400_v30, %v4400_v30  ;;  %v22294_v4 = vld [vmem:[#allocation3 + $0x1ec] ss:$60 sps:$4 sm:$0xff]   ;;  %v20436_v30 = vpop.f32.mrf.mxu1 }
 0x20b   : > { %4575 = vst [vmem:[#allocation3 + $0x264] sm:$0xf] %v19246_v22  ;;  %4767 = vst [vmem:[#allocation3 + $0x26c] sm:$0xf] %v19278_v25  ;;  %7505 = vmatprep.mubr.bf16.mxu0 %v22294_v4  ;;  %v22333_v29 = vld [vmem:[#allocation3 + $0x10] ss:$60 sps:$4 sm:$0xff]   ;;  %v24175_v17 = vadd.f32 %v20436_v30, %v20435_v59 }
 0x20c   : > { %4862 = vst [vmem:[#allocation3 + $0x234] sm:$0xf] %v19246_v22  ;;  %5054 = vst [vmem:[#allocation3 + $0x23c] sm:$0xf] %v19278_v25  ;;  %7506 = vmatmul.mubr.bf16.gmra.mxu0 %v22296_v6  ;;  %v22344_v19 = vld [vmem:[%s26158_s1 + $0x630] sm:$0xff]   ;;  %v22359_v4 = vld [vmem:[%s26158_s1 + $0x6a8] sm:$0xff]  }
 0x20d   : > { %5150 = vst [vmem:[#allocation3 + $0x204] sm:$0xf] %v19246_v22  ;;  %5342 = vst [vmem:[#allocation3 + $0x20c] sm:$0xf] %v19278_v25  ;;  %v22343_v6 = vld [vmem:[#allocation3 + $0x88] ss:$60 sps:$4 sm:$0xff]  }
 0x20e   : > { %5438 = vst [vmem:[#allocation3 + $0x1d4] sm:$0xf] %v19246_v22  ;;  %5630 = vst [vmem:[#allocation3 + $0x1dc] sm:$0xf] %v19278_v25  ;;  %v22364_v48 = vld [vmem:[%s26158_s1 + $0x620] sm:$0xff]   ;;  %v22379_v53 = vld [vmem:[%s26158_s1 + $0x698] sm:$0xff]  }
 0x20f   : > { %4385 = vst [vmem:[#allocation3 + $0x310] sm:$0xf] %v19264_v60  ;;  %4673 = vst [vmem:[#allocation3 + $0x2e0] sm:$0xf] %v19264_v60  ;;  %v22348_v23 = vld [vmem:[#allocation3 + $0x90] ss:$60 sps:$4 sm:$0xff]  }
 0x210   : > { %4960 = vst [vmem:[#allocation3 + $0x2b0] sm:$0xf] %v19264_v60  ;;  %5248 = vst [vmem:[#allocation3 + $0x280] sm:$0xf] %v19264_v60  ;;  %v4209_v15 = vld [vmem:[#allocation2 + $0x13f] sm:$0xff]  ;;  %v22384_v36 = vld [vmem:[%s26158_s1 + $0x610] sm:$0xff]  }
 0x211   : > { %5536 = vst [vmem:[#allocation3 + $0x250] sm:$0xf] %v19264_v60  ;;  %4192 = vst [vmem:[#allocation2 + $0x158] sm:$0xff] %v4176_v5  ;;  %v4401_v26 = vld [vmem:[#allocation2 + $0x141] sm:$0xff]  ;;  %v19248_v28 = vpack.c.bf16 %v4209_v15, %v4209_v15  ;;  %v22301_v1 = vld [vmem:[#allocation3 + $0x258] ss:$60 sps:$4 sm:$0xff]  }
 0x212   : > { %4386 = vst [vmem:[#allocation3 + $0x34c] sm:$0xf] %v19265_v34  ;;  %4674 = vst [vmem:[#allocation3 + $0x31c] sm:$0xf] %v19265_v34  ;;  %v19280_v32 = vpack.c.bf16 %v4401_v26, %v4401_v26  ;;  %7417 = vmatmul.mubr.bf16.gmra.mxu1 %v22301_v1  ;;  %v22306_v21 = vld [vmem:[#allocation3 + $0x260] ss:$60 sps:$4 sm:$0xff]  }
 0x213   : > { %4961 = vst [vmem:[#allocation3 + $0x2ec] sm:$0xf] %v19265_v34  ;;  %5249 = vst [vmem:[#allocation3 + $0x2bc] sm:$0xf] %v19265_v34  ;;  %v22362_v15 = vld [vmem:[%s26158_s1 + $0x668] sm:$0xff]   ;;  %v22367_v26 = vld [vmem:[%s26158_s1 + $0x5e0] sm:$0xff]  }
 0x214   : > { %5537 = vst [vmem:[#allocation3 + $0x28c] sm:$0xf] %v19265_v34  ;;  %4288 = vst [vmem:[#allocation3 + $0x2d0] sm:$0xf] %v19247_v47  ;;  %v22335_v34 = vld [vmem:[#allocation3 + $0x8c] ss:$60 sps:$4 sm:$0xff]  }
 0x215   : > { %4480 = vst [vmem:[#allocation3 + $0x2d8] sm:$0xf] %v19279_v45  ;;  %4576 = vst [vmem:[#allocation3 + $0x2a0] sm:$0xf] %v19247_v47  ;;  %v22372_v50 = vld [vmem:[%s26158_s1 + $0x660] sm:$0xff]   ;;  %v22392_v39 = vld [vmem:[%s26158_s1 + $0x650] sm:$0xff]  }
 0x216   : > { %4768 = vst [vmem:[#allocation3 + $0x2a8] sm:$0xf] %v19279_v45  ;;  %4863 = vst [vmem:[#allocation3 + $0x270] sm:$0xf] %v19247_v47  ;;  %v22309_v8 = vld [vmem:[#allocation3 + $0x2d4] ss:$60 sps:$4 sm:$0xff]  }
 0x217   : > { %5055 = vst [vmem:[#allocation3 + $0x278] sm:$0xf] %v19279_v45  ;;  %5151 = vst [vmem:[#allocation3 + $0x240] sm:$0xf] %v19247_v47  ;;  %7424 = vmatprep.mubr.bf16.mxu1 %v22309_v8  ;;  %v22355_v1 = vld [vmem:[#allocation3 + $0x17c] ss:$60 sps:$4 sm:$0xff]  }
 0x218   : > { %5343 = vst [vmem:[#allocation3 + $0x248] sm:$0xf] %v19279_v45  ;;  %5439 = vst [vmem:[#allocation3 + $0x210] sm:$0xf] %v19247_v47  ;;  %v4210_v37 = vld [vmem:[#allocation2 + $0x157] sm:$0xff] }
 0x219   : > { %5631 = vst [vmem:[#allocation3 + $0x218] sm:$0xf] %v19279_v45  ;;  %4193 = vst [vmem:[#allocation2 + $0x170] sm:$0xff] %v4177_v55  ;;  %v4402_v56 = vld [vmem:[#allocation2 + $0x159] sm:$0xff]  ;;  %v19249_v38 = vpack.c.bf16 %v4210_v37, %v4210_v37  ;;  %v22340_v47 = vld [vmem:[#allocation3 + $0x94] ss:$60 sps:$4 sm:$0xff]  }
 0x21a   : > { %4289 = vst [vmem:[#allocation3 + $0x30c] sm:$0xf] %v19248_v28  ;;  %4481 = vst [vmem:[#allocation3 + $0x314] sm:$0xf] %v19280_v32  ;;  %v19281_v35 = vpack.c.bf16 %v4402_v56, %v4402_v56  ;;  %v22354_v45 = vld [vmem:[%s26158_s1 + $0x628] sm:$0xff]   ;;  %v22369_v55 = vld [vmem:[%s26158_s1 + $0x6a0] sm:$0xff]  }
 0x21b   : > { %4577 = vst [vmem:[#allocation3 + $0x2dc] sm:$0xf] %v19248_v28  ;;  %4769 = vst [vmem:[#allocation3 + $0x2e4] sm:$0xf] %v19280_v32  ;;  %v22387_v37 = vld [vmem:[%s26158_s1 + $0x5d0] sm:$0xff]   ;;  %v9510_v59 = vld [vmem:[#allocation2 + $0x1b9] sm:$0xff] }
 0x21c   : > { %4864 = vst [vmem:[#allocation3 + $0x2ac] sm:$0xf] %v19248_v28  ;;  %5056 = vst [vmem:[#allocation3 + $0x2b4] sm:$0xf] %v19280_v32  ;;  %v22304_v49 = vld [vmem:[#allocation3 + $0x264] ss:$60 sps:$4 sm:$0xff]  }
 0x21d   : > { %5152 = vst [vmem:[#allocation3 + $0x27c] sm:$0xf] %v19248_v28  ;;  %5344 = vst [vmem:[#allocation3 + $0x284] sm:$0xf] %v19280_v32  ;;  %7513 = vmatprep.mubr.bf16.mxu0 %v22304_v49  ;;  %v22389_v56 = vld [vmem:[%s26158_s1 + $0x690] sm:$0xff]   ;;  %v22399_v49 = vld [vmem:[%s26158_s1 + $0x688] sm:$0xff]  }
 0x21e   : > { %5440 = vst [vmem:[#allocation3 + $0x24c] sm:$0xf] %v19248_v28  ;;  %5632 = vst [vmem:[#allocation3 + $0x254] sm:$0xf] %v19280_v32  ;;  %7514 = vmatmul.mubr.bf16.gmra.mxu0 %v22306_v21  ;;  %v22350_v28 = vld [vmem:[#allocation3 + $0x10c] ss:$60 sps:$4 sm:$0xff]  }
 0x21f   : > { %4387 = vst [vmem:[#allocation3 + $0x388] sm:$0xf] %v19266_v58  ;;  %4675 = vst [vmem:[#allocation3 + $0x358] sm:$0xf] %v19266_v58  ;;  %v22374_v32 = vld [vmem:[%s26158_s1 + $0x618] sm:$0xff]  }
 0x220   : > { %4962 = vst [vmem:[#allocation3 + $0x328] sm:$0xf] %v19266_v58  ;;  %5250 = vst [vmem:[#allocation3 + $0x2f8] sm:$0xf] %v19266_v58  ;;  %v4211_v27 = vld [vmem:[#allocation2 + $0x16f] sm:$0xff] }
 0x221   : > { %5538 = vst [vmem:[#allocation3 + $0x2c8] sm:$0xf] %v19266_v58  ;;  %4194 = vst [vmem:[#allocation2 + $0x188] sm:$0xff] %v4178_v57  ;;  %v4403_v62 = vld [vmem:[#allocation2 + $0x171] sm:$0xff]  ;;  %v19250_v63 = vpack.c.bf16 %v4211_v27, %v4211_v27  ;;  %v22353_v58 = vld [vmem:[#allocation3 + $0x100] ss:$60 sps:$4 sm:$0xff]  }
 0x222   : > { %4290 = vst [vmem:[#allocation3 + $0x348] sm:$0xf] %v19249_v38  ;;  %4482 = vst [vmem:[#allocation3 + $0x350] sm:$0xf] %v19281_v35  ;;  %v19282_v16 = vpack.c.bf16 %v4403_v62, %v4403_v62  ;;  %v22311_v24 = vld [vmem:[#allocation3 + $0x2d0] ss:$60 sps:$4 sm:$0xff]  }
 0x223   : > { %4578 = vst [vmem:[#allocation3 + $0x318] sm:$0xf] %v19249_v38  ;;  %4770 = vst [vmem:[#allocation3 + $0x320] sm:$0xf] %v19281_v35  ;;  %7425 = vmatmul.mubr.bf16.gmra.mxu1 %v22311_v24  ;;  %v22316_v54 = vld [vmem:[#allocation3 + $0x2d8] ss:$60 sps:$4 sm:$0xff]  }
 0x224   : > { %4865 = vst [vmem:[#allocation3 + $0x2e8] sm:$0xf] %v19249_v38  ;;  %5057 = vst [vmem:[#allocation3 + $0x2f0] sm:$0xf] %v19281_v35  ;;  %v22382_v57 = vld [vmem:[%s26158_s1 + $0x658] sm:$0xff]   ;;  %v22402_v62 = vld [vmem:[%s26158_s1 + $0x648] sm:$0xff]  }
 0x225   : > { %5153 = vst [vmem:[#allocation3 + $0x2b8] sm:$0xf] %v19249_v38  ;;  %5345 = vst [vmem:[#allocation3 + $0x2c0] sm:$0xf] %v19281_v35  ;;  %v22363_v21 = vld [vmem:[#allocation3 + $0x178] ss:$60 sps:$4 sm:$0xff]  }
 0x226   : > { %5441 = vst [vmem:[#allocation3 + $0x288] sm:$0xf] %v19249_v38  ;;  %5633 = vst [vmem:[#allocation3 + $0x290] sm:$0xf] %v19281_v35  ;;  %v22319_v5 = vld [vmem:[#allocation3 + $0x34c] ss:$60 sps:$4 sm:$0xff]  }
 0x227   : > { %4676 = vst [vmem:[#allocation3 + $0x394] sm:$0xf] %v19314_v43  ;;  %4963 = vst [vmem:[#allocation3 + $0x364] sm:$0xf] %v19314_v43  ;;  %7432 = vmatprep.mubr.bf16.mxu1 %v22319_v5  ;;  %v22394_v38 = vld [vmem:[%s26158_s1 + $0x608] sm:$0xff]   ;;  %v22414_v24 = vld [vmem:[%s26158_s1 + $0x738] sm:$0xff]  }
 0x228   : > { %5251 = vst [vmem:[#allocation3 + $0x334] sm:$0xf] %v19314_v43  ;;  %5539 = vst [vmem:[#allocation3 + $0x304] sm:$0xf] %v19314_v43  ;;  %v4500_v10 = vld [vmem:[#allocation2 + $0x187] sm:$0xff] }
 0x229   : > { %4195 = vst [vmem:[#allocation2 + $0x1a0] sm:$0xff] %v4179_v44  ;;  %4964 = vst [vmem:[#allocation3 + $0x3a0] sm:$0xf] %v19362_v61  ;;  %v4692_v22 = vld [vmem:[#allocation2 + $0x189] sm:$0xff]  ;;  %v19298_v25 = vpack.c.bf16 %v4500_v10, %v4500_v10  ;;  %v22360_v43 = vld [vmem:[#allocation3 + $0x184] ss:$60 sps:$4 sm:$0xff]  }
 0x22a   : > { %5252 = vst [vmem:[#allocation3 + $0x370] sm:$0xf] %v19362_v61  ;;  %5540 = vst [vmem:[#allocation3 + $0x340] sm:$0xf] %v19362_v61  ;;  %v19330_v60 = vpack.c.bf16 %v4692_v22, %v4692_v22  ;;  %v22314_v40 = vld [vmem:[#allocation3 + $0x2dc] ss:$60 sps:$4 sm:$0xff]  }
 0x22b   : > { %4291 = vst [vmem:[#allocation3 + $0x384] sm:$0xf] %v19250_v63  ;;  %4483 = vst [vmem:[#allocation3 + $0x38c] sm:$0xf] %v19282_v16  ;;  %7521 = vmatprep.mubr.bf16.mxu0 %v22314_v40  ;;  %v22358_v35 = vld [vmem:[#allocation3 + $0x108] ss:$60 sps:$4 sm:$0xff]  }
 0x22c   : > { %4579 = vst [vmem:[#allocation3 + $0x354] sm:$0xf] %v19250_v63  ;;  %4771 = vst [vmem:[#allocation3 + $0x35c] sm:$0xf] %v19282_v16  ;;  %7522 = vmatmul.mubr.bf16.gmra.mxu0 %v22316_v54  ;;  %v22397_v44 = vld [vmem:[%s26158_s1 + $0x5c8] sm:$0xff]   ;;  %v22404_v61 = vld [vmem:[%s26158_s1 + $0x600] sm:$0xff]  }
 0x22d   : > { %4866 = vst [vmem:[#allocation3 + $0x324] sm:$0xf] %v19250_v63  ;;  %5058 = vst [vmem:[#allocation3 + $0x32c] sm:$0xf] %v19282_v16  ;;  %v22365_v27 = vld [vmem:[#allocation3 + $0x1f4] ss:$60 sps:$4 sm:$0xff]  }
 0x22e   : > { %5154 = vst [vmem:[#allocation3 + $0x2f4] sm:$0xf] %v19250_v63  ;;  %5346 = vst [vmem:[#allocation3 + $0x2fc] sm:$0xf] %v19282_v16  ;;  %v22368_v8 = vld [vmem:[#allocation3 + $0x180] ss:$60 sps:$4 sm:$0xff]  }
 0x22f   : > { %5442 = vst [vmem:[#allocation3 + $0x2c4] sm:$0xf] %v19250_v63  ;;  %5634 = vst [vmem:[#allocation3 + $0x2cc] sm:$0xf] %v19282_v16  ;;  %v22405_v63 = vld [vmem:[%s26158_s1 + $0x5c0] sm:$0xff]  }
 0x230   : > { %4580 = vst [vmem:[#allocation3 + $0x390] sm:$0xf] %v19298_v25  ;;  %4772 = vst [vmem:[#allocation3 + $0x398] sm:$0xf] %v19330_v60  ;;  %v4788_v31 = vld [vmem:[#allocation2 + $0x19f] sm:$0xff] }
 0x231   : > { %4867 = vst [vmem:[#allocation3 + $0x360] sm:$0xf] %v19298_v25  ;;  %5059 = vst [vmem:[#allocation3 + $0x368] sm:$0xf] %v19330_v60  ;;  %v4980_v41 = vld [vmem:[#allocation2 + $0x1a1] sm:$0xff]  ;;  %v19346_v46 = vpack.c.bf16 %v4788_v31, %v4788_v31 }
 0x232   : > { %5155 = vst [vmem:[#allocation3 + $0x330] sm:$0xf] %v19298_v25  ;;  %5347 = vst [vmem:[#allocation3 + $0x338] sm:$0xf] %v19330_v60  ;;  %v19378_v51 = vpack.c.bf16 %v4980_v41, %v4980_v41  ;;  %v22321_v0 = vld [vmem:[#allocation3 + $0x348] ss:$60 sps:$4 sm:$0xff]  }
 0x233   : > { %5443 = vst [vmem:[#allocation3 + $0x300] sm:$0xf] %v19298_v25  ;;  %5635 = vst [vmem:[#allocation3 + $0x308] sm:$0xf] %v19330_v60  ;;  %7433 = vmatmul.mubr.bf16.gmra.mxu1 %v22321_v0  ;;  %v22328_v20 = vld [vmem:[#allocation3 + $0x350] ss:$60 sps:$4 sm:$0xff]  }
 0x234   : > { %4868 = vst [vmem:[#allocation3 + $0x39c] sm:$0xf] %v19346_v46  ;;  %5060 = vst [vmem:[#allocation3 + $0x3a4] sm:$0xf] %v19378_v51  ;;  %7570 = vmatprep.mubr.bf16.mxu1 %v22324_v52  ;;  %v22409_v16 = vld [vmem:[%s26158_s1 + $0x680] sm:$0xff]   ;;  %v22419_v25 = vld [vmem:[%s26158_s1 + $0x778] sm:$0xff]  }
 0x235   : > { %5156 = vst [vmem:[#allocation3 + $0x36c] sm:$0xf] %v19346_v46  ;;  %5348 = vst [vmem:[#allocation3 + $0x374] sm:$0xf] %v19378_v51  ;;  %v22370_v10 = vld [vmem:[#allocation3 + $0x1fc] ss:$60 sps:$4 sm:$0xff]  }
 0x236   : > { %5444 = vst [vmem:[#allocation3 + $0x33c] sm:$0xf] %v19346_v46  ;;  %5636 = vst [vmem:[#allocation3 + $0x344] sm:$0xf] %v19378_v51  ;;  %v22410_v22 = vld [vmem:[%s26158_s1 + $0x640] sm:$0xff]  }
 0x237   : > { %v22326_v3 = vld [vmem:[#allocation3 + $0x354] ss:$60 sps:$4 sm:$0xff]   ;;  %v22375_v40 = vld [vmem:[#allocation3 + $0x26c] ss:$60 sps:$4 sm:$0xff]   ;;  %v22385_v46 = vld [vmem:[#allocation3 + $0x2e4] ss:$60 sps:$4 sm:$0xff]  }
 0x238   : > { %7529 = vmatprep.mubr.bf16.mxu0 %v22326_v3  ;;  %v22373_v60 = vld [vmem:[#allocation3 + $0x1f0] ss:$60 sps:$4 sm:$0xff]   ;;  %v22378_v54 = vld [vmem:[#allocation3 + $0x1f8] ss:$60 sps:$4 sm:$0xff]   ;;  %v22383_v41 = vld [vmem:[#allocation3 + $0x268] ss:$60 sps:$4 sm:$0xff]  }
 0x239   : > { %7530 = vmatmul.mubr.bf16.gmra.mxu0 %v22328_v20  ;;  %v22380_v31 = vld [vmem:[#allocation3 + $0x274] ss:$60 sps:$4 sm:$0xff]   ;;  %v22390_v5 = vld [vmem:[#allocation3 + $0x2ec] ss:$60 sps:$4 sm:$0xff]   ;;  %v22393_v0 = vld [vmem:[#allocation3 + $0x2e0] ss:$60 sps:$4 sm:$0xff]  }
 0x23a   : > { %7667 = vmatprep.mubr.bf16.mxu0 %v22331_v2  ;;  %v22388_v51 = vld [vmem:[#allocation3 + $0x270] ss:$60 sps:$4 sm:$0xff]   ;;  %v22395_v52 = vld [vmem:[#allocation3 + $0x35c] ss:$60 sps:$4 sm:$0xff]   ;;  %v22398_v3 = vld [vmem:[#allocation3 + $0x2e8] ss:$60 sps:$4 sm:$0xff]  }
 0x23b   : > { %7571 = vmatmul.mubr.bf16.vlgmr.msra.gmra.mxu1 %v22333_v29  ;;  %v22400_v20 = vld [vmem:[#allocation3 + $0x364] ss:$60 sps:$4 sm:$0xff]   ;;  %v19713_v29 = vpack.c.bf16 %v9510_v59, %v9510_v59  ;;  %v22403_v30 = vld [vmem:[#allocation3 + $0x358] ss:$60 sps:$4 sm:$0xff]   ;;  %v22484_v59 = vld [vmem:[#allocation3 + $0x30] ss:$60 sps:$4 sm:$0xff]  }
 0x23c   : > { %7578 = vmatprep.mubr.bf16.mxu1 %v22335_v34  ;;  %20676 = vmatpush3.bf16.msra.mxu1 %v22337_v11  ;;  %v24267_v2 = vld [vmem:[#allocation3 + $0x380] ss:$60 sps:$4 sm:$0xff]   ;;  %v9511_v11 = vld [vmem:[#allocation2 + $0x1d1] sm:$0xff] }
 0x23d   : > { %20677 = vmatprep.subr.bf16.mxu1 %v22344_v19  ;;  %v19714_v19 = vpack.c.bf16 %v9511_v11, %v9511_v11  ;;  %9590 = vst [vmem:[#allocation3 + $0x380] sm:$0xf] %v19713_v29  ;;  %v22406_v34 = vld [vmem:[#allocation3 + $0x24] ss:$60 sps:$4 sm:$0xff]   ;;  %v20438_v11 = vpop.f32.mrf.mxu1  ;;  %v22485_v29 = vld [vmem:[#allocation3 + $0xac] ss:$60 sps:$4 sm:$0xff]  }
 0x23f   : > { %9591 = vst [vmem:[#allocation3 + $0x3bc] sm:$0xf] %v19714_v19  ;;  %v22487_v19 = vld [vmem:[#allocation3 + $0xb0] ss:$60 sps:$4 sm:$0xff]  }
 0x240   : > { %20678 = vmatpush3.bf16.msra.mxu1 %v22347_v42  ;;  %v22411_v42 = vld [vmem:[#allocation3 + $0x2c] ss:$60 sps:$4 sm:$0xff]  }
 0x241   : > { %7668 = vmatmul.mubr.bf16.vlgmr.msra.gmra.mxu0 %v22338_v12  ;;  %20679 = vmatprep.subr.bf16.mxu1 %v22354_v45  ;;  %v22417_v12 = vld [vmem:[%s26158_s1 + $0x6f8] sm:$0xff]  }
 0x242   : > { %7675 = vmatprep.mubr.bf16.mxu0 %v22340_v47  ;;  %20740 = vmatpush3.bf16.msra.mxu0 %v22342_v33  ;;  %v22408_v33 = vld [vmem:[#allocation3 + $0x360] ss:$60 sps:$4 sm:$0xff]   ;;  %v22423_v47 = vld [vmem:[%s26158_s1 + $0x730] sm:$0xff]  }
 0x243   : > { %20741 = vmatprep.subr.bf16.mxu0 %v22349_v9  ;;  %7579 = vmatmul.mubr.bf16.gmra.mxu1 %v22343_v6  ;;  %v22413_v9 = vld [vmem:[#allocation3 + $0x20] ss:$60 sps:$4 sm:$0xff]  }
 0x244   : > { %7586 = vmatprep.mubr.bf16.mxu1 %v22345_v14  ;;  %20680 = vmatpush3.bf16.msra.mxu1 %v22357_v13  ;;  %v22415_v45 = vld [vmem:[#allocation3 + $0x9c] ss:$60 sps:$4 sm:$0xff]   ;;  %v22426_v13 = vld [vmem:[%s26158_s1 + $0x6f0] sm:$0xff]   ;;  %v22420_v6 = vld [vmem:[#allocation3 + $0xa4] ss:$60 sps:$4 sm:$0xff]  }
 0x245   : > { %20681 = vmatprep.subr.bf16.mxu1 %v22364_v48  ;;  %v22432_v14 = vld [vmem:[%s26158_s1 + $0x728] sm:$0xff]   ;;  %v22422_v48 = vld [vmem:[#allocation3 + $0x98] ss:$60 sps:$4 sm:$0xff]  }
 0x246   : > { %20742 = vmatpush3.bf16.msra.mxu0 %v22352_v7  ;;  %v22418_v7 = vld [vmem:[#allocation3 + $0x28] ss:$60 sps:$4 sm:$0xff]  }
 0x247   : > { %20743 = vmatprep.subr.bf16.mxu0 %v22359_v4  ;;  %v22428_v4 = vld [vmem:[%s26158_s1 + $0x770] sm:$0xff]  }
 0x248   : > { %20682 = vmatpush3.bf16.msra.mxu1 %v22367_v26  ;;  %v22437_v26 = vld [vmem:[%s26158_s1 + $0x768] sm:$0xff]  }
 0x249   : > { %7676 = vmatmul.mubr.bf16.gmra.mxu0 %v22348_v23  ;;  %20683 = vmatprep.subr.bf16.mxu1 %v22374_v32  ;;  %v22441_v23 = vld [vmem:[%s26158_s1 + $0x720] sm:$0xff]  }
 0x24a   : > { %7683 = vmatprep.mubr.bf16.mxu0 %v22350_v28  ;;  %20744 = vmatpush3.bf16.msra.mxu0 %v22362_v15  ;;  %v22435_v15 = vld [vmem:[%s26158_s1 + $0x6e8] sm:$0xff]   ;;  %v22427_v28 = vld [vmem:[#allocation3 + $0xa0] ss:$60 sps:$4 sm:$0xff]  }
 0x24b   : > { %20745 = vmatprep.subr.bf16.mxu0 %v22369_v55  ;;  %7587 = vmatmul.mubr.bf16.gmra.mxu1 %v22353_v58  ;;  %v22424_v55 = vld [vmem:[#allocation3 + $0x114] ss:$60 sps:$4 sm:$0xff]   ;;  %v22444_v32 = vld [vmem:[%s26158_s1 + $0x6e0] sm:$0xff]   ;;  %v22450_v58 = vld [vmem:[%s26158_s1 + $0x718] sm:$0xff]  }
 0x24c   : > { %7594 = vmatprep.mubr.bf16.mxu1 %v22355_v1  ;;  %20684 = vmatpush3.bf16.msra.mxu1 %v22377_v18  ;;  %v22429_v18 = vld [vmem:[#allocation3 + $0x11c] ss:$60 sps:$4 sm:$0xff]  }
 0x24d   : > { %20685 = vmatprep.subr.bf16.mxu1 %v22384_v36  ;;  %v22453_v1 = vld [vmem:[%s26158_s1 + $0x6d8] sm:$0xff]   ;;  %v22433_v36 = vld [vmem:[#allocation3 + $0x18c] ss:$60 sps:$4 sm:$0xff]  }
 0x24e   : > { %20746 = vmatpush3.bf16.msra.mxu0 %v22372_v50  ;;  %v22446_v50 = vld [vmem:[%s26158_s1 + $0x760] sm:$0xff]  }
 0x24f   : > { %20747 = vmatprep.subr.bf16.mxu0 %v22379_v53  ;;  %v22431_v53 = vld [vmem:[#allocation3 + $0x110] ss:$60 sps:$4 sm:$0xff]  }
 0x250   : > { %20686 = vmatpush3.bf16.msra.mxu1 %v22387_v37  ;;  %v22459_v37 = vld [vmem:[%s26158_s1 + $0x710] sm:$0xff]  }
 0x251   : > { %7684 = vmatmul.mubr.bf16.gmra.mxu0 %v22358_v35  ;;  %20687 = vmatprep.subr.bf16.mxu1 %v22394_v38  ;;  %v22462_v38 = vld [vmem:[%s26158_s1 + $0x6d0] sm:$0xff]  }
 0x252   : > { %7691 = vmatprep.mubr.bf16.mxu0 %v22360_v43  ;;  %20748 = vmatpush3.bf16.msra.mxu0 %v22382_v57  ;;  %v22455_v57 = vld [vmem:[%s26158_s1 + $0x758] sm:$0xff]   ;;  %v22464_v35 = vld [vmem:[%s26158_s1 + $0x750] sm:$0xff]  }
 0x253   : > { %20749 = vmatprep.subr.bf16.mxu0 %v22389_v56  ;;  %7595 = vmatmul.mubr.bf16.gmra.mxu1 %v22363_v21  ;;  %v22436_v56 = vld [vmem:[#allocation3 + $0x118] ss:$60 sps:$4 sm:$0xff]   ;;  %v22473_v21 = vld [vmem:[%s26158_s1 + $0x748] sm:$0xff]  }
 0x254   : > { %7602 = vmatprep.mubr.bf16.mxu1 %v22365_v27  ;;  %20688 = vmatpush3.bf16.msra.mxu1 %v22397_v44  ;;  %v22438_v43 = vld [vmem:[#allocation3 + $0x194] ss:$60 sps:$4 sm:$0xff]   ;;  %v22440_v44 = vld [vmem:[#allocation3 + $0x188] ss:$60 sps:$4 sm:$0xff]  }
 0x255   : > { %20689 = vmatprep.subr.bf16.mxu1 %v22404_v61  ;;  %v22442_v27 = vld [vmem:[#allocation3 + $0x204] ss:$60 sps:$4 sm:$0xff]   ;;  %v22445_v61 = vld [vmem:[#allocation3 + $0x190] ss:$60 sps:$4 sm:$0xff]  }
 0x256   : > { %20750 = vmatpush3.bf16.msra.mxu0 %v22392_v39  ;;  %v22468_v39 = vld [vmem:[%s26158_s1 + $0x708] sm:$0xff]  }
 0x257   : > { %20751 = vmatprep.subr.bf16.mxu0 %v22399_v49  ;;  %v22471_v49 = vld [vmem:[%s26158_s1 + $0x6c8] sm:$0xff]  }
 0x258   : > { %20690 = vmatpush3.bf16.msra.mxu1 %v22405_v63  ;;  %v22478_v63 = vld [vmem:[%s26158_s1 + $0x6c0] sm:$0xff]  }
 0x259   : > { %7692 = vmatmul.mubr.bf16.gmra.mxu0 %v22368_v8  ;;  %20803 = vmatprep.subr.bf16.mxu1 %v22414_v24  ;;  %v22447_v8 = vld [vmem:[#allocation3 + $0x20c] ss:$60 sps:$4 sm:$0xff]   ;;  %v22449_v24 = vld [vmem:[#allocation3 + $0x200] ss:$60 sps:$4 sm:$0xff]  }
 0x25a   : > { %7699 = vmatprep.mubr.bf16.mxu0 %v22370_v10  ;;  %20752 = vmatpush3.bf16.msra.mxu0 %v22402_v62  ;;  %v22477_v62 = vld [vmem:[%s26158_s1 + $0x700] sm:$0xff]   ;;  %v22451_v10 = vld [vmem:[#allocation3 + $0x27c] ss:$60 sps:$4 sm:$0xff]  }
 0x25b   : > { %20753 = vmatprep.subr.bf16.mxu0 %v22409_v16  ;;  %7603 = vmatmul.mubr.bf16.gmra.mxu1 %v22373_v60  ;;  %v22482_v16 = vld [vmem:[%s26158_s1 + $0x740] sm:$0xff]   ;;  %v22458_v60 = vld [vmem:[#allocation3 + $0x278] ss:$60 sps:$4 sm:$0xff]  }
 0x25c   : > { %7610 = vmatprep.mubr.bf16.mxu1 %v22375_v40  ;;  %v22460_v40 = vld [vmem:[#allocation3 + $0x2f4] ss:$60 sps:$4 sm:$0xff]  }
 0x25e   : > { %20754 = vmatpush3.bf16.msra.mxu0 %v22410_v22  ;;  %v22454_v22 = vld [vmem:[#allocation3 + $0x208] ss:$60 sps:$4 sm:$0xff]  }
 0x25f   : > { %21843 = vmatprep.subr.bf16.mxu0 %v22419_v25 }
 0x261   : > { %7700 = vmatmul.mubr.bf16.gmra.mxu0 %v22378_v54  ;;  %v22463_v54 = vld [vmem:[#allocation3 + $0x280] ss:$60 sps:$4 sm:$0xff]  }
 0x262   : > { %7707 = vmatprep.mubr.bf16.mxu0 %v22380_v31  ;;  %v22465_v31 = vld [vmem:[#allocation3 + $0x2fc] ss:$60 sps:$4 sm:$0xff]  }
 0x263   : > { %7611 = vmatmul.mubr.bf16.gmra.mxu1 %v22383_v41  ;;  %v22467_v41 = vld [vmem:[#allocation3 + $0x2f0] ss:$60 sps:$4 sm:$0xff]  }
 0x264   : > { %7618 = vmatprep.mubr.bf16.mxu1 %v22385_v46  ;;  %v22469_v46 = vld [vmem:[#allocation3 + $0x36c] ss:$60 sps:$4 sm:$0xff]  }
 0x269   : > { %7708 = vmatmul.mubr.bf16.gmra.mxu0 %v22388_v51  ;;  %v22472_v51 = vld [vmem:[#allocation3 + $0x2f8] ss:$60 sps:$4 sm:$0xff]  }
 0x26a   : > { %7715 = vmatprep.mubr.bf16.mxu0 %v22390_v5  ;;  %v22474_v5 = vld [vmem:[#allocation3 + $0x374] ss:$60 sps:$4 sm:$0xff]  }
 0x26b   : > { %7619 = vmatmul.mubr.bf16.gmra.mxu1 %v22393_v0  ;;  %v22476_v0 = vld [vmem:[#allocation3 + $0x368] ss:$60 sps:$4 sm:$0xff]  }
 0x26c   : > { %7626 = vmatprep.mubr.bf16.mxu1 %v22395_v52  ;;  %v22479_v52 = vld [vmem:[#allocation3 + $0x34] ss:$60 sps:$4 sm:$0xff]  }
 0x271   : > { %7716 = vmatmul.mubr.bf16.gmra.mxu0 %v22398_v3  ;;  %v22481_v3 = vld [vmem:[#allocation3 + $0x370] ss:$60 sps:$4 sm:$0xff]  }
 0x272   : > { %7723 = vmatprep.mubr.bf16.mxu0 %v22400_v20  ;;  %v22483_v20 = vld [vmem:[#allocation3 + $0x38] ss:$60 sps:$4 sm:$0xff]  }
 0x273   : > { %7627 = vmatmul.mubr.bf16.gmra.mxu1 %v22403_v30  ;;  %v24338_v30 = vld [vmem:[%s26159_s2 + $0x1] ss:$0 sm:$0xff] }
 0x274   : > { %7764 = vmatprep.mubr.bf16.mxu1 %v22406_v34  ;;  %v20439_v34 = vpop.f32.mrf.mxu1 }
 0x279   : > { %7724 = vmatmul.mubr.bf16.gmra.mxu0 %v22408_v33 }
 0x27a   : > { %7861 = vmatprep.mubr.bf16.mxu0 %v22411_v42  ;;  %v22488_v42 = vld [vmem:[#allocation3 + $0x128] ss:$60 sps:$4 sm:$0xff]  }
 0x27b   : > { %7765 = vmatmul.mubr.bf16.vlgmr.msra.gmra.mxu1 %v22413_v9  ;;  %v7379_v9 = vadd.f32 %v24175_v17, %v24338_v30  ;;  %v22493_v17 = vld [vmem:[#allocation3 + $0x218] ss:$60 sps:$4 sm:$0xff]  }
 0x27c   : > { %7772 = vmatprep.mubr.bf16.mxu1 %v22415_v45  ;;  %20804 = vmatpush3.bf16.msra.mxu1 %v22417_v12 }
 0x27d   : > { %20805 = vmatprep.subr.bf16.mxu1 %v22423_v47  ;;  %v20440_v47 = vadd.f32 %v20439_v34, %v20438_v11 }
 0x280   : > { %20806 = vmatpush3.bf16.msra.mxu1 %v22426_v13 }
 0x281   : > { %7862 = vmatmul.mubr.bf16.vlgmr.msra.gmra.mxu0 %v22418_v7  ;;  %20807 = vmatprep.subr.bf16.mxu1 %v22432_v14  ;;  %v22489_v7 = vld [vmem:[#allocation3 + $0xa8] ss:$60 sps:$4 sm:$0xff]  }
 0x282   : > { %7869 = vmatprep.mubr.bf16.mxu0 %v22420_v6  ;;  %21844 = vmatpush3.bf16.msra.mxu0 %v22419_v25  ;;  %v22456_v25 = vld [vmem:[#allocation3 + $0x284] ss:$60 sps:$4 sm:$0xff]  }
 0x283   : > { %21845 = vmatprep.subr.bf16.mxu0 %v22428_v4  ;;  %7773 = vmatmul.mubr.bf16.gmra.mxu1 %v22422_v48  ;;  %v22490_v6 = vld [vmem:[#allocation3 + $0x124] ss:$60 sps:$4 sm:$0xff]  }
 0x284   : > { %7780 = vmatprep.mubr.bf16.mxu1 %v22424_v55  ;;  %20808 = vmatpush3.bf16.msra.mxu1 %v22435_v15 }
 0x285   : > { %20809 = vmatprep.subr.bf16.mxu1 %v22441_v23 }
 0x286   : > { %21846 = vmatpush3.bf16.msra.mxu0 %v22428_v4 }
 0x287   : > { %21847 = vmatprep.subr.bf16.mxu0 %v22437_v26 }
 0x288   : > { %20810 = vmatpush3.bf16.msra.mxu1 %v22444_v32 }
 0x289   : > { %7870 = vmatmul.mubr.bf16.gmra.mxu0 %v22427_v28  ;;  %20811 = vmatprep.subr.bf16.mxu1 %v22450_v58  ;;  %v22492_v28 = vld [vmem:[#allocation3 + $0x1a0] ss:$60 sps:$4 sm:$0xff]  }
 0x28a   : > { %7877 = vmatprep.mubr.bf16.mxu0 %v22429_v18  ;;  %21848 = vmatpush3.bf16.msra.mxu0 %v22437_v26  ;;  %v7382_v26 = vadd.f32 %v20440_v47, %v24338_v30 }
 0x28b   : > { %21849 = vmatprep.subr.bf16.mxu0 %v22446_v50  ;;  %7781 = vmatmul.mubr.bf16.gmra.mxu1 %v22431_v53 }
 0x28c   : > { %7788 = vmatprep.mubr.bf16.mxu1 %v22433_v36  ;;  %20812 = vmatpush3.bf16.msra.mxu1 %v22453_v1 }
 0x28d   : > { %20813 = vmatprep.subr.bf16.mxu1 %v22459_v37  ;;  %v22494_v37 = vld [vmem:[#allocation3 + $0x120] ss:$60 sps:$4 sm:$0xff]  }
 0x28e   : > { %21850 = vmatpush3.bf16.msra.mxu0 %v22446_v50  ;;  %v20499_v33 = vpop.f32.mrf.mxu0 }
 0x28f   : > { %21851 = vmatprep.subr.bf16.mxu0 %v22455_v57 }
 0x290   : > { %20814 = vmatpush3.bf16.msra.mxu1 %v22462_v38  ;;  %v20500_v12 = vpop.f32.mrf.mxu0 }
 0x291   : > { %7878 = vmatmul.mubr.bf16.gmra.mxu0 %v22436_v56  ;;  %20815 = vmatprep.subr.bf16.mxu1 %v22468_v39  ;;  %v20501_v45 = vadd.f32 %v20500_v12, %v20499_v33  ;;  %v22502_v33 = vld [vmem:[#allocation3 + $0x210] ss:$60 sps:$4 sm:$0xff]  }
 0x292   : > { %7885 = vmatprep.mubr.bf16.mxu0 %v22438_v43  ;;  %21852 = vmatpush3.bf16.msra.mxu0 %v22455_v57  ;;  %v20502_v4 = vpop.f32.mrf.mxu0 }
 0x293   : > { %21853 = vmatprep.subr.bf16.mxu0 %v22464_v35  ;;  %7789 = vmatmul.mubr.bf16.gmra.mxu1 %v22440_v44  ;;  %v24342_v14 = vadd.f32 %v20501_v45, %v7379_v9  ;;  %v22503_v9 = vld [vmem:[#allocation3 + $0x28c] ss:$60 sps:$4 sm:$0xff]  }
 0x294   : > { %7796 = vmatprep.mubr.bf16.mxu1 %v22442_v27  ;;  %20816 = vmatpush3.bf16.msra.mxu1 %v22471_v49  ;;  %v20441_v13 = vpop.f32.mrf.mxu1  ;;  %v20503_v15 = vpop.f32.mrf.mxu0 }
 0x295   : > { %20817 = vmatprep.subr.bf16.mxu1 %v22477_v62  ;;  %v20504_v23 = vadd.f32 %v20503_v15, %v20502_v4  ;;  %v22497_v62 = vld [vmem:[#allocation3 + $0x290] ss:$60 sps:$4 sm:$0xff]  }
 0x296   : > { %21854 = vmatpush3.bf16.msra.mxu0 %v22464_v35  ;;  %v20442_v48 = vpop.f32.mrf.mxu1  ;;  %v22495_v35 = vld [vmem:[#allocation3 + $0x19c] ss:$60 sps:$4 sm:$0xff]  }
 0x297   : > { %21855 = vmatprep.subr.bf16.mxu0 %v22473_v21  ;;  %v20443_v55 = vadd.f32 %v20442_v48, %v20441_v13  ;;  %v24345_v18 = vadd.f32 %v20504_v23, %v7382_v26  ;;  %v22514_v13 = vld [vmem:[%s26158_s1 + $0x838] sm:$0xff]  }
 0x298   : > { %20818 = vmatpush3.bf16.msra.mxu1 %v22478_v63  ;;  %v20444_v32 = vpop.f32.mrf.mxu1  ;;  %v22498_v63 = vld [vmem:[#allocation3 + $0x308] ss:$60 sps:$4 sm:$0xff]  }
 0x299   : > { %7886 = vmatmul.mubr.bf16.gmra.mxu0 %v22445_v61  ;;  %v7387_v1 = vadd.f32 %v20443_v55, %v24338_v30 }
 0x29a   : > { %7893 = vmatprep.mubr.bf16.mxu0 %v22447_v8  ;;  %21856 = vmatpush3.bf16.msra.mxu0 %v22473_v21  ;;  %v20445_v58 = vpop.f32.mrf.mxu1 }
 0x29b   : > { %21857 = vmatprep.subr.bf16.mxu0 %v22482_v16  ;;  %7797 = vmatmul.mubr.bf16.gmra.mxu1 %v22449_v24  ;;  %v20446_v57 = vadd.f32 %v20445_v58, %v20444_v32 }
 0x29c   : > { %7804 = vmatprep.mubr.bf16.mxu1 %v22451_v10  ;;  %v20505_v50 = vpop.f32.mrf.mxu0 }
 0x29d   : > { %v7390_v49 = vadd.f32 %v20446_v57, %v24338_v30  ;;  %v22506_v57 = vld [vmem:[#allocation3 + $0x304] ss:$60 sps:$4 sm:$0xff]  }
 0x29e   : > { %21858 = vmatpush3.bf16.msra.mxu0 %v22482_v16  ;;  %v20506_v53 = vpop.f32.mrf.mxu0 }
 0x29f   : > { %v20507_v36 = vadd.f32 %v20506_v53, %v20505_v50 }
 0x2a0   : > { %v20508_v38 = vpop.f32.mrf.mxu0 }
 0x2a1   : > { %7894 = vmatmul.mubr.bf16.gmra.mxu0 %v22454_v22  ;;  %v24348_v43 = vadd.f32 %v20507_v36, %v7387_v1 }
 0x2a2   : > { %7901 = vmatprep.mubr.bf16.mxu0 %v22456_v25  ;;  %v20509_v44 = vpop.f32.mrf.mxu0  ;;  %v22499_v25 = vld [vmem:[#allocation3 + $0x198] ss:$60 sps:$4 sm:$0xff]  }
 0x2a3   : > { %7805 = vmatmul.mubr.bf16.gmra.mxu1 %v22458_v60  ;;  %v20447_v56 = vpop.f32.mrf.mxu1  ;;  %v20510_v27 = vadd.f32 %v20509_v44, %v20508_v38  ;;  %v22515_v38 = vld [vmem:[%s26158_s1 + $0x870] sm:$0xff]  }
 0x2a4   : > { %7812 = vmatprep.mubr.bf16.mxu1 %v22460_v40 }
 0x2a5   : > { %v20448_v39 = vpop.f32.mrf.mxu1  ;;  %v24351_v16 = vadd.f32 %v20510_v27, %v7390_v49 }
 0x2a6   : > { %v20449_v21 = vadd.f32 %v20448_v39, %v20447_v56 }
 0x2a7   : > { %v20450_v61 = vpop.f32.mrf.mxu1 }
 0x2a8   : > { %v7395_v60 = vadd.f32 %v20449_v21, %v24338_v30 }
 0x2a9   : > { %7902 = vmatmul.mubr.bf16.gmra.mxu0 %v22463_v54  ;;  %v20451_v24 = vpop.f32.mrf.mxu1 }
 0x2aa   : > { %7909 = vmatprep.mubr.bf16.mxu0 %v22465_v31  ;;  %v20452_v10 = vadd.f32 %v20451_v24, %v20450_v61  ;;  %v22500_v31 = vld [vmem:[#allocation3 + $0x214] ss:$60 sps:$4 sm:$0xff]  }
 0x2ab   : > { %7813 = vmatmul.mubr.bf16.gmra.mxu1 %v22467_v41 }
 0x2ac   : > { %7820 = vmatprep.mubr.bf16.mxu1 %v22469_v46 }
 0x2ae   : > { %v20511_v8 = vpop.f32.mrf.mxu0 }
 0x2b0   : > { %v20512_v22 = vpop.f32.mrf.mxu0 }
 0x2b1   : > { %7910 = vmatmul.mubr.bf16.gmra.mxu0 %v22472_v51  ;;  %v20513_v40 = vadd.f32 %v20512_v22, %v20511_v8  ;;  %v22510_v8 = vld [vmem:[#allocation3 + $0x37c] ss:$60 sps:$4 sm:$0xff]  }
 0x2b2   : > { %7917 = vmatprep.mubr.bf16.mxu0 %v22474_v5  ;;  %v20514_v41 = vpop.f32.mrf.mxu0  ;;  %v22509_v22 = vld [vmem:[#allocation3 + $0x300] ss:$60 sps:$4 sm:$0xff]  }
 0x2b3   : > { %7821 = vmatmul.mubr.bf16.gmra.mxu1 %v22476_v0  ;;  %v20453_v54 = vpop.f32.mrf.mxu1  ;;  %v24354_v46 = vadd.f32 %v20513_v40, %v7395_v60 }
 0x2b4   : > { %7958 = vmatprep.mubr.bf16.mxu1 %v22479_v52  ;;  %v20515_v0 = vpop.f32.mrf.mxu0  ;;  %v7398_v52 = vadd.f32 %v20452_v10, %v24338_v30 }
 0x2b5   : > { %v20454_v51 = vpop.f32.mrf.mxu1 }
 0x2b6   : > { %v20455_v5 = vadd.f32 %v20454_v51, %v20453_v54  ;;  %v22517_v51 = vld [vmem:[%s26158_s1 + $0x868] sm:$0xff]  }
 0x2b9   : > { %7918 = vmatmul.mubr.bf16.gmra.mxu0 %v22481_v3  ;;  %v20516_v3 = vadd.f32 %v20515_v0, %v20514_v41 }
 0x2ba   : > { %21859 = vmatprep.mubr.bf16.mxu0 %v22483_v20  ;;  %v20456_v20 = vpop.f32.mrf.mxu1 }
 0x2bb   : > { %7959 = vmatmul.mubr.bf16.vlgmr.msra.gmra.mxu1 %v22484_v59  ;;  %v24358_v11 = vadd.f32 %v20516_v3, %v7398_v52 }
 0x2bc   : > { %7966 = vmatprep.mubr.bf16.mxu1 %v22485_v29  ;;  %v20517_v59 = vpop.f32.mrf.mxu0  ;;  %v20457_v29 = vpop.f32.mrf.mxu1 }
 0x2be   : > { %v20518_v34 = vpop.f32.mrf.mxu0 }
 0x2bf   : > { %v20519_v12 = vadd.f32 %v20518_v34, %v20517_v59  ;;  %v22512_v34 = vld [vmem:[#allocation3 + $0x378] ss:$60 sps:$4 sm:$0xff]  }
 0x2c0   : > { %v20520_v45 = vpop.f32.mrf.mxu0 }
 0x2c1   : > { %21860 = vmatmul.mubr.bf16.vlgmr.msra.gmra.mxu0 %v22487_v19  ;;  %v20458_v19 = vadd.f32 %v20457_v29, %v20456_v20 }
 0x2c2   : > { %21863 = vmatprep.mubr.bf16.mxu0 %v22488_v42  ;;  %v7403_v42 = vadd.f32 %v20455_v5, %v24338_v30  ;;  %v22518_v5 = vld [vmem:[%s26158_s1 + $0x828] sm:$0xff]  }
 0x2c3   : > { %7967 = vmatmul.mubr.bf16.gmra.mxu1 %v22489_v7  ;;  %v7406_v48 = vadd.f32 %v20458_v19, %v24338_v30 }
 0x2c4   : > { %7974 = vmatprep.mubr.bf16.mxu1 %v22490_v6  ;;  %v20459_v47 = vpop.f32.mrf.mxu1  ;;  %v24361_v7 = vadd.f32 %v20519_v12, %v7403_v42  ;;  %v20521_v6 = vpop.f32.mrf.mxu0 }
 0x2c5   : > { %v20522_v26 = vadd.f32 %v20521_v6, %v20520_v45  ;;  %v22519_v6 = vld [vmem:[%s26158_s1 + $0x7f8] sm:$0xff]  }
 0x2c6   : > { %v20460_v4 = vpop.f32.mrf.mxu1  ;;  %20883 = vmatprep.subr.bf16.mxu0 %v22519_v6 }
 0x2c7   : > { %v20461_v15 = vadd.f32 %v20460_v4, %v20459_v47 }
 0x2c8   : > { %v20462_v55 = vpop.f32.mrf.mxu1 }
 0x2c9   : > { %21864 = vmatmul.mubr.bf16.gmra.mxu0 %v22492_v28  ;;  %v24370_v28 = vadd.f32 %v20522_v26, %v7406_v48  ;;  %v7411_v58 = vadd.f32 %v20461_v15, %v24338_v30  ;;  %v22520_v48 = vld [vmem:[%s26158_s1 + $0x7b8] sm:$0xff]   ;;  %v22521_v15 = vld [vmem:[%s26158_s1 + $0x860] sm:$0xff]  }
 0x2ca   : > { %21867 = vmatprep.mubr.bf16.mxu0 %v22493_v17  ;;  %v20463_v32 = vpop.f32.mrf.mxu1  ;;  %v22505_v17 = vld [vmem:[#allocation3 + $0x288] ss:$60 sps:$4 sm:$0xff]   ;;  %20884 = vmatpush3.bf16.msra.mxu0 %v22520_v48  ;;  %v22534_v48 = vld [vmem:[%s26158_s1 + $0x810] sm:$0xff]  }
 0x2cb   : > { %7975 = vmatmul.mubr.bf16.gmra.mxu1 %v22494_v37  ;;  %v20464_v53 = vadd.f32 %v20463_v32, %v20462_v55 }
 0x2cc   : > { %7982 = vmatprep.mubr.bf16.mxu1 %v22495_v35  ;;  %v20523_v23 = vpop.f32.mrf.mxu0  ;;  %v22516_v35 = vld [vmem:[%s26158_s1 + $0x830] sm:$0xff]  }
 0x2cd   : > { %v7414_v49 = vadd.f32 %v20464_v53, %v24338_v30 }
 0x2ce   : > { %v20524_v50 = vpop.f32.mrf.mxu0 }
 0x2cf   : > { %v20525_v1 = vadd.f32 %v20524_v50, %v20523_v23  ;;  %v22522_v23 = vld [vmem:[%s26158_s1 + $0x820] sm:$0xff]  }
 0x2d0   : > { %v20526_v37 = vpop.f32.mrf.mxu0 }
 0x2d1   : > { %21868 = vmatmul.mubr.bf16.gmra.mxu0 %v22497_v62  ;;  %v24373_v56 = vadd.f32 %v20525_v1, %v7411_v58 }
 0x2d2   : > { %21871 = vmatprep.mubr.bf16.mxu0 %v22498_v63  ;;  %v20465_v36 = vpop.f32.mrf.mxu1  ;;  %v20527_v44 = vpop.f32.mrf.mxu0 }
 0x2d3   : > { %7983 = vmatmul.mubr.bf16.gmra.mxu1 %v22499_v25  ;;  %v20528_v27 = vadd.f32 %v20527_v44, %v20526_v37 }
 0x2d4   : > { %7990 = vmatprep.mubr.bf16.mxu1 %v22500_v31  ;;  %v20466_v39 = vpop.f32.mrf.mxu1 }
 0x2d5   : > { %v20467_v21 = vadd.f32 %v20466_v39, %v20465_v36  ;;  %v24382_v63 = vadd.f32 %v20528_v27, %v7414_v49  ;;  %v22524_v36 = vld [vmem:[%s26158_s1 + $0x7b0] sm:$0xff]  }
 0x2d6   : > { %v20468_v62 = vpop.f32.mrf.mxu1 }
 0x2d7   : > { %v7419_v25 = vadd.f32 %v20467_v21, %v24338_v30 }
 0x2d8   : > { %v20469_v24 = vpop.f32.mrf.mxu1 }
 0x2d9   : > { %21872 = vmatmul.mubr.bf16.gmra.mxu0 %v24267_v2  ;;  %v22513_v2 = vld [vmem:[%s26158_s1 + $0x878] sm:$0xff]   ;;  %v20470_v60 = vadd.f32 %v20469_v24, %v20468_v62  ;;  %v22525_v62 = vld [vmem:[%s26158_s1 + $0x7e8] sm:$0xff]  }
 0x2da   : > { %20947 = vmatprep.subr.bf16.mxu1 %v22513_v2 }
 0x2db   : > { %7991 = vmatmul.mubr.bf16.gmra.mxu1 %v22502_v33  ;;  %v7422_v3 = vadd.f32 %v20470_v60, %v24338_v30 }
 0x2dc   : > { %7998 = vmatprep.mubr.bf16.mxu1 %v22503_v9  ;;  %20948 = vmatpush3.bf16.msra.mxu1 %v22514_v13 }
 0x2dd   : > { %20949 = vmatprep.subr.bf16.mxu1 %v22515_v38 }
 0x2de   : > { %v20529_v61 = vpop.f32.mrf.mxu0 }
 0x2e0   : > { %20950 = vmatpush3.bf16.msra.mxu1 %v22516_v35  ;;  %v20530_v10 = vpop.f32.mrf.mxu0 }
 0x2e1   : > { %v20531_v40 = vadd.f32 %v20530_v10, %v20529_v61  ;;  %20951 = vmatprep.subr.bf16.mxu1 %v22517_v51  ;;  %v22526_v61 = vld [vmem:[%s26158_s1 + $0x7a8] sm:$0xff]  }
 0x2e2   : > { %v20532_v31 = vpop.f32.mrf.mxu0 }
 0x2e3   : > { %7999 = vmatmul.mubr.bf16.gmra.mxu1 %v22505_v17  ;;  %v20471_v54 = vpop.f32.mrf.mxu1  ;;  %v24385_v41 = vadd.f32 %v20531_v40, %v7419_v25 }
 0x2e4   : > { %8006 = vmatprep.mubr.bf16.mxu1 %v22506_v57  ;;  %v20533_v52 = vpop.f32.mrf.mxu0  ;;  %20952 = vmatpush3.bf16.msra.mxu1 %v22518_v5  ;;  %v22523_v57 = vld [vmem:[%s26158_s1 + $0x7f0] sm:$0xff]  }
 0x2e5   : > { %v20472_v0 = vpop.f32.mrf.mxu1  ;;  %v20534_v59 = vadd.f32 %v20533_v52, %v20532_v31  ;;  %20953 = vmatprep.subr.bf16.mxu1 %v22521_v15  ;;  %20885 = vmatprep.subr.bf16.mxu0 %v22523_v57 }
 0x2e6   : > { %v20473_v20 = vadd.f32 %v20472_v0, %v20471_v54  ;;  %20886 = vmatpush3.bf16.msra.mxu0 %v22524_v36  ;;  %v22529_v0 = vld [vmem:[%s26158_s1 + $0x7e0] sm:$0xff]  }
 0x2e7   : > { %v20474_v29 = vpop.f32.mrf.mxu1  ;;  %v24394_v33 = vadd.f32 %v20534_v59, %v7422_v3  ;;  %20887 = vmatprep.subr.bf16.mxu0 %v22525_v62 }
 0x2e8   : > { %v7427_v9 = vadd.f32 %v20473_v20, %v24338_v30  ;;  %20954 = vmatpush3.bf16.msra.mxu1 %v22522_v23 }
 0x2e9   : > { %v20475_v42 = vpop.f32.mrf.mxu1 }
 0x2ea   : > { %v20476_v47 = vadd.f32 %v20475_v42, %v20474_v29  ;;  %20888 = vmatpush3.bf16.msra.mxu0 %v22526_v61 }
 0x2eb   : > { %8007 = vmatmul.mubr.bf16.gmra.mxu1 %v22509_v22  ;;  %v22528_v22 = vld [vmem:[%s26158_s1 + $0x818] sm:$0xff]   ;;  %20889 = vmatprep.subr.bf16.mxu0 %v22529_v0 }
 0x2ec   : > { %8014 = vmatprep.mubr.bf16.mxu1 %v22510_v8  ;;  %v20535_v19 = vpop.f32.mrf.mxu0  ;;  %v7430_v32 = vadd.f32 %v20476_v47, %v24338_v30  ;;  %v22527_v8 = vld [vmem:[%s26158_s1 + $0x858] sm:$0xff]  }
 0x2ed   : > { %20955 = vmatprep.subr.bf16.mxu1 %v22527_v8 }
 0x2ee   : > { %v20536_v12 = vpop.f32.mrf.mxu0  ;;  %20956 = vmatpush3.bf16.msra.mxu1 %v22528_v22  ;;  %v22538_v22 = vld [vmem:[%s26158_s1 + $0x788] sm:$0xff]  }
 0x2ef   : > { %v20537_v45 = vadd.f32 %v20536_v12, %v20535_v19 }
 0x2f0   : > { %v20538_v13 = vpop.f32.mrf.mxu0 }
 0x2f1   : > { %v24397_v4 = vadd.f32 %v20537_v45, %v7427_v9  ;;  %v22531_v45 = vld [vmem:[%s26158_s1 + $0x7d8] sm:$0xff]  }
 0x2f2   : > { %v20539_v55 = vpop.f32.mrf.mxu0 }
 0x2f3   : > { %v20477_v2 = vpop.f32.mrf.mxu1  ;;  %8015 = vmatmul.mubr.bf16.gmra.mxu1 %v22512_v34  ;;  %v20540_v17 = vadd.f32 %v20539_v55, %v20538_v13  ;;  %v22533_v13 = vld [vmem:[%s26158_s1 + $0x850] sm:$0xff]  }
 0x2f4   : > { %20957 = vmatprep.subr.bf16.mxu1 %v22533_v13  ;;  %v8249_v13 = vld [vmem:[#allocation2 + $0x20] sm:$0xff] }
 0x2f5   : > { %v20478_v26 = vpop.f32.mrf.mxu1  ;;  %v24412_v1 = vadd.f32 %v20540_v17, %v7430_v32  ;;  %20958 = vmatpush3.bf16.msra.mxu1 %v22534_v48 }
 0x2f6   : > { %v20479_v50 = vadd.f32 %v20478_v26, %v20477_v2  ;;  %v22532_v2 = vld [vmem:[%s26158_s1 + $0x798] sm:$0xff]  }
 0x2f7   : > { %v20480_v58 = vpop.f32.mrf.mxu1 }
 0x2f8   : > { %v7435_v35 = vadd.f32 %v20479_v50, %v24338_v30 }
 0x2f9   : > { %v20541_v53 = vpop.f32.mrf.mxu0  ;;  %v20481_v37 = vpop.f32.mrf.mxu1 }
 0x2fa   : > { %v20482_v39 = vadd.f32 %v20481_v37, %v20480_v58 }
 0x2fb   : > { %v20542_v38 = vpop.f32.mrf.mxu0  ;;  %v20563_v21 = vpop.f32.mrf.mxu1 }
 0x2fc   : > { %v20543_v44 = vadd.f32 %v20542_v38, %v20541_v53  ;;  %v7438_v25 = vadd.f32 %v20482_v39, %v24338_v30  ;;  %v22530_v30 = vld [vmem:[%s26158_s1 + $0x7a0] sm:$0xff]   ;;  %v22536_v39 = vld [vmem:[%s26158_s1 + $0x790] sm:$0xff]  }
 0x2fd   : > { %v20544_v49 = vpop.f32.mrf.mxu0  ;;  %v20564_v10 = vpop.f32.mrf.mxu1  ;;  %20890 = vmatpush3.bf16.msra.mxu0 %v22530_v30 }
 0x2fe   : > { %v24421_v27 = vadd.f32 %v20543_v44, %v7435_v35  ;;  %v20565_v40 = vadd.f32 %v20564_v10, %v20563_v21  ;;  %20891 = vmatprep.subr.bf16.mxu0 %v22531_v45  ;;  %v22535_v35 = vld [vmem:[%s26158_s1 + $0x7d0] sm:$0xff]   ;;  %v22537_v10 = vld [vmem:[%s26158_s1 + $0x7c8] sm:$0xff]  }
 0x2ff   : > { %v20545_v24 = vpop.f32.mrf.mxu0  ;;  %v20566_v54 = vpop.f32.mrf.mxu1 }
 0x300   : > { %v20546_v60 = vadd.f32 %v20545_v24, %v20544_v49  ;;  %v7573_v5 = vadd.f32 %v20565_v40, %v24342_v14  ;;  %v22540_v40 = vld [vmem:[%s26158_s1 + $0x808] sm:$0xff]  }
 0x301   : > { %v20627_v31 = vpop.f32.mrf.mxu0  ;;  %v20567_v52 = vpop.f32.mrf.mxu1  ;;  %20892 = vmatpush3.bf16.msra.mxu0 %v22532_v2  ;;  %v8248_v2 = vld [vmem:[#allocation2 + $0x8] sm:$0xff] }
 0x302   : > { %v24436_v51 = vadd.f32 %v20546_v60, %v7438_v25  ;;  %v20568_v20 = vadd.f32 %v20567_v52, %v20566_v54  ;;  %20893 = vmatprep.subr.bf16.mxu0 %v22535_v35 }
 0x303   : > { %v20628_v3 = vpop.f32.mrf.mxu0  ;;  %v20569_v29 = vpop.f32.mrf.mxu1 }
 0x304   : > { %v20629_v59 = vadd.f32 %v20628_v3, %v20627_v31  ;;  %v7576_v34 = vadd.f32 %v20568_v20, %v24345_v18  ;;  %v22541_v3 = vld [vmem:[%s26158_s1 + $0x7c0] sm:$0xff]  }
 0x305   : > { %v20630_v19 = vpop.f32.mrf.mxu0  ;;  %v20570_v14 = vpop.f32.mrf.mxu1  ;;  %20894 = vmatpush3.bf16.msra.mxu0 %v22536_v39  ;;  %v22542_v20 = vld [vmem:[%s26158_s1 + $0x780] sm:$0xff]  }
 0x306   : > { %v24446_v42 = vadd.f32 %v20629_v59, %v7573_v5  ;;  %v20571_v9 = vadd.f32 %v20570_v14, %v20569_v29  ;;  %20895 = vmatprep.subr.bf16.mxu0 %v22537_v10 }
 0x307   : > { %v20631_v12 = vpop.f32.mrf.mxu0  ;;  %v20572_v6 = vpop.f32.mrf.mxu1 }
 0x308   : > { %v20632_v47 = vadd.f32 %v20631_v12, %v20630_v19  ;;  %v7581_v15 = vadd.f32 %v20571_v9, %v24348_v43 }
 0x309   : > { %v20633_v18 = vpop.f32.mrf.mxu0  ;;  %v20573_v55 = vpop.f32.mrf.mxu1  ;;  %20896 = vmatpush3.bf16.msra.mxu0 %v22538_v22 }
 0x30a   : > { %v24461_v26 = vadd.f32 %v20632_v47, %v7576_v34  ;;  %v20574_v32 = vadd.f32 %v20573_v55, %v20572_v6  ;;  %20897 = vmatprep.subr.bf16.mxu0 %v22541_v3  ;;  %v23089_v47 = vld [vmem:[#allocation2 + $0x7] sm:$0xff] }
 0x30b   : > { %v20634_v23 = vpop.f32.mrf.mxu0  ;;  %v20575_v17 = vpop.f32.mrf.mxu1  ;;  %v24499_v45 = vpack.c.bf16 %v23089_v47, %v23089_v47  ;;  %v22546_v6 = vld [vmem:[%s26158_s1 + $0x840] sm:$0xff]  }
 0x30c   : > { %v20635_v50 = vadd.f32 %v20634_v23, %v20633_v18  ;;  %v7584_v53 = vadd.f32 %v20574_v32, %v24351_v16  ;;  %v22547_v55 = vld [vmem:[%s26158_s1 + $0x800] sm:$0xff]  }
 0x30d   : > { %v20636_v58 = vpop.f32.mrf.mxu0  ;;  %v20576_v36 = vpop.f32.mrf.mxu1  ;;  %20898 = vmatpush3.bf16.msra.mxu0 %v22542_v20  ;;  %8232 = vst [vmem:[#allocation3] sm:$0xf] %v24499_v45  ;;  %8233 = vst [vmem:[#allocation3 + $0x3c] sm:$0xf] %v24499_v45 }
 0x30e   : > { %v24464_v57 = vadd.f32 %v20635_v50, %v7581_v15  ;;  %v20577_v38 = vadd.f32 %v20576_v36, %v20575_v17  ;;  %v24504_v15 = vpack.c.bf16 %v8249_v13, %v8249_v13  ;;  %8520 = vst [vmem:[#allocation3 + $0xc] sm:$0xf] %v24499_v45  ;;  %9111 = vst [vmem:[#allocation3 + $0x3a8] sm:$0xf] %v24499_v45 }
 0x30f   : > { %v20637_v37 = vpop.f32.mrf.mxu0  ;;  %v20578_v44 = vpop.f32.mrf.mxu1  ;;  %9398 = vst [vmem:[#allocation3 + $0x378] sm:$0xf] %v24499_v45  ;;  %9399 = vst [vmem:[#allocation3 + $0x3b4] sm:$0xf] %v24499_v45 }
 0x310   : > { %v20638_v43 = vadd.f32 %v20637_v37, %v20636_v58  ;;  %v7589_v21 = vadd.f32 %v20577_v38, %v24354_v46  ;;  %v22539_v46 = vld [vmem:[%s26158_s1 + $0x848] sm:$0xff]   ;;  %8329 = vst [vmem:[#allocation3 + $0x40] sm:$0xf] %v24504_v15  ;;  %8616 = vst [vmem:[#allocation3 + $0x10] sm:$0xf] %v24504_v15 }
 0x311   : > { %v20639_v49 = vpop.f32.mrf.mxu0  ;;  %v20579_v16 = vpop.f32.mrf.mxu1  ;;  %20959 = vmatprep.subr.bf16.mxu1 %v22539_v46  ;;  %13351 = vst [vmem:[#allocation3 + $0x378] sm:$0xf] %v24499_v45  ;;  %13352 = vst [vmem:[#allocation3 + $0x3b4] sm:$0xf] %v24499_v45 }
 0x312   : > { %v24473_v62 = vadd.f32 %v20638_v43, %v7584_v53  ;;  %v20580_v8 = vadd.f32 %v20579_v16, %v20578_v44  ;;  %20960 = vmatpush3.bf16.msra.mxu1 %v22540_v40  ;;  %v8345_v16 = vld [vmem:[#allocation2 + $0x21] sm:$0xff] }
 0x313   : > { %v20640_v61 = vpop.f32.mrf.mxu0  ;;  %v20581_v25 = vpop.f32.mrf.mxu1  ;;  %20961 = vmatprep.subr.bf16.mxu1 %v22546_v6  ;;  %v24528_v22 = vpack.c.bf16 %v8345_v16, %v8345_v16 }
 0x314   : > { %v20641_v24 = vadd.f32 %v20640_v61, %v20639_v49  ;;  %v7592_v54 = vadd.f32 %v20580_v8, %v24358_v11  ;;  %v22553_v61 = vld [vmem:[%s26158_s1 + $0x978] sm:$0xff]  }
 0x315   : > { %v20642_v60 = vpop.f32.mrf.mxu0  ;;  %v20582_v5 = vpop.f32.mrf.mxu1  ;;  %8425 = vst [vmem:[#allocation3 + $0x44] sm:$0xf] %v24528_v22  ;;  %8712 = vst [vmem:[#allocation3 + $0x14] sm:$0xf] %v24528_v22 }
 0x316   : > { %v24488_v31 = vadd.f32 %v20641_v24, %v7589_v21  ;;  %v20583_v30 = vadd.f32 %v20582_v5, %v20581_v25  ;;  %20962 = vmatpush3.bf16.msra.mxu1 %v22547_v55  ;;  %v8344_v21 = vld [vmem:[#allocation2 + $0x9] sm:$0xff]  ;;  %v22543_v25 = vld [vmem:[#allocation3] ss:$60 sps:$4 sm:$0xff]   ;;  %12665 = vst [vmem:[#allocation3 + $0x14] sm:$0xf] %v24528_v22 }
 0x317   : > { %v20643_v0 = vpop.f32.mrf.mxu0  ;;  %v20584_v59 = vpop.f32.mrf.mxu1  ;;  %v24526_v10 = vpack.c.bf16 %v8344_v21, %v8344_v21  ;;  %21075 = vmatprep.subr.bf16.mxu1 %v22553_v61  ;;  %12185 = vst [vmem:[#allocation3] sm:$0xf] %v24499_v45  ;;  %12186 = vst [vmem:[#allocation3 + $0x3c] sm:$0xf] %v24499_v45  ;;  %v22549_v5 = vld [vmem:[%s26158_s1 + $0x8b8] sm:$0xff]   ;;  %v22569_v55 = vld [vmem:[%s26158_s1 + $0x8a8] sm:$0xff]  }
 0x318   : > { %v20644_v52 = vadd.f32 %v20643_v0, %v20642_v60  ;;  %v7597_v29 = vadd.f32 %v20583_v30, %v24361_v7  ;;  %v19491_v7 = vpack.c.bf16 %v8248_v2, %v8248_v2  ;;  %v22558_v30 = vld [vmem:[%s26158_s1 + $0x8f0] sm:$0xff]   ;;  %v22579_v61 = vld [vmem:[%s26158_s1 + $0x8a0] sm:$0xff]  }
 0x319   : > { %v20645_v11 = vpop.f32.mrf.mxu0  ;;  %v20585_v34 = vpop.f32.mrf.mxu1  ;;  %8424 = vst [vmem:[#allocation3 + $0x8] sm:$0xf] %v24526_v10 }
 0x31a   : > { %v24497_v19 = vadd.f32 %v20644_v52, %v7592_v54  ;;  %v20586_v12 = vadd.f32 %v20585_v34, %v20584_v59  ;;  %8328 = vst [vmem:[#allocation3 + $0x4] sm:$0xf] %v19491_v7  ;;  %v22559_v34 = vld [vmem:[%s26158_s1 + $0x8b0] sm:$0xff]  }
 0x31b   : > { %v20646_v14 = vpop.f32.mrf.mxu0  ;;  %v20587_v18 = vpop.f32.mrf.mxu1 }
 0x31c   : > { %v20647_v9 = vadd.f32 %v20646_v14, %v20645_v11  ;;  %v7600_v23 = vadd.f32 %v20586_v12, %v24370_v28  ;;  %v22548_v28 = vld [vmem:[%s26158_s1 + $0x8f8] sm:$0xff]  }
 0x31d   : > { %v20648_v48 = vpop.f32.mrf.mxu0  ;;  %v20588_v50 = vpop.f32.mrf.mxu1  ;;  %21011 = vmatprep.subr.bf16.mxu0 %v22548_v28 }
 0x31e   : > { %v24510_v32 = vadd.f32 %v20647_v9, %v7597_v29  ;;  %v20589_v58 = vadd.f32 %v20588_v50, %v20587_v18 }
 0x31f   : > { %v20649_v17 = vpop.f32.mrf.mxu0  ;;  %v20590_v36 = vpop.f32.mrf.mxu1 }
 0x320   : > { %v20650_v53 = vadd.f32 %v20649_v17, %v20648_v48  ;;  %v7605_v38 = vadd.f32 %v20589_v58, %v24373_v56 }
 0x321   : > { %v20651_v37 = vpop.f32.mrf.mxu0  ;;  %v20591_v35 = vpop.f32.mrf.mxu1  ;;  %v22545_v54 = vld [vmem:[#allocation3 + $0x4] ss:$60 sps:$4 sm:$0xff]  }
 0x322   : > { %v24521_v43 = vadd.f32 %v20650_v53, %v7600_v23  ;;  %v20592_v44 = vadd.f32 %v20591_v35, %v20590_v36  ;;  %12281 = vst [vmem:[#allocation3 + $0x4] sm:$0xf] %v19491_v7  ;;  %12282 = vst [vmem:[#allocation3 + $0x40] sm:$0xf] %v24504_v15  ;;  %11329 = vmatprep.mubr.bf16.mxu0 %v22545_v54  ;;  %v22568_v7 = vld [vmem:[%s26158_s1 + $0x8e8] sm:$0xff]  }
 0x323   : > { %v20652_v39 = vpop.f32.mrf.mxu0  ;;  %v20593_v8 = vpop.f32.mrf.mxu1  ;;  %11330 = vmatmul.mubr.bf16.vlgmr.msra.gmra.mxu0 %v22543_v25 }
 0x324   : > { %v20653_v49 = vadd.f32 %v20652_v39, %v20651_v37  ;;  %v7608_v56 = vadd.f32 %v20592_v44, %v24382_v63  ;;  %21012 = vmatpush3.bf16.msra.mxu0 %v22549_v5 }
 0x325   : > { %v20654_v24 = vpop.f32.mrf.mxu0  ;;  %v20594_v60 = vpop.f32.mrf.mxu1  ;;  %21013 = vmatprep.subr.bf16.mxu0 %v22558_v30 }
 0x326   : > { %v24531_v46 = vadd.f32 %v20653_v49, %v7605_v38  ;;  %v20595_v63 = vadd.f32 %v20594_v60, %v20593_v8 }
 0x327   : > { %v20655_v40 = vpop.f32.mrf.mxu0  ;;  %v20596_v52 = vpop.f32.mrf.mxu1 }
 0x328   : > { %v20656_v0 = vadd.f32 %v20655_v40, %v20654_v24  ;;  %v7613_v20 = vadd.f32 %v20595_v63, %v24385_v41  ;;  %21014 = vmatpush3.bf16.msra.mxu0 %v22559_v34 }
 0x329   : > { %v20657_v3 = vpop.f32.mrf.mxu0  ;;  %v20597_v11 = vpop.f32.mrf.mxu1  ;;  %21015 = vmatprep.subr.bf16.mxu0 %v22568_v7  ;;  %v22609_v7 = vld [vmem:[%s26158_s1 + $0x888] sm:$0xff]  }
 0x32a   : > { %v24546_v59 = vadd.f32 %v20656_v0, %v7608_v56  ;;  %v20598_v14 = vadd.f32 %v20597_v11, %v20596_v52  ;;  %v22589_v11 = vld [vmem:[%s26158_s1 + $0x898] sm:$0xff]  }
 0x32b   : > { %v20658_v29 = vpop.f32.mrf.mxu0  ;;  %v20599_v9 = vpop.f32.mrf.mxu1 }
 0x32c   : > { %26216 = vst [vmem:[#allocation12_spill] sm:$0xff] %v24546_v59  ;;  %v20659_v12 = vadd.f32 %v20658_v29, %v20657_v3  ;;  %v7616_v2 = vadd.f32 %v20598_v14, %v24394_v33  ;;  %21016 = vmatpush3.bf16.msra.mxu0 %v22569_v55 }
 0x32d   : > { %v20660_v47 = vpop.f32.mrf.mxu0  ;;  %v20600_v41 = vpop.f32.mrf.mxu1 }
 0x32e   : > { %v24552_v13 = vadd.f32 %v20659_v12, %v7613_v20  ;;  %v20601_v18 = vadd.f32 %v20600_v41, %v20599_v9  ;;  %v22598_v9 = vld [vmem:[%s26158_s1 + $0x8d0] sm:$0xff]  }
 0x32f   : > { %v20661_v6 = vpop.f32.mrf.mxu0  ;;  %v20602_v23 = vpop.f32.mrf.mxu1  ;;  %v22599_v41 = vld [vmem:[%s26158_s1 + $0x890] sm:$0xff]  }
 0x330   : > { %26217 = vst [vmem:[#allocation4_spill] sm:$0xff] %v24552_v13  ;;  %v20662_v48 = vadd.f32 %v20661_v6, %v20660_v47  ;;  %v7621_v17 = vadd.f32 %v20601_v18, %v24397_v4  ;;  %v22578_v4 = vld [vmem:[%s26158_s1 + $0x8e0] sm:$0xff]  }
 0x331   : > { %v20663_v50 = vpop.f32.mrf.mxu0  ;;  %v20603_v58 = vpop.f32.mrf.mxu1  ;;  %21017 = vmatprep.subr.bf16.mxu0 %v22578_v4 }
 0x332   : > { %v24561_v33 = vadd.f32 %v20662_v48, %v7616_v2  ;;  %v20604_v28 = vadd.f32 %v20603_v58, %v20602_v23  ;;  %21018 = vmatpush3.bf16.msra.mxu0 %v22579_v61  ;;  %v22608_v48 = vld [vmem:[%s26158_s1 + $0x8c8] sm:$0xff]  }
 0x333   : > { %v20664_v53 = vpop.f32.mrf.mxu0  ;;  %v20605_v37 = vpop.f32.mrf.mxu1 }
 0x334   : > { %26218 = vst [vmem:[#allocation10_spill] sm:$0xff] %v24561_v33  ;;  %v20665_v36 = vadd.f32 %v20664_v53, %v20663_v50  ;;  %v7624_v35 = vadd.f32 %v20604_v28, %v24412_v1 }
 0x335   : > { %v20666_v38 = vpop.f32.mrf.mxu0  ;;  %v20606_v44 = vpop.f32.mrf.mxu1 }
 0x336   : > { %v24564_v39 = vadd.f32 %v20665_v36, %v7621_v17  ;;  %v20607_v21 = vadd.f32 %v20606_v44, %v20605_v37  ;;  %v22618_v37 = vld [vmem:[%s26158_s1 + $0x8c0] sm:$0xff]  }
 0x337   : > { %v20667_v49 = vpop.f32.mrf.mxu0  ;;  %v20608_v8 = vpop.f32.mrf.mxu1 }
 0x338   : > { %26219 = vst [vmem:[#allocation11_spill] sm:$0xff] %v24564_v39  ;;  %v20668_v16 = vadd.f32 %v20667_v49, %v20666_v38  ;;  %v7629_v56 = vadd.f32 %v20607_v21, %v24421_v27  ;;  %v22588_v27 = vld [vmem:[%s26158_s1 + $0x8d8] sm:$0xff]   ;;  %v22619_v38 = vld [vmem:[%s26158_s1 + $0x880] sm:$0xff]  }
 0x339   : > { %v20669_v24 = vpop.f32.mrf.mxu0  ;;  %v20609_v1 = vpop.f32.mrf.mxu1  ;;  %21019 = vmatprep.subr.bf16.mxu0 %v22588_v27 }
 0x33a   : > { %v24573_v25 = vadd.f32 %v20668_v16, %v7624_v35  ;;  %v20610_v40 = vadd.f32 %v20609_v1, %v20608_v8  ;;  %21020 = vmatpush3.bf16.msra.mxu0 %v22589_v11 }
 0x33b   : > { %v20670_v60 = vpop.f32.mrf.mxu0  ;;  %v24575_v63 = vpop.f32.mrf.mxu1  ;;  %21021 = vmatprep.subr.bf16.mxu0 %v22598_v9 }
 0x33c   : > { %26220 = vst [vmem:[#allocation5_spill] sm:$0xff] %v24573_v25  ;;  %v20671_v54 = vadd.f32 %v20670_v60, %v20669_v24  ;;  %v7632_v0 = vadd.f32 %v20610_v40, %v24436_v51  ;;  %v22631_v24 = vld [vmem:[%s26158_s1 + $0x9f8] sm:$0xff]  }
 0x33d   : > { %v20672_v5 = vpop.f32.mrf.mxu0  ;;  %v24580_v3 = vpop.f32.mrf.mxu1 }
 0x33e   : > { %v24578_v30 = vadd.f32 %v20671_v54, %v7629_v56  ;;  %21022 = vmatpush3.bf16.msra.mxu0 %v22599_v41 }
 0x33f   : > { %v20673_v52 = vpop.f32.mrf.mxu0  ;;  %v24588_v29 = vpop.f32.mrf.mxu1  ;;  %21023 = vmatprep.subr.bf16.mxu0 %v22608_v48 }
 0x340   : > { %26221 = vst [vmem:[#allocation14_spill] sm:$0xff] %v24578_v30  ;;  %v20674_v20 = vadd.f32 %v20673_v52, %v20672_v5 }
 0x341   : > { %v24590_v34 = vpop.f32.mrf.mxu0  ;;  %v24594_v51 = vpop.f32.mrf.mxu1 }
 0x342   : > { %v24592_v14 = vadd.f32 %v20674_v20, %v7632_v0  ;;  %21024 = vmatpush3.bf16.msra.mxu0 %v22609_v7 }
 0x343   : > { %v24596_v12 = vpop.f32.mrf.mxu0  ;;  %v24601_v47 = vpop.f32.mrf.mxu1  ;;  %21025 = vmatprep.subr.bf16.mxu0 %v22618_v37 }
 0x344   : > { %26222 = vst [vmem:[#allocation16_spill] sm:$0xff] %v24592_v14 }
 0x345   : > { %v24603_v2 = vpop.f32.mrf.mxu0  ;;  %v24608_v6 = vpop.f32.mrf.mxu1 }
 0x346   : > { %21026 = vmatpush3.bf16.msra.mxu0 %v22619_v38 }
 0x347   : > { %v24610_v18 = vpop.f32.mrf.mxu0  ;;  %v24618_v55 = vpop.f32.mrf.mxu1  ;;  %21139 = vmatprep.subr.bf16.mxu0 %v22631_v24 }
 0x349   : > { %v24620_v23 = vpop.f32.mrf.mxu0  ;;  %v24622_v50 = vpop.f32.mrf.mxu1 }
 0x34b   : > { %v24624_v17 = vpop.f32.mrf.mxu0  ;;  %v24626_v58 = vpop.f32.mrf.mxu1 }
 0x34d   : > { %v24628_v53 = vpop.f32.mrf.mxu0  ;;  %v24630_v28 = vpop.f32.mrf.mxu1 }
 0x34f   : > { %v24632_v36 = vpop.f32.mrf.mxu0  ;;  %v24640_v35 = vpop.f32.mrf.mxu1 }
 0x351   : > { %v24642_v44 = vpop.f32.mrf.mxu0  ;;  %v24644_v49 = vpop.f32.mrf.mxu1 }
 0x353   : > { %v24646_v21 = vpop.f32.mrf.mxu0  ;;  %v24648_v16 = vpop.f32.mrf.mxu1 }
 0x355   : > { %v24650_v4 = vpop.f32.mrf.mxu0  ;;  %v24652_v61 = vpop.f32.mrf.mxu1 }
 0x357   : > { %v24654_v8 = vpop.f32.mrf.mxu0  ;;  %v24659_v56 = vpop.f32.mrf.mxu1 }
 0x359   : > { %v24661_v1 = vpop.f32.mrf.mxu0  ;;  %v24663_v60 = vpop.f32.mrf.mxu1 }
 0x35b   : > { %v24665_v40 = vpop.f32.mrf.mxu0  ;;  %v24667_v54 = vpop.f32.mrf.mxu1 }
 0x35d   : > { %v24669_v5 = vpop.f32.mrf.mxu0  ;;  %v24671_v0 = vpop.f32.mrf.mxu1 }
 0x35f   : > { %v24673_v52 = vpop.f32.mrf.mxu0  ;;  %v24675_v20 = vpop.f32.mrf.mxu1 }
 0x361   : > { %v24677_v27 = vpop.f32.mrf.mxu0  ;;  %v24679_v11 = vpop.f32.mrf.mxu1 }
 0x363   : > { %v24681_v9 = vpop.f32.mrf.mxu0  ;;  %v24683_v41 = vpop.f32.mrf.mxu1 }
 0x364   : > { %26223 = vst [vmem:[#allocation13_spill] sm:$0xff] %v24683_v41 }
 0x365   : > { %v24685_v48 = vpop.f32.mrf.mxu0  ;;  %v24687_v7 = vpop.f32.mrf.mxu1 }
 0x366   : > { %26224 = vst [vmem:[#allocation15_spill] sm:$0xff] %v24687_v7 }
 0x367   : > { %v24689_v37 = vpop.f32.mrf.mxu0  ;;  %v24691_v38 = vpop.f32.mrf.mxu1 }
 0x368   : > { %26225 = vst [vmem:[#allocation6_spill] sm:$0xff] %v24691_v38 }
 0x369   : > { %v24693_v24 = vpop.f32.mrf.mxu0  ;;  %v24695_v14 = vpop.f32.mrf.mxu1 }
 0x36a   : > { %26226 = vst [vmem:[#allocation17_spill] sm:$0xff] %v24693_v24  ;;  %26227 = vst [vmem:[#allocation19_spill] sm:$0xff] %v24695_v14 }
 0x36b   : > { %v24697_v30 = vpop.f32.mrf.mxu0  ;;  %v24699_v25 = vpop.f32.mrf.mxu1 }
 0x36c   : > { %26228 = vst [vmem:[#allocation18_spill] sm:$0xff] %v24697_v30  ;;  %26229 = vst [vmem:[#allocation20_spill] sm:$0xff] %v24699_v25 }
 0x36d   : > { %v24701_v39 = vpop.f32.mrf.mxu0  ;;  %v24703_v33 = vpop.f32.mrf.mxu1 }
 0x36e   : > { %26230 = vst [vmem:[#allocation22_spill] sm:$0xff] %v24701_v39  ;;  %26231 = vst [vmem:[#allocation24_spill] sm:$0xff] %v24703_v33 }
 0x36f   : > { %v24705_v13 = vpop.f32.mrf.mxu0  ;;  %v24707_v41 = vpop.f32.mrf.mxu1 }
 0x370   : > { %26232 = vst [vmem:[#allocation7_spill] sm:$0xff] %v24705_v13  ;;  %26233 = vst [vmem:[#allocation21_spill] sm:$0xff] %v24707_v41  ;;  %v20693_v41 = vadd.f32 %v24580_v3, %v24575_v63  ;;  %v20760_v63 = vadd.f32 %v24610_v18, %v24603_v2 }
 0x371   : > { %v24709_v7 = vpop.f32.mrf.mxu0  ;;  %v24711_v59 = vpop.f32.mrf.mxu1 }
 0x372   : > { %26234 = vst [vmem:[#allocation23_spill] sm:$0xff] %v24709_v7  ;;  %26235 = vst [vmem:[#allocation8_spill] sm:$0xff] %v24711_v59 }
 0x373   : > { %v24713_v38 = vpop.f32.mrf.mxu0  ;;  %v24715_v24 = vpop.f32.mrf.mxu1 }
 0x374   : > { %26236 = vst [vmem:[#allocation25_spill] sm:$0xff] %v24713_v38  ;;  %26237 = vst [vmem:[#allocation27_spill] sm:$0xff] %v24715_v24  ;;  %v20757_v24 = vadd.f32 %v24596_v12, %v24590_v34 }
 0x375   : > { %v24717_v14 = vpop.f32.mrf.mxu0  ;;  %v24719_v30 = vpop.f32.mrf.mxu1 }
 0x376   : > { %26238 = vst [vmem:[#allocation26_spill] sm:$0xff] %v24717_v14  ;;  %26239 = vst [vmem:[#allocation28_spill] sm:$0xff] %v24719_v30  ;;  %v7767_v30 = vadd.f32 %v20693_v41, %v24446_v42  ;;  %v20763_v42 = vadd.f32 %v24624_v17, %v24620_v23 }
 0x377   : > { %v24721_v25 = vpop.f32.mrf.mxu0  ;;  %v24723_v39 = vpop.f32.mrf.mxu1 }
 0x378   : > { %26240 = vst [vmem:[#allocation9_spill] sm:$0xff] %v24721_v25  ;;  %26241 = vst [vmem:[#allocation29_spill] sm:$0xff] %v24723_v39  ;;  %v20696_v39 = vadd.f32 %v24594_v51, %v24588_v29  ;;  %v7864_v13 = vadd.f32 %v20757_v24, %v7767_v30 }
 0x379   : > { %v24725_v33 = vpop.f32.mrf.mxu0  ;;  %v24729_v7 = vpop.f32.mrf.mxu1 }
 0x37a   : > { %26242 = vst [vmem:[#allocation30_spill] sm:$0xff] %v24725_v33  ;;  %26243 = vst [vmem:[#allocation31_spill] sm:$0xff] %v24729_v7  ;;  %v20699_v7 = vadd.f32 %v24608_v6, %v24601_v47 }
 0x37b   : > { %v24731_v59 = vpop.f32.mrf.mxu0  ;;  %v20819_v14 = vpop.f32.mrf.mxu1 }
 0x37c   : > { %26244 = vst [vmem:[#allocation32_spill] sm:$0xff] %v24731_v59  ;;  %v7775_v24 = vadd.f32 %v20699_v7, %v24464_v57  ;;  %v20705_v57 = vadd.f32 %v24630_v28, %v24626_v58 }
 0x37d   : > { %v24735_v38 = vpop.f32.mrf.mxu0  ;;  %v20820_v33 = vpop.f32.mrf.mxu1 }
 0x37e   : > { %26245 = vst [vmem:[#allocation33_spill] sm:$0xff] %v24735_v38  ;;  %v20821_v3 = vadd.f32 %v20820_v33, %v20819_v14  ;;  %v7770_v38 = vadd.f32 %v20696_v39, %v24461_v26  ;;  %v20702_v14 = vadd.f32 %v24622_v50, %v24618_v55  ;;  %v7872_v18 = vadd.f32 %v20763_v42, %v7775_v24 }
 0x37f   : > { %v24740_v25 = vpop.f32.mrf.mxu0  ;;  %v20822_v34 = vpop.f32.mrf.mxu1  ;;  %v20766_v39 = vadd.f32 %v24632_v36, %v24628_v53  ;;  %v20769_v50 = vadd.f32 %v24646_v21, %v24642_v44  ;;  %v7783_v28 = vadd.f32 %v20705_v57, %v24488_v31 }
 0x380   : > { %26246 = vst [vmem:[#allocation34_spill] sm:$0xff] %v24740_v25  ;;  %v7961_v59 = vadd.f32 %v20821_v3, %v7864_v13  ;;  %v7867_v41 = vadd.f32 %v20760_v63, %v7770_v38  ;;  %v7778_v7 = vadd.f32 %v20702_v14, %v24473_v62  ;;  %v20711_v62 = vadd.f32 %v24652_v61, %v24648_v16 }
 0x381   : > { %v21861_v12 = vpop.f32.mrf.mxu0  ;;  %v20823_v29 = vpop.f32.mrf.mxu1  ;;  %v7880_v44 = vadd.f32 %v20769_v50, %v7783_v28 }
 0x382   : > { %v20824_v25 = vadd.f32 %v20823_v29, %v20822_v34  ;;  %v7875_v3 = vadd.f32 %v20766_v39, %v7778_v7  ;;  %v9127_v39 = vld [vmem:[#allocation2 + $0x1b8] sm:$0xff] }
 0x383   : > { %v8057_v51 = vpop.f32.mrf.mxu0  ;;  %v20825_v2 = vpop.f32.mrf.mxu1 }
 0x384   : > { %v8058_v30 = vadd.f32 %v8057_v51, %v7961_v59  ;;  %v7964_v6 = vadd.f32 %v20824_v25, %v7867_v41  ;;  %v20708_v25 = vadd.f32 %v24644_v49, %v24640_v35  ;;  %v20772_v49 = vadd.f32 %v24654_v8, %v24650_v4 }
 0x385   : > { %v21862_v33 = vpop.f32.mrf.mxu0  ;;  %v20826_v26 = vpop.f32.mrf.mxu1 }
 0x386   : > { %v8120_v47 = vmax.f32 %v8058_v30, 0.0  ;;  %v20827_v23 = vadd.f32 %v20826_v26, %v20825_v2  ;;  %v7786_v35 = vadd.f32 %v20708_v25, %v24497_v19 }
 0x387   : > { %v8060_v13 = vpop.f32.mrf.mxu0  ;;  %v20828_v59 = vpop.f32.mrf.mxu1 }
 0x388   : > { %8136 = vst [vmem:[#allocation2 + $0x38] sm:$0xff] %v8120_v47  ;;  %v8061_v17 = vadd.f32 %v8060_v13, %v7964_v6  ;;  %v19493_v38 = vpack.c.bf16 %v8120_v47, %v8120_v47  ;;  %v7969_v63 = vadd.f32 %v20827_v23, %v7872_v18  ;;  %v7791_v6 = vadd.f32 %v20711_v62, %v24510_v32  ;;  %v9223_v23 = vld [vmem:[#allocation2 + $0x1b9] sm:$0xff] }
 0x389   : > { %v24761_v53 = vpop.f32.mrf.mxu0  ;;  %v20829_v36 = vpop.f32.mrf.mxu1  ;;  %v20775_v32 = vadd.f32 %v24665_v40, %v24661_v1  ;;  %v24778_v25 = vpack.c.bf16 %v9223_v23, %v9223_v23 }
 0x38a   : > { %v8121_v55 = vmax.f32 %v8061_v17, 0.0  ;;  %8330 = vst [vmem:[#allocation3 + $0x7c] sm:$0xf] %v19493_v38  ;;  %v8066_v34 = vadd.f32 %v21861_v12, %v7969_v63  ;;  %v20830_v42 = vadd.f32 %v20829_v36, %v20828_v59  ;;  %v7883_v17 = vadd.f32 %v20772_v49, %v7786_v35 }
 0x38b   : > { %v20831_v29 = vpop.f32.mrf.mxu1  ;;  %v8073_v21 = vpop.f32.mrf.mxu0  ;;  %v20714_v38 = vadd.f32 %v24663_v60, %v24659_v56  ;;  %9303 = vst [vmem:[#allocation3 + $0x3b0] sm:$0xf] %v24778_v25  ;;  %v20717_v35 = vadd.f32 %v24671_v0, %v24667_v54  ;;  %v22563_v0 = vld [vmem:[%s26158_s1 + $0x970] sm:$0xff]  }
 0x38c   : > { %8137 = vst [vmem:[#allocation2 + $0x50] sm:$0xff] %v8121_v55  ;;  %v19494_v58 = vpack.c.bf16 %v8121_v55, %v8121_v55  ;;  %v8122_v51 = vmax.f32 %v8066_v34, 0.0  ;;  %v7972_v41 = vadd.f32 %v20830_v42, %v7875_v3 }
 0x38d   : > { %v20832_v12 = vpop.f32.mrf.mxu1  ;;  %v24776_v57 = vpop.f32.mrf.mxu0 }
 0x38e   : > { %8331 = vst [vmem:[#allocation3 + $0xb8] sm:$0xf] %v19494_v58  ;;  %8138 = vst [vmem:[#allocation2 + $0x68] sm:$0xff] %v8122_v51  ;;  %v8069_v31 = vadd.f32 %v21862_v33, %v7972_v41  ;;  %v20833_v14 = vadd.f32 %v20832_v12, %v20831_v29  ;;  %v19495_v26 = vpack.c.bf16 %v8122_v51, %v8122_v51  ;;  %v24794_v12 = vld [vmem:[%s26158_s1 + $0x938] sm:$0xff]  }
 0x38f   : > { %v8441_v30 = vld [vmem:[#allocation2 + $0x37] sm:$0xff]  ;;  %v20834_v18 = vpop.f32.mrf.mxu1  ;;  %v24770_v33 = vpack.c.bf16 %v9127_v39, %v9127_v39  ;;  %v7794_v51 = vadd.f32 %v20714_v38, %v24521_v43  ;;  %v7888_v41 = vadd.f32 %v20775_v32, %v7791_v6  ;;  %v8076_v49 = vpop.f32.mrf.mxu0 }
 0x390   : > { %v8346_v24 = vld [vmem:[#allocation2 + $0x39] sm:$0xff]  ;;  %v19524_v47 = vpack.c.bf16 %v8441_v30, %v8441_v30  ;;  %v8123_v4 = vmax.f32 %v8069_v31, 0.0  ;;  %v7977_v8 = vadd.f32 %v20833_v14, %v7880_v44  ;;  %8332 = vst [vmem:[#allocation3 + $0xf4] sm:$0xf] %v19495_v26  ;;  %v20778_v44 = vadd.f32 %v24673_v52, %v24669_v5  ;;  %v24812_v32 = vld [vmem:[%s26158_s1 + $0x930] sm:$0xff]  }
 0x391   : > { %v8537_v2 = vld [vmem:[#allocation2 + $0x38] sm:$0xff]  ;;  %v19509_v16 = vpack.c.bf16 %v8346_v24, %v8346_v24  ;;  %v20835_v59 = vpop.f32.mrf.mxu1  ;;  %9207 = vst [vmem:[#allocation3 + $0x3ac] sm:$0xf] %v24770_v33  ;;  %9494 = vst [vmem:[#allocation3 + $0x37c] sm:$0xf] %v24770_v33  ;;  %v24807_v38 = vpop.f32.mrf.mxu0 }
 0x392   : > { %v8920_v61 = vld [vmem:[#allocation2 + $0x39] sm:$0xff]  ;;  %v19540_v19 = vpack.c.bf16 %v8537_v2, %v8537_v2  ;;  %8521 = vst [vmem:[#allocation3 + $0x48] sm:$0xf] %v19524_v47  ;;  %8234 = vst [vmem:[#allocation3 + $0x78] sm:$0xf] %v19524_v47  ;;  %v8074_v50 = vadd.f32 %v8073_v21, %v7977_v8  ;;  %v20836_v36 = vadd.f32 %v20835_v59, %v20834_v18 }
 0x393   : > { %v19603_v13 = vpack.c.bf16 %v8920_v61, %v8920_v61  ;;  %8426 = vst [vmem:[#allocation3 + $0x80] sm:$0xf] %v19509_v16  ;;  %8713 = vst [vmem:[#allocation3 + $0x50] sm:$0xf] %v19509_v16  ;;  %v8155_v7 = vld [vmem:[#allocation2 + $0x4f] sm:$0xff]  ;;  %v20837_v1 = vpop.f32.mrf.mxu1  ;;  %v19496_v40 = vpack.c.bf16 %v8123_v4, %v8123_v4  ;;  %v7891_v8 = vadd.f32 %v20778_v44, %v7794_v51  ;;  %v26247_v44 = vld [vmem:[#allocation12_spill] sm:$0xff] }
 0x394   : > { %8808 = vst [vmem:[#allocation3 + $0x18] sm:$0xf] %v19524_v47  ;;  %v8347_v63 = vld [vmem:[#allocation2 + $0x51] sm:$0xff]  ;;  %8617 = vst [vmem:[#allocation3 + $0x4c] sm:$0xf] %v19540_v19  ;;  %v19478_v3 = vpack.c.bf16 %v8155_v7, %v8155_v7  ;;  %v8124_v62 = vmax.f32 %v8074_v50, 0.0  ;;  %v7980_v29 = vadd.f32 %v20836_v36, %v7883_v17  ;;  %v20781_v17 = vadd.f32 %v24681_v9, %v24677_v27 }
 0x395   : > { %v8825_v55 = vld [vmem:[#allocation2 + $0x50] sm:$0xff]  ;;  %8904 = vst [vmem:[#allocation3 + $0x1c] sm:$0xf] %v19540_v19  ;;  %9000 = vst [vmem:[#allocation3 + $0x20] sm:$0xf] %v19603_v13  ;;  %v19510_v56 = vpack.c.bf16 %v8347_v63, %v8347_v63  ;;  %v20838_v21 = vpop.f32.mrf.mxu1  ;;  %v8443_v30 = vld [vmem:[#allocation2 + $0x67] sm:$0xff] }
 0x396   : > { %8139 = vst [vmem:[#allocation2 + $0x80] sm:$0xff] %v8123_v4  ;;  %v8921_v60 = vld [vmem:[#allocation2 + $0x51] sm:$0xff]  ;;  %v19588_v42 = vpack.c.bf16 %v8825_v55, %v8825_v55  ;;  %8235 = vst [vmem:[#allocation3 + $0xb4] sm:$0xf] %v19478_v3  ;;  %v8348_v24 = vld [vmem:[#allocation2 + $0x69] sm:$0xff]  ;;  %v8077_v43 = vadd.f32 %v8076_v49, %v7980_v29  ;;  %v20839_v54 = vadd.f32 %v20838_v21, %v20837_v1 }
 0x397   : > { %v9016_v34 = vld [vmem:[#allocation2 + $0x4f] sm:$0xff]  ;;  %v19604_v58 = vpack.c.bf16 %v8921_v60, %v8921_v60  ;;  %8427 = vst [vmem:[#allocation3 + $0xbc] sm:$0xf] %v19510_v56  ;;  %8522 = vst [vmem:[#allocation3 + $0x84] sm:$0xf] %v19478_v3  ;;  %v19526_v5 = vpack.c.bf16 %v8443_v30, %v8443_v30  ;;  %v19511_v52 = vpack.c.bf16 %v8348_v24, %v8348_v24  ;;  %v9017_v31 = vld [vmem:[#allocation2 + $0x67] sm:$0xff]  ;;  %v20840_v47 = vpop.f32.mrf.mxu1 }
 0x398   : > { %v19619_v28 = vpack.c.bf16 %v9016_v34, %v9016_v34  ;;  %8809 = vst [vmem:[#allocation3 + $0x54] sm:$0xf] %v19478_v3  ;;  %8714 = vst [vmem:[#allocation3 + $0x8c] sm:$0xf] %v19510_v56  ;;  %v8539_v2 = vld [vmem:[#allocation2 + $0x68] sm:$0xff]  ;;  %v19497_v6 = vpack.c.bf16 %v8124_v62, %v8124_v62  ;;  %v19620_v26 = vpack.c.bf16 %v9017_v31, %v9017_v31  ;;  %v8125_v13 = vmax.f32 %v8077_v43, 0.0 }
 0x399   : > { %8333 = vst [vmem:[#allocation3 + $0x130] sm:$0xf] %v19496_v40  ;;  %8905 = vst [vmem:[#allocation3 + $0x58] sm:$0xf] %v19588_v42  ;;  %v9209_v14 = vld [vmem:[#allocation2 + $0x69] sm:$0xff]  ;;  %v19542_v18 = vpack.c.bf16 %v8539_v2, %v8539_v2  ;;  %v7985_v39 = vadd.f32 %v20839_v54, %v7888_v41  ;;  %v7799_v4 = vadd.f32 %v20717_v35, %v24531_v46 }
 0x39a   : > { %8618 = vst [vmem:[#allocation3 + $0x88] sm:$0xf] %v19588_v42  ;;  %9001 = vst [vmem:[#allocation3 + $0x5c] sm:$0xf] %v19604_v58  ;;  %v22550_v16 = vld [vmem:[#allocation3 + $0x8] ss:$60 sps:$4 sm:$0xff]   ;;  %v19652_v19 = vpack.c.bf16 %v9209_v14, %v9209_v14  ;;  %v19498_v56 = vpack.c.bf16 %v8125_v13, %v8125_v13 }
 0x39b   : > { %9096 = vst [vmem:[#allocation3 + $0x24] sm:$0xf] %v19619_v28  ;;  %9192 = vst [vmem:[#allocation3 + $0x28] sm:$0xf] %v19588_v42  ;;  %v22552_v61 = vld [vmem:[#allocation3 + $0xc] ss:$60 sps:$4 sm:$0xff]   ;;  %v8082_v46 = vadd.f32 %v24761_v53, %v7985_v39  ;;  %v8089_v42 = vpop.f32.mrf.mxu0 }
 0x39c   : > { %9288 = vst [vmem:[#allocation3 + $0x2c] sm:$0xf] %v19604_v58  ;;  %8140 = vst [vmem:[#allocation2 + $0x98] sm:$0xff] %v8124_v62  ;;  %v24802_v23 = vld [vmem:[#allocation3 + $0x10] ss:$60 sps:$4 sm:$0xff]   ;;  %11426 = vmatprep.mubr.bf16.mxu1 %v22552_v61 }
 0x39d   : > { %12377 = vst [vmem:[#allocation3 + $0x8] sm:$0xf] %v24526_v10  ;;  %12378 = vst [vmem:[#allocation3 + $0x44] sm:$0xf] %v24528_v22  ;;  %v20841_v10 = vpop.f32.mrf.mxu1  ;;  %v8157_v59 = vld [vmem:[#allocation2 + $0x7f] sm:$0xff]  ;;  %11427 = vmatmul.mubr.bf16.vlgmr.msra.gmra.mxu1 %v22550_v16  ;;  %v8126_v1 = vmax.f32 %v8082_v46, 0.0  ;;  %v24838_v61 = vpop.f32.mrf.mxu0 }
 0x39e   : > { %12473 = vst [vmem:[#allocation3 + $0xc] sm:$0xf] %v24499_v45  ;;  %8523 = vst [vmem:[#allocation3 + $0xc0] sm:$0xf] %v19526_v5  ;;  %v8349_v7 = vld [vmem:[#allocation2 + $0x81] sm:$0xff]  ;;  %v20842_v27 = vadd.f32 %v20841_v10, %v20840_v47  ;;  %v19480_v9 = vpack.c.bf16 %v8157_v59, %v8157_v59  ;;  %21076 = vmatpush3.bf16.msra.mxu1 %v24794_v12  ;;  %v26249_v12 = vld [vmem:[#allocation15_spill] sm:$0xff] }
 0x39f   : > { %8236 = vst [vmem:[#allocation3 + $0xf0] sm:$0xf] %v19526_v5  ;;  %8428 = vst [vmem:[#allocation3 + $0xf8] sm:$0xf] %v19511_v52  ;;  %v19512_v63 = vpack.c.bf16 %v8349_v7, %v8349_v7  ;;  %v8827_v55 = vld [vmem:[#allocation2 + $0x80] sm:$0xff]  ;;  %v20843_v22 = vpop.f32.mrf.mxu1  ;;  %21077 = vmatprep.subr.bf16.mxu1 %v22563_v0  ;;  %v22573_v53 = vld [vmem:[%s26158_s1 + $0x968] sm:$0xff]  }
 0x3a0   : > { %8715 = vst [vmem:[#allocation3 + $0xc8] sm:$0xf] %v19511_v52  ;;  %8810 = vst [vmem:[#allocation3 + $0x90] sm:$0xf] %v19526_v5  ;;  %v8923_v50 = vld [vmem:[#allocation2 + $0x81] sm:$0xff]  ;;  %v19590_v60 = vpack.c.bf16 %v8827_v55, %v8827_v55  ;;  %v7988_v40 = vadd.f32 %v20842_v27, %v7891_v8  ;;  %v26251_v47 = vld [vmem:[#allocation18_spill] sm:$0xff] }
 0x3a1   : > { %8334 = vst [vmem:[#allocation3 + $0x16c] sm:$0xf] %v19497_v6  ;;  %12569 = vst [vmem:[#allocation3 + $0x10] sm:$0xf] %v24504_v15  ;;  %v20720_v15 = vadd.f32 %v24679_v11, %v24675_v20  ;;  %v22555_v36 = vld [vmem:[#allocation3 + $0x7c] ss:$60 sps:$4 sm:$0xff]   ;;  %v19606_v34 = vpack.c.bf16 %v8923_v50, %v8923_v50  ;;  %v7896_v20 = vadd.f32 %v20781_v17, %v7799_v4  ;;  %v20844_v58 = vpop.f32.mrf.mxu1 }
 0x3a2   : > { %8619 = vst [vmem:[#allocation3 + $0xc4] sm:$0xf] %v19542_v18  ;;  %8906 = vst [vmem:[#allocation3 + $0x94] sm:$0xf] %v19542_v18  ;;  %v22557_v3 = vld [vmem:[#allocation3 + $0x78] ss:$60 sps:$4 sm:$0xff]   ;;  %v20784_v11 = vadd.f32 %v24689_v37, %v24685_v48  ;;  %11337 = vmatprep.mubr.bf16.mxu0 %v22555_v36  ;;  %v8085_v29 = vadd.f32 %v24776_v57, %v7988_v40  ;;  %v20845_v51 = vadd.f32 %v20844_v58, %v20843_v22 }
 0x3a3   : > { %9097 = vst [vmem:[#allocation3 + $0x60] sm:$0xf] %v19620_v26  ;;  %9193 = vst [vmem:[#allocation3 + $0x64] sm:$0xf] %v19542_v18  ;;  %v8445_v28 = vld [vmem:[#allocation2 + $0x97] sm:$0xff]  ;;  %11338 = vmatmul.mubr.bf16.gmra.mxu0 %v22557_v3  ;;  %v22574_v48 = vld [vmem:[%s26158_s1 + $0x928] sm:$0xff]   ;;  %v7802_v49 = vadd.f32 %v20720_v15, %v26247_v44  ;;  %v20846_v24 = vpop.f32.mrf.mxu1  ;;  %21078 = vmatpush3.bf16.msra.mxu1 %v24812_v32  ;;  %v19499_v57 = vpack.c.bf16 %v8126_v1, %v8126_v1 }
 0x3a4   : > { %9289 = vst [vmem:[#allocation3 + $0x68] sm:$0xf] %v19652_v19  ;;  %9002 = vst [vmem:[#allocation3 + $0x98] sm:$0xf] %v19652_v19  ;;  %v8350_v62 = vld [vmem:[#allocation2 + $0x99] sm:$0xff]  ;;  %v19528_v41 = vpack.c.bf16 %v8445_v28, %v8445_v28  ;;  %v26248_v21 = vld [vmem:[#allocation13_spill] sm:$0xff]  ;;  %v7993_v0 = vadd.f32 %v20845_v51, %v7896_v20  ;;  %21079 = vmatprep.subr.bf16.mxu1 %v22573_v53 }
 0x3a5   : > { %9384 = vst [vmem:[#allocation3 + $0x30] sm:$0xf] %v19620_v26  ;;  %9576 = vst [vmem:[#allocation3 + $0x38] sm:$0xf] %v19652_v19  ;;  %v19513_v37 = vpack.c.bf16 %v8350_v62, %v8350_v62  ;;  %v8541_v35 = vld [vmem:[#allocation2 + $0x98] sm:$0xff]  ;;  %v20723_v30 = vadd.f32 %v26249_v12, %v26248_v21  ;;  %v8127_v5 = vmax.f32 %v8085_v29, 0.0  ;;  %v7899_v31 = vadd.f32 %v20784_v11, %v7802_v49  ;;  %v20847_v6 = vpop.f32.mrf.mxu1 }
 0x3a6   : > { %8141 = vst [vmem:[#allocation2 + $0xb0] sm:$0xff] %v8125_v13  ;;  %8237 = vst [vmem:[#allocation3 + $0x12c] sm:$0xf] %v19480_v9  ;;  %v22560_v2 = vld [vmem:[#allocation3 + $0x84] ss:$60 sps:$4 sm:$0xff]   ;;  %v19544_v54 = vpack.c.bf16 %v8541_v35, %v8541_v35  ;;  %v26250_v14 = vld [vmem:[#allocation17_spill] sm:$0xff]  ;;  %v8090_v19 = vadd.f32 %v8089_v42, %v7993_v0  ;;  %v20848_v13 = vadd.f32 %v20847_v6, %v20846_v24 }
 0x3a7   : > { %8429 = vst [vmem:[#allocation3 + $0x134] sm:$0xf] %v19512_v63  ;;  %8524 = vst [vmem:[#allocation3 + $0xfc] sm:$0xf] %v19480_v9  ;;  %v22562_v43 = vld [vmem:[#allocation3 + $0x80] ss:$60 sps:$4 sm:$0xff]   ;;  %v20787_v16 = vadd.f32 %v26251_v47, %v26250_v14  ;;  %11434 = vmatprep.mubr.bf16.mxu1 %v22560_v2  ;;  %v20849_v27 = vpop.f32.mrf.mxu1  ;;  %21080 = vmatpush3.bf16.msra.mxu1 %v22574_v48  ;;  %v19500_v55 = vpack.c.bf16 %v8127_v5, %v8127_v5 }
 0x3a8   : > { %8811 = vst [vmem:[#allocation3 + $0xcc] sm:$0xf] %v19480_v9  ;;  %8716 = vst [vmem:[#allocation3 + $0x104] sm:$0xf] %v19512_v63  ;;  %v22583_v52 = vld [vmem:[%s26158_s1 + $0x960] sm:$0xff]   ;;  %11435 = vmatmul.mubr.bf16.gmra.mxu1 %v22562_v43  ;;  %v26253_v59 = vld [vmem:[#allocation6_spill] sm:$0xff]  ;;  %v7996_v22 = vadd.f32 %v20848_v13, %v7899_v31 }
 0x3a9   : > { %8335 = vst [vmem:[#allocation3 + $0x1a8] sm:$0xf] %v19498_v56  ;;  %8907 = vst [vmem:[#allocation3 + $0xd0] sm:$0xf] %v19590_v60  ;;  %v22584_v8 = vld [vmem:[%s26158_s1 + $0x920] sm:$0xff]   ;;  %v26254_v7 = vld [vmem:[#allocation19_spill] sm:$0xff]  ;;  %21081 = vmatprep.subr.bf16.mxu1 %v22583_v52  ;;  %v20850_v40 = vpop.f32.mrf.mxu1 }
 0x3aa   : > { %8620 = vst [vmem:[#allocation3 + $0x100] sm:$0xf] %v19590_v60  ;;  %9003 = vst [vmem:[#allocation3 + $0xd4] sm:$0xf] %v19606_v34  ;;  %v26252_v10 = vld [vmem:[#allocation4_spill] sm:$0xff]  ;;  %v20726_v46 = vadd.f32 %v26254_v7, %v26253_v59  ;;  %v8128_v15 = vmax.f32 %v8090_v19, 0.0  ;;  %v20851_v42 = vadd.f32 %v20850_v40, %v20849_v27 }
 0x3ab   : > { %9194 = vst [vmem:[#allocation3 + $0xa0] sm:$0xf] %v19590_v60  ;;  %9290 = vst [vmem:[#allocation3 + $0xa4] sm:$0xf] %v19606_v34  ;;  %v7807_v32 = vadd.f32 %v20723_v30, %v26252_v10  ;;  %v22565_v9 = vld [vmem:[#allocation3 + $0xf4] ss:$60 sps:$4 sm:$0xff]   ;;  %v20852_v44 = vpop.f32.mrf.mxu1  ;;  %21082 = vmatpush3.bf16.msra.mxu1 %v22584_v8 }
 0x3ac   : > { %9577 = vst [vmem:[#allocation3 + $0x74] sm:$0xf] %v19606_v34  ;;  %8142 = vst [vmem:[#allocation2 + $0xc8] sm:$0xff] %v8126_v1  ;;  %v22593_v36 = vld [vmem:[%s26158_s1 + $0x958] sm:$0xff]   ;;  %v26255_v56 = vld [vmem:[#allocation22_spill] sm:$0xff]  ;;  %v8092_v1 = vpop.f32.mrf.mxu0  ;;  %11345 = vmatprep.mubr.bf16.mxu0 %v22565_v9  ;;  %v19501_v12 = vpack.c.bf16 %v8128_v15, %v8128_v15 }
 0x3ad   : > { %8525 = vst [vmem:[#allocation3 + $0x138] sm:$0xf] %v19528_v41  ;;  %8238 = vst [vmem:[#allocation3 + $0x168] sm:$0xf] %v19528_v41  ;;  %v8159_v18 = vld [vmem:[#allocation2 + $0xaf] sm:$0xff]  ;;  %v7904_v3 = vadd.f32 %v20787_v16, %v7807_v32  ;;  %v26256_v60 = vld [vmem:[#allocation7_spill] sm:$0xff]  ;;  %v8093_v11 = vadd.f32 %v8092_v1, %v7996_v22  ;;  %21083 = vmatprep.subr.bf16.mxu1 %v22593_v36  ;;  %v20853_v52 = vpop.f32.mrf.mxu1 }
 0x3ae   : > { %8430 = vst [vmem:[#allocation3 + $0x170] sm:$0xf] %v19513_v37  ;;  %8717 = vst [vmem:[#allocation3 + $0x140] sm:$0xf] %v19513_v37  ;;  %v8351_v26 = vld [vmem:[#allocation2 + $0xb1] sm:$0xff]  ;;  %v19482_v39 = vpack.c.bf16 %v8159_v18, %v8159_v18  ;;  %v20790_v34 = vadd.f32 %v26256_v60, %v26255_v56  ;;  %v26258_v48 = vld [vmem:[#allocation20_spill] sm:$0xff]  ;;  %v24862_v31 = vpop.f32.mrf.mxu0  ;;  %v20854_v18 = vadd.f32 %v20853_v52, %v20852_v44 }
 0x3af   : > { %8812 = vst [vmem:[#allocation3 + $0x108] sm:$0xf] %v19528_v41  ;;  %8336 = vst [vmem:[#allocation3 + $0x1e4] sm:$0xf] %v19499_v57  ;;  %v19514_v4 = vpack.c.bf16 %v8351_v26, %v8351_v26  ;;  %v8829_v17 = vld [vmem:[#allocation2 + $0xb0] sm:$0xff]  ;;  %v22594_v62 = vld [vmem:[%s26158_s1 + $0x918] sm:$0xff]   ;;  %v8001_v2 = vadd.f32 %v20851_v42, %v7904_v3  ;;  %v20855_v32 = vpop.f32.mrf.mxu1 }
 0x3b0   : > { %8621 = vst [vmem:[#allocation3 + $0x13c] sm:$0xf] %v19544_v54  ;;  %8908 = vst [vmem:[#allocation3 + $0x10c] sm:$0xf] %v19544_v54  ;;  %v22567_v63 = vld [vmem:[#allocation3 + $0xf0] ss:$60 sps:$4 sm:$0xff]   ;;  %v19592_v50 = vpack.c.bf16 %v8829_v17, %v8829_v17  ;;  %21084 = vmatpush3.bf16.msra.mxu1 %v22594_v62  ;;  %v8105_v60 = vpop.f32.mrf.mxu0 }
 0x3b1   : > { %9195 = vst [vmem:[#allocation3 + $0xdc] sm:$0xf] %v19544_v54  ;;  %8143 = vst [vmem:[#allocation2 + $0xe0] sm:$0xff] %v8127_v5  ;;  %11346 = vmatmul.mubr.bf16.gmra.mxu0 %v22567_v63  ;;  %v26257_v51 = vld [vmem:[#allocation10_spill] sm:$0xff]  ;;  %v26259_v37 = vld [vmem:[#allocation24_spill] sm:$0xff]  ;;  %v8129_v24 = vmax.f32 %v8093_v11, 0.0  ;;  %v8098_v6 = vadd.f32 %v24807_v38, %v8001_v2 }
 0x3b2   : > { %8239 = vst [vmem:[#allocation3 + $0x1a4] sm:$0xf] %v19482_v39  ;;  %8431 = vst [vmem:[#allocation3 + $0x1ac] sm:$0xf] %v19514_v4  ;;  %v7810_v41 = vadd.f32 %v20726_v46, %v26257_v51  ;;  %v20729_v35 = vadd.f32 %v26259_v37, %v26258_v48  ;;  %v22572_v21 = vld [vmem:[#allocation3 + $0xf8] ss:$60 sps:$4 sm:$0xff]  }
 0x3b3   : > { %8526 = vst [vmem:[#allocation3 + $0x174] sm:$0xf] %v19482_v39  ;;  %8813 = vst [vmem:[#allocation3 + $0x144] sm:$0xf] %v19482_v39  ;;  %v8447_v53 = vld [vmem:[#allocation2 + $0xc7] sm:$0xff]  ;;  %v22603_v43 = vld [vmem:[%s26158_s1 + $0x950] sm:$0xff]   ;;  %v19502_v46 = vpack.c.bf16 %v8129_v24, %v8129_v24 }
 0x3b4   : > { %8718 = vst [vmem:[#allocation3 + $0x17c] sm:$0xf] %v19514_v4  ;;  %8337 = vst [vmem:[#allocation3 + $0x220] sm:$0xf] %v19500_v55  ;;  %v8352_v20 = vld [vmem:[#allocation2 + $0xc9] sm:$0xff]  ;;  %v19530_v58 = vpack.c.bf16 %v8447_v53, %v8447_v53  ;;  %v7907_v57 = vadd.f32 %v20790_v34, %v7810_v41  ;;  %v26260_v54 = vld [vmem:[#allocation23_spill] sm:$0xff]  ;;  %21085 = vmatprep.subr.bf16.mxu1 %v22603_v43  ;;  %v20856_v34 = vpop.f32.mrf.mxu1 }
 0x3b5   : > { %8909 = vst [vmem:[#allocation3 + $0x148] sm:$0xf] %v19592_v50  ;;  %8622 = vst [vmem:[#allocation3 + $0x178] sm:$0xf] %v19592_v50  ;;  %v19515_v28 = vpack.c.bf16 %v8352_v20, %v8352_v20  ;;  %v8543_v29 = vld [vmem:[#allocation2 + $0xc8] sm:$0xff]  ;;  %v22604_v16 = vld [vmem:[%s26158_s1 + $0x910] sm:$0xff]   ;;  %v20857_v20 = vadd.f32 %v20856_v34, %v20855_v32 }
 0x3b6   : > { %9196 = vst [vmem:[#allocation3 + $0x118] sm:$0xf] %v19592_v50  ;;  %8144 = vst [vmem:[#allocation2 + $0xf8] sm:$0xff] %v8128_v15  ;;  %v22570_v49 = vld [vmem:[#allocation3 + $0xfc] ss:$60 sps:$4 sm:$0xff]   ;;  %v19546_v30 = vpack.c.bf16 %v8543_v29, %v8543_v29  ;;  %v26261_v5 = vld [vmem:[#allocation25_spill] sm:$0xff]  ;;  %v8004_v63 = vadd.f32 %v20854_v18, %v7907_v57  ;;  %v20858_v51 = vpop.f32.mrf.mxu1  ;;  %21086 = vmatpush3.bf16.msra.mxu1 %v22604_v16  ;;  %v24889_v57 = vpop.f32.mrf.mxu0 }
 0x3b7   : > { %8527 = vst [vmem:[#allocation3 + $0x1b0] sm:$0xf] %v19530_v58  ;;  %8240 = vst [vmem:[#allocation3 + $0x1e0] sm:$0xf] %v19530_v58  ;;  %v20793_v0 = vadd.f32 %v26261_v5, %v26260_v54  ;;  %11442 = vmatprep.mubr.bf16.mxu1 %v22570_v49  ;;  %v26262_v39 = vld [vmem:[#allocation11_spill] sm:$0xff]  ;;  %v26263_v8 = vld [vmem:[#allocation21_spill] sm:$0xff] }
 0x3b8   : > { %8432 = vst [vmem:[#allocation3 + $0x1e8] sm:$0xf] %v19515_v28  ;;  %8719 = vst [vmem:[#allocation3 + $0x1b8] sm:$0xf] %v19515_v28  ;;  %v8161_v14 = vld [vmem:[#allocation2 + $0xdf] sm:$0xff]  ;;  %11443 = vmatmul.mubr.bf16.gmra.mxu1 %v22572_v21  ;;  %v7815_v4 = vadd.f32 %v20729_v35, %v26262_v39  ;;  %v8130_v9 = vmax.f32 %v8098_v6, 0.0  ;;  %v8101_v53 = vadd.f32 %v24838_v61, %v8004_v63  ;;  %v20859_v54 = vpop.f32.mrf.mxu1 }
 0x3b9   : > { %8814 = vst [vmem:[#allocation3 + $0x180] sm:$0xf] %v19530_v58  ;;  %v8353_v47 = vld [vmem:[#allocation2 + $0xe1] sm:$0xff]  ;;  %8338 = vst [vmem:[#allocation3 + $0x25c] sm:$0xf] %v19501_v12  ;;  %v19484_v26 = vpack.c.bf16 %v8161_v14, %v8161_v14  ;;  %v26265_v50 = vld [vmem:[#allocation27_spill] sm:$0xff]  ;;  %v20860_v14 = vadd.f32 %v20859_v54, %v20858_v51 }
 0x3ba   : > { %8623 = vst [vmem:[#allocation3 + $0x1b4] sm:$0xf] %v19546_v30  ;;  %8910 = vst [vmem:[#allocation3 + $0x184] sm:$0xf] %v19546_v30  ;;  %v19516_v19 = vpack.c.bf16 %v8353_v47, %v8353_v47  ;;  %v8831_v13 = vld [vmem:[#allocation2 + $0xe0] sm:$0xff]  ;;  %v22613_v38 = vld [vmem:[%s26158_s1 + $0x948] sm:$0xff]   ;;  %v7912_v55 = vadd.f32 %v20793_v0, %v7815_v4  ;;  %v19503_v37 = vpack.c.bf16 %v8130_v9, %v8130_v9  ;;  %v20861_v4 = vpop.f32.mrf.mxu1 }
 0x3bb   : > { %9197 = vst [vmem:[#allocation3 + $0x154] sm:$0xf] %v19546_v30  ;;  %8145 = vst [vmem:[#allocation2 + $0x110] sm:$0xff] %v8129_v24  ;;  %v26264_v17 = vld [vmem:[#allocation8_spill] sm:$0xff]  ;;  %v22575_v59 = vld [vmem:[#allocation3 + $0x16c] ss:$60 sps:$4 sm:$0xff]   ;;  %v19594_v27 = vpack.c.bf16 %v8831_v13, %v8831_v13  ;;  %21087 = vmatprep.subr.bf16.mxu1 %v22613_v38 }
 0x3bc   : > { %v20732_v10 = vadd.f32 %v26264_v17, %v26263_v8  ;;  %v22577_v7 = vld [vmem:[#allocation3 + $0x168] ss:$60 sps:$4 sm:$0xff]   ;;  %8241 = vst [vmem:[#allocation3 + $0x21c] sm:$0xf] %v19484_v26  ;;  %8433 = vst [vmem:[#allocation3 + $0x224] sm:$0xf] %v19516_v19  ;;  %11353 = vmatprep.mubr.bf16.mxu0 %v22575_v59  ;;  %v8009_v49 = vadd.f32 %v20857_v20, %v7912_v55 }
 0x3bd   : > { %8528 = vst [vmem:[#allocation3 + $0x1ec] sm:$0xf] %v19484_v26  ;;  %8815 = vst [vmem:[#allocation3 + $0x1bc] sm:$0xf] %v19484_v26  ;;  %v26266_v15 = vld [vmem:[#allocation28_spill] sm:$0xff]  ;;  %v26267_v36 = vld [vmem:[#allocation26_spill] sm:$0xff]  ;;  %11354 = vmatmul.mubr.bf16.gmra.mxu0 %v22577_v7 }
 0x3be   : > { %8720 = vst [vmem:[#allocation3 + $0x1f4] sm:$0xf] %v19516_v19  ;;  %v20735_v22 = vadd.f32 %v26266_v15, %v26265_v50  ;;  %v26268_v3 = vld [vmem:[#allocation9_spill] sm:$0xff]  ;;  %v8449_v1 = vld [vmem:[#allocation2 + $0xf7] sm:$0xff]  ;;  %8339 = vst [vmem:[#allocation3 + $0x298] sm:$0xf] %v19502_v46  ;;  %v8106_v52 = vadd.f32 %v8105_v60, %v8009_v49  ;;  %v8108_v50 = vpop.f32.mrf.mxu0  ;;  %v20862_v15 = vpop.f32.mrf.mxu1 }
 0x3bf   : > { %v20796_v56 = vadd.f32 %v26268_v3, %v26267_v36  ;;  %v8354_v40 = vld [vmem:[#allocation2 + $0xf9] sm:$0xff]  ;;  %8911 = vst [vmem:[#allocation3 + $0x1c0] sm:$0xf] %v19594_v27  ;;  %8624 = vst [vmem:[#allocation3 + $0x1f0] sm:$0xf] %v19594_v27  ;;  %v19532_v11 = vpack.c.bf16 %v8449_v1, %v8449_v1  ;;  %v22614_v58 = vld [vmem:[%s26158_s1 + $0x908] sm:$0xff]  }
 0x3c0   : > { %9198 = vst [vmem:[#allocation3 + $0x190] sm:$0xf] %v19594_v27  ;;  %8146 = vst [vmem:[#allocation2 + $0x128] sm:$0xff] %v8130_v9  ;;  %v19517_v42 = vpack.c.bf16 %v8354_v40, %v8354_v40  ;;  %v8545_v28 = vld [vmem:[#allocation2 + $0xf8] sm:$0xff]  ;;  %v26269_v62 = vld [vmem:[#allocation5_spill] sm:$0xff]  ;;  %v8131_v44 = vmax.f32 %v8101_v53, 0.0  ;;  %21088 = vmatpush3.bf16.msra.mxu1 %v22614_v58 }
 0x3c1   : > { %v7818_v29 = vadd.f32 %v20732_v10, %v26269_v62  ;;  %v22580_v41 = vld [vmem:[#allocation3 + $0x174] ss:$60 sps:$4 sm:$0xff]   ;;  %v19548_v35 = vpack.c.bf16 %v8545_v28, %v8545_v28  ;;  %8529 = vst [vmem:[#allocation3 + $0x228] sm:$0xf] %v19532_v11  ;;  %8242 = vst [vmem:[#allocation3 + $0x258] sm:$0xf] %v19532_v11 }
 0x3c2   : > { %v22582_v48 = vld [vmem:[#allocation3 + $0x170] ss:$60 sps:$4 sm:$0xff]   ;;  %8434 = vst [vmem:[#allocation3 + $0x260] sm:$0xf] %v19517_v42  ;;  %v22626_v61 = vld [vmem:[%s26158_s1 + $0x940] sm:$0xff]   ;;  %11450 = vmatprep.mubr.bf16.mxu1 %v22580_v41  ;;  %8147 = vst [vmem:[#allocation2 + $0x140] sm:$0xff] %v8131_v44  ;;  %v19504_v10 = vpack.c.bf16 %v8131_v44, %v8131_v44 }
 0x3c3   : > { %8721 = vst [vmem:[#allocation3 + $0x230] sm:$0xf] %v19517_v42  ;;  %8816 = vst [vmem:[#allocation3 + $0x1f8] sm:$0xf] %v19532_v11  ;;  %v26270_v21 = vld [vmem:[#allocation14_spill] sm:$0xff]  ;;  %v7915_v30 = vadd.f32 %v20796_v56, %v7818_v29  ;;  %v26272_v2 = vld [vmem:[#allocation32_spill] sm:$0xff]  ;;  %11451 = vmatmul.mubr.bf16.gmra.mxu1 %v22582_v48  ;;  %21089 = vmatprep.subr.bf16.mxu1 %v22626_v61  ;;  %v20863_v56 = vadd.f32 %v20862_v15, %v20861_v4  ;;  %v20864_v11 = vpop.f32.mrf.mxu1 }
 0x3c4   : > { %v7823_v12 = vadd.f32 %v20735_v22, %v26270_v21  ;;  %v26271_v24 = vld [vmem:[#allocation30_spill] sm:$0xff]  ;;  %8340 = vst [vmem:[#allocation3 + $0x2d4] sm:$0xf] %v19503_v37  ;;  %8625 = vst [vmem:[#allocation3 + $0x22c] sm:$0xf] %v19548_v35  ;;  %v22627_v6 = vld [vmem:[%s26158_s1 + $0x900] sm:$0xff]  }
 0x3c5   : > { %v20799_v43 = vadd.f32 %v26272_v2, %v26271_v24  ;;  %v8163_v5 = vld [vmem:[#allocation2 + $0x10f] sm:$0xff]  ;;  %8912 = vst [vmem:[#allocation3 + $0x1fc] sm:$0xf] %v19548_v35  ;;  %9199 = vst [vmem:[#allocation3 + $0x1cc] sm:$0xf] %v19548_v35  ;;  %v9018_v26 = vld [vmem:[#allocation2 + $0x7f] sm:$0xff]  ;;  %v8012_v46 = vadd.f32 %v20860_v14, %v7915_v30  ;;  %21090 = vmatpush3.bf16.msra.mxu1 %v22627_v6  ;;  %v20865_v37 = vpop.f32.mrf.mxu1 }
 0x3c6   : > { %v8355_v0 = vld [vmem:[#allocation2 + $0x111] sm:$0xff]  ;;  %v19486_v47 = vpack.c.bf16 %v8163_v5, %v8163_v5  ;;  %v26273_v19 = vld [vmem:[#allocation29_spill] sm:$0xff]  ;;  %v22585_v8 = vld [vmem:[#allocation3 + $0x1e4] ss:$60 sps:$4 sm:$0xff]   ;;  %v19621_v59 = vpack.c.bf16 %v9018_v26, %v9018_v26  ;;  %v8132_v7 = vmax.f32 %v8106_v52, 0.0  ;;  %v20866_v61 = vadd.f32 %v20865_v37, %v20864_v11 }
 0x3c7   : > { %v19518_v16 = vpack.c.bf16 %v8355_v0, %v8355_v0  ;;  %v8833_v18 = vld [vmem:[#allocation2 + $0x110] sm:$0xff]  ;;  %v26274_v13 = vld [vmem:[#allocation31_spill] sm:$0xff]  ;;  %v7920_v9 = vadd.f32 %v20799_v43, %v7823_v12  ;;  %v26275_v63 = vld [vmem:[#allocation33_spill] sm:$0xff]  ;;  %11361 = vmatprep.mubr.bf16.mxu0 %v22585_v8  ;;  %8341 = vst [vmem:[#allocation3 + $0x310] sm:$0xf] %v19504_v10  ;;  %v8109_v3 = vadd.f32 %v8108_v50, %v8012_v46 }
 0x3c8   : > { %v20738_v39 = vadd.f32 %v26274_v13, %v26273_v19  ;;  %v22587_v17 = vld [vmem:[#allocation3 + $0x1e0] ss:$60 sps:$4 sm:$0xff]   ;;  %v19596_v32 = vpack.c.bf16 %v8833_v18, %v8833_v18  ;;  %8243 = vst [vmem:[#allocation3 + $0x294] sm:$0xf] %v19486_v47  ;;  %8530 = vst [vmem:[#allocation3 + $0x264] sm:$0xf] %v19486_v47  ;;  %v19505_v28 = vpack.c.bf16 %v8132_v7, %v8132_v7 }
 0x3c9   : > { %8435 = vst [vmem:[#allocation3 + $0x29c] sm:$0xf] %v19518_v16  ;;  %v22635_v27 = vld [vmem:[%s26158_s1 + $0xa78] sm:$0xff]   ;;  %8817 = vst [vmem:[#allocation3 + $0x234] sm:$0xf] %v19486_v47  ;;  %v26276_v38 = vld [vmem:[#allocation34_spill] sm:$0xff]  ;;  %11362 = vmatmul.mubr.bf16.gmra.mxu0 %v22587_v17  ;;  %v8017_v41 = vadd.f32 %v20863_v56, %v7920_v9 }
 0x3ca   : > { %8722 = vst [vmem:[#allocation3 + $0x26c] sm:$0xf] %v19518_v16  ;;  %v20802_v55 = vadd.f32 %v26276_v38, %v26275_v63  ;;  %v8451_v22 = vld [vmem:[#allocation2 + $0x127] sm:$0xff]  ;;  %8913 = vst [vmem:[#allocation3 + $0x238] sm:$0xf] %v19596_v32  ;;  %v9019_v40 = vld [vmem:[#allocation2 + $0x97] sm:$0xff]  ;;  %21203 = vmatprep.subr.bf16.mxu1 %v22635_v27 }
 0x3cb   : > { %v8356_v36 = vld [vmem:[#allocation2 + $0x129] sm:$0xff]  ;;  %8626 = vst [vmem:[#allocation3 + $0x268] sm:$0xf] %v19596_v32  ;;  %9098 = vst [vmem:[#allocation3 + $0x9c] sm:$0xf] %v19621_v59  ;;  %v19534_v60 = vpack.c.bf16 %v8451_v22, %v8451_v22  ;;  %v26277_v53 = vld [vmem:[#allocation16_spill] sm:$0xff]  ;;  %v19622_v29 = vpack.c.bf16 %v9019_v40, %v9019_v40  ;;  %v8114_v49 = vadd.f32 %v24862_v31, %v8017_v41 }
 0x3cc   : > { %9200 = vst [vmem:[#allocation3 + $0x208] sm:$0xf] %v19596_v32  ;;  %9385 = vst [vmem:[#allocation3 + $0x6c] sm:$0xf] %v19621_v59  ;;  %v19519_v34 = vpack.c.bf16 %v8356_v36, %v8356_v36  ;;  %v8547_v1 = vld [vmem:[#allocation2 + $0x128] sm:$0xff]  ;;  %v7826_v20 = vadd.f32 %v20738_v39, %v26277_v53  ;;  %v8133_v51 = vmax.f32 %v8109_v3, 0.0 }
 0x3cd   : > { %8148 = vst [vmem:[#allocation2 + $0x158] sm:$0xff] %v8132_v7  ;;  %v22590_v42 = vld [vmem:[#allocation3 + $0x1ec] ss:$60 sps:$4 sm:$0xff]   ;;  %v19550_v62 = vpack.c.bf16 %v8547_v1, %v8547_v1  ;;  %8531 = vst [vmem:[#allocation3 + $0x2a0] sm:$0xf] %v19534_v60  ;;  %v8165_v35 = vld [vmem:[#allocation2 + $0x13f] sm:$0xff] }
 0x3ce   : > { %v22592_v58 = vld [vmem:[#allocation3 + $0x1e8] ss:$60 sps:$4 sm:$0xff]   ;;  %8244 = vst [vmem:[#allocation3 + $0x2d0] sm:$0xf] %v19534_v60  ;;  %8436 = vst [vmem:[#allocation3 + $0x2d8] sm:$0xf] %v19519_v34  ;;  %v7923_v48 = vadd.f32 %v20802_v55, %v7826_v20  ;;  %11458 = vmatprep.mubr.bf16.mxu1 %v22590_v42  ;;  %v19488_v21 = vpack.c.bf16 %v8165_v35, %v8165_v35  ;;  %v19506_v43 = vpack.c.bf16 %v8133_v51, %v8133_v51 }
 0x3cf   : > { %8723 = vst [vmem:[#allocation3 + $0x2a8] sm:$0xf] %v19519_v34  ;;  %8818 = vst [vmem:[#allocation3 + $0x270] sm:$0xf] %v19534_v60  ;;  %v8357_v44 = vld [vmem:[#allocation2 + $0x141] sm:$0xff]  ;;  %11459 = vmatmul.mubr.bf16.gmra.mxu1 %v22592_v58  ;;  %v8134_v5 = vmax.f32 %v8114_v49, 0.0 }
 0x3d0   : > { %8342 = vst [vmem:[#allocation3 + $0x34c] sm:$0xf] %v19505_v28  ;;  %8627 = vst [vmem:[#allocation3 + $0x2a4] sm:$0xf] %v19550_v62  ;;  %v19520_v12 = vpack.c.bf16 %v8357_v44, %v8357_v44  ;;  %v8835_v30 = vld [vmem:[#allocation2 + $0x140] sm:$0xff]  ;;  %v8020_v0 = vadd.f32 %v20866_v61, %v7923_v48  ;;  %v8925_v34 = vld [vmem:[#allocation2 + $0xb1] sm:$0xff] }
 0x3d1   : > { %8914 = vst [vmem:[#allocation3 + $0x274] sm:$0xf] %v19550_v62  ;;  %9099 = vst [vmem:[#allocation3 + $0xd8] sm:$0xf] %v19622_v29  ;;  %v22595_v24 = vld [vmem:[#allocation3 + $0x25c] ss:$60 sps:$4 sm:$0xff]   ;;  %v19598_v54 = vpack.c.bf16 %v8835_v30, %v8835_v30  ;;  %v19608_v53 = vpack.c.bf16 %v8925_v34, %v8925_v34 }
 0x3d2   : > { %9201 = vst [vmem:[#allocation3 + $0x244] sm:$0xf] %v19550_v62  ;;  %9386 = vst [vmem:[#allocation3 + $0xa8] sm:$0xf] %v19622_v29  ;;  %v22597_v2 = vld [vmem:[#allocation3 + $0x258] ss:$60 sps:$4 sm:$0xff]   ;;  %11369 = vmatprep.mubr.bf16.mxu0 %v22595_v24  ;;  %v8117_v14 = vadd.f32 %v24889_v57, %v8020_v0 }
 0x3d3   : > { %8149 = vst [vmem:[#allocation2 + $0x170] sm:$0xff] %v8133_v51  ;;  %8245 = vst [vmem:[#allocation3 + $0x30c] sm:$0xf] %v19488_v21  ;;  %11370 = vmatmul.mubr.bf16.gmra.mxu0 %v22597_v2  ;;  %v22602_v26 = vld [vmem:[#allocation3 + $0x260] ss:$60 sps:$4 sm:$0xff]   ;;  %v9020_v11 = vld [vmem:[#allocation2 + $0xaf] sm:$0xff] }
 0x3d4   : > { %8437 = vst [vmem:[#allocation3 + $0x314] sm:$0xf] %v19520_v12  ;;  %8532 = vst [vmem:[#allocation3 + $0x2dc] sm:$0xf] %v19488_v21  ;;  %v8453_v52 = vld [vmem:[#allocation2 + $0x157] sm:$0xff]  ;;  %v8135_v13 = vmax.f32 %v8117_v14, 0.0  ;;  %v19623_v58 = vpack.c.bf16 %v9020_v11, %v9020_v11 }
 0x3d5   : > { %8819 = vst [vmem:[#allocation3 + $0x2ac] sm:$0xf] %v19488_v21  ;;  %8724 = vst [vmem:[#allocation3 + $0x2e4] sm:$0xf] %v19520_v12  ;;  %v8358_v31 = vld [vmem:[#allocation2 + $0x159] sm:$0xff]  ;;  %v19536_v47 = vpack.c.bf16 %v8453_v52, %v8453_v52  ;;  %v9021_v42 = vld [vmem:[#allocation2 + $0xc7] sm:$0xff] }
 0x3d6   : > { %8343 = vst [vmem:[#allocation3 + $0x388] sm:$0xf] %v19506_v43  ;;  %8915 = vst [vmem:[#allocation3 + $0x2b0] sm:$0xf] %v19598_v54  ;;  %v19521_v16 = vpack.c.bf16 %v8358_v31, %v8358_v31  ;;  %v8549_v6 = vld [vmem:[#allocation2 + $0x158] sm:$0xff]  ;;  %v19624_v29 = vpack.c.bf16 %v9021_v42, %v9021_v42  ;;  %v9213_v41 = vld [vmem:[#allocation2 + $0xc9] sm:$0xff] }
 0x3d7   : > { %8628 = vst [vmem:[#allocation3 + $0x2e0] sm:$0xf] %v19598_v54  ;;  %9202 = vst [vmem:[#allocation3 + $0x280] sm:$0xf] %v19598_v54  ;;  %v22600_v18 = vld [vmem:[#allocation3 + $0x264] ss:$60 sps:$4 sm:$0xff]   ;;  %v19552_v19 = vpack.c.bf16 %v8549_v6, %v8549_v6  ;;  %v19656_v44 = vpack.c.bf16 %v9213_v41, %v9213_v41 }
 0x3d8   : > { %8150 = vst [vmem:[#allocation2 + $0x188] sm:$0xff] %v8134_v5  ;;  %8533 = vst [vmem:[#allocation3 + $0x318] sm:$0xf] %v19536_v47  ;;  %11466 = vmatprep.mubr.bf16.mxu1 %v22600_v18  ;;  %v22605_v10 = vld [vmem:[#allocation3 + $0x2d4] ss:$60 sps:$4 sm:$0xff]   ;;  %v9211_v63 = vld [vmem:[#allocation2 + $0x99] sm:$0xff] }
 0x3d9   : > { %8246 = vst [vmem:[#allocation3 + $0x348] sm:$0xf] %v19536_v47  ;;  %8438 = vst [vmem:[#allocation3 + $0x350] sm:$0xf] %v19521_v16  ;;  %11467 = vmatmul.mubr.bf16.gmra.mxu1 %v22602_v26  ;;  %11377 = vmatprep.mubr.bf16.mxu0 %v22605_v10  ;;  %v19654_v22 = vpack.c.bf16 %v9211_v63, %v9211_v63  ;;  %v22622_v20 = vld [vmem:[#allocation3 + $0x14] ss:$60 sps:$4 sm:$0xff]  }
 0x3da   : > { %8725 = vst [vmem:[#allocation3 + $0x320] sm:$0xf] %v19521_v16  ;;  %8820 = vst [vmem:[#allocation3 + $0x2e8] sm:$0xf] %v19536_v47  ;;  %v8167_v39 = vld [vmem:[#allocation2 + $0x16f] sm:$0xff]  ;;  %v8927_v48 = vld [vmem:[#allocation2 + $0xe1] sm:$0xff] }
 0x3db   : > { %v8359_v4 = vld [vmem:[#allocation2 + $0x171] sm:$0xff]  ;;  %8629 = vst [vmem:[#allocation3 + $0x31c] sm:$0xf] %v19552_v19  ;;  %8916 = vst [vmem:[#allocation3 + $0x2ec] sm:$0xf] %v19552_v19  ;;  %v19490_v57 = vpack.c.bf16 %v8167_v39, %v8167_v39  ;;  %v19610_v49 = vpack.c.bf16 %v8927_v48, %v8927_v48  ;;  %v9022_v61 = vld [vmem:[#allocation2 + $0xdf] sm:$0xff] }
 0x3dc   : > { %9203 = vst [vmem:[#allocation3 + $0x2bc] sm:$0xf] %v19552_v19  ;;  %8151 = vst [vmem:[#allocation2 + $0x1a0] sm:$0xff] %v8135_v13  ;;  %v19522_v8 = vpack.c.bf16 %v8359_v4, %v8359_v4  ;;  %v8837_v17 = vld [vmem:[#allocation2 + $0x170] sm:$0xff]  ;;  %v22630_v51 = vld [vmem:[#allocation3 + $0x1c] ss:$60 sps:$4 sm:$0xff]   ;;  %v19625_v30 = vpack.c.bf16 %v9022_v61, %v9022_v61 }
 0x3dd   : > { %v22607_v32 = vld [vmem:[#allocation3 + $0x2d0] ss:$60 sps:$4 sm:$0xff]   ;;  %v19600_v59 = vpack.c.bf16 %v8837_v17, %v8837_v17  ;;  %8247 = vst [vmem:[#allocation3 + $0x384] sm:$0xf] %v19490_v57  ;;  %8534 = vst [vmem:[#allocation3 + $0x354] sm:$0xf] %v19490_v57 }
 0x3de   : > { %8439 = vst [vmem:[#allocation3 + $0x38c] sm:$0xf] %v19522_v8  ;;  %8821 = vst [vmem:[#allocation3 + $0x324] sm:$0xf] %v19490_v57  ;;  %11378 = vmatmul.mubr.bf16.gmra.mxu0 %v22607_v32  ;;  %v22612_v55 = vld [vmem:[#allocation3 + $0x2d8] ss:$60 sps:$4 sm:$0xff]  }
 0x3df   : > { %8726 = vst [vmem:[#allocation3 + $0x35c] sm:$0xf] %v19522_v8  ;;  %v8455_v7 = vld [vmem:[#allocation2 + $0x187] sm:$0xff]  ;;  %8917 = vst [vmem:[#allocation3 + $0x328] sm:$0xf] %v19600_v59  ;;  %v22634_v37 = vld [vmem:[%s26158_s1 + $0x9b8] sm:$0xff]  }
 0x3e0   : > { %8630 = vst [vmem:[#allocation3 + $0x358] sm:$0xf] %v19600_v59  ;;  %9204 = vst [vmem:[#allocation3 + $0x2f8] sm:$0xf] %v19600_v59  ;;  %v19538_v46 = vpack.c.bf16 %v8455_v7, %v8455_v7  ;;  %v8551_v27 = vld [vmem:[#allocation2 + $0x188] sm:$0xff]  ;;  %v22639_v35 = vld [vmem:[%s26158_s1 + $0x9f0] sm:$0xff]  }
 0x3e1   : > { %v8647_v9 = vld [vmem:[#allocation2 + $0x189] sm:$0xff]  ;;  %v22610_v38 = vld [vmem:[#allocation3 + $0x2dc] ss:$60 sps:$4 sm:$0xff]   ;;  %v19554_v50 = vpack.c.bf16 %v8551_v27, %v8551_v27  ;;  %9291 = vst [vmem:[#allocation3 + $0xe0] sm:$0xf] %v19654_v22  ;;  %v8931_v4 = vld [vmem:[#allocation2 + $0x141] sm:$0xff] }
 0x3e2   : > { %v19570_v15 = vpack.c.bf16 %v8647_v9, %v8647_v9  ;;  %8535 = vst [vmem:[#allocation3 + $0x390] sm:$0xf] %v19538_v46  ;;  %8822 = vst [vmem:[#allocation3 + $0x360] sm:$0xf] %v19538_v46  ;;  %11474 = vmatprep.mubr.bf16.mxu1 %v22610_v38  ;;  %v22615_v1 = vld [vmem:[#allocation3 + $0x34c] ss:$60 sps:$4 sm:$0xff]   ;;  %v19614_v17 = vpack.c.bf16 %v8931_v4, %v8931_v4 }
 0x3e3   : > { %8631 = vst [vmem:[#allocation3 + $0x394] sm:$0xf] %v19554_v50  ;;  %v8743_v36 = vld [vmem:[#allocation2 + $0x19f] sm:$0xff]  ;;  %8918 = vst [vmem:[#allocation3 + $0x364] sm:$0xf] %v19554_v50  ;;  %11475 = vmatmul.mubr.bf16.gmra.mxu1 %v22612_v55  ;;  %11385 = vmatprep.mubr.bf16.mxu0 %v22615_v1  ;;  %v9023_v21 = vld [vmem:[#allocation2 + $0xf7] sm:$0xff] }
 0x3e4   : > { %8727 = vst [vmem:[#allocation3 + $0x398] sm:$0xf] %v19570_v15  ;;  %v8839_v3 = vld [vmem:[#allocation2 + $0x1a0] sm:$0xff]  ;;  %9004 = vst [vmem:[#allocation3 + $0x110] sm:$0xf] %v19654_v22  ;;  %v19586_v56 = vpack.c.bf16 %v8743_v36, %v8743_v36  ;;  %v19626_v24 = vpack.c.bf16 %v9023_v21, %v9023_v21  ;;  %v22638_v43 = vld [vmem:[%s26158_s1 + $0xa38] sm:$0xff]  }
 0x3e5   : > { %9205 = vst [vmem:[#allocation3 + $0x334] sm:$0xf] %v19554_v50  ;;  %9301 = vst [vmem:[#allocation3 + $0x338] sm:$0xf] %v19570_v15  ;;  %v19602_v60 = vpack.c.bf16 %v8839_v3, %v8839_v3  ;;  %v22617_v40 = vld [vmem:[#allocation3 + $0x348] ss:$60 sps:$4 sm:$0xff]  }
 0x3e6   : > { %9014 = vst [vmem:[#allocation3 + $0x368] sm:$0xf] %v19570_v15  ;;  %9578 = vst [vmem:[#allocation3 + $0xb0] sm:$0xf] %v19654_v22  ;;  %11386 = vmatmul.mubr.bf16.gmra.mxu0 %v22617_v40  ;;  %v22625_v62 = vld [vmem:[#allocation3 + $0x350] ss:$60 sps:$4 sm:$0xff]  }
 0x3e7   : > { %8823 = vst [vmem:[#allocation3 + $0x39c] sm:$0xf] %v19586_v56  ;;  %8919 = vst [vmem:[#allocation3 + $0x3a0] sm:$0xf] %v19602_v60  ;;  %11523 = vmatprep.mubr.bf16.mxu0 %v22622_v20  ;;  %v22632_v12 = vld [vmem:[#allocation3 + $0x8c] ss:$60 sps:$4 sm:$0xff]  }
 0x3e8   : > { %9110 = vst [vmem:[#allocation3 + $0x36c] sm:$0xf] %v19586_v56  ;;  %9206 = vst [vmem:[#allocation3 + $0x370] sm:$0xf] %v19602_v60  ;;  %v9215_v2 = vld [vmem:[#allocation2 + $0xf9] sm:$0xff]  ;;  %v8929_v5 = vld [vmem:[#allocation2 + $0x111] sm:$0xff] }
 0x3e9   : > { %9005 = vst [vmem:[#allocation3 + $0x14c] sm:$0xf] %v19608_v53  ;;  %9292 = vst [vmem:[#allocation3 + $0x11c] sm:$0xf] %v19608_v53  ;;  %v22623_v28 = vld [vmem:[#allocation3 + $0x354] ss:$60 sps:$4 sm:$0xff]   ;;  %v19658_v54 = vpack.c.bf16 %v9215_v2, %v9215_v2 }
 0x3ea   : > { %9579 = vst [vmem:[#allocation3 + $0xec] sm:$0xf] %v19608_v53  ;;  %9100 = vst [vmem:[#allocation3 + $0x114] sm:$0xf] %v19623_v58  ;;  %11482 = vmatprep.mubr.bf16.mxu1 %v22623_v28  ;;  %v9024_v0 = vld [vmem:[#allocation2 + $0x10f] sm:$0xff]  ;;  %v9025_v14 = vld [vmem:[#allocation2 + $0x127] sm:$0xff] }
 0x3eb   : > { %9387 = vst [vmem:[#allocation3 + $0xe4] sm:$0xf] %v19623_v58  ;;  %9101 = vst [vmem:[#allocation3 + $0x150] sm:$0xf] %v19624_v29  ;;  %11483 = vmatmul.mubr.bf16.gmra.mxu1 %v22625_v62  ;;  %v22642_v52 = vld [vmem:[%s26158_s1 + $0x9b0] sm:$0xff]   ;;  %v19627_v47 = vpack.c.bf16 %v9024_v0, %v9024_v0  ;;  %v9618_v6 = vld [vmem:[#allocation3 + $0xc4] sm:$0xff]  ;;  %v19628_v26 = vpack.c.bf16 %v9025_v14, %v9025_v14 }
 0x3ec   : > { %9388 = vst [vmem:[#allocation3 + $0x120] sm:$0xf] %v19624_v29  ;;  %11620 = vmatprep.mubr.bf16.mxu1 %v22630_v51  ;;  %9293 = vst [vmem:[#allocation3 + $0x158] sm:$0xf] %v19656_v44  ;;  %v22644_v31 = vld [vmem:[%s26158_s1 + $0xa70] sm:$0xff]   ;;  %v22648_v18 = vld [vmem:[%s26158_s1 + $0x9e8] sm:$0xff]  }
 0x3ed   : > { %9006 = vst [vmem:[#allocation3 + $0x188] sm:$0xf] %v19656_v44  ;;  %9007 = vst [vmem:[#allocation3 + $0x1c4] sm:$0xf] %v19610_v49  ;;  %v22628_v16 = vld [vmem:[#allocation3 + $0x18] ss:$60 sps:$4 sm:$0xff]  }
 0x3ee   : > { %9294 = vst [vmem:[#allocation3 + $0x194] sm:$0xf] %v19610_v49  ;;  %9580 = vst [vmem:[#allocation3 + $0x128] sm:$0xf] %v19656_v44  ;;  %11524 = vmatmul.mubr.bf16.vlgmr.msra.gmra.mxu0 %v24802_v23  ;;  %v19612_v23 = vpack.c.bf16 %v8929_v5, %v8929_v5  ;;  %v22636_v19 = vld [vmem:[#allocation3 + $0x94] ss:$60 sps:$4 sm:$0xff]  }
 0x3ef   : > { %9581 = vst [vmem:[#allocation3 + $0x164] sm:$0xf] %v19610_v49  ;;  %11531 = vmatprep.mubr.bf16.mxu0 %v22632_v12  ;;  %21140 = vmatpush3.bf16.msra.mxu0 %v22634_v37  ;;  %9102 = vst [vmem:[#allocation3 + $0x18c] sm:$0xf] %v19625_v30  ;;  %v22647_v13 = vld [vmem:[%s26158_s1 + $0xa30] sm:$0xff]   ;;  %v22651_v57 = vld [vmem:[%s26158_s1 + $0x9a8] sm:$0xff]   ;;  %v20899_v12 = vpop.f32.mrf.mxu0 }
 0x3f0   : > { %9103 = vst [vmem:[#allocation3 + $0x1c8] sm:$0xf] %v19626_v24  ;;  %9389 = vst [vmem:[#allocation3 + $0x15c] sm:$0xf] %v19625_v30  ;;  %21141 = vmatprep.subr.bf16.mxu0 %v22639_v35  ;;  %v9217_v39 = vld [vmem:[#allocation2 + $0x129] sm:$0xff]  ;;  %v9026_v10 = vld [vmem:[#allocation2 + $0x13f] sm:$0xff] }
 0x3f1   : > { %9390 = vst [vmem:[#allocation3 + $0x198] sm:$0xf] %v19626_v24  ;;  %9295 = vst [vmem:[#allocation3 + $0x1d0] sm:$0xf] %v19658_v54  ;;  %v19660_v8 = vpack.c.bf16 %v9217_v39, %v9217_v39  ;;  %v9027_v32 = vld [vmem:[#allocation2 + $0x157] sm:$0xff]  ;;  %v9610_v59 = vld [vmem:[#allocation3 + $0x88] sm:$0xff]  ;;  %v19629_v46 = vpack.c.bf16 %v9026_v10, %v9026_v10 }
 0x3f2   : > { %9008 = vst [vmem:[#allocation3 + $0x200] sm:$0xf] %v19658_v54  ;;  %9582 = vst [vmem:[#allocation3 + $0x1a0] sm:$0xf] %v19658_v54  ;;  %v22653_v7 = vld [vmem:[%s26158_s1 + $0xa68] sm:$0xff]   ;;  %v19630_v27 = vpack.c.bf16 %v9027_v32, %v9027_v32  ;;  %v9219_v9 = vld [vmem:[#allocation2 + $0x159] sm:$0xff]  ;;  %v18049_v63 = vcombine.low %v9610_v59, %v9618_v6 }
 0x3f3   : > { %9009 = vst [vmem:[#allocation3 + $0x23c] sm:$0xf] %v19612_v23  ;;  %9104 = vst [vmem:[#allocation3 + $0x204] sm:$0xf] %v19627_v47  ;;  %11621 = vmatmul.mubr.bf16.vlgmr.msra.gmra.mxu1 %v22628_v16  ;;  %v22640_v38 = vld [vmem:[#allocation3 + $0x104] ss:$60 sps:$4 sm:$0xff]   ;;  %21142 = vmatpush3.bf16.msra.mxu0 %v22642_v52  ;;  %v19662_v50 = vpack.c.bf16 %v9219_v9, %v9219_v9  ;;  %v20900_v52 = vpop.f32.mrf.mxu0 }
 0x3f4   : > { %9296 = vst [vmem:[#allocation3 + $0x20c] sm:$0xf] %v19612_v23  ;;  %9583 = vst [vmem:[#allocation3 + $0x1dc] sm:$0xf] %v19612_v23  ;;  %11628 = vmatprep.mubr.bf16.mxu1 %v22636_v19  ;;  %21204 = vmatpush3.bf16.msra.mxu1 %v22638_v43  ;;  %v22657_v55 = vld [vmem:[%s26158_s1 + $0x9e0] sm:$0xff]   ;;  %v8933_v15 = vld [vmem:[#allocation2 + $0x171] sm:$0xff]  ;;  %v24983_v16 = vadd.f32 %v20900_v52, %v20899_v12 }
 0x3f5   : > { %9391 = vst [vmem:[#allocation3 + $0x1d4] sm:$0xf] %v19627_v47  ;;  %9105 = vst [vmem:[#allocation3 + $0x240] sm:$0xf] %v19628_v26  ;;  %21205 = vmatprep.subr.bf16.mxu1 %v22644_v31  ;;  %21143 = vmatprep.subr.bf16.mxu0 %v22648_v18  ;;  %v9028_v22 = vld [vmem:[#allocation2 + $0x16f] sm:$0xff]  ;;  %v19616_v3 = vpack.c.bf16 %v8933_v15, %v8933_v15  ;;  %v22660_v60 = vld [vmem:[%s26158_s1 + $0x9a0] sm:$0xff]  }
 0x3f6   : > { %9392 = vst [vmem:[#allocation3 + $0x210] sm:$0xf] %v19628_v26  ;;  %9297 = vst [vmem:[#allocation3 + $0x248] sm:$0xf] %v19660_v8  ;;  %11532 = vmatmul.mubr.bf16.gmra.mxu0 %v18049_v63  ;;  %v22656_v36 = vld [vmem:[%s26158_s1 + $0xa28] sm:$0xff]   ;;  %v19631_v56 = vpack.c.bf16 %v9028_v22, %v9028_v22  ;;  %v22662_v34 = vld [vmem:[%s26158_s1 + $0xa60] sm:$0xff]  }
 0x3f7   : > { %9010 = vst [vmem:[#allocation3 + $0x278] sm:$0xf] %v19660_v8  ;;  %9011 = vst [vmem:[#allocation3 + $0x2b4] sm:$0xf] %v19614_v17  ;;  %11539 = vmatprep.mubr.bf16.mxu0 %v22640_v38  ;;  %v22643_v1 = vld [vmem:[#allocation3 + $0x90] ss:$60 sps:$4 sm:$0xff]   ;;  %21144 = vmatpush3.bf16.msra.mxu0 %v22651_v57 }
 0x3f8   : > { %9298 = vst [vmem:[#allocation3 + $0x284] sm:$0xf] %v19614_v17  ;;  %9584 = vst [vmem:[#allocation3 + $0x218] sm:$0xf] %v19660_v8  ;;  %21206 = vmatpush3.bf16.msra.mxu1 %v22647_v13  ;;  %v9029_v40 = vld [vmem:[#allocation2 + $0x187] sm:$0xff]  ;;  %v9634_v53 = vld [vmem:[#allocation3 + $0x13c] sm:$0xff]  ;;  %21145 = vmatprep.subr.bf16.mxu0 %v22657_v55 }
 0x3f9   : > { %9585 = vst [vmem:[#allocation3 + $0x254] sm:$0xf] %v19614_v17  ;;  %9106 = vst [vmem:[#allocation3 + $0x27c] sm:$0xf] %v19629_v46  ;;  %21207 = vmatprep.subr.bf16.mxu1 %v22653_v7  ;;  %v22645_v20 = vld [vmem:[#allocation3 + $0x10c] ss:$60 sps:$4 sm:$0xff]   ;;  %v19632_v42 = vpack.c.bf16 %v9029_v40, %v9029_v40 }
 0x3fa   : > { %9107 = vst [vmem:[#allocation3 + $0x2b8] sm:$0xf] %v19630_v27  ;;  %9393 = vst [vmem:[#allocation3 + $0x24c] sm:$0xf] %v19629_v46  ;;  %v22666_v11 = vld [vmem:[%s26158_s1 + $0x9d8] sm:$0xff]   ;;  %v9626_v58 = vld [vmem:[#allocation3 + $0x100] sm:$0xff] }
 0x3fb   : > { %9394 = vst [vmem:[#allocation3 + $0x288] sm:$0xf] %v19630_v27  ;;  %9299 = vst [vmem:[#allocation3 + $0x2c0] sm:$0xf] %v19662_v50  ;;  %11629 = vmatmul.mubr.bf16.gmra.mxu1 %v22643_v1  ;;  %v22665_v28 = vld [vmem:[%s26158_s1 + $0xa20] sm:$0xff]   ;;  %v18064_v62 = vcombine.low %v9626_v58, %v9634_v53  ;;  %21146 = vmatpush3.bf16.msra.mxu0 %v22660_v60  ;;  %v22669_v29 = vld [vmem:[%s26158_s1 + $0x998] sm:$0xff]  }
 0x3fc   : > { %9012 = vst [vmem:[#allocation3 + $0x2f0] sm:$0xf] %v19662_v50  ;;  %9586 = vst [vmem:[#allocation3 + $0x290] sm:$0xf] %v19662_v50  ;;  %11636 = vmatprep.mubr.bf16.mxu1 %v22645_v20  ;;  %21208 = vmatpush3.bf16.msra.mxu1 %v22656_v36  ;;  %v22671_v51 = vld [vmem:[%s26158_s1 + $0xa58] sm:$0xff]   ;;  %v22675_v41 = vld [vmem:[%s26158_s1 + $0x9d0] sm:$0xff]  }
 0x3fd   : > { %9013 = vst [vmem:[#allocation3 + $0x32c] sm:$0xf] %v19616_v3  ;;  %9108 = vst [vmem:[#allocation3 + $0x2f4] sm:$0xf] %v19631_v56  ;;  %21209 = vmatprep.subr.bf16.mxu1 %v22662_v34  ;;  %v22649_v48 = vld [vmem:[#allocation3 + $0x17c] ss:$60 sps:$4 sm:$0xff]   ;;  %21147 = vmatprep.subr.bf16.mxu0 %v22666_v11 }
 0x3fe   : > { %9300 = vst [vmem:[#allocation3 + $0x2fc] sm:$0xf] %v19616_v3  ;;  %9587 = vst [vmem:[#allocation3 + $0x2cc] sm:$0xf] %v19616_v3  ;;  %11540 = vmatmul.mubr.bf16.gmra.mxu0 %v18064_v62  ;;  %v8935_v37 = vld [vmem:[#allocation2 + $0x1a1] sm:$0xff]  ;;  %v22674_v35 = vld [vmem:[%s26158_s1 + $0xa18] sm:$0xff]  }
 0x3ff   : > { %9395 = vst [vmem:[#allocation3 + $0x2c4] sm:$0xf] %v19631_v56  ;;  %9109 = vst [vmem:[#allocation3 + $0x330] sm:$0xf] %v19632_v42  ;;  %11547 = vmatprep.mubr.bf16.mxu0 %v22649_v48  ;;  %v19618_v44 = vpack.c.bf16 %v8935_v37, %v8935_v37  ;;  %v22652_v49 = vld [vmem:[#allocation3 + $0x108] ss:$60 sps:$4 sm:$0xff]   ;;  %21148 = vmatpush3.bf16.msra.mxu0 %v22669_v29 }
 0x400   : > { %9396 = vst [vmem:[#allocation3 + $0x300] sm:$0xf] %v19632_v42  ;;  %21210 = vmatpush3.bf16.msra.mxu1 %v22665_v28  ;;  %v22678_v61 = vld [vmem:[%s26158_s1 + $0x990] sm:$0xff]   ;;  %v22654_v24 = vld [vmem:[#allocation3 + $0x184] ss:$60 sps:$4 sm:$0xff]   ;;  %21149 = vmatprep.subr.bf16.mxu0 %v22675_v41  ;;  %v22684_v43 = vld [vmem:[%s26158_s1 + $0x9c8] sm:$0xff]  }
 0x401   : > { %21211 = vmatprep.subr.bf16.mxu1 %v22671_v51  ;;  %v22680_v21 = vld [vmem:[%s26158_s1 + $0xa50] sm:$0xff]   ;;  %9015 = vst [vmem:[#allocation3 + $0x3a4] sm:$0xf] %v19618_v44  ;;  %9302 = vst [vmem:[#allocation3 + $0x374] sm:$0xf] %v19618_v44  ;;  %v22687_v54 = vld [vmem:[%s26158_s1 + $0x988] sm:$0xff]  }
 0x402   : > { %v9650_v30 = vld [vmem:[#allocation3 + $0x1b4] sm:$0xff]  ;;  %9589 = vst [vmem:[#allocation3 + $0x344] sm:$0xf] %v19618_v44  ;;  %v22689_v5 = vld [vmem:[%s26158_s1 + $0xa48] sm:$0xff]   ;;  %v22693_v23 = vld [vmem:[%s26158_s1 + $0x9c0] sm:$0xff]  }
 0x403   : > { %v22683_v2 = vld [vmem:[%s26158_s1 + $0xa10] sm:$0xff]   ;;  %11637 = vmatmul.mubr.bf16.gmra.mxu1 %v22652_v49  ;;  %v9400_v0 = vld [vmem:[#allocation2 + $0x68] sm:$0xff]  ;;  %v9642_v31 = vld [vmem:[#allocation3 + $0x178] sm:$0xff]  ;;  %21150 = vmatpush3.bf16.msra.mxu0 %v22678_v61  ;;  %13160 = vst [vmem:[#allocation3 + $0x3ac] sm:$0xf] %v24770_v33 }
 0x404   : > { %11644 = vmatprep.mubr.bf16.mxu1 %v22654_v24  ;;  %21212 = vmatpush3.bf16.msra.mxu1 %v22674_v35  ;;  %v9401_v14 = vld [vmem:[#allocation2 + $0x80] sm:$0xff]  ;;  %v19683_v47 = vpack.c.bf16 %v9400_v0, %v9400_v0  ;;  %v18079_v6 = vcombine.low %v9642_v31, %v9650_v30  ;;  %v22658_v18 = vld [vmem:[#allocation3 + $0x1f4] ss:$60 sps:$4 sm:$0xff]   ;;  %v22692_v19 = vld [vmem:[%s26158_s1 + $0xa08] sm:$0xff]  }
 0x405   : > { %21213 = vmatprep.subr.bf16.mxu1 %v22680_v21  ;;  %v19684_v26 = vpack.c.bf16 %v9401_v14, %v9401_v14  ;;  %21151 = vmatprep.subr.bf16.mxu0 %v22684_v43  ;;  %v9402_v13 = vld [vmem:[#allocation2 + $0x98] sm:$0xff]  ;;  %v9403_v39 = vld [vmem:[#allocation2 + $0xb0] sm:$0xff]  ;;  %v22694_v4 = vld [vmem:[%s26158_s1 + $0x980] sm:$0xff]  }
 0x406   : > { %9480 = vst [vmem:[#allocation3 + $0x34] sm:$0xf] %v19683_v47  ;;  %11548 = vmatmul.mubr.bf16.gmra.mxu0 %v18079_v6  ;;  %v22699_v57 = vld [vmem:[%s26158_s1 + $0xa40] sm:$0xff]   ;;  %v19685_v8 = vpack.c.bf16 %v9402_v13, %v9402_v13  ;;  %v19686_v17 = vpack.c.bf16 %v9403_v39, %v9403_v39  ;;  %v22704_v32 = vld [vmem:[%s26158_s1 + $0xaf8] sm:$0xff]   ;;  %v9404_v59 = vld [vmem:[#allocation2 + $0xc8] sm:$0xff] }
 0x407   : > { %9481 = vst [vmem:[#allocation3 + $0x70] sm:$0xf] %v19684_v26  ;;  %11555 = vmatprep.mubr.bf16.mxu0 %v22658_v18  ;;  %v22661_v10 = vld [vmem:[#allocation3 + $0x180] ss:$60 sps:$4 sm:$0xff]   ;;  %v9666_v7 = vld [vmem:[#allocation3 + $0x22c] sm:$0xff]  ;;  %21152 = vmatpush3.bf16.msra.mxu0 %v22687_v54  ;;  %v19687_v9 = vpack.c.bf16 %v9404_v59, %v9404_v59  ;;  %v9682_v53 = vld [vmem:[#allocation3 + $0x2a4] sm:$0xff] }
 0x408   : > { %21214 = vmatpush3.bf16.msra.mxu1 %v22683_v2  ;;  %v22663_v46 = vld [vmem:[#allocation3 + $0x1fc] ss:$60 sps:$4 sm:$0xff]   ;;  %v24997_v27 = vld [vmem:[#allocation3 + $0x36c] ss:$60 sps:$4 sm:$0xff]   ;;  %9482 = vst [vmem:[#allocation3 + $0xac] sm:$0xf] %v19685_v8  ;;  %21153 = vmatprep.subr.bf16.mxu0 %v22693_v23 }
 0x409   : > { %21215 = vmatprep.subr.bf16.mxu1 %v22689_v5  ;;  %9483 = vst [vmem:[#allocation3 + $0xe8] sm:$0xf] %v19686_v17  ;;  %v22700_v63 = vld [vmem:[%s26158_s1 + $0xa00] sm:$0xff]   ;;  %13064 = vst [vmem:[#allocation3 + $0x3a8] sm:$0xf] %v24499_v45  ;;  %v9658_v50 = vld [vmem:[#allocation3 + $0x1f0] sm:$0xff] }
 0x40a   : > { %v25003_v38 = vld [vmem:[#allocation3 + $0x374] ss:$60 sps:$4 sm:$0xff]   ;;  %v9405_v55 = vld [vmem:[#allocation2 + $0xe0] sm:$0xff]  ;;  %9484 = vst [vmem:[#allocation3 + $0x124] sm:$0xf] %v19687_v9  ;;  %v25010_v22 = vld [vmem:[%s26158_s1 + $0xb38] sm:$0xff]   ;;  %v18094_v3 = vcombine.low %v9658_v50, %v9666_v7 }
 0x40b   : > { %11645 = vmatmul.mubr.bf16.gmra.mxu1 %v22661_v10  ;;  %13256 = vst [vmem:[#allocation3 + $0x3b0] sm:$0xf] %v24778_v25  ;;  %v19688_v15 = vpack.c.bf16 %v9405_v55, %v9405_v55  ;;  %v9406_v36 = vld [vmem:[#allocation2 + $0xf8] sm:$0xff]  ;;  %21154 = vmatpush3.bf16.msra.mxu0 %v22694_v4  ;;  %v9407_v56 = vld [vmem:[#allocation2 + $0x110] sm:$0xff]  ;;  %v22667_v34 = vld [vmem:[#allocation3 + $0x26c] ss:$60 sps:$4 sm:$0xff]  }
 0x40c   : > { %11652 = vmatprep.mubr.bf16.mxu1 %v22663_v46  ;;  %21216 = vmatpush3.bf16.msra.mxu1 %v22692_v19  ;;  %v19689_v60 = vpack.c.bf16 %v9406_v36, %v9406_v36  ;;  %v19690_v1 = vpack.c.bf16 %v9407_v56, %v9407_v56  ;;  %v9508_v40 = vld [vmem:[#allocation2 + $0x189] sm:$0xff]  ;;  %v22670_v20 = vld [vmem:[#allocation3 + $0x1f8] ss:$60 sps:$4 sm:$0xff]   ;;  %v9409_v28 = vld [vmem:[#allocation2 + $0x140] sm:$0xff] }
 0x40d   : > { %21217 = vmatprep.subr.bf16.mxu1 %v22699_v57  ;;  %9485 = vst [vmem:[#allocation3 + $0x160] sm:$0xf] %v19688_v15  ;;  %21267 = vmatprep.subr.bf16.mxu0 %v22704_v32  ;;  %v22672_v11 = vld [vmem:[#allocation3 + $0x274] ss:$60 sps:$4 sm:$0xff]   ;;  %v19711_v42 = vpack.c.bf16 %v9508_v40, %v9508_v40  ;;  %v9408_v58 = vld [vmem:[#allocation2 + $0x128] sm:$0xff]  ;;  %v19692_v29 = vpack.c.bf16 %v9409_v28, %v9409_v28  ;;  %v9410_v51 = vld [vmem:[#allocation2 + $0x158] sm:$0xff] }
 0x40e   : > { %11556 = vmatmul.mubr.bf16.gmra.mxu0 %v18094_v3  ;;  %9486 = vst [vmem:[#allocation3 + $0x19c] sm:$0xf] %v19689_v60  ;;  %9487 = vst [vmem:[#allocation3 + $0x1d8] sm:$0xf] %v19690_v1  ;;  %v19691_v62 = vpack.c.bf16 %v9408_v58, %v9408_v58  ;;  %v9411_v41 = vld [vmem:[#allocation2 + $0x170] sm:$0xff]  ;;  %v19693_v48 = vpack.c.bf16 %v9410_v51, %v9410_v51  ;;  %v9317_v35 = vld [vmem:[#allocation2 + $0x19f] sm:$0xff] }
 0x40f   : > { %11563 = vmatprep.mubr.bf16.mxu0 %v22667_v34  ;;  %9588 = vst [vmem:[#allocation3 + $0x308] sm:$0xf] %v19711_v42  ;;  %v19694_v37 = vpack.c.bf16 %v9411_v41, %v9411_v41  ;;  %v9412_v44 = vld [vmem:[#allocation2 + $0x188] sm:$0xff]  ;;  %v9413_v49 = vld [vmem:[#allocation2 + $0x1a0] sm:$0xff]  ;;  %9489 = vst [vmem:[#allocation3 + $0x250] sm:$0xf] %v19692_v29  ;;  %v19680_v21 = vpack.c.bf16 %v9317_v35, %v9317_v35 }
 0x410   : > { %21218 = vmatpush3.bf16.msra.mxu1 %v22700_v63  ;;  %v9674_v61 = vld [vmem:[#allocation3 + $0x268] sm:$0xff]  ;;  %9488 = vst [vmem:[#allocation3 + $0x214] sm:$0xf] %v19691_v62  ;;  %v19695_v12 = vpack.c.bf16 %v9412_v44, %v9412_v44  ;;  %v19696_v30 = vpack.c.bf16 %v9413_v49, %v9413_v49  ;;  %9490 = vst [vmem:[#allocation3 + $0x28c] sm:$0xf] %v19693_v48  ;;  %v9698_v54 = vld [vmem:[#allocation3 + $0x31c] sm:$0xff] }
 0x411   : > { %21875 = vmatprep.subr.bf16.mxu1 %v25010_v22  ;;  %v18109_v24 = vcombine.low %v9674_v61, %v9682_v53  ;;  %9491 = vst [vmem:[#allocation3 + $0x2c8] sm:$0xf] %v19694_v37  ;;  %v22676_v2 = vld [vmem:[#allocation3 + $0x2e4] ss:$60 sps:$4 sm:$0xff]   ;;  %9397 = vst [vmem:[#allocation3 + $0x33c] sm:$0xf] %v19680_v21 }
 0x412   : > { %9492 = vst [vmem:[#allocation3 + $0x304] sm:$0xf] %v19695_v12  ;;  %9493 = vst [vmem:[#allocation3 + $0x340] sm:$0xf] %v19696_v30  ;;  %v22679_v43 = vld [vmem:[#allocation3 + $0x270] ss:$60 sps:$4 sm:$0xff]  }
 0x413   : > { %11653 = vmatmul.mubr.bf16.gmra.mxu1 %v22670_v20  ;;  %v22681_v5 = vld [vmem:[#allocation3 + $0x2ec] ss:$60 sps:$4 sm:$0xff]   ;;  %v9690_v0 = vld [vmem:[#allocation3 + $0x2e0] sm:$0xff]  ;;  %v22685_v31 = vld [vmem:[#allocation3 + $0x35c] ss:$60 sps:$4 sm:$0xff]  }
 0x414   : > { %11660 = vmatprep.mubr.bf16.mxu1 %v22672_v11  ;;  %v18124_v52 = vcombine.low %v9690_v0, %v9698_v54  ;;  %v25013_v23 = vld [vmem:[#allocation3 + $0x380] ss:$60 sps:$4 sm:$0xff]   ;;  %v13464_v14 = vld [vmem:[#allocation2 + $0x1d1] sm:$0xff]  ;;  %v22688_v47 = vld [vmem:[#allocation3 + $0x2e8] ss:$60 sps:$4 sm:$0xff]  }
 0x415   : > { %v19954_v6 = vpack.c.bf16 %v13464_v14, %v13464_v14  ;;  %13543 = vst [vmem:[#allocation3 + $0x380] sm:$0xf] %v24778_v25  ;;  %v9714_v18 = vld [vmem:[#allocation3 + $0x394] sm:$0xff]  ;;  %v22690_v26 = vld [vmem:[#allocation3 + $0x364] ss:$60 sps:$4 sm:$0xff]   ;;  %v22719_v50 = vld [vmem:[%s26158_s1 + $0xae8] sm:$0xff]  }
 0x416   : > { %11564 = vmatmul.mubr.bf16.gmra.mxu0 %v18109_v24  ;;  %v9706_v19 = vld [vmem:[#allocation3 + $0x358] sm:$0xff]  ;;  %v22697_v39 = vld [vmem:[#allocation3 + $0x24] ss:$60 sps:$4 sm:$0xff]   ;;  %v9415_v4 = vld [vmem:[#allocation2 + $0x1d0] sm:$0xff] }
 0x417   : > { %11571 = vmatprep.mubr.bf16.mxu0 %v22676_v2  ;;  %13544 = vst [vmem:[#allocation3 + $0x3bc] sm:$0xf] %v19954_v6  ;;  %v18139_v13 = vcombine.low %v9706_v19, %v9714_v18  ;;  %v22698_v57 = vld [vmem:[#allocation3 + $0x360] ss:$60 sps:$4 sm:$0xff]   ;;  %v19698_v8 = vpack.c.bf16 %v9415_v4, %v9415_v4  ;;  %v22703_v17 = vld [vmem:[#allocation3 + $0x2c] ss:$60 sps:$4 sm:$0xff]  }
 0x418   : > { %v22707_v25 = vld [vmem:[%s26158_s1 + $0xab8] sm:$0xff]   ;;  %v22711_v32 = vld [vmem:[%s26158_s1 + $0xaf0] sm:$0xff]   ;;  %v22701_v7 = vld [vmem:[#allocation3 + $0x28] ss:$60 sps:$4 sm:$0xff]  }
 0x419   : > { %9495 = vst [vmem:[#allocation3 + $0x3b8] sm:$0xf] %v19698_v8  ;;  %v22695_v10 = vld [vmem:[#allocation3 + $0x20] ss:$60 sps:$4 sm:$0xff]   ;;  %v9620_v46 = vld [vmem:[#allocation3 + $0xd4] sm:$0xff]  ;;  %v22722_v56 = vld [vmem:[%s26158_s1 + $0xaa8] sm:$0xff]  }
 0x41a   : > { %v22705_v59 = vld [vmem:[#allocation3 + $0x9c] ss:$60 sps:$4 sm:$0xff]   ;;  %v22714_v9 = vld [vmem:[%s26158_s1 + $0xab0] sm:$0xff]   ;;  %v22709_v55 = vld [vmem:[#allocation3 + $0xa4] ss:$60 sps:$4 sm:$0xff]  }
 0x41b   : > { %11661 = vmatmul.mubr.bf16.gmra.mxu1 %v22679_v43  ;;  %v22716_v63 = vld [vmem:[%s26158_s1 + $0xb30] sm:$0xff]   ;;  %v9612_v36 = vld [vmem:[#allocation3 + $0x98] sm:$0xff]  ;;  %v22724_v60 = vld [vmem:[%s26158_s1 + $0xb28] sm:$0xff]  }
 0x41c   : > { %11668 = vmatprep.mubr.bf16.mxu1 %v22681_v5  ;;  %v18053_v3 = vcombine.low %v9612_v36, %v9620_v46  ;;  %v22712_v34 = vld [vmem:[#allocation3 + $0x114] ss:$60 sps:$4 sm:$0xff]   ;;  %v22727_v45 = vld [vmem:[%s26158_s1 + $0xae0] sm:$0xff]   ;;  %v22735_v53 = vld [vmem:[%s26158_s1 + $0xad8] sm:$0xff]  }
 0x41d   : > { %v9636_v1 = vld [vmem:[#allocation3 + $0x14c] sm:$0xff]  ;;  %v22732_v40 = vld [vmem:[%s26158_s1 + $0xb20] sm:$0xff]   ;;  %v22717_v20 = vld [vmem:[#allocation3 + $0x11c] ss:$60 sps:$4 sm:$0xff]  }
 0x41e   : > { %11572 = vmatmul.mubr.bf16.gmra.mxu0 %v18124_v52  ;;  %v9628_v11 = vld [vmem:[#allocation3 + $0x110] sm:$0xff]  ;;  %v22738_v58 = vld [vmem:[%s26158_s1 + $0xa98] sm:$0xff]   ;;  %v22720_v62 = vld [vmem:[#allocation3 + $0x18c] ss:$60 sps:$4 sm:$0xff]  }
 0x41f   : > { %11579 = vmatprep.mubr.bf16.mxu0 %v22685_v31  ;;  %v18068_v42 = vcombine.low %v9628_v11, %v9636_v1  ;;  %v22740_v28 = vld [vmem:[%s26158_s1 + $0xb18] sm:$0xff]   ;;  %v22743_v29 = vld [vmem:[%s26158_s1 + $0xad0] sm:$0xff]   ;;  %v9652_v37 = vld [vmem:[#allocation3 + $0x1c4] sm:$0xff] }
 0x420   : > { %v25031_v15 = vld [vmem:[#allocation3 + $0x37c] ss:$60 sps:$4 sm:$0xff]   ;;  %v22746_v41 = vld [vmem:[%s26158_s1 + $0xa90] sm:$0xff]   ;;  %v22751_v44 = vld [vmem:[%s26158_s1 + $0xac8] sm:$0xff]  }
 0x421   : > { %13447 = vst [vmem:[#allocation3 + $0x37c] sm:$0xf] %v24770_v33  ;;  %13448 = vst [vmem:[#allocation3 + $0x3b8] sm:$0xf] %v19698_v8  ;;  %v22715_v33 = vld [vmem:[#allocation3 + $0xa0] ss:$60 sps:$4 sm:$0xff]  }
 0x422   : > { %v22723_v51 = vld [vmem:[#allocation3 + $0x118] ss:$60 sps:$4 sm:$0xff]   ;;  %v9644_v49 = vld [vmem:[#allocation3 + $0x188] sm:$0xff]  ;;  %v22728_v30 = vld [vmem:[#allocation3 + $0x204] ss:$60 sps:$4 sm:$0xff]  }
 0x423   : > { %11669 = vmatmul.mubr.bf16.gmra.mxu1 %v22688_v47  ;;  %v22748_v48 = vld [vmem:[%s26158_s1 + $0xb10] sm:$0xff]   ;;  %v18083_v61 = vcombine.low %v9644_v49, %v9652_v37  ;;  %v22754_v21 = vld [vmem:[%s26158_s1 + $0xa88] sm:$0xff]   ;;  %v22759_v24 = vld [vmem:[%s26158_s1 + $0xac0] sm:$0xff]  }
 0x424   : > { %11676 = vmatprep.mubr.bf16.mxu1 %v22690_v26  ;;  %v22725_v35 = vld [vmem:[#allocation3 + $0x194] ss:$60 sps:$4 sm:$0xff]   ;;  %v22756_v12 = vld [vmem:[%s26158_s1 + $0xb08] sm:$0xff]   ;;  %v22760_v43 = vld [vmem:[%s26158_s1 + $0xa80] sm:$0xff]  }
 0x425   : > { %v22731_v2 = vld [vmem:[#allocation3 + $0x190] ss:$60 sps:$4 sm:$0xff]   ;;  %v22764_v54 = vld [vmem:[%s26158_s1 + $0xb00] sm:$0xff]   ;;  %v22736_v14 = vld [vmem:[#allocation3 + $0x27c] ss:$60 sps:$4 sm:$0xff]  }
 0x426   : > { %11580 = vmatmul.mubr.bf16.gmra.mxu0 %v18139_v13  ;;  %v9668_v5 = vld [vmem:[#allocation3 + $0x23c] sm:$0xff]  ;;  %v22733_v0 = vld [vmem:[#allocation3 + $0x20c] ss:$60 sps:$4 sm:$0xff]   ;;  %v9684_v6 = vld [vmem:[#allocation3 + $0x2b4] sm:$0xff] }
 0x427   : > { %11717 = vmatprep.mubr.bf16.mxu0 %v22697_v39  ;;  %v9660_v52 = vld [vmem:[#allocation3 + $0x200] sm:$0xff]  ;;  %v9676_v26 = vld [vmem:[#allocation3 + $0x278] sm:$0xff]  ;;  %v22744_v13 = vld [vmem:[#allocation3 + $0x2f4] ss:$60 sps:$4 sm:$0xff]  }
 0x428   : > { %v18098_v31 = vcombine.low %v9660_v52, %v9668_v5  ;;  %v22739_v47 = vld [vmem:[#allocation3 + $0x208] ss:$60 sps:$4 sm:$0xff]   ;;  %v18113_v19 = vcombine.low %v9676_v26, %v9684_v6  ;;  %v22747_v39 = vld [vmem:[#allocation3 + $0x280] ss:$60 sps:$4 sm:$0xff]   ;;  %v9700_v4 = vld [vmem:[#allocation3 + $0x32c] sm:$0xff] }
 0x429   : > { %v22741_v18 = vld [vmem:[#allocation3 + $0x284] ss:$60 sps:$4 sm:$0xff]   ;;  %v9692_v8 = vld [vmem:[#allocation3 + $0x2f0] sm:$0xff]  ;;  %v22766_v36 = vld [vmem:[#allocation3 + $0xac] ss:$60 sps:$4 sm:$0xff]  }
 0x42a   : > { %v9717_v46 = vld [vmem:[#allocation3 + $0x3ac] sm:$0xff]  ;;  %v22770_v11 = vld [vmem:[#allocation3 + $0x124] ss:$60 sps:$4 sm:$0xff]  }
 0x42b   : > { %11677 = vmatmul.mubr.bf16.gmra.mxu1 %v22698_v57  ;;  %v22749_v57 = vld [vmem:[#allocation3 + $0x2fc] ss:$60 sps:$4 sm:$0xff]   ;;  %v22778_v26 = vld [vmem:[#allocation3 + $0x308] ss:$60 sps:$4 sm:$0xff]  }
 0x42c   : > { %11814 = vmatprep.mubr.bf16.mxu1 %v22703_v17  ;;  %v18128_v17 = vcombine.low %v9692_v8, %v9700_v4  ;;  %v22779_v8 = vld [vmem:[#allocation3 + $0x198] ss:$60 sps:$4 sm:$0xff]  }
 0x42e   : > { %11718 = vmatmul.mubr.bf16.vlgmr.msra.gmra.mxu0 %v22695_v10  ;;  %v9708_v10 = vld [vmem:[#allocation3 + $0x368] sm:$0xff] }
 0x42f   : > { %11725 = vmatprep.mubr.bf16.mxu0 %v22705_v59  ;;  %21268 = vmatpush3.bf16.msra.mxu0 %v22707_v25  ;;  %v22755_v25 = vld [vmem:[#allocation3 + $0x2f8] ss:$60 sps:$4 sm:$0xff]  }
 0x430   : > { %21269 = vmatprep.subr.bf16.mxu0 %v22711_v32  ;;  %v9716_v32 = vld [vmem:[#allocation3 + $0x3a4] sm:$0xff] }
 0x431   : > { %v18143_v59 = vcombine.low %v9708_v10, %v9716_v32  ;;  %v22780_v32 = vld [vmem:[#allocation3 + $0x214] ss:$60 sps:$4 sm:$0xff]  }
 0x433   : > { %11815 = vmatmul.mubr.bf16.vlgmr.msra.gmra.mxu1 %v22701_v7  ;;  %21270 = vmatpush3.bf16.msra.mxu0 %v22714_v9  ;;  %v9709_v7 = vld [vmem:[#allocation3 + $0x370] sm:$0xff] }
 0x434   : > { %11822 = vmatprep.mubr.bf16.mxu1 %v22709_v55  ;;  %21876 = vmatpush3.bf16.msra.mxu1 %v25010_v22  ;;  %v22730_v22 = vld [vmem:[%s26158_s1 + $0xaa0] sm:$0xff]   ;;  %v22763_v9 = vld [vmem:[#allocation3 + $0x34] ss:$60 sps:$4 sm:$0xff]  }
 0x435   : > { %21877 = vmatprep.subr.bf16.mxu1 %v22716_v63  ;;  %21271 = vmatprep.subr.bf16.mxu0 %v22719_v50  ;;  %v22765_v55 = vld [vmem:[#allocation3 + $0x38] ss:$60 sps:$4 sm:$0xff]   ;;  %v22761_v50 = vld [vmem:[#allocation3 + $0x30] ss:$60 sps:$4 sm:$0xff]  }
 0x436   : > { %11726 = vmatmul.mubr.bf16.gmra.mxu0 %v18053_v3  ;;  %v20902_v3 = vpop.f32.mrf.mxu0 }
 0x437   : > { %11733 = vmatprep.mubr.bf16.mxu0 %v22712_v34  ;;  %21272 = vmatpush3.bf16.msra.mxu0 %v22722_v56  ;;  %v9622_v56 = vld [vmem:[#allocation3 + $0xe4] sm:$0xff] }
 0x438   : > { %21878 = vmatpush3.bf16.msra.mxu1 %v22716_v63  ;;  %21273 = vmatprep.subr.bf16.mxu0 %v22727_v45  ;;  %v18145_v63 = vcombine.low %v9709_v7, %v9717_v46  ;;  %v20903_v34 = vpop.f32.mrf.mxu0 }
 0x439   : > { %21879 = vmatprep.subr.bf16.mxu1 %v22724_v60 }
 0x43b   : > { %11823 = vmatmul.mubr.bf16.gmra.mxu1 %v22715_v33  ;;  %21274 = vmatpush3.bf16.msra.mxu0 %v22730_v22  ;;  %v9614_v33 = vld [vmem:[#allocation3 + $0xa8] sm:$0xff] }
 0x43c   : > { %11830 = vmatprep.mubr.bf16.mxu1 %v22717_v20  ;;  %21880 = vmatpush3.bf16.msra.mxu1 %v22724_v60  ;;  %v22769_v60 = vld [vmem:[#allocation3 + $0x128] ss:$60 sps:$4 sm:$0xff]   ;;  %v18057_v1 = vcombine.low %v9614_v33, %v9622_v56 }
 0x43d   : > { %21881 = vmatprep.subr.bf16.mxu1 %v22732_v40  ;;  %21275 = vmatprep.subr.bf16.mxu0 %v22735_v53  ;;  %v20904_v53 = vadd.f32 %v20903_v34, %v20902_v3 }
 0x43e   : > { %11734 = vmatmul.mubr.bf16.gmra.mxu0 %v18068_v42 }
 0x43f   : > { %11741 = vmatprep.mubr.bf16.mxu0 %v22720_v62  ;;  %21276 = vmatpush3.bf16.msra.mxu0 %v22738_v58 }
 0x440   : > { %21882 = vmatpush3.bf16.msra.mxu1 %v22732_v40  ;;  %21277 = vmatprep.subr.bf16.mxu0 %v22743_v29 }
 0x441   : > { %21883 = vmatprep.subr.bf16.mxu1 %v22740_v28 }
 0x443   : > { %11831 = vmatmul.mubr.bf16.gmra.mxu1 %v22723_v51  ;;  %21278 = vmatpush3.bf16.msra.mxu0 %v22746_v41  ;;  %v22772_v51 = vld [vmem:[#allocation3 + $0x1a0] ss:$60 sps:$4 sm:$0xff]  }
 0x444   : > { %11838 = vmatprep.mubr.bf16.mxu1 %v22725_v35  ;;  %21884 = vmatpush3.bf16.msra.mxu1 %v22740_v28  ;;  %v22773_v35 = vld [vmem:[#allocation3 + $0x218] ss:$60 sps:$4 sm:$0xff]  }
 0x445   : > { %21885 = vmatprep.subr.bf16.mxu1 %v22748_v48  ;;  %21279 = vmatprep.subr.bf16.mxu0 %v22751_v44 }
 0x446   : > { %11742 = vmatmul.mubr.bf16.gmra.mxu0 %v18083_v61 }
 0x447   : > { %11749 = vmatprep.mubr.bf16.mxu0 %v22728_v30  ;;  %21280 = vmatpush3.bf16.msra.mxu0 %v22754_v21 }
 0x448   : > { %21886 = vmatpush3.bf16.msra.mxu1 %v22748_v48  ;;  %21281 = vmatprep.subr.bf16.mxu0 %v22759_v24 }
 0x449   : > { %21887 = vmatprep.subr.bf16.mxu1 %v22756_v12 }
 0x44b   : > { %11839 = vmatmul.mubr.bf16.gmra.mxu1 %v22731_v2  ;;  %21282 = vmatpush3.bf16.msra.mxu0 %v22760_v43  ;;  %v22775_v43 = vld [vmem:[#allocation3 + $0x19c] ss:$60 sps:$4 sm:$0xff]  }
 0x44c   : > { %11846 = vmatprep.mubr.bf16.mxu1 %v22733_v0  ;;  %21888 = vmatpush3.bf16.msra.mxu1 %v22756_v12  ;;  %v22774_v12 = vld [vmem:[#allocation3 + $0x120] ss:$60 sps:$4 sm:$0xff]  }
 0x44d   : > { %21889 = vmatprep.subr.bf16.mxu1 %v22764_v54 }
 0x44e   : > { %11750 = vmatmul.mubr.bf16.gmra.mxu0 %v18098_v31 }
 0x44f   : > { %11757 = vmatprep.mubr.bf16.mxu0 %v22736_v14  ;;  %v22777_v14 = vld [vmem:[#allocation3 + $0x290] ss:$60 sps:$4 sm:$0xff]  }
 0x450   : > { %21890 = vmatpush3.bf16.msra.mxu1 %v22764_v54 }
 0x453   : > { %11847 = vmatmul.mubr.bf16.gmra.mxu1 %v22739_v47 }
 0x454   : > { %11854 = vmatprep.mubr.bf16.mxu1 %v22741_v18 }
 0x456   : > { %11758 = vmatmul.mubr.bf16.gmra.mxu0 %v18113_v19 }
 0x457   : > { %11765 = vmatprep.mubr.bf16.mxu0 %v22744_v13 }
 0x45b   : > { %11855 = vmatmul.mubr.bf16.gmra.mxu1 %v22747_v39 }
 0x45c   : > { %11862 = vmatprep.mubr.bf16.mxu1 %v22749_v57 }
 0x45d   : > { %v20963_v45 = vpop.f32.mrf.mxu1 }
 0x45e   : > { %11766 = vmatmul.mubr.bf16.gmra.mxu0 %v18128_v17 }
 0x45f   : > { %11773 = vmatprep.mubr.bf16.mxu0 %v24997_v27  ;;  %v22768_v27 = vld [vmem:[#allocation3 + $0xb0] ss:$60 sps:$4 sm:$0xff]   ;;  %v20964_v22 = vpop.f32.mrf.mxu1 }
 0x460   : > { %v20965_v20 = vadd.f32 %v20964_v22, %v20963_v45  ;;  %v22782_v45 = vld [vmem:[#allocation3 + $0x210] ss:$60 sps:$4 sm:$0xff]  }
 0x461   : > { %v20966_v58 = vpop.f32.mrf.mxu1 }
 0x463   : > { %11863 = vmatmul.mubr.bf16.gmra.mxu1 %v22755_v25  ;;  %v20905_v42 = vpop.f32.mrf.mxu0  ;;  %v20967_v29 = vpop.f32.mrf.mxu1 }
 0x464   : > { %11870 = vmatprep.mubr.bf16.mxu1 %v25003_v38  ;;  %v25093_v38 = vld [vmem:[%s26159_s2 + $0x2] ss:$0 sm:$0xff]  ;;  %v20968_v37 = vadd.f32 %v20967_v29, %v20966_v58 }
 0x465   : > { %v11332_v40 = vadd.f32 %v24983_v16, %v25093_v38  ;;  %v20906_v62 = vpop.f32.mrf.mxu0  ;;  %v11335_v41 = vadd.f32 %v20904_v53, %v25093_v38 }
 0x466   : > { %11774 = vmatmul.mubr.bf16.gmra.mxu0 %v18143_v59  ;;  %v20907_v48 = vadd.f32 %v20906_v62, %v20905_v42 }
 0x467   : > { %11911 = vmatprep.mubr.bf16.mxu0 %v22763_v9  ;;  %v25097_v28 = vadd.f32 %v20965_v20, %v11332_v40  ;;  %v20908_v44 = vpop.f32.mrf.mxu0  ;;  %v25100_v16 = vadd.f32 %v20968_v37, %v11335_v41  ;;  %v22783_v40 = vld [vmem:[#allocation3 + $0x28c] ss:$60 sps:$4 sm:$0xff]  }
 0x468   : > { %v20969_v49 = vpop.f32.mrf.mxu1  ;;  %v11340_v30 = vadd.f32 %v20907_v48, %v25093_v38 }
 0x469   : > { %v20909_v61 = vpop.f32.mrf.mxu0 }
 0x46a   : > { %v20970_v21 = vpop.f32.mrf.mxu1  ;;  %v20910_v24 = vadd.f32 %v20909_v61, %v20908_v44  ;;  %v22785_v44 = vld [vmem:[#allocation3 + $0x288] ss:$60 sps:$4 sm:$0xff]  }
 0x46b   : > { %11871 = vmatmul.mubr.bf16.gmra.mxu1 %v18145_v63  ;;  %v20971_v2 = vadd.f32 %v20970_v21, %v20969_v49 }
 0x46c   : > { %21891 = vmatprep.mubr.bf16.mxu1 %v22765_v55  ;;  %v20972_v5 = vpop.f32.mrf.mxu1  ;;  %v11343_v47 = vadd.f32 %v20910_v24, %v25093_v38 }
 0x46d   : > { %v25103_v0 = vadd.f32 %v20971_v2, %v11340_v30 }
 0x46e   : > { %11912 = vmatmul.mubr.bf16.vlgmr.msra.gmra.mxu0 %v22761_v50  ;;  %v20973_v31 = vpop.f32.mrf.mxu1 }
 0x46f   : > { %11919 = vmatprep.mubr.bf16.mxu0 %v22766_v36  ;;  %v20974_v18 = vadd.f32 %v20973_v31, %v20972_v5 }
 0x471   : > { %v20911_v54 = vpop.f32.mrf.mxu0  ;;  %v25106_v39 = vadd.f32 %v20974_v18, %v11343_v47 }
 0x473   : > { %21892 = vmatmul.mubr.bf16.vlgmr.msra.gmra.mxu1 %v22768_v27  ;;  %v20912_v52 = vpop.f32.mrf.mxu0 }
 0x474   : > { %21895 = vmatprep.mubr.bf16.mxu1 %v22769_v60  ;;  %v20913_v6 = vadd.f32 %v20912_v52, %v20911_v54 }
 0x475   : > { %v20914_v19 = vpop.f32.mrf.mxu0 }
 0x476   : > { %11920 = vmatmul.mubr.bf16.gmra.mxu0 %v18057_v1  ;;  %v11348_v17 = vadd.f32 %v20913_v6, %v25093_v38 }
 0x477   : > { %11927 = vmatprep.mubr.bf16.mxu0 %v22770_v11  ;;  %v20915_v4 = vpop.f32.mrf.mxu0 }
 0x478   : > { %v20975_v13 = vpop.f32.mrf.mxu1  ;;  %v20916_v25 = vadd.f32 %v20915_v4, %v20914_v19  ;;  %v22789_v19 = vld [vmem:[#allocation3 + $0x300] ss:$60 sps:$4 sm:$0xff]  }
 0x47a   : > { %v20976_v57 = vpop.f32.mrf.mxu1  ;;  %v11351_v55 = vadd.f32 %v20916_v25, %v25093_v38 }
 0x47b   : > { %21896 = vmatmul.mubr.bf16.gmra.mxu1 %v22772_v51  ;;  %v20977_v10 = vadd.f32 %v20976_v57, %v20975_v13 }
 0x47c   : > { %21899 = vmatprep.mubr.bf16.mxu1 %v22773_v35  ;;  %v20978_v7 = vpop.f32.mrf.mxu1 }
 0x47d   : > { %v20917_v59 = vpop.f32.mrf.mxu0  ;;  %v25109_v46 = vadd.f32 %v20977_v10, %v11348_v17  ;;  %v9710_v10 = vld [vmem:[#allocation3 + $0x378] sm:$0xff] }
 0x47e   : > { %11928 = vmatmul.mubr.bf16.gmra.mxu0 %v22774_v12  ;;  %v20979_v63 = vpop.f32.mrf.mxu1  ;;  %v22786_v12 = vld [vmem:[#allocation3 + $0x304] ss:$60 sps:$4 sm:$0xff]  }
 0x47f   : > { %11935 = vmatprep.mubr.bf16.mxu0 %v22775_v43  ;;  %v20918_v9 = vpop.f32.mrf.mxu0  ;;  %v20980_v36 = vadd.f32 %v20979_v63, %v20978_v7 }
 0x480   : > { %v20919_v50 = vadd.f32 %v20918_v9, %v20917_v59 }
 0x481   : > { %v20920_v3 = vpop.f32.mrf.mxu0  ;;  %v25113_v56 = vadd.f32 %v20980_v36, %v11351_v55 }
 0x482   : > { %v11356_v33 = vadd.f32 %v20919_v50, %v25093_v38 }
 0x483   : > { %21900 = vmatmul.mubr.bf16.gmra.mxu1 %v22777_v14  ;;  %v20981_v27 = vpop.f32.mrf.mxu1  ;;  %v20921_v60 = vpop.f32.mrf.mxu0 }
 0x484   : > { %21903 = vmatprep.mubr.bf16.mxu1 %v22778_v26  ;;  %v20922_v22 = vadd.f32 %v20921_v60, %v20920_v3 }
 0x485   : > { %v20982_v34 = vpop.f32.mrf.mxu1 }
 0x486   : > { %11936 = vmatmul.mubr.bf16.gmra.mxu0 %v22779_v8  ;;  %v20983_v1 = vadd.f32 %v20982_v34, %v20981_v27 }
 0x487   : > { %11943 = vmatprep.mubr.bf16.mxu0 %v22780_v32  ;;  %v20984_v20 = vpop.f32.mrf.mxu1  ;;  %v9718_v32 = vld [vmem:[#allocation3 + $0x3b4] sm:$0xff] }
 0x488   : > { %v25116_v11 = vadd.f32 %v20983_v1, %v11356_v33  ;;  %v18147_v3 = vcombine.low %v9710_v10, %v9718_v32  ;;  %v22800_v10 = vld [vmem:[%s26158_s1 + $0xba0] sm:$0xff]   ;;  %v22802_v32 = vld [vmem:[%s26158_s1 + $0xc30] sm:$0xff]  }
 0x489   : > { %v20923_v53 = vpop.f32.mrf.mxu0  ;;  %v20985_v58 = vpop.f32.mrf.mxu1 }
 0x48a   : > { %v20986_v29 = vadd.f32 %v20985_v58, %v20984_v20  ;;  %v22793_v20 = vld [vmem:[%s26158_s1 + $0xb78] sm:$0xff]  }
 0x48b   : > { %21904 = vmatmul.mubr.bf16.gmra.mxu1 %v25013_v23  ;;  %v20924_v42 = vpop.f32.mrf.mxu0  ;;  %v11359_v23 = vadd.f32 %v20922_v22, %v25093_v38 }
 0x48c   : > { %v20925_v62 = vadd.f32 %v20924_v42, %v20923_v53  ;;  %v22792_v53 = vld [vmem:[%s26158_s1 + $0xbb8] sm:$0xff]  }
 0x48d   : > { %v20926_v51 = vpop.f32.mrf.mxu0  ;;  %v25119_v48 = vadd.f32 %v20986_v29, %v11359_v23  ;;  %21347 = vmatprep.subr.bf16.mxu1 %v22792_v53 }
 0x48e   : > { %11944 = vmatmul.mubr.bf16.gmra.mxu0 %v22782_v45  ;;  %v11364_v49 = vadd.f32 %v20925_v62, %v25093_v38  ;;  %21348 = vmatpush3.bf16.msra.mxu1 %v22793_v20  ;;  %v22807_v20 = vld [vmem:[%s26158_s1 + $0xbe8] sm:$0xff]  }
 0x48f   : > { %11951 = vmatprep.mubr.bf16.mxu0 %v22783_v40  ;;  %v20987_v41 = vpop.f32.mrf.mxu1  ;;  %v20927_v37 = vpop.f32.mrf.mxu0 }
 0x490   : > { %v20928_v61 = vadd.f32 %v20927_v37, %v20926_v51 }
 0x491   : > { %v20988_v35 = vpop.f32.mrf.mxu1 }
 0x492   : > { %v20989_v21 = vadd.f32 %v20988_v35, %v20987_v41  ;;  %v11367_v5 = vadd.f32 %v20928_v61, %v25093_v38  ;;  %v22794_v35 = vld [vmem:[%s26158_s1 + $0xbb0] sm:$0xff]  }
 0x493   : > { %v20929_v30 = vpop.f32.mrf.mxu0  ;;  %v20990_v24 = vpop.f32.mrf.mxu1  ;;  %21349 = vmatprep.subr.bf16.mxu1 %v22794_v35 }
 0x494   : > { %v25122_v2 = vadd.f32 %v20989_v21, %v11364_v49 }
 0x495   : > { %v20930_v43 = vpop.f32.mrf.mxu0  ;;  %v20991_v54 = vpop.f32.mrf.mxu1 }
 0x496   : > { %11952 = vmatmul.mubr.bf16.gmra.mxu0 %v22785_v44  ;;  %v20931_v52 = vadd.f32 %v20930_v43, %v20929_v30  ;;  %v20992_v31 = vadd.f32 %v20991_v54, %v20990_v24  ;;  %v22795_v44 = vld [vmem:[%s26158_s1 + $0xb70] sm:$0xff]  }
 0x497   : > { %11959 = vmatprep.mubr.bf16.mxu0 %v22786_v12  ;;  %v20932_v14 = vpop.f32.mrf.mxu0  ;;  %21350 = vmatpush3.bf16.msra.mxu1 %v22795_v44 }
 0x498   : > { %v25125_v6 = vadd.f32 %v20992_v31, %v11367_v5  ;;  %v11372_v13 = vadd.f32 %v20931_v52, %v25093_v38  ;;  %v22796_v5 = vld [vmem:[%s26158_s1 + $0xba8] sm:$0xff]   ;;  %v22798_v31 = vld [vmem:[%s26158_s1 + $0xc38] sm:$0xff]  }
 0x499   : > { %v20993_v47 = vpop.f32.mrf.mxu1  ;;  %v20933_v18 = vpop.f32.mrf.mxu0  ;;  %v22797_v52 = vld [vmem:[%s26158_s1 + $0xb68] sm:$0xff]   ;;  %21351 = vmatprep.subr.bf16.mxu1 %v22796_v5  ;;  %21411 = vmatprep.subr.bf16.mxu0 %v22798_v31 }
 0x49a   : > { %v20934_v4 = vadd.f32 %v20933_v18, %v20932_v14  ;;  %v22799_v18 = vld [vmem:[%s26158_s1 + $0xbf8] sm:$0xff]  }
 0x49b   : > { %v20994_v26 = vpop.f32.mrf.mxu1  ;;  %21352 = vmatpush3.bf16.msra.mxu1 %v22797_v52  ;;  %21412 = vmatpush3.bf16.msra.mxu0 %v22799_v18  ;;  %v22811_v52 = vld [vmem:[%s26158_s1 + $0xbe0] sm:$0xff]  }
 0x49c   : > { %v20995_v57 = vadd.f32 %v20994_v26, %v20993_v47  ;;  %v11375_v9 = vadd.f32 %v20934_v4, %v25093_v38  ;;  %21353 = vmatprep.subr.bf16.mxu1 %v22800_v10  ;;  %21413 = vmatprep.subr.bf16.mxu0 %v22802_v32  ;;  %v22815_v10 = vld [vmem:[%s26158_s1 + $0xbd8] sm:$0xff]  }
 0x49d   : > { %v20996_v17 = vpop.f32.mrf.mxu1 }
 0x49e   : > { %v20935_v8 = vpop.f32.mrf.mxu0  ;;  %11960 = vmatmul.mubr.bf16.gmra.mxu0 %v22789_v19  ;;  %v25128_v25 = vadd.f32 %v20995_v57, %v11372_v13 }
 0x49f   : > { %11967 = vmatprep.mubr.bf16.mxu0 %v25031_v15  ;;  %v20997_v7 = vpop.f32.mrf.mxu1 }
 0x4a0   : > { %v20936_v59 = vpop.f32.mrf.mxu0  ;;  %v20998_v55 = vadd.f32 %v20997_v7, %v20996_v17 }
 0x4a1   : > { %v20937_v63 = vadd.f32 %v20936_v59, %v20935_v8 }
 0x4a2   : > { %v20938_v50 = vpop.f32.mrf.mxu0  ;;  %v25132_v27 = vadd.f32 %v20998_v55, %v11375_v9  ;;  %v22803_v9 = vld [vmem:[%s26158_s1 + $0xbf0] sm:$0xff]  }
 0x4a3   : > { %v20999_v36 = vpop.f32.mrf.mxu1  ;;  %v11380_v45 = vadd.f32 %v20937_v63, %v25093_v38  ;;  %21414 = vmatpush3.bf16.msra.mxu0 %v22803_v9 }
 0x4a4   : > { %v20939_v60 = vpop.f32.mrf.mxu0 }
 0x4a5   : > { %v21000_v34 = vpop.f32.mrf.mxu1  ;;  %v20940_v33 = vadd.f32 %v20939_v60, %v20938_v50 }
 0x4a6   : > { %v21001_v22 = vadd.f32 %v21000_v34, %v20999_v36  ;;  %v20941_v1 = vpop.f32.mrf.mxu0  ;;  %11968 = vmatmul.mubr.bf16.gmra.mxu0 %v18147_v3 }
 0x4a7   : > { %v21002_v40 = vpop.f32.mrf.mxu1  ;;  %v11383_v23 = vadd.f32 %v20940_v33, %v25093_v38 }
 0x4a8   : > { %v25135_v15 = vadd.f32 %v21001_v22, %v11380_v45  ;;  %v20942_v42 = vpop.f32.mrf.mxu0  ;;  %v22804_v22 = vld [vmem:[%s26158_s1 + $0xb98] sm:$0xff]  }
 0x4a9   : > { %v21003_v58 = vpop.f32.mrf.mxu1  ;;  %v20943_v62 = vadd.f32 %v20942_v42, %v20941_v1  ;;  %v22805_v1 = vld [vmem:[%s26158_s1 + $0xb58] sm:$0xff]  }
 0x4aa   : > { %v21004_v29 = vadd.f32 %v21003_v58, %v21002_v40  ;;  %v20944_v51 = vpop.f32.mrf.mxu0  ;;  %v22806_v40 = vld [vmem:[%s26158_s1 + $0xc28] sm:$0xff]  }
 0x4ab   : > { %v21005_v41 = vpop.f32.mrf.mxu1  ;;  %v11388_v21 = vadd.f32 %v20943_v62, %v25093_v38  ;;  %21415 = vmatprep.subr.bf16.mxu0 %v22806_v40 }
 0x4ac   : > { %v25144_v37 = vadd.f32 %v21004_v29, %v11383_v23  ;;  %v20945_v49 = vpop.f32.mrf.mxu0  ;;  %21416 = vmatpush3.bf16.msra.mxu0 %v22807_v20  ;;  %v22823_v20 = vld [vmem:[%s26158_s1 + $0xc08] sm:$0xff]  }
 0x4ad   : > { %v21006_v61 = vpop.f32.mrf.mxu1  ;;  %v20946_v12 = vadd.f32 %v20945_v49, %v20944_v51 }
 0x4ae   : > { %v21007_v30 = vadd.f32 %v21006_v61, %v21005_v41  ;;  %v21027_v43 = vpop.f32.mrf.mxu0 }
 0x4af   : > { %v21008_v24 = vpop.f32.mrf.mxu1  ;;  %v11391_v26 = vadd.f32 %v20946_v12, %v25093_v38  ;;  %v22801_v38 = vld [vmem:[%s26158_s1 + $0xb60] sm:$0xff]  }
 0x4b0   : > { %v25153_v54 = vadd.f32 %v21007_v30, %v11388_v21  ;;  %v21028_v47 = vpop.f32.mrf.mxu0  ;;  %21354 = vmatpush3.bf16.msra.mxu1 %v22801_v38  ;;  %v22808_v30 = vld [vmem:[%s26158_s1 + $0xb90] sm:$0xff]  }
 0x4b1   : > { %v21009_v14 = vpop.f32.mrf.mxu1  ;;  %v21029_v13 = vadd.f32 %v21028_v47, %v21027_v43  ;;  %21355 = vmatprep.subr.bf16.mxu1 %v22804_v22  ;;  %v22810_v43 = vld [vmem:[%s26158_s1 + $0xc20] sm:$0xff]  }
 0x4b2   : > { %v21010_v19 = vadd.f32 %v21009_v14, %v21008_v24  ;;  %v21030_v4 = vpop.f32.mrf.mxu0  ;;  %v22809_v24 = vld [vmem:[%s26158_s1 + $0xb50] sm:$0xff]   ;;  %21417 = vmatprep.subr.bf16.mxu0 %v22810_v43 }
 0x4b3   : > { %v21091_v57 = vpop.f32.mrf.mxu1  ;;  %v11526_v17 = vadd.f32 %v21029_v13, %v25097_v28  ;;  %21418 = vmatpush3.bf16.msra.mxu0 %v22811_v52  ;;  %v22812_v13 = vld [vmem:[%s26158_s1 + $0xb88] sm:$0xff]  }
 0x4b4   : > { %v25168_v8 = vadd.f32 %v21010_v19, %v11391_v26  ;;  %v21031_v59 = vpop.f32.mrf.mxu0  ;;  %21356 = vmatpush3.bf16.msra.mxu1 %v22805_v1 }
 0x4b5   : > { %v21092_v7 = vpop.f32.mrf.mxu1  ;;  %v21032_v63 = vadd.f32 %v21031_v59, %v21030_v4  ;;  %21357 = vmatprep.subr.bf16.mxu1 %v22808_v30  ;;  %v22813_v4 = vld [vmem:[%s26158_s1 + $0xb48] sm:$0xff]   ;;  %v22828_v30 = vld [vmem:[%s26158_s1 + $0xc78] sm:$0xff]  }
 0x4b6   : > { %v21093_v28 = vadd.f32 %v21092_v7, %v21091_v57  ;;  %v21033_v55 = vpop.f32.mrf.mxu0 }
 0x4b7   : > { %v21094_v50 = vpop.f32.mrf.mxu1  ;;  %v11529_v36 = vadd.f32 %v21032_v63, %v25100_v16 }
 0x4b8   : > { %v25184_v3 = vadd.f32 %v21093_v28, %v11526_v17  ;;  %v21034_v60 = vpop.f32.mrf.mxu0  ;;  %21358 = vmatpush3.bf16.msra.mxu1 %v22809_v24  ;;  %v22816_v28 = vld [vmem:[%s26158_s1 + $0xb80] sm:$0xff]  }
 0x4b9   : > { %v21095_v34 = vpop.f32.mrf.mxu1  ;;  %v21035_v45 = vadd.f32 %v21034_v60, %v21033_v55  ;;  %21359 = vmatprep.subr.bf16.mxu1 %v22812_v13  ;;  %v22817_v55 = vld [vmem:[%s26158_s1 + $0xb40] sm:$0xff]   ;;  %v22819_v60 = vld [vmem:[%s26158_s1 + $0xbd0] sm:$0xff]  }
 0x4ba   : > { %v21096_v33 = vadd.f32 %v21095_v34, %v21094_v50  ;;  %v21036_v53 = vpop.f32.mrf.mxu0 }
 0x4bb   : > { %v21097_v16 = vpop.f32.mrf.mxu1  ;;  %v11534_v42 = vadd.f32 %v21035_v45, %v25103_v0 }
 0x4bc   : > { %v25199_v58 = vadd.f32 %v21096_v33, %v11529_v36  ;;  %v21037_v23 = vpop.f32.mrf.mxu0  ;;  %21360 = vmatpush3.bf16.msra.mxu1 %v22813_v4 }
 0x4bd   : > { %v21098_v62 = vpop.f32.mrf.mxu1  ;;  %v21038_v29 = vadd.f32 %v21037_v23, %v21036_v53  ;;  %21361 = vmatprep.subr.bf16.mxu1 %v22816_v28  ;;  %v22820_v53 = vld [vmem:[#allocation3] ss:$60 sps:$4 sm:$0xff]  }
 0x4be   : > { %v21099_v51 = vadd.f32 %v21098_v62, %v21097_v16  ;;  %v21039_v41 = vpop.f32.mrf.mxu0  ;;  %v22822_v16 = vld [vmem:[#allocation3 + $0x4] ss:$60 sps:$4 sm:$0xff]  }
 0x4bf   : > { %v21100_v35 = vpop.f32.mrf.mxu1  ;;  %v11537_v44 = vadd.f32 %v21038_v29, %v25106_v39  ;;  %15282 = vmatprep.mubr.bf16.mxu1 %v22822_v16 }
 0x4c0   : > { %v25202_v49 = vadd.f32 %v21099_v51, %v11534_v42  ;;  %v21040_v61 = vpop.f32.mrf.mxu0  ;;  %21362 = vmatpush3.bf16.msra.mxu1 %v22817_v55 }
 0x4c1   : > { %v21101_v21 = vpop.f32.mrf.mxu1  ;;  %v21041_v12 = vadd.f32 %v21040_v61, %v21039_v41  ;;  %v22825_v61 = vld [vmem:[%s26158_s1 + $0xc00] sm:$0xff]  }
 0x4c2   : > { %v21102_v0 = vadd.f32 %v21101_v21, %v21100_v35  ;;  %v21042_v5 = vpop.f32.mrf.mxu0  ;;  %v22826_v21 = vld [vmem:[%s26158_s1 + $0xcb8] sm:$0xff]  }
 0x4c3   : > { %v21103_v39 = vpop.f32.mrf.mxu1  ;;  %v11542_v31 = vadd.f32 %v21041_v12, %v25109_v46  ;;  %v22814_v46 = vld [vmem:[%s26158_s1 + $0xc18] sm:$0xff]   ;;  %15283 = vmatmul.mubr.bf16.vlgmr.msra.gmra.mxu1 %v22820_v53  ;;  %21475 = vmatprep.subr.bf16.mxu1 %v22826_v21 }
 0x4c4   : > { %v25217_v14 = vadd.f32 %v21102_v0, %v11537_v44  ;;  %v21043_v47 = vpop.f32.mrf.mxu0  ;;  %21419 = vmatprep.subr.bf16.mxu0 %v22814_v46  ;;  %21476 = vmatpush3.bf16.msra.mxu1 %v22828_v30 }
 0x4c5   : > { %v21104_v18 = vpop.f32.mrf.mxu1  ;;  %v21044_v26 = vadd.f32 %v21043_v47, %v21042_v5  ;;  %21420 = vmatpush3.bf16.msra.mxu0 %v22815_v10 }
 0x4c6   : > { %v21105_v19 = vadd.f32 %v21104_v18, %v21103_v39  ;;  %v21045_v57 = vpop.f32.mrf.mxu0 }
 0x4c7   : > { %v21106_v17 = vpop.f32.mrf.mxu1  ;;  %v11545_v38 = vadd.f32 %v21044_v26, %v25113_v56  ;;  %v22818_v56 = vld [vmem:[%s26158_s1 + $0xc10] sm:$0xff]  }
 0x4c8   : > { %v25232_v32 = vadd.f32 %v21105_v19, %v11542_v31  ;;  %v21046_v59 = vpop.f32.mrf.mxu0  ;;  %21421 = vmatprep.subr.bf16.mxu0 %v22818_v56 }
 0x4c9   : > { %v21107_v7 = vpop.f32.mrf.mxu1  ;;  %v21047_v9 = vadd.f32 %v21046_v59, %v21045_v57  ;;  %21422 = vmatpush3.bf16.msra.mxu0 %v22819_v60  ;;  %v22835_v57 = vld [vmem:[%s26158_s1 + $0xcb0] sm:$0xff]  }
 0x4ca   : > { %v21108_v63 = vadd.f32 %v21107_v7, %v21106_v17  ;;  %v21048_v50 = vpop.f32.mrf.mxu0  ;;  %21423 = vmatprep.subr.bf16.mxu0 %v22823_v20  ;;  %v22836_v17 = vld [vmem:[%s26158_s1 + $0xc70] sm:$0xff]   ;;  %21477 = vmatprep.subr.bf16.mxu1 %v22835_v57  ;;  %v22860_v57 = vld [vmem:[%s26158_s1 + $0xc58] sm:$0xff]  }
 0x4cb   : > { %v21109_v36 = vpop.f32.mrf.mxu1  ;;  %v11550_v34 = vadd.f32 %v21047_v9, %v25116_v11  ;;  %v22824_v11 = vld [vmem:[%s26158_s1 + $0xbc8] sm:$0xff]   ;;  %21478 = vmatpush3.bf16.msra.mxu1 %v22836_v17 }
 0x4cc   : > { %v25247_v45 = vadd.f32 %v21108_v63, %v11545_v38  ;;  %v21049_v33 = vpop.f32.mrf.mxu0 }
 0x4cd   : > { %v21110_v22 = vpop.f32.mrf.mxu1  ;;  %v21050_v1 = vadd.f32 %v21049_v33, %v21048_v50  ;;  %21424 = vmatpush3.bf16.msra.mxu0 %v22824_v11 }
 0x4ce   : > { %v21111_v40 = vadd.f32 %v21110_v22, %v21109_v36  ;;  %v21051_v42 = vpop.f32.mrf.mxu0  ;;  %21425 = vmatprep.subr.bf16.mxu0 %v22825_v61 }
 0x4cf   : > { %v21112_v23 = vpop.f32.mrf.mxu1  ;;  %v11553_v62 = vadd.f32 %v21050_v1, %v25119_v48  ;;  %v22827_v48 = vld [vmem:[%s26158_s1 + $0xbc0] sm:$0xff]   ;;  %v22844_v1 = vld [vmem:[%s26158_s1 + $0xc68] sm:$0xff]  }
 0x4d0   : > { %v25256_v29 = vadd.f32 %v21111_v40, %v11550_v34  ;;  %v21052_v51 = vpop.f32.mrf.mxu0 }
 0x4d1   : > { %v21113_v41 = vpop.f32.mrf.mxu1  ;;  %v21053_v35 = vadd.f32 %v21052_v51, %v21051_v42  ;;  %21426 = vmatpush3.bf16.msra.mxu0 %v22827_v48 }
 0x4d2   : > { %v21114_v44 = vadd.f32 %v21113_v41, %v21112_v23  ;;  %v21054_v12 = vpop.f32.mrf.mxu0 }
 0x4d3   : > { %v21115_v0 = vpop.f32.mrf.mxu1  ;;  %v11558_v24 = vadd.f32 %v21053_v35, %v25122_v2 }
 0x4d4   : > { %v25271_v43 = vadd.f32 %v21114_v44, %v11553_v62  ;;  %v21055_v5 = vpop.f32.mrf.mxu0 }
 0x4d5   : > { %v21116_v39 = vpop.f32.mrf.mxu1  ;;  %v21056_v52 = vadd.f32 %v21055_v5, %v21054_v12  ;;  %v22852_v12 = vld [vmem:[%s26158_s1 + $0xc60] sm:$0xff]  }
 0x4d6   : > { %v21117_v31 = vadd.f32 %v21116_v39, %v21115_v0  ;;  %v21057_v47 = vpop.f32.mrf.mxu0 }
 0x4d7   : > { %v21118_v18 = vpop.f32.mrf.mxu1  ;;  %v11561_v26 = vadd.f32 %v21056_v52, %v25125_v6 }
 0x4d8   : > { %v25274_v19 = vadd.f32 %v21117_v31, %v11558_v24  ;;  %v21058_v13 = vpop.f32.mrf.mxu0 }
 0x4d9   : > { %v21119_v4 = vpop.f32.mrf.mxu1  ;;  %v21059_v46 = vadd.f32 %v21058_v13, %v21057_v47 }
 0x4da   : > { %v21120_v2 = vadd.f32 %v21119_v4, %v21118_v18  ;;  %v21060_v10 = vpop.f32.mrf.mxu0 }
 0x4db   : > { %v21121_v38 = vpop.f32.mrf.mxu1  ;;  %v11566_v59 = vadd.f32 %v21059_v46, %v25128_v25  ;;  %v22843_v25 = vld [vmem:[%s26158_s1 + $0xca8] sm:$0xff]  }
 0x4dc   : > { %v25283_v7 = vadd.f32 %v21120_v2, %v11561_v26  ;;  %v21061_v6 = vpop.f32.mrf.mxu0  ;;  %21479 = vmatprep.subr.bf16.mxu1 %v22843_v25 }
 0x4dd   : > { %v21122_v9 = vpop.f32.mrf.mxu1  ;;  %v21062_v63 = vadd.f32 %v21061_v6, %v21060_v10  ;;  %21480 = vmatpush3.bf16.msra.mxu1 %v22844_v1  ;;  %v22864_v6 = vld [vmem:[%s26158_s1 + $0xd38] sm:$0xff]  }
 0x4de   : > { %v21123_v28 = vadd.f32 %v21122_v9, %v21121_v38  ;;  %v21063_v55 = vpop.f32.mrf.mxu0  ;;  %v22869_v9 = vld [vmem:[%s26158_s1 + $0xc90] sm:$0xff]   ;;  %21539 = vmatprep.subr.bf16.mxu0 %v22864_v6 }
 0x4df   : > { %v21124_v56 = vpop.f32.mrf.mxu1  ;;  %v11569_v50 = vadd.f32 %v21062_v63, %v25132_v27 }
 0x4e0   : > { %v25286_v36 = vadd.f32 %v21123_v28, %v11566_v59  ;;  %v21064_v60 = vpop.f32.mrf.mxu0 }
 0x4e1   : > { %v21125_v34 = vpop.f32.mrf.mxu1  ;;  %v21065_v33 = vadd.f32 %v21064_v60, %v21063_v55  ;;  %v22871_v55 = vld [vmem:[%s26158_s1 + $0xc50] sm:$0xff]   ;;  %v22881_v60 = vld [vmem:[%s26158_s1 + $0xc88] sm:$0xff]  }
 0x4e2   : > { %26278 = vst [vmem:[#allocation12_spill] sm:$0xff] %v25286_v36  ;;  %v21126_v22 = vadd.f32 %v21125_v34, %v21124_v56  ;;  %v21066_v40 = vpop.f32.mrf.mxu0  ;;  %v22883_v34 = vld [vmem:[%s26158_s1 + $0xc48] sm:$0xff]  }
 0x4e3   : > { %v21127_v53 = vpop.f32.mrf.mxu1  ;;  %v11574_v16 = vadd.f32 %v21065_v33, %v25135_v15  ;;  %v22851_v15 = vld [vmem:[%s26158_s1 + $0xca0] sm:$0xff]  }
 0x4e4   : > { %v25295_v20 = vadd.f32 %v21126_v22, %v11569_v50  ;;  %v21067_v27 = vpop.f32.mrf.mxu0  ;;  %21481 = vmatprep.subr.bf16.mxu1 %v22851_v15  ;;  %v22909_v15 = vld [vmem:[%s26158_s1 + $0xdb8] sm:$0xff]  }
 0x4e5   : > { %v21128_v42 = vpop.f32.mrf.mxu1  ;;  %v21068_v23 = vadd.f32 %v21067_v27, %v21066_v40  ;;  %21482 = vmatpush3.bf16.msra.mxu1 %v22852_v12 }
 0x4e6   : > { %26279 = vst [vmem:[#allocation13_spill] sm:$0xff] %v25295_v20  ;;  %v21129_v11 = vadd.f32 %v21128_v42, %v21127_v53  ;;  %v21069_v62 = vpop.f32.mrf.mxu0  ;;  %v22893_v42 = vld [vmem:[%s26158_s1 + $0xc80] sm:$0xff]  }
 0x4e7   : > { %v21130_v51 = vpop.f32.mrf.mxu1  ;;  %v11577_v41 = vadd.f32 %v21068_v23, %v25144_v37  ;;  %v22895_v23 = vld [vmem:[%s26158_s1 + $0xc40] sm:$0xff]  }
 0x4e8   : > { %v25298_v35 = vadd.f32 %v21129_v11, %v11574_v16  ;;  %v21070_v44 = vpop.f32.mrf.mxu0 }
 0x4e9   : > { %v21131_v61 = vpop.f32.mrf.mxu1  ;;  %v21071_v21 = vadd.f32 %v21070_v44, %v21069_v62 }
 0x4ea   : > { %26280 = vst [vmem:[#allocation15_spill] sm:$0xff] %v25298_v35  ;;  %v21132_v48 = vadd.f32 %v21131_v61, %v21130_v51  ;;  %v21072_v0 = vpop.f32.mrf.mxu0 }
 0x4eb   : > { %v21133_v30 = vpop.f32.mrf.mxu1  ;;  %v11582_v24 = vadd.f32 %v21071_v21, %v25153_v54  ;;  %v22859_v54 = vld [vmem:[%s26158_s1 + $0xc98] sm:$0xff]  }
 0x4ec   : > { %v25307_v5 = vadd.f32 %v21132_v48, %v11577_v41  ;;  %v21073_v37 = vpop.f32.mrf.mxu0  ;;  %21483 = vmatprep.subr.bf16.mxu1 %v22859_v54 }
 0x4ed   : > { %v21134_v39 = vpop.f32.mrf.mxu1  ;;  %v21074_v52 = vadd.f32 %v21073_v37, %v21072_v0  ;;  %21484 = vmatpush3.bf16.msra.mxu1 %v22860_v57 }
 0x4ee   : > { %26281 = vst [vmem:[#allocation17_spill] sm:$0xff] %v25307_v5  ;;  %v21135_v31 = vadd.f32 %v21134_v39, %v21133_v30  ;;  %v25309_v18 = vpop.f32.mrf.mxu0  ;;  %21485 = vmatprep.subr.bf16.mxu1 %v22869_v9 }
 0x4ef   : > { %v21136_v47 = vpop.f32.mrf.mxu1  ;;  %v11585_v26 = vadd.f32 %v21074_v52, %v25168_v8 }
 0x4f0   : > { %v25312_v13 = vadd.f32 %v21135_v31, %v11582_v24  ;;  %v25314_v46 = vpop.f32.mrf.mxu0 }
 0x4f1   : > { %v21137_v4 = vpop.f32.mrf.mxu1  ;;  %21486 = vmatpush3.bf16.msra.mxu1 %v22871_v55 }
 0x4f2   : > { %26282 = vst [vmem:[#allocation18_spill] sm:$0xff] %v25312_v13  ;;  %v21138_v2 = vadd.f32 %v21137_v4, %v21136_v47  ;;  %v25322_v17 = vpop.f32.mrf.mxu0  ;;  %21487 = vmatprep.subr.bf16.mxu1 %v22881_v60 }
 0x4f3   : > { %v25324_v10 = vpop.f32.mrf.mxu1 }
 0x4f4   : > { %v25326_v38 = vadd.f32 %v21138_v2, %v11585_v26  ;;  %v25328_v8 = vpop.f32.mrf.mxu0 }
 0x4f5   : > { %v25330_v59 = vpop.f32.mrf.mxu1  ;;  %21488 = vmatpush3.bf16.msra.mxu1 %v22883_v34 }
 0x4f6   : > { %26283 = vst [vmem:[#allocation4_spill] sm:$0xff] %v25326_v38  ;;  %v25338_v63 = vpop.f32.mrf.mxu0  ;;  %21489 = vmatprep.subr.bf16.mxu1 %v22893_v42 }
 0x4f7   : > { %v25340_v28 = vpop.f32.mrf.mxu1 }
 0x4f8   : > { %v25345_v56 = vpop.f32.mrf.mxu0 }
 0x4f9   : > { %v25347_v50 = vpop.f32.mrf.mxu1  ;;  %21490 = vmatpush3.bf16.msra.mxu1 %v22895_v23 }
 0x4fa   : > { %v25355_v33 = vpop.f32.mrf.mxu0  ;;  %21603 = vmatprep.subr.bf16.mxu1 %v22909_v15 }
 0x4fb   : > { %v25357_v22 = vpop.f32.mrf.mxu1 }
 0x4fc   : > { %v25359_v25 = vpop.f32.mrf.mxu0 }
 0x4fd   : > { %v25361_v1 = vpop.f32.mrf.mxu1 }
 0x4fe   : > { %v25363_v40 = vpop.f32.mrf.mxu0 }
 0x4ff   : > { %v25365_v53 = vpop.f32.mrf.mxu1 }
 0x500   : > { %v25367_v16 = vpop.f32.mrf.mxu0 }
 0x501   : > { %v25369_v27 = vpop.f32.mrf.mxu1 }
 0x502   : > { %v25377_v11 = vpop.f32.mrf.mxu0 }
 0x503   : > { %v25379_v62 = vpop.f32.mrf.mxu1 }
 0x504   : > { %v25381_v51 = vpop.f32.mrf.mxu0 }
 0x505   : > { %v25383_v41 = vpop.f32.mrf.mxu1 }
 0x506   : > { %v25385_v44 = vpop.f32.mrf.mxu0 }
 0x507   : > { %v25387_v61 = vpop.f32.mrf.mxu1 }
 0x508   : > { %v25389_v21 = vpop.f32.mrf.mxu0 }
 0x509   : > { %v25391_v48 = vpop.f32.mrf.mxu1 }
 0x50a   : > { %v25396_v12 = vpop.f32.mrf.mxu0 }
 0x50b   : > { %v25398_v0 = vpop.f32.mrf.mxu1 }
 0x50c   : > { %v25400_v30 = vpop.f32.mrf.mxu0 }
 0x50d   : > { %v25402_v24 = vpop.f32.mrf.mxu1 }
 0x50e   : > { %v25404_v37 = vpop.f32.mrf.mxu0 }
 0x50f   : > { %v25406_v39 = vpop.f32.mrf.mxu1 }
 0x510   : > { %v25408_v52 = vpop.f32.mrf.mxu0 }
 0x511   : > { %v25410_v31 = vpop.f32.mrf.mxu1 }
 0x512   : > { %v25412_v47 = vpop.f32.mrf.mxu0 }
 0x513   : > { %v25414_v26 = vpop.f32.mrf.mxu1 }
 0x514   : > { %v25416_v4 = vpop.f32.mrf.mxu0 }
 0x515   : > { %v25418_v2 = vpop.f32.mrf.mxu1 }
 0x516   : > { %v25420_v54 = vpop.f32.mrf.mxu0 }
 0x517   : > { %v25422_v57 = vpop.f32.mrf.mxu1 }
 0x518   : > { %v25424_v6 = vpop.f32.mrf.mxu0 }
 0x519   : > { %v25426_v9 = vpop.f32.mrf.mxu1 }
 0x51a   : > { %v25428_v55 = vpop.f32.mrf.mxu0 }
 0x51b   : > { %26284 = vst [vmem:[#allocation6_spill] sm:$0xff] %v25428_v55  ;;  %v25430_v60 = vpop.f32.mrf.mxu1 }
 0x51c   : > { %v25432_v34 = vpop.f32.mrf.mxu0 }
 0x51d   : > { %26285 = vst [vmem:[#allocation19_spill] sm:$0xff] %v25432_v34  ;;  %v25434_v42 = vpop.f32.mrf.mxu1 }
 0x51e   : > { %26286 = vst [vmem:[#allocation22_spill] sm:$0xff] %v25434_v42  ;;  %v25436_v23 = vpop.f32.mrf.mxu0 }
 0x51f   : > { %26287 = vst [vmem:[#allocation7_spill] sm:$0xff] %v25436_v23  ;;  %v25438_v15 = vpop.f32.mrf.mxu1 }
 0x520   : > { %26288 = vst [vmem:[#allocation10_spill] sm:$0xff] %v25438_v15  ;;  %v25440_v38 = vpop.f32.mrf.mxu0 }
 0x521   : > { %26289 = vst [vmem:[#allocation20_spill] sm:$0xff] %v25440_v38  ;;  %v25442_v13 = vpop.f32.mrf.mxu1 }
 0x522   : > { %26290 = vst [vmem:[#allocation24_spill] sm:$0xff] %v25442_v13  ;;  %v25444_v5 = vpop.f32.mrf.mxu0 }
 0x523   : > { %26291 = vst [vmem:[#allocation23_spill] sm:$0xff] %v25444_v5  ;;  %v25446_v35 = vpop.f32.mrf.mxu1  ;;  %v21157_v5 = vadd.f32 %v25314_v46, %v25309_v18  ;;  %v21224_v18 = vadd.f32 %v25347_v50, %v25340_v28 }
 0x524   : > { %26292 = vst [vmem:[#allocation25_spill] sm:$0xff] %v25446_v35  ;;  %v25448_v20 = vpop.f32.mrf.mxu0 }
 0x525   : > { %26293 = vst [vmem:[#allocation11_spill] sm:$0xff] %v25448_v20  ;;  %v25450_v55 = vpop.f32.mrf.mxu1 }
 0x526   : > { %26294 = vst [vmem:[#allocation21_spill] sm:$0xff] %v25450_v55  ;;  %v25452_v36 = vpop.f32.mrf.mxu0 }
 0x527   : > { %26295 = vst [vmem:[#allocation8_spill] sm:$0xff] %v25452_v36  ;;  %v25454_v34 = vpop.f32.mrf.mxu1  ;;  %v21221_v36 = vadd.f32 %v25330_v59, %v25324_v10 }
 0x528   : > { %26296 = vst [vmem:[#allocation27_spill] sm:$0xff] %v25454_v34  ;;  %v25456_v42 = vpop.f32.mrf.mxu0 }
 0x529   : > { %26297 = vst [vmem:[#allocation28_spill] sm:$0xff] %v25456_v42  ;;  %v25458_v23 = vpop.f32.mrf.mxu1  ;;  %v11720_v42 = vadd.f32 %v21157_v5, %v25184_v3  ;;  %v21227_v3 = vadd.f32 %v25361_v1, %v25357_v22  ;;  %v21230_v22 = vadd.f32 %v25369_v27, %v25365_v53 }
 0x52a   : > { %26298 = vst [vmem:[#allocation26_spill] sm:$0xff] %v25458_v23  ;;  %v25460_v15 = vpop.f32.mrf.mxu0 }
 0x52b   : > { %26299 = vst [vmem:[#allocation9_spill] sm:$0xff] %v25460_v15  ;;  %v25462_v38 = vpop.f32.mrf.mxu1  ;;  %v21160_v15 = vadd.f32 %v25328_v8, %v25322_v17  ;;  %v11817_v13 = vadd.f32 %v21221_v36, %v11720_v42 }
 0x52c   : > { %26300 = vst [vmem:[#allocation5_spill] sm:$0xff] %v25462_v38  ;;  %v25466_v35 = vpop.f32.mrf.mxu0 }
 0x52d   : > { %26301 = vst [vmem:[#allocation14_spill] sm:$0xff] %v25466_v35  ;;  %v25468_v20 = vpop.f32.mrf.mxu1  ;;  %v21163_v35 = vadd.f32 %v25345_v56, %v25338_v63  ;;  %v21166_v63 = vadd.f32 %v25359_v25, %v25355_v33  ;;  %v21233_v25 = vadd.f32 %v25383_v41, %v25379_v62  ;;  %v21175_v62 = vadd.f32 %v25389_v21, %v25385_v44 }
 0x52e   : > { %26302 = vst [vmem:[#allocation30_spill] sm:$0xff] %v25468_v20  ;;  %v21283_v34 = vpop.f32.mrf.mxu0  ;;  %v21236_v41 = vadd.f32 %v25391_v48, %v25387_v61 }
 0x52f   : > { %v25472_v55 = vpop.f32.mrf.mxu1  ;;  %v11728_v42 = vadd.f32 %v21163_v35, %v25202_v49  ;;  %v21169_v49 = vadd.f32 %v25367_v16, %v25363_v40  ;;  %v11731_v35 = vadd.f32 %v21166_v63, %v25217_v14  ;;  %v21172_v40 = vadd.f32 %v25381_v51, %v25377_v11 }
 0x530   : > { %26303 = vst [vmem:[#allocation32_spill] sm:$0xff] %v25472_v55  ;;  %v21284_v38 = vpop.f32.mrf.mxu0  ;;  %v11723_v55 = vadd.f32 %v21160_v15, %v25199_v58  ;;  %v11744_v48 = vadd.f32 %v21175_v62, %v25256_v29 }
 0x531   : > { %v25477_v23 = vpop.f32.mrf.mxu1  ;;  %v21285_v46 = vadd.f32 %v21284_v38, %v21283_v34  ;;  %v11825_v34 = vadd.f32 %v21227_v3, %v11728_v42  ;;  %v11828_v53 = vadd.f32 %v21230_v22, %v11731_v35 }
 0x532   : > { %26304 = vst [vmem:[#allocation29_spill] sm:$0xff] %v25477_v23  ;;  %v21286_v10 = vpop.f32.mrf.mxu0  ;;  %v11820_v8 = vadd.f32 %v21224_v18, %v11723_v55 }
 0x533   : > { %v21893_v59 = vpop.f32.mrf.mxu1  ;;  %v11914_v20 = vadd.f32 %v21285_v46, %v11817_v13 }
 0x534   : > { %v21287_v5 = vpop.f32.mrf.mxu0 }
 0x535   : > { %v12010_v17 = vpop.f32.mrf.mxu1  ;;  %v21288_v23 = vadd.f32 %v21287_v5, %v21286_v10  ;;  %v11736_v5 = vadd.f32 %v21169_v49, %v25232_v32 }
 0x536   : > { %v12011_v36 = vadd.f32 %v12010_v17, %v11914_v20  ;;  %v21289_v28 = vpop.f32.mrf.mxu0 }
 0x537   : > { %v21894_v38 = vpop.f32.mrf.mxu1  ;;  %v11917_v50 = vadd.f32 %v21288_v23, %v11820_v8  ;;  %v11833_v8 = vadd.f32 %v21233_v25, %v11736_v5 }
 0x538   : > { %v12073_v56 = vmax.f32 %v12011_v36, 0.0  ;;  %v21290_v58 = vpop.f32.mrf.mxu0 }
 0x539   : > { %v12013_v13 = vpop.f32.mrf.mxu1  ;;  %v21291_v1 = vadd.f32 %v21290_v58, %v21289_v28 }
 0x53a   : > { %12089 = vst [vmem:[#allocation2 + $0x38] sm:$0xff] %v12073_v56  ;;  %v12014_v55 = vadd.f32 %v12013_v13, %v11917_v50  ;;  %v19733_v15 = vpack.c.bf16 %v12073_v56, %v12073_v56  ;;  %v21292_v20 = vpop.f32.mrf.mxu0  ;;  %v11739_v50 = vadd.f32 %v21172_v40, %v25247_v45  ;;  %v21239_v45 = vadd.f32 %v25402_v24, %v25398_v0 }
 0x53b   : > { %v11922_v18 = vadd.f32 %v21291_v1, %v11825_v34  ;;  %v25496_v23 = vpop.f32.mrf.mxu1  ;;  %v21178_v1 = vadd.f32 %v25400_v30, %v25396_v12 }
 0x53c   : > { %v12074_v33 = vmax.f32 %v12014_v55, 0.0  ;;  %12283 = vst [vmem:[#allocation3 + $0x7c] sm:$0xf] %v19733_v15  ;;  %v21293_v46 = vpop.f32.mrf.mxu0  ;;  %v11841_v40 = vadd.f32 %v21239_v45, %v11744_v48 }
 0x53d   : > { %v12019_v27 = vadd.f32 %v21893_v59, %v11922_v18  ;;  %v21294_v10 = vadd.f32 %v21293_v46, %v21292_v20  ;;  %v12026_v59 = vpop.f32.mrf.mxu1  ;;  %v11747_v5 = vadd.f32 %v21178_v1, %v25271_v43 }
 0x53e   : > { %12090 = vst [vmem:[#allocation2 + $0x50] sm:$0xff] %v12074_v33  ;;  %v19734_v3 = vpack.c.bf16 %v12074_v33, %v12074_v33  ;;  %v21295_v14 = vpop.f32.mrf.mxu0 }
 0x53f   : > { %v12075_v16 = vmax.f32 %v12019_v27, 0.0  ;;  %v11925_v17 = vadd.f32 %v21294_v10, %v11828_v53  ;;  %v25511_v55 = vpop.f32.mrf.mxu1 }
 0x540   : > { %12284 = vst [vmem:[#allocation3 + $0xb8] sm:$0xf] %v19734_v3  ;;  %v21296_v36 = vpop.f32.mrf.mxu0 }
 0x541   : > { %v12394_v42 = vld [vmem:[#allocation2 + $0x37] sm:$0xff]  ;;  %12091 = vst [vmem:[#allocation2 + $0x68] sm:$0xff] %v12075_v16  ;;  %v12022_v32 = vadd.f32 %v21894_v38, %v11925_v17  ;;  %v21297_v56 = vadd.f32 %v21296_v36, %v21295_v14  ;;  %v19735_v58 = vpack.c.bf16 %v12075_v16, %v12075_v16  ;;  %v11836_v38 = vadd.f32 %v21236_v41, %v11739_v50  ;;  %v12029_v17 = vpop.f32.mrf.mxu1 }
 0x542   : > { %v12299_v28 = vld [vmem:[#allocation2 + $0x39] sm:$0xff]  ;;  %v19764_v11 = vpack.c.bf16 %v12394_v42, %v12394_v42  ;;  %v21298_v34 = vpop.f32.mrf.mxu0  ;;  %v21181_v14 = vadd.f32 %v25408_v52, %v25404_v37  ;;  %v21242_v16 = vadd.f32 %v25410_v31, %v25406_v39 }
 0x543   : > { %v12490_v63 = vld [vmem:[#allocation2 + $0x38] sm:$0xff]  ;;  %v19749_v51 = vpack.c.bf16 %v12299_v28, %v12299_v28  ;;  %v12076_v44 = vmax.f32 %v12022_v32, 0.0  ;;  %v11930_v21 = vadd.f32 %v21297_v56, %v11833_v8  ;;  %12285 = vst [vmem:[#allocation3 + $0xf4] sm:$0xf] %v19735_v58 }
 0x544   : > { %v19780_v13 = vpack.c.bf16 %v12490_v63, %v12490_v63  ;;  %v12873_v22 = vld [vmem:[#allocation2 + $0x39] sm:$0xff]  ;;  %12474 = vst [vmem:[#allocation3 + $0x48] sm:$0xf] %v19764_v11  ;;  %12187 = vst [vmem:[#allocation3 + $0x78] sm:$0xf] %v19764_v11  ;;  %v21299_v15 = vpop.f32.mrf.mxu0 }
 0x545   : > { %12379 = vst [vmem:[#allocation3 + $0x80] sm:$0xf] %v19749_v51  ;;  %12666 = vst [vmem:[#allocation3 + $0x50] sm:$0xf] %v19749_v51  ;;  %v19843_v61 = vpack.c.bf16 %v12873_v22, %v12873_v22  ;;  %v12108_v49 = vld [vmem:[#allocation2 + $0x4f] sm:$0xff]  ;;  %v12027_v18 = vadd.f32 %v12026_v59, %v11930_v21  ;;  %v21300_v33 = vadd.f32 %v21299_v15, %v21298_v34  ;;  %v22865_v39 = vld [vmem:[%s26158_s1 + $0xcf8] sm:$0xff]   ;;  %v25526_v21 = vpop.f32.mrf.mxu1 }
 0x546   : > { %12761 = vst [vmem:[#allocation3 + $0x18] sm:$0xf] %v19764_v11  ;;  %v12300_v20 = vld [vmem:[#allocation2 + $0x51] sm:$0xff]  ;;  %12570 = vst [vmem:[#allocation3 + $0x4c] sm:$0xf] %v19780_v13  ;;  %v19718_v29 = vpack.c.bf16 %v12108_v49, %v12108_v49  ;;  %v21301_v30 = vpop.f32.mrf.mxu0  ;;  %v19736_v53 = vpack.c.bf16 %v12076_v44, %v12076_v44  ;;  %v11844_v22 = vadd.f32 %v21242_v16, %v11747_v5 }
 0x547   : > { %v12778_v35 = vld [vmem:[#allocation2 + $0x50] sm:$0xff]  ;;  %12857 = vst [vmem:[#allocation3 + $0x1c] sm:$0xf] %v19780_v13  ;;  %12092 = vst [vmem:[#allocation2 + $0x80] sm:$0xff] %v12076_v44  ;;  %v19750_v25 = vpack.c.bf16 %v12300_v20, %v12300_v20  ;;  %v12077_v10 = vmax.f32 %v12027_v18, 0.0  ;;  %v11933_v3 = vadd.f32 %v21300_v33, %v11836_v38  ;;  %v21245_v44 = vadd.f32 %v25418_v2, %v25414_v26 }
 0x548   : > { %v12874_v46 = vld [vmem:[#allocation2 + $0x51] sm:$0xff]  ;;  %12953 = vst [vmem:[#allocation3 + $0x20] sm:$0xf] %v19843_v61  ;;  %v19828_v0 = vpack.c.bf16 %v12778_v35, %v12778_v35  ;;  %12188 = vst [vmem:[#allocation3 + $0xb4] sm:$0xf] %v19718_v29  ;;  %v21302_v8 = vpop.f32.mrf.mxu0  ;;  %v12396_v62 = vld [vmem:[#allocation2 + $0x67] sm:$0xff]  ;;  %v11752_v20 = vadd.f32 %v21181_v14, %v25274_v19  ;;  %v21184_v35 = vadd.f32 %v25416_v4, %v25412_v47  ;;  %v12042_v4 = vpop.f32.mrf.mxu1 }
 0x549   : > { %v12969_v12 = vld [vmem:[#allocation2 + $0x4f] sm:$0xff]  ;;  %v19844_v24 = vpack.c.bf16 %v12874_v46, %v12874_v46  ;;  %12380 = vst [vmem:[#allocation3 + $0xbc] sm:$0xf] %v19750_v25  ;;  %12475 = vst [vmem:[#allocation3 + $0x84] sm:$0xf] %v19718_v29  ;;  %v12030_v43 = vadd.f32 %v12029_v17, %v11933_v3  ;;  %v21303_v36 = vadd.f32 %v21302_v8, %v21301_v30  ;;  %v12970_v52 = vld [vmem:[#allocation2 + $0x67] sm:$0xff] }
 0x54a   : > { %v19859_v27 = vpack.c.bf16 %v12969_v12, %v12969_v12  ;;  %12762 = vst [vmem:[#allocation3 + $0x54] sm:$0xf] %v19718_v29  ;;  %12667 = vst [vmem:[#allocation3 + $0x8c] sm:$0xf] %v19750_v25  ;;  %v12301_v41 = vld [vmem:[#allocation2 + $0x69] sm:$0xff]  ;;  %v19766_v42 = vpack.c.bf16 %v12396_v62, %v12396_v62  ;;  %v21304_v28 = vpop.f32.mrf.mxu0  ;;  %v19737_v56 = vpack.c.bf16 %v12077_v10, %v12077_v10 }
 0x54b   : > { %12286 = vst [vmem:[#allocation3 + $0x130] sm:$0xf] %v19736_v53  ;;  %12858 = vst [vmem:[#allocation3 + $0x58] sm:$0xf] %v19828_v0  ;;  %v12492_v59 = vld [vmem:[#allocation2 + $0x68] sm:$0xff]  ;;  %v19751_v37 = vpack.c.bf16 %v12301_v41, %v12301_v41  ;;  %v19860_v51 = vpack.c.bf16 %v12970_v52, %v12970_v52  ;;  %v12078_v34 = vmax.f32 %v12030_v43, 0.0  ;;  %v11938_v58 = vadd.f32 %v21303_v36, %v11841_v40  ;;  %v25552_v36 = vpop.f32.mrf.mxu1 }
 0x54c   : > { %12571 = vst [vmem:[#allocation3 + $0x88] sm:$0xf] %v19828_v0  ;;  %12954 = vst [vmem:[#allocation3 + $0x5c] sm:$0xf] %v19844_v24  ;;  %v13162_v31 = vld [vmem:[#allocation2 + $0x69] sm:$0xff]  ;;  %v19782_v11 = vpack.c.bf16 %v12492_v59, %v12492_v59  ;;  %v21305_v61 = vpop.f32.mrf.mxu0  ;;  %v11849_v19 = vadd.f32 %v21245_v44, %v11752_v20  ;;  %v21248_v47 = vadd.f32 %v25426_v9, %v25422_v57  ;;  %v22884_v52 = vld [vmem:[%s26158_s1 + $0xce0] sm:$0xff]  }
 0x54d   : > { %13049 = vst [vmem:[#allocation3 + $0x24] sm:$0xf] %v19859_v27  ;;  %13145 = vst [vmem:[#allocation3 + $0x28] sm:$0xf] %v19828_v0  ;;  %v22829_v63 = vld [vmem:[#allocation3 + $0x8] ss:$60 sps:$4 sm:$0xff]   ;;  %v19892_v50 = vpack.c.bf16 %v13162_v31, %v13162_v31  ;;  %v12035_v1 = vadd.f32 %v25496_v23, %v11938_v58  ;;  %v21306_v45 = vadd.f32 %v21305_v61, %v21304_v28 }
 0x54e   : > { %13241 = vst [vmem:[#allocation3 + $0x2c] sm:$0xf] %v19844_v24  ;;  %12093 = vst [vmem:[#allocation2 + $0x98] sm:$0xff] %v12077_v10  ;;  %v22831_v32 = vld [vmem:[#allocation3 + $0xc] ss:$60 sps:$4 sm:$0xff]   ;;  %v22870_v13 = vld [vmem:[%s26158_s1 + $0xd30] sm:$0xff]   ;;  %v21307_v18 = vpop.f32.mrf.mxu0  ;;  %v19738_v25 = vpack.c.bf16 %v12078_v34, %v12078_v34  ;;  %v11755_v40 = vadd.f32 %v21184_v35, %v25283_v7  ;;  %v21187_v14 = vadd.f32 %v25424_v6, %v25420_v54 }
 0x54f   : > { %12476 = vst [vmem:[#allocation3 + $0xc0] sm:$0xf] %v19766_v42  ;;  %12189 = vst [vmem:[#allocation3 + $0xf0] sm:$0xf] %v19766_v42  ;;  %15379 = vmatprep.mubr.bf16.mxu0 %v22831_v32  ;;  %v12110_v48 = vld [vmem:[#allocation2 + $0x7f] sm:$0xff]  ;;  %v22872_v15 = vld [vmem:[%s26158_s1 + $0xcf0] sm:$0xff]   ;;  %v11941_v12 = vadd.f32 %v21306_v45, %v11844_v22 }
 0x550   : > { %12381 = vst [vmem:[#allocation3 + $0xf8] sm:$0xf] %v19751_v37  ;;  %12668 = vst [vmem:[#allocation3 + $0xc8] sm:$0xf] %v19751_v37  ;;  %v12302_v38 = vld [vmem:[#allocation2 + $0x81] sm:$0xff]  ;;  %15380 = vmatmul.mubr.bf16.vlgmr.msra.gmra.mxu0 %v22829_v63  ;;  %v19720_v26 = vpack.c.bf16 %v12110_v48, %v12110_v48  ;;  %v12079_v46 = vmax.f32 %v12035_v1, 0.0  ;;  %v21308_v53 = vpop.f32.mrf.mxu0  ;;  %v11852_v7 = vadd.f32 %v21248_v47, %v11755_v40 }
 0x551   : > { %12763 = vst [vmem:[#allocation3 + $0x90] sm:$0xf] %v19766_v42  ;;  %12287 = vst [vmem:[#allocation3 + $0x16c] sm:$0xf] %v19737_v56  ;;  %v19752_v2 = vpack.c.bf16 %v12302_v38, %v12302_v38  ;;  %v12780_v49 = vld [vmem:[#allocation2 + $0x80] sm:$0xff]  ;;  %21540 = vmatpush3.bf16.msra.mxu0 %v22865_v39  ;;  %v22876_v30 = vld [vmem:[%s26158_s1 + $0xd28] sm:$0xff]   ;;  %v12038_v10 = vadd.f32 %v25511_v55, %v11941_v12  ;;  %v21309_v3 = vadd.f32 %v21308_v53, %v21307_v18 }
 0x552   : > { %12572 = vst [vmem:[#allocation3 + $0xc4] sm:$0xf] %v19782_v11  ;;  %12859 = vst [vmem:[#allocation3 + $0x94] sm:$0xf] %v19782_v11  ;;  %v22832_v33 = vld [vmem:[#allocation3 + $0x78] ss:$60 sps:$4 sm:$0xff]   ;;  %v19830_v23 = vpack.c.bf16 %v12780_v49, %v12780_v49  ;;  %21541 = vmatprep.subr.bf16.mxu0 %v22870_v13  ;;  %v21310_v16 = vpop.f32.mrf.mxu0  ;;  %v19739_v62 = vpack.c.bf16 %v12079_v46, %v12079_v46  ;;  %v12045_v49 = vpop.f32.mrf.mxu1 }
 0x553   : > { %13050 = vst [vmem:[#allocation3 + $0x60] sm:$0xf] %v19860_v51  ;;  %13146 = vst [vmem:[#allocation3 + $0x64] sm:$0xf] %v19782_v11  ;;  %v22834_v29 = vld [vmem:[#allocation3 + $0x7c] ss:$60 sps:$4 sm:$0xff]   ;;  %v11946_v43 = vadd.f32 %v21309_v3, %v11849_v19 }
 0x554   : > { %13242 = vst [vmem:[#allocation3 + $0x68] sm:$0xf] %v19892_v50  ;;  %12955 = vst [vmem:[#allocation3 + $0x98] sm:$0xf] %v19892_v50  ;;  %15290 = vmatprep.mubr.bf16.mxu1 %v22834_v29  ;;  %v22877_v27 = vld [vmem:[%s26158_s1 + $0xce8] sm:$0xff]   ;;  %v12080_v59 = vmax.f32 %v12038_v10, 0.0  ;;  %v21311_v42 = vpop.f32.mrf.mxu0 }
 0x555   : > { %13337 = vst [vmem:[#allocation3 + $0x30] sm:$0xf] %v19860_v51  ;;  %13529 = vst [vmem:[#allocation3 + $0x38] sm:$0xf] %v19892_v50  ;;  %v12398_v0 = vld [vmem:[#allocation2 + $0x97] sm:$0xff]  ;;  %15291 = vmatmul.mubr.bf16.gmra.mxu1 %v22832_v33  ;;  %21542 = vmatpush3.bf16.msra.mxu0 %v22872_v15  ;;  %v22882_v55 = vld [vmem:[%s26158_s1 + $0xd20] sm:$0xff]   ;;  %v12043_v31 = vadd.f32 %v12042_v4, %v11946_v43  ;;  %v21312_v28 = vadd.f32 %v21311_v42, %v21310_v16 }
 0x556   : > { %12094 = vst [vmem:[#allocation2 + $0xb0] sm:$0xff] %v12078_v34  ;;  %12190 = vst [vmem:[#allocation3 + $0x12c] sm:$0xf] %v19720_v26  ;;  %v12303_v24 = vld [vmem:[#allocation2 + $0x99] sm:$0xff]  ;;  %v19768_v5 = vpack.c.bf16 %v12398_v0, %v12398_v0  ;;  %21543 = vmatprep.subr.bf16.mxu0 %v22876_v30  ;;  %v26305_v54 = vld [vmem:[#allocation22_spill] sm:$0xff]  ;;  %v21313_v58 = vpop.f32.mrf.mxu0  ;;  %v19740_v44 = vpack.c.bf16 %v12080_v59, %v12080_v59 }
 0x557   : > { %12382 = vst [vmem:[#allocation3 + $0x134] sm:$0xf] %v19752_v2  ;;  %12477 = vst [vmem:[#allocation3 + $0xfc] sm:$0xf] %v19720_v26  ;;  %v19753_v57 = vpack.c.bf16 %v12303_v24, %v12303_v24  ;;  %v12494_v9 = vld [vmem:[#allocation2 + $0x98] sm:$0xff]  ;;  %v21251_v6 = vadd.f32 %v26305_v54, %v25430_v60  ;;  %v26306_v56 = vld [vmem:[#allocation12_spill] sm:$0xff]  ;;  %v11949_v38 = vadd.f32 %v21312_v28, %v11852_v7 }
 0x558   : > { %12764 = vst [vmem:[#allocation3 + $0xcc] sm:$0xf] %v19720_v26  ;;  %12669 = vst [vmem:[#allocation3 + $0x104] sm:$0xf] %v19752_v2  ;;  %v22837_v17 = vld [vmem:[#allocation3 + $0x80] ss:$60 sps:$4 sm:$0xff]   ;;  %v19784_v41 = vpack.c.bf16 %v12494_v9, %v12494_v9  ;;  %v11760_v11 = vadd.f32 %v21187_v14, %v26306_v56  ;;  %v21314_v20 = vpop.f32.mrf.mxu0 }
 0x559   : > { %12288 = vst [vmem:[#allocation3 + $0x1a8] sm:$0xf] %v19738_v25  ;;  %12860 = vst [vmem:[#allocation3 + $0xd0] sm:$0xf] %v19830_v23  ;;  %v22839_v8 = vld [vmem:[#allocation3 + $0x84] ss:$60 sps:$4 sm:$0xff]   ;;  %21544 = vmatpush3.bf16.msra.mxu0 %v22877_v27  ;;  %v12046_v33 = vadd.f32 %v12045_v49, %v11949_v38  ;;  %v21315_v29 = vadd.f32 %v21314_v20, %v21313_v58 }
 0x55a   : > { %12573 = vst [vmem:[#allocation3 + $0x100] sm:$0xf] %v19830_v23  ;;  %13147 = vst [vmem:[#allocation3 + $0xa0] sm:$0xf] %v19830_v23  ;;  %15387 = vmatprep.mubr.bf16.mxu0 %v22839_v8  ;;  %v26307_v51 = vld [vmem:[#allocation6_spill] sm:$0xff]  ;;  %v26308_v50 = vld [vmem:[#allocation19_spill] sm:$0xff]  ;;  %21545 = vmatprep.subr.bf16.mxu0 %v22882_v55  ;;  %v11857_v45 = vadd.f32 %v21251_v6, %v11760_v11  ;;  %v21316_v0 = vpop.f32.mrf.mxu0 }
 0x55b   : > { %12095 = vst [vmem:[#allocation2 + $0xc8] sm:$0xff] %v12079_v46  ;;  %12478 = vst [vmem:[#allocation3 + $0x138] sm:$0xf] %v19768_v5  ;;  %15388 = vmatmul.mubr.bf16.gmra.mxu0 %v22837_v17  ;;  %v21190_v34 = vadd.f32 %v26308_v50, %v26307_v51  ;;  %v22842_v22 = vld [vmem:[#allocation3 + $0xf4] ss:$60 sps:$4 sm:$0xff]   ;;  %v12081_v48 = vmax.f32 %v12043_v31, 0.0 }
 0x55c   : > { %12191 = vst [vmem:[#allocation3 + $0x168] sm:$0xf] %v19768_v5  ;;  %12383 = vst [vmem:[#allocation3 + $0x170] sm:$0xf] %v19753_v57  ;;  %v22888_v1 = vld [vmem:[%s26158_s1 + $0xd18] sm:$0xff]   ;;  %v26309_v26 = vld [vmem:[#allocation10_spill] sm:$0xff]  ;;  %15298 = vmatprep.mubr.bf16.mxu1 %v22842_v22  ;;  %v21317_v8 = vpop.f32.mrf.mxu0 }
 0x55d   : > { %12670 = vst [vmem:[#allocation3 + $0x140] sm:$0xf] %v19753_v57  ;;  %12765 = vst [vmem:[#allocation3 + $0x108] sm:$0xf] %v19768_v5  ;;  %v12112_v37 = vld [vmem:[#allocation2 + $0xaf] sm:$0xff]  ;;  %v26310_v2 = vld [vmem:[#allocation24_spill] sm:$0xff]  ;;  %v19741_v10 = vpack.c.bf16 %v12081_v48, %v12081_v48  ;;  %21546 = vmatpush3.bf16.msra.mxu0 %v22884_v52  ;;  %v11954_v57 = vadd.f32 %v21315_v29, %v11857_v45  ;;  %v21318_v55 = vadd.f32 %v21317_v8, %v21316_v0 }
 0x55e   : > { %v12304_v39 = vld [vmem:[#allocation2 + $0xb1] sm:$0xff]  ;;  %12289 = vst [vmem:[#allocation3 + $0x1e4] sm:$0xf] %v19739_v62  ;;  %12574 = vst [vmem:[#allocation3 + $0x13c] sm:$0xf] %v19784_v41  ;;  %v19722_v63 = vpack.c.bf16 %v12112_v37, %v12112_v37  ;;  %v21254_v15 = vadd.f32 %v26310_v2, %v26309_v26  ;;  %v26311_v30 = vld [vmem:[#allocation13_spill] sm:$0xff]  ;;  %21547 = vmatprep.subr.bf16.mxu0 %v22888_v1  ;;  %v25576_v62 = vpop.f32.mrf.mxu1 }
 0x55f   : > { %12861 = vst [vmem:[#allocation3 + $0x10c] sm:$0xf] %v19784_v41  ;;  %13148 = vst [vmem:[#allocation3 + $0xdc] sm:$0xf] %v19784_v41  ;;  %v19754_v60 = vpack.c.bf16 %v12304_v39, %v12304_v39  ;;  %v12782_v32 = vld [vmem:[#allocation2 + $0xb0] sm:$0xff]  ;;  %v22889_v46 = vld [vmem:[%s26158_s1 + $0xcd8] sm:$0xff]   ;;  %v11763_v19 = vadd.f32 %v21190_v34, %v26311_v30  ;;  %v12051_v43 = vadd.f32 %v25526_v21, %v11954_v57 }
 0x560   : > { %12096 = vst [vmem:[#allocation2 + $0xe0] sm:$0xff] %v12080_v59  ;;  %v22840_v13 = vld [vmem:[#allocation3 + $0xf0] ss:$60 sps:$4 sm:$0xff]   ;;  %v19832_v61 = vpack.c.bf16 %v12782_v32, %v12782_v32  ;;  %12192 = vst [vmem:[#allocation3 + $0x1a4] sm:$0xf] %v19722_v63  ;;  %v26312_v47 = vld [vmem:[#allocation7_spill] sm:$0xff] }
 0x561   : > { %12384 = vst [vmem:[#allocation3 + $0x1ac] sm:$0xf] %v19754_v60  ;;  %12479 = vst [vmem:[#allocation3 + $0x174] sm:$0xf] %v19722_v63  ;;  %15299 = vmatmul.mubr.bf16.gmra.mxu1 %v22840_v13  ;;  %v26313_v4 = vld [vmem:[#allocation20_spill] sm:$0xff]  ;;  %v12082_v5 = vmax.f32 %v12046_v33, 0.0  ;;  %v11860_v40 = vadd.f32 %v21254_v15, %v11763_v19  ;;  %21548 = vmatpush3.bf16.msra.mxu0 %v22889_v46 }
 0x562   : > { %12766 = vst [vmem:[#allocation3 + $0x144] sm:$0xf] %v19722_v63  ;;  %12671 = vst [vmem:[#allocation3 + $0x17c] sm:$0xf] %v19754_v60  ;;  %v12400_v35 = vld [vmem:[#allocation2 + $0xc7] sm:$0xff]  ;;  %v21193_v53 = vadd.f32 %v26313_v4, %v26312_v47  ;;  %v22894_v9 = vld [vmem:[%s26158_s1 + $0xd10] sm:$0xff]   ;;  %v21319_v63 = vpop.f32.mrf.mxu0 }
 0x563   : > { %12290 = vst [vmem:[#allocation3 + $0x220] sm:$0xf] %v19740_v44  ;;  %v12305_v18 = vld [vmem:[#allocation2 + $0xc9] sm:$0xff]  ;;  %12862 = vst [vmem:[#allocation3 + $0x148] sm:$0xf] %v19832_v61  ;;  %v19770_v25 = vpack.c.bf16 %v12400_v35, %v12400_v35  ;;  %v26316_v37 = vld [vmem:[#allocation15_spill] sm:$0xff]  ;;  %v19742_v56 = vpack.c.bf16 %v12082_v5, %v12082_v5  ;;  %v11957_v51 = vadd.f32 %v21318_v55, %v11860_v40  ;;  %21549 = vmatprep.subr.bf16.mxu0 %v22894_v9  ;;  %v12058_v44 = vpop.f32.mrf.mxu1 }
 0x564   : > { %12575 = vst [vmem:[#allocation3 + $0x178] sm:$0xf] %v19832_v61  ;;  %13149 = vst [vmem:[#allocation3 + $0x118] sm:$0xf] %v19832_v61  ;;  %v19755_v23 = vpack.c.bf16 %v12305_v18, %v12305_v18  ;;  %v12496_v12 = vld [vmem:[#allocation2 + $0xc8] sm:$0xff]  ;;  %v22899_v6 = vld [vmem:[%s26158_s1 + $0xcd0] sm:$0xff]   ;;  %v11768_v39 = vadd.f32 %v21193_v53, %v26316_v37  ;;  %v21320_v61 = vpop.f32.mrf.mxu0 }
 0x565   : > { %12097 = vst [vmem:[#allocation2 + $0xf8] sm:$0xff] %v12081_v48  ;;  %v22845_v24 = vld [vmem:[#allocation3 + $0xf8] ss:$60 sps:$4 sm:$0xff]   ;;  %v19786_v3 = vpack.c.bf16 %v12496_v12, %v12496_v12  ;;  %12480 = vst [vmem:[#allocation3 + $0x1b0] sm:$0xf] %v19770_v25  ;;  %v26314_v14 = vld [vmem:[#allocation25_spill] sm:$0xff]  ;;  %v12054_v45 = vadd.f32 %v25552_v36, %v11957_v51  ;;  %v21321_v26 = vadd.f32 %v21320_v61, %v21319_v63  ;;  %21550 = vmatpush3.bf16.msra.mxu0 %v22899_v6 }
 0x566   : > { %v22847_v27 = vld [vmem:[#allocation3 + $0xfc] ss:$60 sps:$4 sm:$0xff]   ;;  %12193 = vst [vmem:[#allocation3 + $0x1e0] sm:$0xf] %v19770_v25  ;;  %12385 = vst [vmem:[#allocation3 + $0x1e8] sm:$0xf] %v19755_v23 }
 0x567   : > { %12672 = vst [vmem:[#allocation3 + $0x1b8] sm:$0xf] %v19755_v23  ;;  %12767 = vst [vmem:[#allocation3 + $0x180] sm:$0xf] %v19770_v25  ;;  %v26315_v16 = vld [vmem:[#allocation21_spill] sm:$0xff]  ;;  %15395 = vmatprep.mubr.bf16.mxu0 %v22847_v27  ;;  %v12114_v41 = vld [vmem:[#allocation2 + $0xdf] sm:$0xff]  ;;  %v21322_v25 = vpop.f32.mrf.mxu0  ;;  %v25602_v27 = vpop.f32.mrf.mxu1 }
 0x568   : > { %v21257_v17 = vadd.f32 %v26315_v16, %v26314_v14  ;;  %v12306_v59 = vld [vmem:[#allocation2 + $0xe1] sm:$0xff]  ;;  %12291 = vst [vmem:[#allocation3 + $0x25c] sm:$0xf] %v19741_v10  ;;  %12576 = vst [vmem:[#allocation3 + $0x1b4] sm:$0xf] %v19786_v3  ;;  %15396 = vmatmul.mubr.bf16.gmra.mxu0 %v22845_v24  ;;  %v19724_v7 = vpack.c.bf16 %v12114_v41, %v12114_v41  ;;  %v26317_v52 = vld [vmem:[#allocation23_spill] sm:$0xff] }
 0x569   : > { %12863 = vst [vmem:[#allocation3 + $0x184] sm:$0xf] %v19786_v3  ;;  %13150 = vst [vmem:[#allocation3 + $0x154] sm:$0xf] %v19786_v3  ;;  %v19756_v54 = vpack.c.bf16 %v12306_v59, %v12306_v59  ;;  %v12784_v42 = vld [vmem:[#allocation2 + $0xe0] sm:$0xff]  ;;  %v26318_v31 = vld [vmem:[#allocation11_spill] sm:$0xff]  ;;  %v21323_v10 = vpop.f32.mrf.mxu0 }
 0x56a   : > { %12098 = vst [vmem:[#allocation2 + $0x110] sm:$0xff] %v12082_v5  ;;  %v21196_v28 = vadd.f32 %v26318_v31, %v26317_v52  ;;  %v22848_v60 = vld [vmem:[#allocation3 + $0x168] ss:$60 sps:$4 sm:$0xff]   ;;  %v19834_v21 = vpack.c.bf16 %v12784_v42, %v12784_v42  ;;  %v12083_v11 = vmax.f32 %v12051_v43, 0.0  ;;  %12194 = vst [vmem:[#allocation3 + $0x21c] sm:$0xf] %v19724_v7  ;;  %v11865_v34 = vadd.f32 %v21257_v17, %v11768_v39 }
 0x56b   : > { %v22850_v32 = vld [vmem:[#allocation3 + $0x16c] ss:$60 sps:$4 sm:$0xff]   ;;  %12386 = vst [vmem:[#allocation3 + $0x224] sm:$0xf] %v19756_v54  ;;  %12481 = vst [vmem:[#allocation3 + $0x1ec] sm:$0xf] %v19724_v7  ;;  %v21324_v40 = vadd.f32 %v21323_v10, %v21322_v25 }
 0x56c   : > { %v22903_v50 = vld [vmem:[%s26158_s1 + $0xd08] sm:$0xff]   ;;  %12768 = vst [vmem:[#allocation3 + $0x1bc] sm:$0xf] %v19724_v7  ;;  %12673 = vst [vmem:[#allocation3 + $0x1f4] sm:$0xf] %v19756_v54  ;;  %v26319_v58 = vld [vmem:[#allocation27_spill] sm:$0xff]  ;;  %15306 = vmatprep.mubr.bf16.mxu1 %v22850_v32  ;;  %v19743_v12 = vpack.c.bf16 %v12083_v11, %v12083_v11  ;;  %v11962_v47 = vadd.f32 %v21321_v26, %v11865_v34  ;;  %v21325_v7 = vpop.f32.mrf.mxu0 }
 0x56d   : > { %v26320_v13 = vld [vmem:[#allocation26_spill] sm:$0xff]  ;;  %12292 = vst [vmem:[#allocation3 + $0x298] sm:$0xf] %v19742_v56  ;;  %v12307_v38 = vld [vmem:[#allocation2 + $0xf9] sm:$0xff]  ;;  %v22904_v1 = vld [vmem:[%s26158_s1 + $0xcc8] sm:$0xff]   ;;  %15307 = vmatmul.mubr.bf16.gmra.mxu1 %v22848_v60  ;;  %v12084_v19 = vmax.f32 %v12054_v45, 0.0  ;;  %21551 = vmatprep.subr.bf16.mxu0 %v22903_v50  ;;  %v12061_v56 = vpop.f32.mrf.mxu1 }
 0x56e   : > { %v21260_v22 = vadd.f32 %v26320_v13, %v26319_v58  ;;  %v12402_v48 = vld [vmem:[#allocation2 + $0xf7] sm:$0xff]  ;;  %12864 = vst [vmem:[#allocation3 + $0x1c0] sm:$0xf] %v19834_v21  ;;  %12577 = vst [vmem:[#allocation3 + $0x1f0] sm:$0xf] %v19834_v21  ;;  %v19757_v15 = vpack.c.bf16 %v12307_v38, %v12307_v38  ;;  %v26321_v20 = vld [vmem:[#allocation17_spill] sm:$0xff]  ;;  %v12059_v9 = vadd.f32 %v12058_v44, %v11962_v47  ;;  %21552 = vmatpush3.bf16.msra.mxu0 %v22904_v1 }
 0x56f   : > { %13151 = vst [vmem:[#allocation3 + $0x190] sm:$0xf] %v19834_v21  ;;  %12099 = vst [vmem:[#allocation2 + $0x128] sm:$0xff] %v12083_v11  ;;  %v19772_v2 = vpack.c.bf16 %v12402_v48, %v12402_v48  ;;  %v12498_v49 = vld [vmem:[#allocation2 + $0xf8] sm:$0xff]  ;;  %v11771_v35 = vadd.f32 %v21196_v28, %v26321_v20  ;;  %v26322_v18 = vld [vmem:[#allocation8_spill] sm:$0xff]  ;;  %v19744_v42 = vpack.c.bf16 %v12084_v19, %v12084_v19  ;;  %v21326_v21 = vpop.f32.mrf.mxu0 }
 0x570   : > { %v26323_v33 = vld [vmem:[#allocation28_spill] sm:$0xff]  ;;  %v22853_v23 = vld [vmem:[#allocation3 + $0x170] ss:$60 sps:$4 sm:$0xff]   ;;  %v19788_v30 = vpack.c.bf16 %v12498_v49, %v12498_v49  ;;  %12387 = vst [vmem:[#allocation3 + $0x260] sm:$0xf] %v19757_v15  ;;  %12100 = vst [vmem:[#allocation2 + $0x140] sm:$0xff] %v12084_v19  ;;  %v21327_v34 = vadd.f32 %v21326_v21, %v21325_v7 }
 0x571   : > { %v21199_v29 = vadd.f32 %v26323_v33, %v26322_v18  ;;  %v22855_v46 = vld [vmem:[#allocation3 + $0x174] ss:$60 sps:$4 sm:$0xff]   ;;  %12482 = vst [vmem:[#allocation3 + $0x228] sm:$0xf] %v19772_v2  ;;  %12195 = vst [vmem:[#allocation3 + $0x258] sm:$0xf] %v19772_v2  ;;  %v11868_v4 = vadd.f32 %v21260_v22, %v11771_v35  ;;  %v21328_v48 = vpop.f32.mrf.mxu0 }
 0x572   : > { %v22908_v36 = vld [vmem:[%s26158_s1 + $0xd00] sm:$0xff]   ;;  %12674 = vst [vmem:[#allocation3 + $0x230] sm:$0xf] %v19757_v15  ;;  %12769 = vst [vmem:[#allocation3 + $0x1f8] sm:$0xf] %v19772_v2  ;;  %v26324_v53 = vld [vmem:[#allocation5_spill] sm:$0xff]  ;;  %15403 = vmatprep.mubr.bf16.mxu0 %v22855_v46 }
 0x573   : > { %v26325_v0 = vld [vmem:[#allocation30_spill] sm:$0xff]  ;;  %12293 = vst [vmem:[#allocation3 + $0x2d4] sm:$0xf] %v19743_v12  ;;  %v22913_v57 = vld [vmem:[%s26158_s1 + $0xcc0] sm:$0xff]   ;;  %12578 = vst [vmem:[#allocation3 + $0x22c] sm:$0xf] %v19788_v30  ;;  %15404 = vmatmul.mubr.bf16.gmra.mxu0 %v22853_v23  ;;  %v11965_v52 = vadd.f32 %v21324_v40, %v11868_v4  ;;  %21553 = vmatprep.subr.bf16.mxu0 %v22908_v36  ;;  %v21329_v20 = vpop.f32.mrf.mxu0 }
 0x574   : > { %v21263_v24 = vadd.f32 %v26325_v0, %v26324_v53  ;;  %v12116_v3 = vld [vmem:[#allocation2 + $0x10f] sm:$0xff]  ;;  %12865 = vst [vmem:[#allocation3 + $0x1fc] sm:$0xf] %v19788_v30  ;;  %13152 = vst [vmem:[#allocation3 + $0x1cc] sm:$0xf] %v19788_v30  ;;  %v12085_v39 = vmax.f32 %v12059_v9, 0.0  ;;  %21554 = vmatpush3.bf16.msra.mxu0 %v22913_v57 }
 0x575   : > { %v12308_v5 = vld [vmem:[#allocation2 + $0x111] sm:$0xff]  ;;  %v19726_v14 = vpack.c.bf16 %v12116_v3, %v12116_v3  ;;  %v26327_v59 = vld [vmem:[#allocation9_spill] sm:$0xff]  ;;  %v22856_v54 = vld [vmem:[#allocation3 + $0x1e0] ss:$60 sps:$4 sm:$0xff]   ;;  %12294 = vst [vmem:[#allocation3 + $0x310] sm:$0xf] %v19744_v42  ;;  %v12062_v50 = vadd.f32 %v12061_v56, %v11965_v52 }
 0x576   : > { %v19758_v16 = vpack.c.bf16 %v12308_v5, %v12308_v5  ;;  %v12786_v17 = vld [vmem:[#allocation2 + $0x110] sm:$0xff]  ;;  %v22858_v6 = vld [vmem:[#allocation3 + $0x1e4] ss:$60 sps:$4 sm:$0xff]   ;;  %v22947_v31 = vld [vmem:[%s26158_s1 + $0xe38] sm:$0xff]   ;;  %12101 = vst [vmem:[#allocation2 + $0x158] sm:$0xff] %v12085_v39  ;;  %v19745_v45 = vpack.c.bf16 %v12085_v39, %v12085_v39 }
 0x577   : > { %v26326_v8 = vld [vmem:[#allocation18_spill] sm:$0xff]  ;;  %v19836_v37 = vpack.c.bf16 %v12786_v17, %v12786_v17  ;;  %12196 = vst [vmem:[#allocation3 + $0x294] sm:$0xf] %v19726_v14  ;;  %12483 = vst [vmem:[#allocation3 + $0x264] sm:$0xf] %v19726_v14  ;;  %v26329_v63 = vld [vmem:[#allocation32_spill] sm:$0xff]  ;;  %15314 = vmatprep.mubr.bf16.mxu1 %v22858_v6  ;;  %21667 = vmatprep.subr.bf16.mxu0 %v22947_v31 }
 0x578   : > { %v11776_v41 = vadd.f32 %v21199_v29, %v26326_v8  ;;  %v26328_v43 = vld [vmem:[#allocation14_spill] sm:$0xff]  ;;  %12388 = vst [vmem:[#allocation3 + $0x29c] sm:$0xf] %v19758_v16  ;;  %12770 = vst [vmem:[#allocation3 + $0x234] sm:$0xf] %v19726_v14  ;;  %v26330_v60 = vld [vmem:[#allocation29_spill] sm:$0xff]  ;;  %15315 = vmatmul.mubr.bf16.gmra.mxu1 %v22856_v54  ;;  %v21330_v29 = vadd.f32 %v21329_v20, %v21328_v48 }
 0x579   : > { %v21202_v55 = vadd.f32 %v26328_v43, %v26327_v59  ;;  %12675 = vst [vmem:[#allocation3 + $0x26c] sm:$0xf] %v19758_v16  ;;  %v21266_v32 = vadd.f32 %v26330_v60, %v26329_v63  ;;  %v12404_v11 = vld [vmem:[#allocation2 + $0x127] sm:$0xff]  ;;  %12866 = vst [vmem:[#allocation3 + $0x238] sm:$0xf] %v19836_v37  ;;  %v12086_v2 = vmax.f32 %v12062_v50, 0.0 }
 0x57a   : > { %v11873_v28 = vadd.f32 %v21263_v24, %v11776_v41  ;;  %v12309_v51 = vld [vmem:[#allocation2 + $0x129] sm:$0xff]  ;;  %12579 = vst [vmem:[#allocation3 + $0x268] sm:$0xf] %v19836_v37  ;;  %13153 = vst [vmem:[#allocation3 + $0x208] sm:$0xf] %v19836_v37  ;;  %v19774_v58 = vpack.c.bf16 %v12404_v11, %v12404_v11  ;;  %v26331_v44 = vld [vmem:[#allocation4_spill] sm:$0xff] }
 0x57b   : > { %v19759_v13 = vpack.c.bf16 %v12309_v51, %v12309_v51  ;;  %v12500_v22 = vld [vmem:[#allocation2 + $0x128] sm:$0xff]  ;;  %v11779_v61 = vadd.f32 %v21202_v55, %v26331_v44  ;;  %v12118_v35 = vld [vmem:[#allocation2 + $0x13f] sm:$0xff]  ;;  %12295 = vst [vmem:[#allocation3 + $0x34c] sm:$0xf] %v19745_v45  ;;  %12102 = vst [vmem:[#allocation2 + $0x170] sm:$0xff] %v12086_v2  ;;  %v19746_v19 = vpack.c.bf16 %v12086_v2, %v12086_v2 }
 0x57c   : > { %v22861_v38 = vld [vmem:[#allocation3 + $0x1e8] ss:$60 sps:$4 sm:$0xff]   ;;  %v19790_v26 = vpack.c.bf16 %v12500_v22, %v12500_v22  ;;  %v11970_v15 = vadd.f32 %v21327_v34, %v11873_v28  ;;  %12484 = vst [vmem:[#allocation3 + $0x2a0] sm:$0xf] %v19774_v58  ;;  %12197 = vst [vmem:[#allocation3 + $0x2d0] sm:$0xf] %v19774_v58  ;;  %v19728_v25 = vpack.c.bf16 %v12118_v35, %v12118_v35 }
 0x57d   : > { %v22863_v1 = vld [vmem:[#allocation3 + $0x1ec] ss:$60 sps:$4 sm:$0xff]   ;;  %12389 = vst [vmem:[#allocation3 + $0x2d8] sm:$0xf] %v19759_v13  ;;  %12676 = vst [vmem:[#allocation3 + $0x2a8] sm:$0xf] %v19759_v13  ;;  %v11876_v49 = vadd.f32 %v21266_v32, %v11779_v61 }
 0x57e   : > { %12771 = vst [vmem:[#allocation3 + $0x270] sm:$0xf] %v19774_v58  ;;  %15411 = vmatprep.mubr.bf16.mxu0 %v22863_v1  ;;  %v12310_v18 = vld [vmem:[#allocation2 + $0x141] sm:$0xff]  ;;  %12580 = vst [vmem:[#allocation3 + $0x2a4] sm:$0xf] %v19790_v26  ;;  %v12067_v33 = vadd.f32 %v25576_v62, %v11970_v15  ;;  %v12406_v53 = vld [vmem:[#allocation2 + $0x157] sm:$0xff] }
 0x57f   : > { %12867 = vst [vmem:[#allocation3 + $0x274] sm:$0xf] %v19790_v26  ;;  %13154 = vst [vmem:[#allocation3 + $0x244] sm:$0xf] %v19790_v26  ;;  %15412 = vmatmul.mubr.bf16.gmra.mxu0 %v22861_v38  ;;  %v19760_v23 = vpack.c.bf16 %v12310_v18, %v12310_v18  ;;  %v12788_v46 = vld [vmem:[#allocation2 + $0x140] sm:$0xff]  ;;  %v11973_v4 = vadd.f32 %v21330_v29, %v11876_v49  ;;  %v19776_v24 = vpack.c.bf16 %v12406_v53, %v12406_v53  ;;  %v12502_v3 = vld [vmem:[#allocation2 + $0x158] sm:$0xff] }
 0x580   : > { %v22866_v12 = vld [vmem:[#allocation3 + $0x258] ss:$60 sps:$4 sm:$0xff]   ;;  %v19838_v47 = vpack.c.bf16 %v12788_v46, %v12788_v46  ;;  %v12087_v36 = vmax.f32 %v12067_v33, 0.0  ;;  %12198 = vst [vmem:[#allocation3 + $0x30c] sm:$0xf] %v19728_v25  ;;  %v12876_v5 = vld [vmem:[#allocation2 + $0x81] sm:$0xff]  ;;  %v19792_v40 = vpack.c.bf16 %v12502_v3, %v12502_v3 }
 0x581   : > { %v22868_v30 = vld [vmem:[#allocation3 + $0x25c] ss:$60 sps:$4 sm:$0xff]   ;;  %12390 = vst [vmem:[#allocation3 + $0x314] sm:$0xf] %v19760_v23  ;;  %12485 = vst [vmem:[#allocation3 + $0x2dc] sm:$0xf] %v19728_v25  ;;  %v12070_v0 = vadd.f32 %v25602_v27, %v11973_v4  ;;  %v19846_v14 = vpack.c.bf16 %v12876_v5, %v12876_v5 }
 0x582   : > { %12772 = vst [vmem:[#allocation3 + $0x2ac] sm:$0xf] %v19728_v25  ;;  %12677 = vst [vmem:[#allocation3 + $0x2e4] sm:$0xf] %v19760_v23  ;;  %15322 = vmatprep.mubr.bf16.mxu1 %v22868_v30  ;;  %v12311_v62 = vld [vmem:[#allocation2 + $0x159] sm:$0xff]  ;;  %v12120_v17 = vld [vmem:[#allocation2 + $0x16f] sm:$0xff] }
 0x583   : > { %12296 = vst [vmem:[#allocation3 + $0x388] sm:$0xf] %v19746_v19  ;;  %12868 = vst [vmem:[#allocation3 + $0x2b0] sm:$0xf] %v19838_v47  ;;  %15323 = vmatmul.mubr.bf16.gmra.mxu1 %v22866_v12  ;;  %v19761_v10 = vpack.c.bf16 %v12311_v62, %v12311_v62  ;;  %v22873_v57 = vld [vmem:[#allocation3 + $0x260] ss:$60 sps:$4 sm:$0xff]   ;;  %v19730_v27 = vpack.c.bf16 %v12120_v17, %v12120_v17 }
 0x584   : > { %12581 = vst [vmem:[#allocation3 + $0x2e0] sm:$0xf] %v19838_v47  ;;  %13155 = vst [vmem:[#allocation3 + $0x280] sm:$0xf] %v19838_v47  ;;  %v22875_v9 = vld [vmem:[#allocation3 + $0x264] ss:$60 sps:$4 sm:$0xff]  }
 0x585   : > { %12103 = vst [vmem:[#allocation2 + $0x188] sm:$0xff] %v12087_v36  ;;  %v12088_v16 = vmax.f32 %v12070_v0, 0.0  ;;  %12486 = vst [vmem:[#allocation3 + $0x318] sm:$0xf] %v19776_v24  ;;  %15419 = vmatprep.mubr.bf16.mxu0 %v22875_v9  ;;  %v12312_v8 = vld [vmem:[#allocation2 + $0x171] sm:$0xff]  ;;  %v12971_v43 = vld [vmem:[#allocation2 + $0x7f] sm:$0xff] }
 0x586   : > { %12199 = vst [vmem:[#allocation3 + $0x348] sm:$0xf] %v19776_v24  ;;  %12391 = vst [vmem:[#allocation3 + $0x350] sm:$0xf] %v19761_v10  ;;  %v19762_v41 = vpack.c.bf16 %v12312_v8, %v12312_v8  ;;  %v12790_v59 = vld [vmem:[#allocation2 + $0x170] sm:$0xff]  ;;  %v19861_v6 = vpack.c.bf16 %v12971_v43, %v12971_v43  ;;  %v13164_v22 = vld [vmem:[#allocation2 + $0x99] sm:$0xff] }
 0x587   : > { %12678 = vst [vmem:[#allocation3 + $0x320] sm:$0xf] %v19761_v10  ;;  %12773 = vst [vmem:[#allocation3 + $0x2e8] sm:$0xf] %v19776_v24  ;;  %15420 = vmatmul.mubr.bf16.gmra.mxu0 %v22873_v57  ;;  %v22878_v55 = vld [vmem:[#allocation3 + $0x2d0] ss:$60 sps:$4 sm:$0xff]   ;;  %v19840_v54 = vpack.c.bf16 %v12790_v59, %v12790_v59  ;;  %v19894_v48 = vpack.c.bf16 %v13164_v22, %v13164_v22 }
 0x588   : > { %12582 = vst [vmem:[#allocation3 + $0x31c] sm:$0xf] %v19792_v40  ;;  %12869 = vst [vmem:[#allocation3 + $0x2ec] sm:$0xf] %v19792_v40  ;;  %v22880_v7 = vld [vmem:[#allocation3 + $0x2d4] ss:$60 sps:$4 sm:$0xff]  }
 0x589   : > { %12956 = vst [vmem:[#allocation3 + $0xd4] sm:$0xf] %v19846_v14  ;;  %13243 = vst [vmem:[#allocation3 + $0xa4] sm:$0xf] %v19846_v14  ;;  %15330 = vmatprep.mubr.bf16.mxu1 %v22880_v7  ;;  %v12972_v31 = vld [vmem:[#allocation2 + $0x97] sm:$0xff]  ;;  %v12973_v45 = vld [vmem:[#allocation2 + $0xaf] sm:$0xff] }
 0x58a   : > { %13156 = vst [vmem:[#allocation3 + $0x2bc] sm:$0xf] %v19792_v40  ;;  %13530 = vst [vmem:[#allocation3 + $0x74] sm:$0xf] %v19846_v14  ;;  %v22885_v28 = vld [vmem:[#allocation3 + $0x2d8] ss:$60 sps:$4 sm:$0xff]   ;;  %v19862_v56 = vpack.c.bf16 %v12972_v31, %v12972_v31  ;;  %v19863_v49 = vpack.c.bf16 %v12973_v45, %v12973_v45 }
 0x58b   : > { %12104 = vst [vmem:[#allocation2 + $0x1a0] sm:$0xff] %v12088_v16  ;;  %12200 = vst [vmem:[#allocation3 + $0x384] sm:$0xf] %v19730_v27  ;;  %15331 = vmatmul.mubr.bf16.gmra.mxu1 %v22878_v55  ;;  %v22892_v34 = vld [vmem:[#allocation3 + $0x34c] ss:$60 sps:$4 sm:$0xff]   ;;  %v12878_v1 = vld [vmem:[#allocation2 + $0xb1] sm:$0xff] }
 0x58c   : > { %12392 = vst [vmem:[#allocation3 + $0x38c] sm:$0xf] %v19762_v41  ;;  %12487 = vst [vmem:[#allocation3 + $0x354] sm:$0xf] %v19730_v27  ;;  %v12408_v42 = vld [vmem:[#allocation2 + $0x187] sm:$0xff]  ;;  %15338 = vmatprep.mubr.bf16.mxu1 %v22892_v34  ;;  %v22914_v26 = vld [vmem:[%s26158_s1 + $0xd78] sm:$0xff]   ;;  %v19848_v2 = vpack.c.bf16 %v12878_v1, %v12878_v1 }
 0x58d   : > { %12774 = vst [vmem:[#allocation3 + $0x324] sm:$0xf] %v19730_v27  ;;  %12679 = vst [vmem:[#allocation3 + $0x35c] sm:$0xf] %v19762_v41  ;;  %v19778_v37 = vpack.c.bf16 %v12408_v42, %v12408_v42  ;;  %v12504_v39 = vld [vmem:[#allocation2 + $0x188] sm:$0xff]  ;;  %v22918_v18 = vld [vmem:[%s26158_s1 + $0xdb0] sm:$0xff]  }
 0x58e   : > { %12870 = vst [vmem:[#allocation3 + $0x328] sm:$0xf] %v19840_v54  ;;  %12583 = vst [vmem:[#allocation3 + $0x358] sm:$0xf] %v19840_v54  ;;  %v12600_v52 = vld [vmem:[#allocation2 + $0x189] sm:$0xff]  ;;  %v19794_v60 = vpack.c.bf16 %v12504_v39, %v12504_v39  ;;  %v12880_v46 = vld [vmem:[#allocation2 + $0xe1] sm:$0xff] }
 0x58f   : > { %13051 = vst [vmem:[#allocation3 + $0x9c] sm:$0xf] %v19861_v6  ;;  %13157 = vst [vmem:[#allocation3 + $0x2f8] sm:$0xf] %v19840_v54  ;;  %v22887_v63 = vld [vmem:[#allocation3 + $0x2dc] ss:$60 sps:$4 sm:$0xff]   ;;  %v19810_v32 = vpack.c.bf16 %v12600_v52, %v12600_v52  ;;  %v19850_v19 = vpack.c.bf16 %v12880_v46, %v12880_v46 }
 0x590   : > { %13338 = vst [vmem:[#allocation3 + $0x6c] sm:$0xf] %v19861_v6  ;;  %12488 = vst [vmem:[#allocation3 + $0x390] sm:$0xf] %v19778_v37  ;;  %15427 = vmatprep.mubr.bf16.mxu0 %v22887_v63  ;;  %v22898_v13 = vld [vmem:[#allocation3 + $0x14] ss:$60 sps:$4 sm:$0xff]   ;;  %v21363_v63 = vpop.f32.mrf.mxu1 }
 0x591   : > { %12775 = vst [vmem:[#allocation3 + $0x360] sm:$0xf] %v19778_v37  ;;  %12584 = vst [vmem:[#allocation3 + $0x394] sm:$0xf] %v19794_v60  ;;  %15428 = vmatmul.mubr.bf16.gmra.mxu0 %v22885_v28  ;;  %v22907_v38 = vld [vmem:[#allocation3 + $0x1c] ss:$60 sps:$4 sm:$0xff]  }
 0x592   : > { %12680 = vst [vmem:[#allocation3 + $0x398] sm:$0xf] %v19810_v32  ;;  %v12696_v21 = vld [vmem:[#allocation2 + $0x19f] sm:$0xff]  ;;  %12871 = vst [vmem:[#allocation3 + $0x364] sm:$0xf] %v19794_v60  ;;  %v12974_v15 = vld [vmem:[#allocation2 + $0xc7] sm:$0xff] }
 0x593   : > { %13052 = vst [vmem:[#allocation3 + $0xd8] sm:$0xf] %v19862_v56  ;;  %13158 = vst [vmem:[#allocation3 + $0x334] sm:$0xf] %v19794_v60  ;;  %v19826_v11 = vpack.c.bf16 %v12696_v21, %v12696_v21  ;;  %v12792_v51 = vld [vmem:[#allocation2 + $0x1a0] sm:$0xff]  ;;  %v13166_v20 = vld [vmem:[#allocation2 + $0xc9] sm:$0xff]  ;;  %v19864_v33 = vpack.c.bf16 %v12974_v15, %v12974_v15 }
 0x594   : > { %13254 = vst [vmem:[#allocation3 + $0x338] sm:$0xf] %v19810_v32  ;;  %12967 = vst [vmem:[#allocation3 + $0x368] sm:$0xf] %v19810_v32  ;;  %v22890_v50 = vld [vmem:[#allocation3 + $0x348] ss:$60 sps:$4 sm:$0xff]   ;;  %v19842_v58 = vpack.c.bf16 %v12792_v51, %v12792_v51  ;;  %v19896_v29 = vpack.c.bf16 %v13166_v20, %v13166_v20 }
 0x595   : > { %13339 = vst [vmem:[#allocation3 + $0xa8] sm:$0xf] %v19862_v56  ;;  %12776 = vst [vmem:[#allocation3 + $0x39c] sm:$0xf] %v19826_v11  ;;  %15339 = vmatmul.mubr.bf16.gmra.mxu1 %v22890_v50  ;;  %v22900_v44 = vld [vmem:[#allocation3 + $0x350] ss:$60 sps:$4 sm:$0xff]   ;;  %v21364_v56 = vpop.f32.mrf.mxu1 }
 0x596   : > { %13063 = vst [vmem:[#allocation3 + $0x36c] sm:$0xf] %v19826_v11  ;;  %12872 = vst [vmem:[#allocation3 + $0x3a0] sm:$0xf] %v19842_v58  ;;  %15476 = vmatprep.mubr.bf16.mxu1 %v22898_v13  ;;  %v22896_v35 = vld [vmem:[#allocation3 + $0x10] ss:$60 sps:$4 sm:$0xff]   ;;  %v25657_v51 = vadd.f32 %v21364_v56, %v21363_v63 }
 0x597   : > { %13159 = vst [vmem:[#allocation3 + $0x370] sm:$0xf] %v19842_v58  ;;  %v22902_v61 = vld [vmem:[#allocation3 + $0x354] ss:$60 sps:$4 sm:$0xff]   ;;  %13244 = vst [vmem:[#allocation3 + $0xe0] sm:$0xf] %v19894_v48 }
 0x598   : > { %15435 = vmatprep.mubr.bf16.mxu0 %v22902_v61  ;;  %12957 = vst [vmem:[#allocation3 + $0x110] sm:$0xf] %v19894_v48  ;;  %13531 = vst [vmem:[#allocation3 + $0xb0] sm:$0xf] %v19894_v48  ;;  %v22912_v25 = vld [vmem:[#allocation3 + $0x8c] ss:$60 sps:$4 sm:$0xff]  }
 0x599   : > { %15436 = vmatmul.mubr.bf16.gmra.mxu0 %v22900_v44  ;;  %v22922_v23 = vld [vmem:[%s26158_s1 + $0xd70] sm:$0xff]   ;;  %12958 = vst [vmem:[#allocation3 + $0x14c] sm:$0xf] %v19848_v2  ;;  %13053 = vst [vmem:[#allocation3 + $0x114] sm:$0xf] %v19863_v49  ;;  %v12975_v12 = vld [vmem:[#allocation2 + $0xdf] sm:$0xff] }
 0x59a   : > { %15573 = vmatprep.mubr.bf16.mxu0 %v22907_v38  ;;  %13245 = vst [vmem:[#allocation3 + $0x11c] sm:$0xf] %v19848_v2  ;;  %13340 = vst [vmem:[#allocation3 + $0xe4] sm:$0xf] %v19863_v49  ;;  %v22926_v30 = vld [vmem:[%s26158_s1 + $0xda8] sm:$0xff]   ;;  %v12976_v47 = vld [vmem:[#allocation2 + $0xf7] sm:$0xff]  ;;  %v19865_v36 = vpack.c.bf16 %v12975_v12, %v12975_v12 }
 0x59b   : > { %13532 = vst [vmem:[#allocation3 + $0xec] sm:$0xf] %v19848_v2  ;;  %13054 = vst [vmem:[#allocation3 + $0x150] sm:$0xf] %v19864_v33  ;;  %v13168_v4 = vld [vmem:[#allocation2 + $0xf9] sm:$0xff]  ;;  %v19866_v62 = vpack.c.bf16 %v12976_v47, %v12976_v47  ;;  %v12882_v24 = vld [vmem:[#allocation2 + $0x111] sm:$0xff] }
 0x59c   : > { %13246 = vst [vmem:[#allocation3 + $0x158] sm:$0xf] %v19896_v29  ;;  %12959 = vst [vmem:[#allocation3 + $0x188] sm:$0xf] %v19896_v29  ;;  %v22951_v53 = vld [vmem:[%s26158_s1 + $0xdf8] sm:$0xff]   ;;  %v19898_v0 = vpack.c.bf16 %v13168_v4, %v13168_v4  ;;  %v12977_v10 = vld [vmem:[#allocation2 + $0x10f] sm:$0xff]  ;;  %v19852_v57 = vpack.c.bf16 %v12882_v24, %v12882_v24 }
 0x59d   : > { %15477 = vmatmul.mubr.bf16.vlgmr.msra.gmra.mxu1 %v22896_v35  ;;  %13533 = vst [vmem:[#allocation3 + $0x128] sm:$0xf] %v19896_v29  ;;  %13341 = vst [vmem:[#allocation3 + $0x120] sm:$0xf] %v19864_v33  ;;  %v22905_v3 = vld [vmem:[#allocation3 + $0x18] ss:$60 sps:$4 sm:$0xff]   ;;  %v19867_v9 = vpack.c.bf16 %v12977_v10, %v12977_v10 }
 0x59e   : > { %15484 = vmatprep.mubr.bf16.mxu1 %v22912_v25  ;;  %21604 = vmatpush3.bf16.msra.mxu1 %v22914_v26  ;;  %v22953_v5 = vld [vmem:[%s26158_s1 + $0xe30] sm:$0xff]   ;;  %12960 = vst [vmem:[#allocation3 + $0x1c4] sm:$0xf] %v19850_v19  ;;  %13055 = vst [vmem:[#allocation3 + $0x18c] sm:$0xf] %v19865_v36  ;;  %v22930_v14 = vld [vmem:[%s26158_s1 + $0xd68] sm:$0xff]  }
 0x59f   : > { %21605 = vmatprep.subr.bf16.mxu1 %v22918_v18  ;;  %13247 = vst [vmem:[#allocation3 + $0x194] sm:$0xf] %v19850_v19  ;;  %13534 = vst [vmem:[#allocation3 + $0x164] sm:$0xf] %v19850_v19  ;;  %v22917_v40 = vld [vmem:[#allocation3 + $0x94] ss:$60 sps:$4 sm:$0xff]  }
 0x5a0   : > { %13342 = vst [vmem:[#allocation3 + $0x15c] sm:$0xf] %v19865_v36  ;;  %13056 = vst [vmem:[#allocation3 + $0x1c8] sm:$0xf] %v19866_v62  ;;  %v12978_v16 = vld [vmem:[#allocation2 + $0x127] sm:$0xff]  ;;  %v12979_v43 = vld [vmem:[#allocation2 + $0x13f] sm:$0xff] }
 0x5a1   : > { %13248 = vst [vmem:[#allocation3 + $0x1d0] sm:$0xf] %v19898_v0  ;;  %12961 = vst [vmem:[#allocation3 + $0x200] sm:$0xf] %v19898_v0  ;;  %v13170_v17 = vld [vmem:[#allocation2 + $0x129] sm:$0xff]  ;;  %15574 = vmatmul.mubr.bf16.vlgmr.msra.gmra.mxu0 %v22905_v3  ;;  %v22934_v8 = vld [vmem:[%s26158_s1 + $0xda0] sm:$0xff]   ;;  %v19868_v27 = vpack.c.bf16 %v12978_v16, %v12978_v16  ;;  %v19869_v42 = vpack.c.bf16 %v12979_v43, %v12979_v43 }
 0x5a2   : > { %13535 = vst [vmem:[#allocation3 + $0x1a0] sm:$0xf] %v19898_v0  ;;  %13343 = vst [vmem:[#allocation3 + $0x198] sm:$0xf] %v19866_v62  ;;  %v19900_v41 = vpack.c.bf16 %v13170_v17, %v13170_v17  ;;  %v12884_v59 = vld [vmem:[#allocation2 + $0x141] sm:$0xff]  ;;  %15581 = vmatprep.mubr.bf16.mxu0 %v22917_v40  ;;  %21606 = vmatpush3.bf16.msra.mxu1 %v22922_v23  ;;  %v22958_v7 = vld [vmem:[%s26158_s1 + $0xdf0] sm:$0xff]  }
 0x5a3   : > { %12962 = vst [vmem:[#allocation3 + $0x23c] sm:$0xf] %v19852_v57  ;;  %13057 = vst [vmem:[#allocation3 + $0x204] sm:$0xf] %v19867_v9  ;;  %v22910_v55 = vld [vmem:[#allocation3 + $0x88] ss:$60 sps:$4 sm:$0xff]   ;;  %v19854_v54 = vpack.c.bf16 %v12884_v59, %v12884_v59  ;;  %21607 = vmatprep.subr.bf16.mxu1 %v22926_v30  ;;  %21668 = vmatpush3.bf16.msra.mxu0 %v22951_v53 }
 0x5a4   : > { %13249 = vst [vmem:[#allocation3 + $0x20c] sm:$0xf] %v19852_v57  ;;  %13536 = vst [vmem:[#allocation3 + $0x1dc] sm:$0xf] %v19852_v57  ;;  %v12980_v6 = vld [vmem:[#allocation2 + $0x157] sm:$0xff]  ;;  %21669 = vmatprep.subr.bf16.mxu0 %v22953_v5  ;;  %v22959_v31 = vld [vmem:[%s26158_s1 + $0xe28] sm:$0xff]  }
 0x5a5   : > { %13344 = vst [vmem:[#allocation3 + $0x1d4] sm:$0xf] %v19867_v9  ;;  %13058 = vst [vmem:[#allocation3 + $0x240] sm:$0xf] %v19868_v27  ;;  %v19870_v37 = vpack.c.bf16 %v12980_v6, %v12980_v6  ;;  %v13172_v39 = vld [vmem:[#allocation2 + $0x159] sm:$0xff]  ;;  %15485 = vmatmul.mubr.bf16.gmra.mxu1 %v22910_v55  ;;  %v22963_v11 = vld [vmem:[%s26158_s1 + $0xde8] sm:$0xff]  }
 0x5a6   : > { %13250 = vst [vmem:[#allocation3 + $0x248] sm:$0xf] %v19900_v41  ;;  %12963 = vst [vmem:[#allocation3 + $0x278] sm:$0xf] %v19900_v41  ;;  %v22921_v52 = vld [vmem:[#allocation3 + $0x104] ss:$60 sps:$4 sm:$0xff]   ;;  %v19902_v28 = vpack.c.bf16 %v13172_v39, %v13172_v39  ;;  %21608 = vmatpush3.bf16.msra.mxu1 %v22930_v14 }
 0x5a7   : > { %13537 = vst [vmem:[#allocation3 + $0x218] sm:$0xf] %v19900_v41  ;;  %13345 = vst [vmem:[#allocation3 + $0x210] sm:$0xf] %v19868_v27  ;;  %v22938_v60 = vld [vmem:[%s26158_s1 + $0xd60] sm:$0xff]   ;;  %15492 = vmatprep.mubr.bf16.mxu1 %v22921_v52  ;;  %v22942_v32 = vld [vmem:[%s26158_s1 + $0xd98] sm:$0xff]   ;;  %21609 = vmatprep.subr.bf16.mxu1 %v22934_v8 }
 0x5a8   : > { %12964 = vst [vmem:[#allocation3 + $0x2b4] sm:$0xf] %v19854_v54  ;;  %13059 = vst [vmem:[#allocation3 + $0x27c] sm:$0xf] %v19869_v42  ;;  %v22915_v21 = vld [vmem:[#allocation3 + $0x90] ss:$60 sps:$4 sm:$0xff]   ;;  %21670 = vmatpush3.bf16.msra.mxu0 %v22958_v7 }
 0x5a9   : > { %13251 = vst [vmem:[#allocation3 + $0x284] sm:$0xf] %v19854_v54  ;;  %13538 = vst [vmem:[#allocation3 + $0x254] sm:$0xf] %v19854_v54  ;;  %v22925_v50 = vld [vmem:[#allocation3 + $0x10c] ss:$60 sps:$4 sm:$0xff]   ;;  %21671 = vmatprep.subr.bf16.mxu0 %v22959_v31  ;;  %15582 = vmatmul.mubr.bf16.gmra.mxu0 %v22915_v21 }
 0x5aa   : > { %13346 = vst [vmem:[#allocation3 + $0x24c] sm:$0xf] %v19869_v42  ;;  %13060 = vst [vmem:[#allocation3 + $0x2b8] sm:$0xf] %v19870_v37  ;;  %v22965_v34 = vld [vmem:[%s26158_s1 + $0xe20] sm:$0xff]   ;;  %v22946_v58 = vld [vmem:[%s26158_s1 + $0xd58] sm:$0xff]   ;;  %15589 = vmatprep.mubr.bf16.mxu0 %v22925_v50  ;;  %21610 = vmatpush3.bf16.msra.mxu1 %v22938_v60 }
 0x5ab   : > { %13347 = vst [vmem:[#allocation3 + $0x288] sm:$0xf] %v19870_v37  ;;  %13252 = vst [vmem:[#allocation3 + $0x2c0] sm:$0xf] %v19902_v28  ;;  %v22952_v13 = vld [vmem:[%s26158_s1 + $0xd90] sm:$0xff]   ;;  %v22970_v22 = vld [vmem:[%s26158_s1 + $0xde0] sm:$0xff]   ;;  %21611 = vmatprep.subr.bf16.mxu1 %v22942_v32 }
 0x5ac   : > { %12965 = vst [vmem:[#allocation3 + $0x2f0] sm:$0xf] %v19902_v28  ;;  %13539 = vst [vmem:[#allocation3 + $0x290] sm:$0xf] %v19902_v28  ;;  %v22919_v44 = vld [vmem:[#allocation3 + $0x100] ss:$60 sps:$4 sm:$0xff]   ;;  %21672 = vmatpush3.bf16.msra.mxu0 %v22963_v11 }
 0x5ad   : > { %v22971_v61 = vld [vmem:[%s26158_s1 + $0xe18] sm:$0xff]   ;;  %21673 = vmatprep.subr.bf16.mxu0 %v22965_v34  ;;  %15493 = vmatmul.mubr.bf16.gmra.mxu1 %v22919_v44  ;;  %v22957_v38 = vld [vmem:[%s26158_s1 + $0xd50] sm:$0xff]   ;;  %v22964_v1 = vld [vmem:[%s26158_s1 + $0xd88] sm:$0xff]  }
 0x5ae   : > { %v22929_v48 = vld [vmem:[#allocation3 + $0x17c] ss:$60 sps:$4 sm:$0xff]   ;;  %21612 = vmatpush3.bf16.msra.mxu1 %v22946_v58  ;;  %v22923_v2 = vld [vmem:[#allocation3 + $0x108] ss:$60 sps:$4 sm:$0xff]   ;;  %v12981_v49 = vld [vmem:[#allocation2 + $0x16f] sm:$0xff] }
 0x5af   : > { %15500 = vmatprep.mubr.bf16.mxu1 %v22929_v48  ;;  %v22975_v45 = vld [vmem:[%s26158_s1 + $0xdd8] sm:$0xff]   ;;  %21613 = vmatprep.subr.bf16.mxu1 %v22952_v13  ;;  %v12982_v20 = vld [vmem:[#allocation2 + $0x187] sm:$0xff]  ;;  %v22977_v18 = vld [vmem:[%s26158_s1 + $0xe10] sm:$0xff]   ;;  %v19871_v33 = vpack.c.bf16 %v12981_v49, %v12981_v49 }
 0x5b0   : > { %v12886_v26 = vld [vmem:[#allocation2 + $0x171] sm:$0xff]  ;;  %21674 = vmatpush3.bf16.msra.mxu0 %v22970_v22  ;;  %v22933_v35 = vld [vmem:[#allocation3 + $0x184] ss:$60 sps:$4 sm:$0xff]   ;;  %v19872_v29 = vpack.c.bf16 %v12982_v20, %v12982_v20  ;;  %v22969_v23 = vld [vmem:[%s26158_s1 + $0xd48] sm:$0xff]  }
 0x5b1   : > { %v19856_v15 = vpack.c.bf16 %v12886_v26, %v12886_v26  ;;  %21675 = vmatprep.subr.bf16.mxu0 %v22971_v61  ;;  %15590 = vmatmul.mubr.bf16.gmra.mxu0 %v22923_v2  ;;  %v12888_v25 = vld [vmem:[#allocation2 + $0x1a1] sm:$0xff]  ;;  %13061 = vst [vmem:[#allocation3 + $0x2f4] sm:$0xf] %v19871_v33  ;;  %13348 = vst [vmem:[#allocation3 + $0x2c4] sm:$0xf] %v19871_v33  ;;  %v22982_v19 = vld [vmem:[%s26158_s1 + $0xdd0] sm:$0xff]  }
 0x5b2   : > { %15597 = vmatprep.mubr.bf16.mxu0 %v22933_v35  ;;  %21614 = vmatpush3.bf16.msra.mxu1 %v22957_v38  ;;  %v22976_v46 = vld [vmem:[%s26158_s1 + $0xd80] sm:$0xff]   ;;  %13062 = vst [vmem:[#allocation3 + $0x330] sm:$0xf] %v19872_v29  ;;  %v19858_v12 = vpack.c.bf16 %v12888_v25, %v12888_v25  ;;  %13349 = vst [vmem:[#allocation3 + $0x300] sm:$0xf] %v19872_v29  ;;  %v13353_v47 = vld [vmem:[#allocation2 + $0x68] sm:$0xff] }
 0x5b3   : > { %12966 = vst [vmem:[#allocation3 + $0x32c] sm:$0xf] %v19856_v15  ;;  %13253 = vst [vmem:[#allocation3 + $0x2fc] sm:$0xf] %v19856_v15  ;;  %v22927_v30 = vld [vmem:[#allocation3 + $0x178] ss:$60 sps:$4 sm:$0xff]   ;;  %21615 = vmatprep.subr.bf16.mxu1 %v22964_v1  ;;  %v19923_v0 = vpack.c.bf16 %v13353_v47, %v13353_v47 }
 0x5b4   : > { %13540 = vst [vmem:[#allocation3 + $0x2cc] sm:$0xf] %v19856_v15  ;;  %21676 = vmatpush3.bf16.msra.mxu0 %v22975_v45  ;;  %v22937_v36 = vld [vmem:[#allocation3 + $0x1f4] ss:$60 sps:$4 sm:$0xff]   ;;  %v22978_v4 = vld [vmem:[%s26158_s1 + $0xd40] sm:$0xff]   ;;  %v22983_v53 = vld [vmem:[%s26158_s1 + $0xe08] sm:$0xff]  }
 0x5b5   : > { %21677 = vmatprep.subr.bf16.mxu0 %v22977_v18  ;;  %12968 = vst [vmem:[#allocation3 + $0x3a4] sm:$0xf] %v19858_v12  ;;  %13255 = vst [vmem:[#allocation3 + $0x374] sm:$0xf] %v19858_v12  ;;  %v13354_v62 = vld [vmem:[#allocation2 + $0x80] sm:$0xff]  ;;  %15501 = vmatmul.mubr.bf16.gmra.mxu1 %v22927_v30  ;;  %v22984_v24 = vld [vmem:[%s26158_s1 + $0xdc8] sm:$0xff]  }
 0x5b6   : > { %13542 = vst [vmem:[#allocation3 + $0x344] sm:$0xf] %v19858_v12  ;;  %v19924_v10 = vpack.c.bf16 %v13354_v62, %v13354_v62  ;;  %15508 = vmatprep.mubr.bf16.mxu1 %v22937_v36  ;;  %21616 = vmatpush3.bf16.msra.mxu1 %v22969_v23  ;;  %v22989_v3 = vld [vmem:[%s26158_s1 + $0xeb8] sm:$0xff]   ;;  %13433 = vst [vmem:[#allocation3 + $0x34] sm:$0xf] %v19923_v0  ;;  %v13356_v57 = vld [vmem:[#allocation2 + $0xb0] sm:$0xff] }
 0x5b7   : > { %v13355_v5 = vld [vmem:[#allocation2 + $0x98] sm:$0xff]  ;;  %21617 = vmatprep.subr.bf16.mxu1 %v22976_v46  ;;  %v19926_v14 = vpack.c.bf16 %v13356_v57, %v13356_v57  ;;  %v22988_v17 = vld [vmem:[%s26158_s1 + $0xe00] sm:$0xff]   ;;  %v22935_v8 = vld [vmem:[#allocation3 + $0x1f0] ss:$60 sps:$4 sm:$0xff]  }
 0x5b8   : > { %v22931_v9 = vld [vmem:[#allocation3 + $0x180] ss:$60 sps:$4 sm:$0xff]   ;;  %21678 = vmatpush3.bf16.msra.mxu0 %v22982_v19  ;;  %13434 = vst [vmem:[#allocation3 + $0x70] sm:$0xf] %v19924_v10  ;;  %v19925_v40 = vpack.c.bf16 %v13355_v5, %v13355_v5  ;;  %v22945_v41 = vld [vmem:[#allocation3 + $0x26c] ss:$60 sps:$4 sm:$0xff]  }
 0x5b9   : > { %v22941_v16 = vld [vmem:[#allocation3 + $0x1fc] ss:$60 sps:$4 sm:$0xff]   ;;  %21679 = vmatprep.subr.bf16.mxu0 %v22983_v53  ;;  %15598 = vmatmul.mubr.bf16.gmra.mxu0 %v22931_v9  ;;  %13436 = vst [vmem:[#allocation3 + $0xe8] sm:$0xf] %v19926_v14  ;;  %v22993_v27 = vld [vmem:[%s26158_s1 + $0xdc0] sm:$0xff]   ;;  %v13357_v43 = vld [vmem:[#allocation2 + $0xc8] sm:$0xff] }
 0x5ba   : > { %13435 = vst [vmem:[#allocation3 + $0xac] sm:$0xf] %v19925_v40  ;;  %15605 = vmatprep.mubr.bf16.mxu0 %v22941_v16  ;;  %21618 = vmatpush3.bf16.msra.mxu1 %v22978_v4  ;;  %v25716_v59 = vld [vmem:[%s26158_s1 + $0xef8] sm:$0xff]   ;;  %v19927_v7 = vpack.c.bf16 %v13357_v43, %v13357_v43  ;;  %v13358_v54 = vld [vmem:[#allocation2 + $0xe0] sm:$0xff]  ;;  %v22950_v6 = vld [vmem:[#allocation3 + $0x274] ss:$60 sps:$4 sm:$0xff]  }
 0x5bb   : > { %21731 = vmatprep.subr.bf16.mxu1 %v22989_v3  ;;  %v22939_v55 = vld [vmem:[#allocation3 + $0x1f8] ss:$60 sps:$4 sm:$0xff]   ;;  %v19928_v42 = vpack.c.bf16 %v13358_v54, %v13358_v54  ;;  %v22943_v37 = vld [vmem:[#allocation3 + $0x268] ss:$60 sps:$4 sm:$0xff]   ;;  %v22948_v61 = vld [vmem:[#allocation3 + $0x270] ss:$60 sps:$4 sm:$0xff]  }
 0x5bc   : > { %21680 = vmatpush3.bf16.msra.mxu0 %v22984_v24  ;;  %13437 = vst [vmem:[#allocation3 + $0x124] sm:$0xf] %v19927_v7  ;;  %v13359_v39 = vld [vmem:[#allocation2 + $0xf8] sm:$0xff]  ;;  %v13360_v52 = vld [vmem:[#allocation2 + $0x110] sm:$0xff]  ;;  %v22956_v28 = vld [vmem:[#allocation3 + $0x2e4] ss:$60 sps:$4 sm:$0xff]  }
 0x5bd   : > { %21681 = vmatprep.subr.bf16.mxu0 %v22988_v17  ;;  %15509 = vmatmul.mubr.bf16.gmra.mxu1 %v22935_v8  ;;  %13438 = vst [vmem:[#allocation3 + $0x160] sm:$0xf] %v19928_v42  ;;  %v19929_v31 = vpack.c.bf16 %v13359_v39, %v13359_v39  ;;  %v19930_v63 = vpack.c.bf16 %v13360_v52, %v13360_v52  ;;  %v13461_v60 = vld [vmem:[#allocation2 + $0x189] sm:$0xff]  ;;  %v13362_v21 = vld [vmem:[#allocation2 + $0x140] sm:$0xff]  ;;  %v13363_v11 = vld [vmem:[#allocation2 + $0x158] sm:$0xff] }
 0x5be   : > { %15516 = vmatprep.mubr.bf16.mxu1 %v22945_v41  ;;  %v19951_v32 = vpack.c.bf16 %v13461_v60, %v13461_v60  ;;  %v13361_v56 = vld [vmem:[#allocation2 + $0x128] sm:$0xff]  ;;  %v19932_v34 = vpack.c.bf16 %v13362_v21, %v13362_v21  ;;  %v13364_v58 = vld [vmem:[#allocation2 + $0x170] sm:$0xff]  ;;  %v19933_v13 = vpack.c.bf16 %v13363_v11, %v13363_v11  ;;  %v13270_v22 = vld [vmem:[#allocation2 + $0x19f] sm:$0xff] }
 0x5bf   : > { %13439 = vst [vmem:[#allocation3 + $0x19c] sm:$0xf] %v19929_v31  ;;  %13440 = vst [vmem:[#allocation3 + $0x1d8] sm:$0xf] %v19930_v63  ;;  %v19931_v50 = vpack.c.bf16 %v13361_v56, %v13361_v56  ;;  %v13365_v44 = vld [vmem:[#allocation2 + $0x188] sm:$0xff]  ;;  %v19934_v48 = vpack.c.bf16 %v13364_v58, %v13364_v58  ;;  %v19920_v38 = vpack.c.bf16 %v13270_v22, %v13270_v22  ;;  %v13366_v1 = vld [vmem:[#allocation2 + $0x1a0] sm:$0xff] }
 0x5c0   : > { %21682 = vmatpush3.bf16.msra.mxu0 %v22993_v27  ;;  %13541 = vst [vmem:[#allocation3 + $0x308] sm:$0xf] %v19951_v32  ;;  %v19935_v45 = vpack.c.bf16 %v13365_v44, %v13365_v44  ;;  %v22962_v26 = vld [vmem:[#allocation3 + $0x2ec] ss:$60 sps:$4 sm:$0xff]   ;;  %13442 = vst [vmem:[#allocation3 + $0x250] sm:$0xf] %v19932_v34  ;;  %v19936_v2 = vpack.c.bf16 %v13366_v1, %v13366_v1 }
 0x5c1   : > { %21907 = vmatprep.subr.bf16.mxu0 %v25716_v59  ;;  %15606 = vmatmul.mubr.bf16.gmra.mxu0 %v22939_v55  ;;  %13441 = vst [vmem:[#allocation3 + $0x214] sm:$0xf] %v19931_v50  ;;  %13443 = vst [vmem:[#allocation3 + $0x28c] sm:$0xf] %v19933_v13  ;;  %v22954_v15 = vld [vmem:[#allocation3 + $0x2e0] ss:$60 sps:$4 sm:$0xff]  }
 0x5c2   : > { %15613 = vmatprep.mubr.bf16.mxu0 %v22950_v6  ;;  %13444 = vst [vmem:[#allocation3 + $0x2c8] sm:$0xf] %v19934_v48  ;;  %13350 = vst [vmem:[#allocation3 + $0x33c] sm:$0xf] %v19920_v38  ;;  %v22968_v49 = vld [vmem:[#allocation3 + $0x35c] ss:$60 sps:$4 sm:$0xff]  }
 0x5c3   : > { %13445 = vst [vmem:[#allocation3 + $0x304] sm:$0xf] %v19935_v45  ;;  %13446 = vst [vmem:[#allocation3 + $0x340] sm:$0xf] %v19936_v2  ;;  %v22960_v20 = vld [vmem:[#allocation3 + $0x2e8] ss:$60 sps:$4 sm:$0xff]  }
 0x5c4   : > { %v22974_v35 = vld [vmem:[#allocation3 + $0x364] ss:$60 sps:$4 sm:$0xff]   ;;  %v22966_v18 = vld [vmem:[#allocation3 + $0x358] ss:$60 sps:$4 sm:$0xff]   ;;  %v22987_v25 = vld [vmem:[#allocation3 + $0x2c] ss:$60 sps:$4 sm:$0xff]  }
 0x5c5   : > { %15517 = vmatmul.mubr.bf16.gmra.mxu1 %v22943_v37  ;;  %v22981_v33 = vld [vmem:[#allocation3 + $0x24] ss:$60 sps:$4 sm:$0xff]   ;;  %v22994_v23 = vld [vmem:[%s26158_s1 + $0xe78] sm:$0xff]   ;;  %v22998_v12 = vld [vmem:[%s26158_s1 + $0xeb0] sm:$0xff]  }
 0x5c6   : > { %15524 = vmatprep.mubr.bf16.mxu1 %v22956_v28  ;;  %v22972_v29 = vld [vmem:[#allocation3 + $0x360] ss:$60 sps:$4 sm:$0xff]   ;;  %v23002_v19 = vld [vmem:[%s26158_s1 + $0xe70] sm:$0xff]   ;;  %v22985_v47 = vld [vmem:[#allocation3 + $0x28] ss:$60 sps:$4 sm:$0xff]  }
 0x5c7   : > { %v22979_v46 = vld [vmem:[#allocation3 + $0x20] ss:$60 sps:$4 sm:$0xff]   ;;  %v23006_v36 = vld [vmem:[%s26158_s1 + $0xea8] sm:$0xff]   ;;  %v23032_v53 = vld [vmem:[%s26158_s1 + $0xef0] sm:$0xff]  }
 0x5c8   : > { %v22992_v30 = vld [vmem:[#allocation3 + $0x9c] ss:$60 sps:$4 sm:$0xff]   ;;  %v22997_v4 = vld [vmem:[#allocation3 + $0xa4] ss:$60 sps:$4 sm:$0xff]   ;;  %v23010_v62 = vld [vmem:[%s26158_s1 + $0xe68] sm:$0xff]  }
 0x5c9   : > { %15614 = vmatmul.mubr.bf16.gmra.mxu0 %v22948_v61  ;;  %v22990_v0 = vld [vmem:[#allocation3 + $0x98] ss:$60 sps:$4 sm:$0xff]   ;;  %v23014_v24 = vld [vmem:[%s26158_s1 + $0xea0] sm:$0xff]   ;;  %v23037_v3 = vld [vmem:[%s26158_s1 + $0xee8] sm:$0xff]  }
 0x5ca   : > { %15621 = vmatprep.mubr.bf16.mxu0 %v22962_v26  ;;  %v23001_v10 = vld [vmem:[#allocation3 + $0x114] ss:$60 sps:$4 sm:$0xff]   ;;  %v23018_v5 = vld [vmem:[%s26158_s1 + $0xe60] sm:$0xff]   ;;  %v23022_v9 = vld [vmem:[%s26158_s1 + $0xe98] sm:$0xff]  }
 0x5cb   : > { %v22995_v57 = vld [vmem:[#allocation3 + $0xa0] ss:$60 sps:$4 sm:$0xff]   ;;  %v22999_v17 = vld [vmem:[#allocation3 + $0x110] ss:$60 sps:$4 sm:$0xff]   ;;  %v23003_v43 = vld [vmem:[#allocation3 + $0x118] ss:$60 sps:$4 sm:$0xff]  }
 0x5cc   : > { %v23005_v40 = vld [vmem:[#allocation3 + $0x11c] ss:$60 sps:$4 sm:$0xff]   ;;  %v23042_v14 = vld [vmem:[%s26158_s1 + $0xee0] sm:$0xff]   ;;  %v23031_v8 = vld [vmem:[%s26158_s1 + $0xe90] sm:$0xff]  }
 0x5cd   : > { %15525 = vmatmul.mubr.bf16.gmra.mxu1 %v22954_v15  ;;  %v23026_v16 = vld [vmem:[%s26158_s1 + $0xe58] sm:$0xff]   ;;  %v23009_v27 = vld [vmem:[#allocation3 + $0x18c] ss:$60 sps:$4 sm:$0xff]   ;;  %v23013_v7 = vld [vmem:[#allocation3 + $0x194] ss:$60 sps:$4 sm:$0xff]  }
 0x5ce   : > { %15532 = vmatprep.mubr.bf16.mxu1 %v22968_v49  ;;  %v23047_v41 = vld [vmem:[%s26158_s1 + $0xed8] sm:$0xff]   ;;  %v23041_v55 = vld [vmem:[%s26158_s1 + $0xe88] sm:$0xff]   ;;  %v23052_v54 = vld [vmem:[%s26158_s1 + $0xed0] sm:$0xff]   ;;  %v21366_v49 = vpop.f32.mrf.mxu1 }
 0x5cf   : > { %v23046_v6 = vld [vmem:[%s26158_s1 + $0xe48] sm:$0xff]   ;;  %v23051_v37 = vld [vmem:[%s26158_s1 + $0xe80] sm:$0xff]   ;;  %v23025_v56 = vld [vmem:[#allocation3 + $0x27c] ss:$60 sps:$4 sm:$0xff]  }
 0x5d0   : > { %v23007_v42 = vld [vmem:[#allocation3 + $0x188] ss:$60 sps:$4 sm:$0xff]   ;;  %v23011_v28 = vld [vmem:[#allocation3 + $0x190] ss:$60 sps:$4 sm:$0xff]   ;;  %v23015_v32 = vld [vmem:[#allocation3 + $0x200] ss:$60 sps:$4 sm:$0xff]  }
 0x5d1   : > { %15622 = vmatmul.mubr.bf16.gmra.mxu0 %v22960_v20  ;;  %v23017_v39 = vld [vmem:[#allocation3 + $0x204] ss:$60 sps:$4 sm:$0xff]   ;;  %v23057_v52 = vld [vmem:[%s26158_s1 + $0xec8] sm:$0xff]   ;;  %v23023_v50 = vld [vmem:[#allocation3 + $0x278] ss:$60 sps:$4 sm:$0xff]  }
 0x5d2   : > { %15629 = vmatprep.mubr.bf16.mxu0 %v22974_v35  ;;  %v23053_v31 = vld [vmem:[%s26158_s1 + $0xe40] sm:$0xff]   ;;  %v23021_v63 = vld [vmem:[#allocation3 + $0x20c] ss:$60 sps:$4 sm:$0xff]   ;;  %v23035_v34 = vld [vmem:[#allocation3 + $0x2f4] ss:$60 sps:$4 sm:$0xff]  }
 0x5d3   : > { %v23059_v60 = vld [vmem:[%s26158_s1 + $0xec0] sm:$0xff]   ;;  %v23040_v13 = vld [vmem:[#allocation3 + $0x2fc] ss:$60 sps:$4 sm:$0xff]   ;;  %v23033_v22 = vld [vmem:[#allocation3 + $0x2f0] ss:$60 sps:$4 sm:$0xff]  }
 0x5d4   : > { %v23019_v21 = vld [vmem:[#allocation3 + $0x208] ss:$60 sps:$4 sm:$0xff]   ;;  %v23028_v58 = vld [vmem:[#allocation3 + $0x280] ss:$60 sps:$4 sm:$0xff]   ;;  %v23038_v61 = vld [vmem:[#allocation3 + $0x2f8] ss:$60 sps:$4 sm:$0xff]  }
 0x5d5   : > { %15533 = vmatmul.mubr.bf16.gmra.mxu1 %v22966_v18  ;;  %v23030_v11 = vld [vmem:[#allocation3 + $0x284] ss:$60 sps:$4 sm:$0xff]   ;;  %v23045_v44 = vld [vmem:[#allocation3 + $0x36c] ss:$60 sps:$4 sm:$0xff]   ;;  %v23050_v48 = vld [vmem:[#allocation3 + $0x374] ss:$60 sps:$4 sm:$0xff]  }
 0x5d6   : > { %15670 = vmatprep.mubr.bf16.mxu1 %v22981_v33  ;;  %v23043_v38 = vld [vmem:[#allocation3 + $0x368] ss:$60 sps:$4 sm:$0xff]   ;;  %v23056_v1 = vld [vmem:[#allocation3 + $0x34] ss:$60 sps:$4 sm:$0xff]   ;;  %v25789_v18 = vld [vmem:[%s26159_s2 + $0x3] ss:$0 sm:$0xff]  ;;  %v21367_v33 = vpop.f32.mrf.mxu1 }
 0x5d7   : > { %v23048_v45 = vld [vmem:[#allocation3 + $0x370] ss:$60 sps:$4 sm:$0xff]   ;;  %v23058_v26 = vld [vmem:[#allocation3 + $0x38] ss:$60 sps:$4 sm:$0xff]   ;;  %v23064_v35 = vld [vmem:[#allocation3 + $0x128] ss:$60 sps:$4 sm:$0xff]  }
 0x5d8   : > { %v23054_v2 = vld [vmem:[#allocation3 + $0x30] ss:$60 sps:$4 sm:$0xff]  }
 0x5d9   : > { %15630 = vmatmul.mubr.bf16.gmra.mxu0 %v22972_v29  ;;  %v23062_v15 = vld [vmem:[#allocation3 + $0xac] ss:$60 sps:$4 sm:$0xff]  }
 0x5da   : > { %15767 = vmatprep.mubr.bf16.mxu0 %v22987_v25  ;;  %v23063_v20 = vld [vmem:[#allocation3 + $0xb0] ss:$60 sps:$4 sm:$0xff]   ;;  %v23060_v25 = vld [vmem:[#allocation3 + $0xa8] ss:$60 sps:$4 sm:$0xff]  }
 0x5dd   : > { %15671 = vmatmul.mubr.bf16.vlgmr.msra.gmra.mxu1 %v22979_v46  ;;  %v15285_v46 = vadd.f32 %v25657_v51, %v25789_v18 }
 0x5de   : > { %15678 = vmatprep.mubr.bf16.mxu1 %v22992_v30  ;;  %21732 = vmatpush3.bf16.msra.mxu1 %v22994_v23 }
 0x5df   : > { %21733 = vmatprep.subr.bf16.mxu1 %v22998_v12  ;;  %v21368_v12 = vadd.f32 %v21367_v33, %v21366_v49  ;;  %v23075_v49 = vld [vmem:[#allocation3 + $0x210] ss:$60 sps:$4 sm:$0xff]  }
 0x5e1   : > { %15768 = vmatmul.mubr.bf16.vlgmr.msra.gmra.mxu0 %v22985_v47 }
 0x5e2   : > { %15775 = vmatprep.mubr.bf16.mxu0 %v22997_v4  ;;  %21734 = vmatpush3.bf16.msra.mxu1 %v23002_v19  ;;  %v23067_v19 = vld [vmem:[#allocation3 + $0x124] ss:$60 sps:$4 sm:$0xff]  }
 0x5e3   : > { %21735 = vmatprep.subr.bf16.mxu1 %v23006_v36  ;;  %21908 = vmatpush3.bf16.msra.mxu0 %v25716_v59  ;;  %v23036_v59 = vld [vmem:[%s26158_s1 + $0xe50] sm:$0xff]  }
 0x5e4   : > { %21909 = vmatprep.subr.bf16.mxu0 %v23032_v53 }
 0x5e5   : > { %15679 = vmatmul.mubr.bf16.gmra.mxu1 %v22990_v0  ;;  %v23068_v0 = vld [vmem:[#allocation3 + $0x1a0] ss:$60 sps:$4 sm:$0xff]  }
 0x5e6   : > { %15686 = vmatprep.mubr.bf16.mxu1 %v23001_v10  ;;  %21736 = vmatpush3.bf16.msra.mxu1 %v23010_v62 }
 0x5e7   : > { %21737 = vmatprep.subr.bf16.mxu1 %v23014_v24  ;;  %21910 = vmatpush3.bf16.msra.mxu0 %v23032_v53  ;;  %v15288_v24 = vadd.f32 %v21368_v12, %v25789_v18 }
 0x5e8   : > { %21911 = vmatprep.subr.bf16.mxu0 %v23037_v3 }
 0x5e9   : > { %15776 = vmatmul.mubr.bf16.gmra.mxu0 %v22995_v57 }
 0x5ea   : > { %15783 = vmatprep.mubr.bf16.mxu0 %v23005_v40  ;;  %21738 = vmatpush3.bf16.msra.mxu1 %v23018_v5  ;;  %v23069_v5 = vld [vmem:[#allocation3 + $0x218] ss:$60 sps:$4 sm:$0xff]   ;;  %v23065_v40 = vld [vmem:[#allocation3 + $0x120] ss:$60 sps:$4 sm:$0xff]  }
 0x5eb   : > { %21739 = vmatprep.subr.bf16.mxu1 %v23022_v9  ;;  %21912 = vmatpush3.bf16.msra.mxu0 %v23037_v3 }
 0x5ec   : > { %21913 = vmatprep.subr.bf16.mxu0 %v23042_v14 }
 0x5ed   : > { %15687 = vmatmul.mubr.bf16.gmra.mxu1 %v22999_v17 }
 0x5ee   : > { %15694 = vmatprep.mubr.bf16.mxu1 %v23009_v27  ;;  %21740 = vmatpush3.bf16.msra.mxu1 %v23026_v16 }
 0x5ef   : > { %21741 = vmatprep.subr.bf16.mxu1 %v23031_v8  ;;  %21914 = vmatpush3.bf16.msra.mxu0 %v23042_v14 }
 0x5f0   : > { %21915 = vmatprep.subr.bf16.mxu0 %v23047_v41 }
 0x5f1   : > { %15784 = vmatmul.mubr.bf16.gmra.mxu0 %v23003_v43 }
 0x5f2   : > { %15791 = vmatprep.mubr.bf16.mxu0 %v23013_v7  ;;  %21742 = vmatpush3.bf16.msra.mxu1 %v23036_v59 }
 0x5f3   : > { %21743 = vmatprep.subr.bf16.mxu1 %v23041_v55  ;;  %21916 = vmatpush3.bf16.msra.mxu0 %v23047_v41  ;;  %v23072_v41 = vld [vmem:[#allocation3 + $0x19c] ss:$60 sps:$4 sm:$0xff]  }
 0x5f4   : > { %21917 = vmatprep.subr.bf16.mxu0 %v23052_v54 }
 0x5f5   : > { %15695 = vmatmul.mubr.bf16.gmra.mxu1 %v23007_v42 }
 0x5f6   : > { %15702 = vmatprep.mubr.bf16.mxu1 %v23017_v39  ;;  %21744 = vmatpush3.bf16.msra.mxu1 %v23046_v6  ;;  %v23073_v6 = vld [vmem:[#allocation3 + $0x290] ss:$60 sps:$4 sm:$0xff]  }
 0x5f7   : > { %21745 = vmatprep.subr.bf16.mxu1 %v23051_v37  ;;  %21918 = vmatpush3.bf16.msra.mxu0 %v23052_v54 }
 0x5f8   : > { %21919 = vmatprep.subr.bf16.mxu0 %v23057_v52 }
 0x5f9   : > { %15792 = vmatmul.mubr.bf16.gmra.mxu0 %v23011_v28 }
 0x5fa   : > { %15799 = vmatprep.mubr.bf16.mxu0 %v23021_v63  ;;  %21746 = vmatpush3.bf16.msra.mxu1 %v23053_v31 }
 0x5fb   : > { %21920 = vmatpush3.bf16.msra.mxu0 %v23057_v52  ;;  %v23074_v52 = vld [vmem:[#allocation3 + $0x308] ss:$60 sps:$4 sm:$0xff]  }
 0x5fc   : > { %21921 = vmatprep.subr.bf16.mxu0 %v23059_v60 }
 0x5fd   : > { %15703 = vmatmul.mubr.bf16.gmra.mxu1 %v23015_v32 }
 0x5fe   : > { %15710 = vmatprep.mubr.bf16.mxu1 %v23025_v56 }
 0x5ff   : > { %21922 = vmatpush3.bf16.msra.mxu0 %v23059_v60  ;;  %v23070_v60 = vld [vmem:[#allocation3 + $0x198] ss:$60 sps:$4 sm:$0xff]  }
 0x601   : > { %15800 = vmatmul.mubr.bf16.gmra.mxu0 %v23019_v21 }
 0x602   : > { %15807 = vmatprep.mubr.bf16.mxu0 %v23030_v11 }
 0x605   : > { %15711 = vmatmul.mubr.bf16.gmra.mxu1 %v23023_v50 }
 0x606   : > { %15718 = vmatprep.mubr.bf16.mxu1 %v23035_v34  ;;  %v23077_v34 = vld [vmem:[#allocation3 + $0x214] ss:$60 sps:$4 sm:$0xff]  }
 0x609   : > { %15808 = vmatmul.mubr.bf16.gmra.mxu0 %v23028_v58 }
 0x60a   : > { %15815 = vmatprep.mubr.bf16.mxu0 %v23040_v13 }
 0x60d   : > { %15719 = vmatmul.mubr.bf16.gmra.mxu1 %v23033_v22  ;;  %v23084_v22 = vld [vmem:[#allocation3 + $0x380] ss:$60 sps:$4 sm:$0xff]  }
 0x60e   : > { %15726 = vmatprep.mubr.bf16.mxu1 %v23045_v44 }
 0x610   : > { %v21427_v29 = vpop.f32.mrf.mxu0 }
 0x611   : > { %15816 = vmatmul.mubr.bf16.gmra.mxu0 %v23038_v61 }
 0x612   : > { %15823 = vmatprep.mubr.bf16.mxu0 %v23050_v48  ;;  %v21428_v23 = vpop.f32.mrf.mxu0 }
 0x613   : > { %v21429_v30 = vadd.f32 %v21428_v23, %v21427_v29  ;;  %v23080_v23 = vld [vmem:[#allocation3 + $0x28c] ss:$60 sps:$4 sm:$0xff]  }
 0x614   : > { %v21430_v36 = vpop.f32.mrf.mxu0 }
 0x615   : > { %15727 = vmatmul.mubr.bf16.gmra.mxu1 %v23043_v38  ;;  %v21369_v47 = vpop.f32.mrf.mxu1  ;;  %v25793_v4 = vadd.f32 %v21429_v30, %v15285_v46 }
 0x616   : > { %15864 = vmatprep.mubr.bf16.mxu1 %v23056_v1  ;;  %v21431_v62 = vpop.f32.mrf.mxu0 }
 0x617   : > { %v21370_v53 = vpop.f32.mrf.mxu1  ;;  %v21432_v3 = vadd.f32 %v21431_v62, %v21430_v36 }
 0x618   : > { %v21371_v10 = vadd.f32 %v21370_v53, %v21369_v47 }
 0x619   : > { %15824 = vmatmul.mubr.bf16.gmra.mxu0 %v23048_v45  ;;  %v21372_v57 = vpop.f32.mrf.mxu1  ;;  %v25796_v51 = vadd.f32 %v21432_v3, %v15288_v24  ;;  %v23078_v3 = vld [vmem:[#allocation3 + $0x288] ss:$60 sps:$4 sm:$0xff]  }
 0x61a   : > { %21923 = vmatprep.mubr.bf16.mxu0 %v23058_v26  ;;  %v15293_v17 = vadd.f32 %v21371_v10, %v25789_v18 }
 0x61b   : > { %v21433_v9 = vpop.f32.mrf.mxu0  ;;  %v21373_v14 = vpop.f32.mrf.mxu1 }
 0x61c   : > { %v21374_v8 = vadd.f32 %v21373_v14, %v21372_v57 }
 0x61d   : > { %15865 = vmatmul.mubr.bf16.vlgmr.msra.gmra.mxu1 %v23054_v2  ;;  %v21434_v16 = vpop.f32.mrf.mxu0 }
 0x61e   : > { %15872 = vmatprep.mubr.bf16.mxu1 %v23062_v15  ;;  %v21435_v27 = vadd.f32 %v21434_v16, %v21433_v9  ;;  %v15296_v42 = vadd.f32 %v21374_v8, %v25789_v18  ;;  %v23083_v16 = vld [vmem:[#allocation3 + $0x304] ss:$60 sps:$4 sm:$0xff]  }
 0x61f   : > { %v21436_v43 = vpop.f32.mrf.mxu0 }
 0x620   : > { %v25799_v55 = vadd.f32 %v21435_v27, %v15293_v17 }
 0x621   : > { %21924 = vmatmul.mubr.bf16.vlgmr.msra.gmra.mxu0 %v23063_v20  ;;  %v21375_v59 = vpop.f32.mrf.mxu1  ;;  %v21437_v54 = vpop.f32.mrf.mxu0 }
 0x622   : > { %21927 = vmatprep.mubr.bf16.mxu0 %v23064_v35  ;;  %v21438_v39 = vadd.f32 %v21437_v54, %v21436_v43 }
 0x623   : > { %v21376_v7 = vpop.f32.mrf.mxu1 }
 0x624   : > { %v21377_v37 = vadd.f32 %v21376_v7, %v21375_v59  ;;  %v25802_v63 = vadd.f32 %v21438_v39, %v15296_v42  ;;  %v23087_v39 = vld [vmem:[#allocation3 + $0x37c] ss:$60 sps:$4 sm:$0xff]  }
 0x625   : > { %15873 = vmatmul.mubr.bf16.gmra.mxu1 %v23060_v25  ;;  %v21378_v31 = vpop.f32.mrf.mxu1 }
 0x626   : > { %15880 = vmatprep.mubr.bf16.mxu1 %v23067_v19  ;;  %v15301_v21 = vadd.f32 %v21377_v37, %v25789_v18 }
 0x627   : > { %v21379_v32 = vpop.f32.mrf.mxu1 }
 0x628   : > { %v21439_v28 = vpop.f32.mrf.mxu0  ;;  %v21380_v11 = vadd.f32 %v21379_v32, %v21378_v31 }
 0x629   : > { %21928 = vmatmul.mubr.bf16.gmra.mxu0 %v23068_v0 }
 0x62a   : > { %21931 = vmatprep.mubr.bf16.mxu0 %v23069_v5  ;;  %v21440_v56 = vpop.f32.mrf.mxu0  ;;  %v15304_v38 = vadd.f32 %v21380_v11, %v25789_v18 }
 0x62b   : > { %v21441_v50 = vadd.f32 %v21440_v56, %v21439_v28 }
 0x62c   : > { %v21442_v13 = vpop.f32.mrf.mxu0 }
 0x62d   : > { %15881 = vmatmul.mubr.bf16.gmra.mxu1 %v23065_v40  ;;  %v21381_v58 = vpop.f32.mrf.mxu1  ;;  %v25805_v44 = vadd.f32 %v21441_v50, %v15301_v21 }
 0x62e   : > { %15888 = vmatprep.mubr.bf16.mxu1 %v23072_v41  ;;  %v21443_v48 = vpop.f32.mrf.mxu0 }
 0x62f   : > { %v21382_v61 = vpop.f32.mrf.mxu1  ;;  %v21444_v45 = vadd.f32 %v21443_v48, %v21442_v13 }
 0x630   : > { %v21383_v1 = vadd.f32 %v21382_v61, %v21381_v58 }
 0x631   : > { %21932 = vmatmul.mubr.bf16.gmra.mxu0 %v23073_v6  ;;  %v21384_v26 = vpop.f32.mrf.mxu1  ;;  %v25808_v15 = vadd.f32 %v21444_v45, %v15304_v38 }
 0x632   : > { %21935 = vmatprep.mubr.bf16.mxu0 %v23074_v52  ;;  %v15309_v33 = vadd.f32 %v21383_v1, %v25789_v18  ;;  %v23081_v52 = vld [vmem:[#allocation3 + $0x300] ss:$60 sps:$4 sm:$0xff]   ;;  %v23085_v1 = vld [vmem:[#allocation3 + $0x378] ss:$60 sps:$4 sm:$0xff]  }
 0x633   : > { %v21445_v2 = vpop.f32.mrf.mxu0  ;;  %v21385_v20 = vpop.f32.mrf.mxu1 }
 0x634   : > { %v21386_v29 = vadd.f32 %v21385_v20, %v21384_v26 }
 0x635   : > { %15889 = vmatmul.mubr.bf16.gmra.mxu1 %v23070_v60  ;;  %v21446_v35 = vpop.f32.mrf.mxu0 }
 0x636   : > { %15896 = vmatprep.mubr.bf16.mxu1 %v23077_v34  ;;  %v21447_v25 = vadd.f32 %v21446_v35, %v21445_v2  ;;  %v15312_v36 = vadd.f32 %v21386_v29, %v25789_v18 }
 0x637   : > { %v21448_v12 = vpop.f32.mrf.mxu0 }
 0x638   : > { %v21387_v46 = vpop.f32.mrf.mxu1  ;;  %v25811_v30 = vadd.f32 %v21447_v25, %v15309_v33 }
 0x639   : > { %21936 = vmatmul.mubr.bf16.gmra.mxu0 %v23084_v22  ;;  %v21449_v47 = vpop.f32.mrf.mxu0 }
 0x63a   : > { %v21388_v19 = vpop.f32.mrf.mxu1  ;;  %v21450_v62 = vadd.f32 %v21449_v47, %v21448_v12 }
 0x63b   : > { %v21389_v53 = vadd.f32 %v21388_v19, %v21387_v46 }
 0x63c   : > { %v21390_v0 = vpop.f32.mrf.mxu1  ;;  %v25814_v10 = vadd.f32 %v21450_v62, %v15312_v36 }
 0x63d   : > { %15897 = vmatmul.mubr.bf16.gmra.mxu1 %v23075_v49  ;;  %v15317_v9 = vadd.f32 %v21389_v53, %v25789_v18 }
 0x63e   : > { %15904 = vmatprep.mubr.bf16.mxu1 %v23080_v23  ;;  %v21391_v5 = vpop.f32.mrf.mxu1 }
 0x63f   : > { %v21451_v24 = vpop.f32.mrf.mxu0  ;;  %v21392_v40 = vadd.f32 %v21391_v5, %v21390_v0 }
 0x641   : > { %v21452_v57 = vpop.f32.mrf.mxu0  ;;  %v15320_v43 = vadd.f32 %v21392_v40, %v25789_v18 }
 0x642   : > { %v21453_v14 = vadd.f32 %v21452_v57, %v21451_v24 }
 0x643   : > { %v21393_v17 = vpop.f32.mrf.mxu1  ;;  %v21454_v8 = vpop.f32.mrf.mxu0 }
 0x644   : > { %v25817_v27 = vadd.f32 %v21453_v14, %v15317_v9 }
 0x645   : > { %15905 = vmatmul.mubr.bf16.gmra.mxu1 %v23078_v3  ;;  %v21394_v41 = vpop.f32.mrf.mxu1  ;;  %v21455_v59 = vpop.f32.mrf.mxu0 }
 0x646   : > { %15912 = vmatprep.mubr.bf16.mxu1 %v23083_v16  ;;  %v21395_v7 = vadd.f32 %v21394_v41, %v21393_v17  ;;  %v21456_v54 = vadd.f32 %v21455_v59, %v21454_v8 }
 0x647   : > { %v21396_v6 = vpop.f32.mrf.mxu1  ;;  %v21457_v42 = vpop.f32.mrf.mxu0 }
 0x648   : > { %v25820_v37 = vadd.f32 %v21456_v54, %v15320_v43  ;;  %v15325_v60 = vadd.f32 %v21395_v7, %v25789_v18 }
 0x649   : > { %v21397_v31 = vpop.f32.mrf.mxu1  ;;  %v21458_v28 = vpop.f32.mrf.mxu0 }
 0x64a   : > { %v21398_v32 = vadd.f32 %v21397_v31, %v21396_v6  ;;  %v21459_v56 = vadd.f32 %v21458_v28, %v21457_v42 }
 0x64b   : > { %v21399_v21 = vpop.f32.mrf.mxu1  ;;  %v21460_v11 = vpop.f32.mrf.mxu0 }
 0x64c   : > { %v25823_v50 = vadd.f32 %v21459_v56, %v15325_v60  ;;  %v15328_v13 = vadd.f32 %v21398_v32, %v25789_v18 }
 0x64d   : > { %15913 = vmatmul.mubr.bf16.gmra.mxu1 %v23081_v52  ;;  %v21400_v34 = vpop.f32.mrf.mxu1  ;;  %v21461_v58 = vpop.f32.mrf.mxu0 }
 0x64e   : > { %15920 = vmatprep.mubr.bf16.mxu1 %v23087_v39  ;;  %v21401_v22 = vadd.f32 %v21400_v34, %v21399_v21  ;;  %v21462_v61 = vadd.f32 %v21461_v58, %v21460_v11 }
 0x64f   : > { %v21402_v48 = vpop.f32.mrf.mxu1 }
 0x650   : > { %v25826_v45 = vadd.f32 %v21462_v61, %v15328_v13  ;;  %v15333_v49 = vadd.f32 %v21401_v22, %v25789_v18 }
 0x651   : > { %v21463_v38 = vpop.f32.mrf.mxu0  ;;  %v21403_v26 = vpop.f32.mrf.mxu1 }
 0x652   : > { %v21404_v20 = vadd.f32 %v21403_v26, %v21402_v48 }
 0x653   : > { %v21464_v2 = vpop.f32.mrf.mxu0 }
 0x654   : > { %v21465_v35 = vadd.f32 %v21464_v2, %v21463_v38  ;;  %v15336_v12 = vadd.f32 %v21404_v20, %v25789_v18 }
 0x655   : > { %v21405_v33 = vpop.f32.mrf.mxu1  ;;  %v21466_v29 = vpop.f32.mrf.mxu0  ;;  %15921 = vmatmul.mubr.bf16.gmra.mxu1 %v23085_v1 }
 0x656   : > { %v25829_v25 = vadd.f32 %v21465_v35, %v15333_v49 }
 0x657   : > { %v21406_v23 = vpop.f32.mrf.mxu1  ;;  %v21467_v46 = vpop.f32.mrf.mxu0 }
 0x658   : > { %v21407_v19 = vadd.f32 %v21406_v23, %v21405_v33  ;;  %v21468_v47 = vadd.f32 %v21467_v46, %v21466_v29 }
 0x659   : > { %v21408_v36 = vpop.f32.mrf.mxu1  ;;  %v21469_v53 = vpop.f32.mrf.mxu0 }
 0x65a   : > { %v25832_v62 = vadd.f32 %v21468_v47, %v15336_v12  ;;  %v15341_v3 = vadd.f32 %v21407_v19, %v25789_v18 }
 0x65b   : > { %v21409_v0 = vpop.f32.mrf.mxu1  ;;  %v21470_v24 = vpop.f32.mrf.mxu0 }
 0x65c   : > { %v21410_v5 = vadd.f32 %v21409_v0, %v21408_v36  ;;  %v21471_v57 = vadd.f32 %v21470_v24, %v21469_v53 }
 0x65d   : > { %v21472_v9 = vpop.f32.mrf.mxu0  ;;  %v21491_v40 = vpop.f32.mrf.mxu1 }
 0x65e   : > { %v25835_v14 = vadd.f32 %v21471_v57, %v15341_v3  ;;  %v15344_v8 = vadd.f32 %v21410_v5, %v25789_v18 }
 0x65f   : > { %v21473_v16 = vpop.f32.mrf.mxu0  ;;  %v21492_v17 = vpop.f32.mrf.mxu1 }
 0x660   : > { %v21474_v41 = vadd.f32 %v21473_v16, %v21472_v9  ;;  %v21493_v59 = vadd.f32 %v21492_v17, %v21491_v40 }
 0x661   : > { %v21494_v43 = vpop.f32.mrf.mxu1  ;;  %v21555_v7 = vpop.f32.mrf.mxu0 }
 0x662   : > { %v25838_v54 = vadd.f32 %v21474_v41, %v15344_v8  ;;  %v15479_v6 = vadd.f32 %v21493_v59, %v25793_v4 }
 0x663   : > { %v21495_v42 = vpop.f32.mrf.mxu1  ;;  %v21556_v39 = vpop.f32.mrf.mxu0 }
 0x664   : > { %v21496_v52 = vadd.f32 %v21495_v42, %v21494_v43  ;;  %v21557_v31 = vadd.f32 %v21556_v39, %v21555_v7 }
 0x665   : > { %v21497_v28 = vpop.f32.mrf.mxu1  ;;  %v21558_v60 = vpop.f32.mrf.mxu0 }
 0x666   : > { %v15482_v32 = vadd.f32 %v21496_v52, %v25796_v51  ;;  %v25842_v56 = vadd.f32 %v21557_v31, %v15479_v6 }
 0x667   : > { %v21498_v21 = vpop.f32.mrf.mxu1  ;;  %v21559_v18 = vpop.f32.mrf.mxu0 }
 0x668   : > { %v21499_v11 = vadd.f32 %v21498_v21, %v21497_v28  ;;  %v21560_v34 = vadd.f32 %v21559_v18, %v21558_v60 }
 0x669   : > { %v21500_v58 = vpop.f32.mrf.mxu1  ;;  %v21561_v13 = vpop.f32.mrf.mxu0 }
 0x66a   : > { %v15487_v22 = vadd.f32 %v21499_v11, %v25799_v55  ;;  %v25845_v61 = vadd.f32 %v21560_v34, %v15482_v32 }
 0x66b   : > { %v21501_v4 = vpop.f32.mrf.mxu1  ;;  %v21562_v48 = vpop.f32.mrf.mxu0 }
 0x66c   : > { %v21502_v38 = vadd.f32 %v21501_v4, %v21500_v58  ;;  %v21563_v1 = vadd.f32 %v21562_v48, %v21561_v13 }
 0x66d   : > { %v21503_v26 = vpop.f32.mrf.mxu1  ;;  %v21564_v2 = vpop.f32.mrf.mxu0 }
 0x66e   : > { %v15490_v51 = vadd.f32 %v21502_v38, %v25802_v63  ;;  %v25848_v49 = vadd.f32 %v21563_v1, %v15487_v22 }
 0x66f   : > { %v21504_v20 = vpop.f32.mrf.mxu1  ;;  %v21565_v35 = vpop.f32.mrf.mxu0 }
 0x670   : > { %v21505_v33 = vadd.f32 %v21504_v20, %v21503_v26  ;;  %v21566_v29 = vadd.f32 %v21565_v35, %v21564_v2 }
 0x671   : > { %v21506_v23 = vpop.f32.mrf.mxu1  ;;  %v21567_v46 = vpop.f32.mrf.mxu0 }
 0x672   : > { %v15495_v55 = vadd.f32 %v21505_v33, %v25805_v44  ;;  %v25851_v12 = vadd.f32 %v21566_v29, %v15490_v51 }
 0x673   : > { %v21507_v19 = vpop.f32.mrf.mxu1  ;;  %v21568_v47 = vpop.f32.mrf.mxu0 }
 0x674   : > { %v21508_v36 = vadd.f32 %v21507_v19, %v21506_v23  ;;  %v21569_v53 = vadd.f32 %v21568_v47, %v21567_v46 }
 0x675   : > { %v21509_v0 = vpop.f32.mrf.mxu1  ;;  %v21570_v24 = vpop.f32.mrf.mxu0 }
 0x676   : > { %v15498_v63 = vadd.f32 %v21508_v36, %v25808_v15  ;;  %v25854_v3 = vadd.f32 %v21569_v53, %v15495_v55 }
 0x677   : > { %v21510_v5 = vpop.f32.mrf.mxu1  ;;  %v21571_v57 = vpop.f32.mrf.mxu0 }
 0x678   : > { %v21511_v9 = vadd.f32 %v21510_v5, %v21509_v0  ;;  %v21572_v40 = vadd.f32 %v21571_v57, %v21570_v24 }
 0x679   : > { %v21512_v16 = vpop.f32.mrf.mxu1  ;;  %v21573_v17 = vpop.f32.mrf.mxu0 }
 0x67a   : > { %v15503_v44 = vadd.f32 %v21511_v9, %v25811_v30  ;;  %v25857_v8 = vadd.f32 %v21572_v40, %v15498_v63 }
 0x67b   : > { %v21513_v41 = vpop.f32.mrf.mxu1  ;;  %v21574_v59 = vpop.f32.mrf.mxu0 }
 0x67c   : > { %v21514_v43 = vadd.f32 %v21513_v41, %v21512_v16  ;;  %v21575_v7 = vadd.f32 %v21574_v59, %v21573_v17 }
 0x67d   : > { %v21515_v6 = vpop.f32.mrf.mxu1  ;;  %v21576_v42 = vpop.f32.mrf.mxu0 }
 0x67e   : > { %v15506_v15 = vadd.f32 %v21514_v43, %v25814_v10  ;;  %v25860_v39 = vadd.f32 %v21575_v7, %v15503_v44 }
 0x67f   : > { %v21516_v52 = vpop.f32.mrf.mxu1  ;;  %v21577_v31 = vpop.f32.mrf.mxu0 }
 0x680   : > { %v21517_v28 = vadd.f32 %v21516_v52, %v21515_v6  ;;  %v21578_v60 = vadd.f32 %v21577_v31, %v21576_v42 }
 0x681   : > { %v21518_v32 = vpop.f32.mrf.mxu1  ;;  %v21579_v21 = vpop.f32.mrf.mxu0 }
 0x682   : > { %v15511_v30 = vadd.f32 %v21517_v28, %v25817_v27  ;;  %v25863_v18 = vadd.f32 %v21578_v60, %v15506_v15 }
 0x683   : > { %v21519_v11 = vpop.f32.mrf.mxu1  ;;  %v21580_v34 = vpop.f32.mrf.mxu0 }
 0x684   : > { %v21520_v58 = vadd.f32 %v21519_v11, %v21518_v32  ;;  %v21581_v13 = vadd.f32 %v21580_v34, %v21579_v21 }
 0x685   : > { %v21521_v22 = vpop.f32.mrf.mxu1  ;;  %v21582_v4 = vpop.f32.mrf.mxu0 }
 0x686   : > { %v15514_v10 = vadd.f32 %v21520_v58, %v25820_v37  ;;  %v25866_v48 = vadd.f32 %v21581_v13, %v15511_v30 }
 0x687   : > { %v21522_v38 = vpop.f32.mrf.mxu1  ;;  %v21583_v1 = vpop.f32.mrf.mxu0 }
 0x688   : > { %v21523_v26 = vadd.f32 %v21522_v38, %v21521_v22  ;;  %v21584_v2 = vadd.f32 %v21583_v1, %v21582_v4 }
 0x689   : > { %v21524_v51 = vpop.f32.mrf.mxu1  ;;  %v21585_v20 = vpop.f32.mrf.mxu0 }
 0x68a   : > { %v15519_v27 = vadd.f32 %v21523_v26, %v25823_v50  ;;  %v25869_v35 = vadd.f32 %v21584_v2, %v15514_v10 }
 0x68b   : > { %v21525_v33 = vpop.f32.mrf.mxu1  ;;  %v21586_v29 = vpop.f32.mrf.mxu0 }
 0x68c   : > { %v21526_v23 = vadd.f32 %v21525_v33, %v21524_v51  ;;  %v21587_v46 = vadd.f32 %v21586_v29, %v21585_v20 }
 0x68d   : > { %v21527_v55 = vpop.f32.mrf.mxu1  ;;  %v21588_v19 = vpop.f32.mrf.mxu0 }
 0x68e   : > { %v15522_v37 = vadd.f32 %v21526_v23, %v25826_v45  ;;  %v25872_v47 = vadd.f32 %v21587_v46, %v15519_v27 }
 0x68f   : > { %v21528_v36 = vpop.f32.mrf.mxu1  ;;  %v21589_v53 = vpop.f32.mrf.mxu0 }
 0x690   : > { %26332 = vst [vmem:[#allocation31_spill] sm:$0xff] %v25872_v47  ;;  %v21529_v0 = vadd.f32 %v21528_v36, %v21527_v55  ;;  %v21590_v24 = vadd.f32 %v21589_v53, %v21588_v19 }
 0x691   : > { %v21530_v63 = vpop.f32.mrf.mxu1  ;;  %v21591_v5 = vpop.f32.mrf.mxu0 }
 0x692   : > { %v15527_v50 = vadd.f32 %v21529_v0, %v25829_v25  ;;  %v25875_v57 = vadd.f32 %v21590_v24, %v15522_v37 }
 0x693   : > { %v21531_v9 = vpop.f32.mrf.mxu1  ;;  %v21592_v40 = vpop.f32.mrf.mxu0 }
 0x694   : > { %26333 = vst [vmem:[#allocation33_spill] sm:$0xff] %v25875_v57  ;;  %v21532_v16 = vadd.f32 %v21531_v9, %v21530_v63  ;;  %v21593_v17 = vadd.f32 %v21592_v40, %v21591_v5 }
 0x695   : > { %v21533_v44 = vpop.f32.mrf.mxu1  ;;  %v21594_v41 = vpop.f32.mrf.mxu0 }
 0x696   : > { %v15530_v45 = vadd.f32 %v21532_v16, %v25832_v62  ;;  %v25878_v59 = vadd.f32 %v21593_v17, %v15527_v50 }
 0x697   : > { %v21534_v43 = vpop.f32.mrf.mxu1  ;;  %v21595_v7 = vpop.f32.mrf.mxu0 }
 0x698   : > { %26334 = vst [vmem:[#allocation34_spill] sm:$0xff] %v25878_v59  ;;  %v21535_v6 = vadd.f32 %v21534_v43, %v21533_v44  ;;  %v21596_v42 = vadd.f32 %v21595_v7, %v21594_v41 }
 0x699   : > { %v21536_v15 = vpop.f32.mrf.mxu1  ;;  %v21597_v52 = vpop.f32.mrf.mxu0 }
 0x69a   : > { %v15535_v25 = vadd.f32 %v21535_v6, %v25835_v14  ;;  %v25881_v31 = vadd.f32 %v21596_v42, %v15530_v45 }
 0x69b   : > { %v21537_v28 = vpop.f32.mrf.mxu1  ;;  %v21598_v60 = vpop.f32.mrf.mxu0 }
 0x69c   : > { %26335 = vst [vmem:[#allocation16_spill] sm:$0xff] %v25881_v31  ;;  %v21538_v32 = vadd.f32 %v21537_v28, %v21536_v15  ;;  %v21599_v21 = vadd.f32 %v21598_v60, %v21597_v52 }
 0x69d   : > { %v21600_v30 = vpop.f32.mrf.mxu0  ;;  %v25883_v11 = vpop.f32.mrf.mxu1 }
 0x69e   : > { %v15538_v62 = vadd.f32 %v21538_v32, %v25838_v54  ;;  %v25886_v34 = vadd.f32 %v21599_v21, %v15535_v25 }
 0x69f   : > { %v21601_v58 = vpop.f32.mrf.mxu0  ;;  %v21620_v13 = vpop.f32.mrf.mxu1 }
 0x6a0   : > { %26336 = vst [vmem:[#allocation22_spill] sm:$0xff] %v25886_v34  ;;  %v21602_v22 = vadd.f32 %v21601_v58, %v21600_v30 }
 0x6a1   : > { %v25888_v4 = vpop.f32.mrf.mxu1  ;;  %v21683_v10 = vpop.f32.mrf.mxu0 }
 0x6a2   : > { %v25890_v14 = vadd.f32 %v21602_v22, %v15538_v62 }
 0x6a3   : > { %v25892_v38 = vpop.f32.mrf.mxu1  ;;  %v21684_v1 = vpop.f32.mrf.mxu0 }
 0x6a4   : > { %26337 = vst [vmem:[#allocation12_spill] sm:$0xff] %v25890_v14 }
 0x6a5   : > { %v25894_v26 = vpop.f32.mrf.mxu1  ;;  %v25896_v2 = vpop.f32.mrf.mxu0 }
 0x6a7   : > { %v25898_v51 = vpop.f32.mrf.mxu1  ;;  %v21687_v54 = vpop.f32.mrf.mxu0 }
 0x6a9   : > { %v25900_v20 = vpop.f32.mrf.mxu1  ;;  %v25902_v27 = vpop.f32.mrf.mxu0 }
 0x6ab   : > { %v25904_v33 = vpop.f32.mrf.mxu1  ;;  %v25906_v29 = vpop.f32.mrf.mxu0 }
 0x6ad   : > { %v25908_v23 = vpop.f32.mrf.mxu1  ;;  %v25910_v46 = vpop.f32.mrf.mxu0 }
 0x6af   : > { %v25912_v55 = vpop.f32.mrf.mxu1  ;;  %v25914_v19 = vpop.f32.mrf.mxu0 }
 0x6b1   : > { %v25916_v37 = vpop.f32.mrf.mxu1  ;;  %v25918_v36 = vpop.f32.mrf.mxu0 }
 0x6b3   : > { %v25920_v53 = vpop.f32.mrf.mxu1  ;;  %v25922_v0 = vpop.f32.mrf.mxu0 }
 0x6b5   : > { %v25924_v24 = vpop.f32.mrf.mxu1  ;;  %v25926_v63 = vpop.f32.mrf.mxu0 }
 0x6b7   : > { %v25928_v5 = vpop.f32.mrf.mxu1  ;;  %v25930_v50 = vpop.f32.mrf.mxu0 }
 0x6b9   : > { %v25932_v9 = vpop.f32.mrf.mxu1  ;;  %v25934_v40 = vpop.f32.mrf.mxu0 }
 0x6bb   : > { %v25936_v16 = vpop.f32.mrf.mxu1  ;;  %v25938_v17 = vpop.f32.mrf.mxu0 }
 0x6bd   : > { %v25940_v44 = vpop.f32.mrf.mxu1  ;;  %v25942_v41 = vpop.f32.mrf.mxu0 }
 0x6bf   : > { %v25944_v45 = vpop.f32.mrf.mxu1  ;;  %v25946_v43 = vpop.f32.mrf.mxu0 }
 0x6c1   : > { %v25948_v7 = vpop.f32.mrf.mxu1  ;;  %v25950_v6 = vpop.f32.mrf.mxu0 }
 0x6c3   : > { %v25952_v42 = vpop.f32.mrf.mxu1  ;;  %v25954_v15 = vpop.f32.mrf.mxu0 }
 0x6c5   : > { %v25956_v52 = vpop.f32.mrf.mxu1  ;;  %v25958_v25 = vpop.f32.mrf.mxu0 }
 0x6c7   : > { %v25960_v28 = vpop.f32.mrf.mxu1  ;;  %v25962_v60 = vpop.f32.mrf.mxu0 }
 0x6c9   : > { %v25964_v32 = vpop.f32.mrf.mxu1  ;;  %v25966_v21 = vpop.f32.mrf.mxu0 }
 0x6ca   : > { %26338 = vst [vmem:[#allocation6_spill] sm:$0xff] %v25964_v32 }
 0x6cb   : > { %v25968_v30 = vpop.f32.mrf.mxu1  ;;  %v25970_v62 = vpop.f32.mrf.mxu0 }
 0x6cc   : > { %26339 = vst [vmem:[#allocation19_spill] sm:$0xff] %v25968_v30  ;;  %26340 = vst [vmem:[#allocation10_spill] sm:$0xff] %v25970_v62 }
 0x6cd   : > { %v25972_v58 = vpop.f32.mrf.mxu1  ;;  %v25974_v22 = vpop.f32.mrf.mxu0 }
 0x6ce   : > { %26341 = vst [vmem:[#allocation24_spill] sm:$0xff] %v25972_v58  ;;  %26342 = vst [vmem:[#allocation13_spill] sm:$0xff] %v25974_v22 }
 0x6cf   : > { %v25976_v14 = vpop.f32.mrf.mxu1  ;;  %v25978_v34 = vpop.f32.mrf.mxu0 }
 0x6d0   : > { %26343 = vst [vmem:[#allocation7_spill] sm:$0xff] %v25976_v14  ;;  %26344 = vst [vmem:[#allocation20_spill] sm:$0xff] %v25978_v34 }
 0x6d1   : > { %v25980_v31 = vpop.f32.mrf.mxu1  ;;  %v25982_v59 = vpop.f32.mrf.mxu0 }
 0x6d2   : > { %26345 = vst [vmem:[#allocation25_spill] sm:$0xff] %v25980_v31  ;;  %26346 = vst [vmem:[#allocation21_spill] sm:$0xff] %v25982_v59  ;;  %v21621_v31 = vadd.f32 %v21620_v13, %v25883_v11  ;;  %v21688_v11 = vadd.f32 %v21687_v54, %v25896_v2 }
 0x6d3   : > { %v25984_v57 = vpop.f32.mrf.mxu1  ;;  %v25986_v32 = vpop.f32.mrf.mxu0 }
 0x6d4   : > { %26347 = vst [vmem:[#allocation15_spill] sm:$0xff] %v25984_v57  ;;  %26348 = vst [vmem:[#allocation23_spill] sm:$0xff] %v25986_v32  ;;  %v21685_v57 = vadd.f32 %v21684_v1, %v21683_v10 }
 0x6d5   : > { %v25988_v47 = vpop.f32.mrf.mxu1  ;;  %v25990_v30 = vpop.f32.mrf.mxu0 }
 0x6d6   : > { %26349 = vst [vmem:[#allocation11_spill] sm:$0xff] %v25988_v47  ;;  %26350 = vst [vmem:[#allocation27_spill] sm:$0xff] %v25990_v30  ;;  %v15673_v30 = vadd.f32 %v21621_v31, %v25842_v56  ;;  %v21691_v56 = vadd.f32 %v25906_v29, %v25902_v27 }
 0x6d7   : > { %v25992_v62 = vpop.f32.mrf.mxu1  ;;  %v25994_v58 = vpop.f32.mrf.mxu0 }
 0x6d8   : > { %26351 = vst [vmem:[#allocation26_spill] sm:$0xff] %v25992_v62  ;;  %26352 = vst [vmem:[#allocation17_spill] sm:$0xff] %v25994_v58  ;;  %v21624_v62 = vadd.f32 %v25892_v38, %v25888_v4 }
 0x6d9   : > { %v25996_v22 = vpop.f32.mrf.mxu1  ;;  %v25998_v14 = vpop.f32.mrf.mxu0 }
 0x6da   : > { %26353 = vst [vmem:[#allocation8_spill] sm:$0xff] %v25996_v22  ;;  %26354 = vst [vmem:[#allocation28_spill] sm:$0xff] %v25998_v14  ;;  %v15770_v14 = vadd.f32 %v21685_v57, %v15673_v30 }
 0x6db   : > { %v26001_v34 = vpop.f32.mrf.mxu1  ;;  %v26003_v59 = vpop.f32.mrf.mxu0 }
 0x6dc   : > { %26355 = vst [vmem:[#allocation5_spill] sm:$0xff] %v26001_v34  ;;  %26356 = vst [vmem:[#allocation30_spill] sm:$0xff] %v26003_v59  ;;  %v21627_v34 = vadd.f32 %v25898_v51, %v25894_v26 }
 0x6dd   : > { %v26005_v32 = vpop.f32.mrf.mxu0  ;;  %v21747_v47 = vpop.f32.mrf.mxu1 }
 0x6de   : > { %26357 = vst [vmem:[#allocation18_spill] sm:$0xff] %v26005_v32  ;;  %v15676_v32 = vadd.f32 %v21624_v62, %v25845_v61  ;;  %v15681_v2 = vadd.f32 %v21627_v34, %v25848_v49  ;;  %v21630_v61 = vadd.f32 %v25904_v33, %v25900_v20  ;;  %v21694_v34 = vadd.f32 %v25914_v19, %v25910_v46  ;;  %v16043_v33 = vld [vmem:[%s26160_s3 + $0x8] sm:$0xff] }
 0x6df   : > { %v26010_v58 = vpop.f32.mrf.mxu0  ;;  %v21748_v22 = vpop.f32.mrf.mxu1  ;;  %v21633_v20 = vadd.f32 %v25912_v55, %v25908_v23  ;;  %v21697_v46 = vadd.f32 %v25922_v0, %v25918_v36 }
 0x6e0   : > { %26358 = vst [vmem:[#allocation9_spill] sm:$0xff] %v26010_v58  ;;  %v21749_v13 = vadd.f32 %v21748_v22, %v21747_v47  ;;  %v15773_v38 = vadd.f32 %v21688_v11, %v15676_v32  ;;  %v16042_v47 = vld [vmem:[%s26160_s3] sm:$0xff]  ;;  %v15778_v27 = vadd.f32 %v21691_v56, %v15681_v2 }
 0x6e1   : > { %v21750_v10 = vpop.f32.mrf.mxu1  ;;  %v21925_v1 = vpop.f32.mrf.mxu0  ;;  %v15689_v55 = vadd.f32 %v21633_v20, %v25854_v3 }
 0x6e2   : > { %v15867_v59 = vadd.f32 %v21749_v13, %v15770_v14 }
 0x6e3   : > { %v21751_v31 = vpop.f32.mrf.mxu1  ;;  %v15963_v4 = vpop.f32.mrf.mxu0  ;;  %v15786_v0 = vadd.f32 %v21697_v46, %v15689_v55  ;;  %v21645_v46 = vadd.f32 %v25944_v45, %v25940_v44 }
 0x6e4   : > { %v21752_v58 = vadd.f32 %v21751_v31, %v21750_v10  ;;  %v15964_v57 = vadd.f32 %v15963_v4, %v15867_v59  ;;  %v16044_v4 = vld [vmem:[%s26160_s3 + $0x10] sm:$0xff] }
 0x6e5   : > { %v21753_v26 = vpop.f32.mrf.mxu1  ;;  %v21926_v51 = vpop.f32.mrf.mxu0  ;;  %v15705_v45 = vadd.f32 %v21645_v46, %v25866_v48  ;;  %v26367_v46 = vld [vmem:[#allocation33_spill] sm:$0xff] }
 0x6e6   : > { %v16026_v14 = vmax.f32 %v15964_v57, 0.0  ;;  %v15870_v54 = vadd.f32 %v21752_v58, %v15773_v38  ;;  %v15684_v58 = vadd.f32 %v21630_v61, %v25851_v12  ;;  %v21636_v38 = vadd.f32 %v25920_v53, %v25916_v37 }
 0x6e7   : > { %v21754_v59 = vpop.f32.mrf.mxu1  ;;  %v15966_v49 = vpop.f32.mrf.mxu0 }
 0x6e8   : > { %v16058_v29 = vadd.f32 %v16042_v47, %v16026_v14  ;;  %v21755_v32 = vadd.f32 %v21754_v59, %v21753_v26  ;;  %v15967_v30 = vadd.f32 %v15966_v49, %v15870_v54  ;;  %v15781_v10 = vadd.f32 %v21694_v34, %v15684_v58  ;;  %v16045_v54 = vld [vmem:[%s26160_s3 + $0x18] sm:$0xff] }
 0x6e9   : > { %v21756_v62 = vpop.f32.mrf.mxu1  ;;  %v21929_v19 = vpop.f32.mrf.mxu0  ;;  %v21639_v14 = vadd.f32 %v25928_v5, %v25924_v24  ;;  %v15692_v53 = vadd.f32 %v21636_v38, %v25857_v8  ;;  %v21642_v8 = vadd.f32 %v25936_v16, %v25932_v9  ;;  %v21706_v58 = vadd.f32 %v25946_v43, %v25942_v41 }
 0x6ea   : > { %16074 = vst [vmem:[%s26028_s17] sm:$0xff] %v16058_v29  ;;  %v15875_v22 = vadd.f32 %v21755_v32, %v15778_v27  ;;  %v16027_v11 = vmax.f32 %v15967_v30, 0.0  ;;  %v16046_v32 = vld [vmem:[%s26160_s3 + $0x20] sm:$0xff]  ;;  %v21709_v41 = vadd.f32 %v25954_v15, %v25950_v6 }
 0x6eb   : > { %v21757_v13 = vpop.f32.mrf.mxu1  ;;  %v15979_v2 = vpop.f32.mrf.mxu0  ;;  %v15697_v5 = vadd.f32 %v21639_v14, %v25860_v39  ;;  %v15700_v16 = vadd.f32 %v21642_v8, %v25863_v18  ;;  %v21648_v18 = vadd.f32 %v25952_v42, %v25948_v7  ;;  %v26359_v14 = vld [vmem:[#allocation10_spill] sm:$0xff] }
 0x6ec   : > { %v15972_v56 = vadd.f32 %v21925_v1, %v15875_v22  ;;  %v16059_v31 = vadd.f32 %v16043_v33, %v16027_v11  ;;  %v21758_v23 = vadd.f32 %v21757_v13, %v21756_v62  ;;  %v21700_v1 = vadd.f32 %v25930_v50, %v25926_v63  ;;  %v16047_v13 = vld [vmem:[%s26160_s3 + $0x28] sm:$0xff] }
 0x6ed   : > { %v21759_v12 = vpop.f32.mrf.mxu1  ;;  %v21703_v63 = vadd.f32 %v25938_v17, %v25934_v40  ;;  %v21930_v50 = vpop.f32.mrf.mxu0  ;;  %v15802_v15 = vadd.f32 %v21709_v41, %v15705_v45  ;;  %v15708_v42 = vadd.f32 %v21648_v18, %v25869_v35  ;;  %v26361_v35 = vld [vmem:[#allocation6_spill] sm:$0xff] }
 0x6ee   : > { %v16028_v57 = vmax.f32 %v15972_v56, 0.0  ;;  %16075 = vst [vmem:[%s26028_s17 + $0x8] sm:$0xff] %v16059_v31  ;;  %v15878_v36 = vadd.f32 %v21758_v23, %v15781_v10  ;;  %v15789_v49 = vadd.f32 %v21700_v1, %v15692_v53  ;;  %v15797_v23 = vadd.f32 %v21706_v58, %v15700_v16  ;;  %v26370_v45 = vld [vmem:[#allocation34_spill] sm:$0xff] }
 0x6ef   : > { %v21760_v47 = vpop.f32.mrf.mxu1  ;;  %v15794_v17 = vadd.f32 %v21703_v63, %v15697_v5  ;;  %v15982_v33 = vpop.f32.mrf.mxu0  ;;  %v21651_v1 = vadd.f32 %v25960_v28, %v25956_v52  ;;  %v26360_v28 = vld [vmem:[#allocation31_spill] sm:$0xff]  ;;  %v16050_v63 = vld [vmem:[%s26160_s3 + $0x40] sm:$0xff] }
 0x6f0   : > { %v16060_v26 = vadd.f32 %v16044_v4, %v16028_v57  ;;  %v15975_v3 = vadd.f32 %v21926_v51, %v15878_v36  ;;  %v21761_v61 = vadd.f32 %v21760_v47, %v21759_v12  ;;  %v16048_v12 = vld [vmem:[%s26160_s3 + $0x30] sm:$0xff] }
 0x6f1   : > { %v21762_v37 = vpop.f32.mrf.mxu1  ;;  %v21933_v43 = vpop.f32.mrf.mxu0 }
 0x6f2   : > { %16076 = vst [vmem:[%s26028_s17 + $0x10] sm:$0xff] %v16060_v26  ;;  %v16029_v27 = vmax.f32 %v15975_v3, 0.0  ;;  %v15883_v59 = vadd.f32 %v21761_v61, %v15786_v0  ;;  %v16049_v26 = vld [vmem:[%s26160_s3 + $0x38] sm:$0xff] }
 0x6f3   : > { %v21763_v51 = vpop.f32.mrf.mxu1  ;;  %v15995_v36 = vpop.f32.mrf.mxu0 }
 0x6f4   : > { %v16061_v34 = vadd.f32 %v16045_v54, %v16029_v27  ;;  %v15980_v29 = vadd.f32 %v15979_v2, %v15883_v59  ;;  %v21764_v24 = vadd.f32 %v21763_v51, %v21762_v37  ;;  %v15713_v59 = vadd.f32 %v21651_v1, %v26360_v28  ;;  %v26362_v51 = vld [vmem:[#allocation19_spill] sm:$0xff] }
 0x6f5   : > { %v21765_v30 = vpop.f32.mrf.mxu1 }
 0x6f6   : > { %16077 = vst [vmem:[%s26028_s17 + $0x18] sm:$0xff] %v16061_v34  ;;  %v16030_v20 = vmax.f32 %v15980_v29, 0.0  ;;  %v15886_v40 = vadd.f32 %v21764_v24, %v15789_v49  ;;  %v21654_v49 = vadd.f32 %v26362_v51, %v26361_v35 }
 0x6f7   : > { %v21766_v62 = vpop.f32.mrf.mxu1 }
 0x6f8   : > { %v16062_v22 = vadd.f32 %v16046_v32, %v16030_v20  ;;  %v15983_v39 = vadd.f32 %v15982_v33, %v15886_v40  ;;  %v21767_v11 = vadd.f32 %v21766_v62, %v21765_v30  ;;  %v26363_v32 = vld [vmem:[#allocation13_spill] sm:$0xff]  ;;  %v26364_v30 = vld [vmem:[#allocation20_spill] sm:$0xff]  ;;  %v26366_v62 = vld [vmem:[#allocation7_spill] sm:$0xff] }
 0x6f9   : > { %v21768_v9 = vpop.f32.mrf.mxu1  ;;  %v21718_v8 = vadd.f32 %v26364_v30, %v26363_v32  ;;  %v26365_v33 = vld [vmem:[#allocation24_spill] sm:$0xff] }
 0x6fa   : > { %16078 = vst [vmem:[%s26028_s17 + $0x20] sm:$0xff] %v16062_v22  ;;  %v16031_v10 = vmax.f32 %v15983_v39, 0.0  ;;  %v15891_v56 = vadd.f32 %v21767_v11, %v15794_v17  ;;  %v21657_v58 = vadd.f32 %v26366_v62, %v26365_v33  ;;  %v16051_v22 = vld [vmem:[%s26160_s3 + $0x48] sm:$0xff]  ;;  %v26381_v30 = vld [vmem:[#allocation8_spill] sm:$0xff] }
 0x6fb   : > { %v21769_v31 = vpop.f32.mrf.mxu1 }
 0x6fc   : > { %v16063_v55 = vadd.f32 %v16047_v13, %v16031_v10  ;;  %v15988_v4 = vadd.f32 %v21929_v19, %v15891_v56  ;;  %v21770_v44 = vadd.f32 %v21769_v31, %v21768_v9  ;;  %v21712_v19 = vadd.f32 %v25962_v60, %v25958_v25  ;;  %v21934_v60 = vpop.f32.mrf.mxu0  ;;  %v26368_v10 = vld [vmem:[#allocation21_spill] sm:$0xff]  ;;  %v26369_v56 = vld [vmem:[#allocation23_spill] sm:$0xff] }
 0x6fd   : > { %v21771_v38 = vpop.f32.mrf.mxu1  ;;  %v21715_v25 = vadd.f32 %v26359_v14, %v25966_v21  ;;  %v15716_v13 = vadd.f32 %v21654_v49, %v26367_v46  ;;  %v21721_v41 = vadd.f32 %v26369_v56, %v26368_v10  ;;  %v26385_v56 = vld [vmem:[#allocation12_spill] sm:$0xff] }
 0x6fe   : > { %16079 = vst [vmem:[%s26028_s17 + $0x28] sm:$0xff] %v16063_v55  ;;  %v16032_v57 = vmax.f32 %v15988_v4, 0.0  ;;  %v15894_v6 = vadd.f32 %v21770_v44, %v15797_v23  ;;  %v15805_v37 = vadd.f32 %v21712_v19, %v15708_v42  ;;  %v15998_v24 = vpop.f32.mrf.mxu0 }
 0x6ff   : > { %v21772_v0 = vpop.f32.mrf.mxu1  ;;  %v15810_v29 = vadd.f32 %v21715_v25, %v15713_v59  ;;  %v15813_v23 = vadd.f32 %v21718_v8, %v15716_v13  ;;  %v16053_v25 = vld [vmem:[%s26160_s3 + $0x58] sm:$0xff]  ;;  %v26378_v59 = vld [vmem:[#allocation28_spill] sm:$0xff]  ;;  %v26382_v8 = vld [vmem:[#allocation5_spill] sm:$0xff] }
 0x700   : > { %v16064_v2 = vadd.f32 %v16048_v12, %v16032_v57  ;;  %v15991_v48 = vadd.f32 %v21930_v50, %v15894_v6  ;;  %v21773_v47 = vadd.f32 %v21772_v0, %v21771_v38  ;;  %v21937_v11 = vpop.f32.mrf.mxu0  ;;  %v15721_v12 = vadd.f32 %v21657_v58, %v26370_v45  ;;  %v16052_v38 = vld [vmem:[%s26160_s3 + $0x50] sm:$0xff]  ;;  %v26371_v6 = vld [vmem:[#allocation25_spill] sm:$0xff] }
 0x701   : > { %v21774_v7 = vpop.f32.mrf.mxu1  ;;  %v26383_v58 = vld [vmem:[#allocation18_spill] sm:$0xff] }
 0x702   : > { %16080 = vst [vmem:[%s26028_s17 + $0x30] sm:$0xff] %v16064_v2  ;;  %v16033_v3 = vmax.f32 %v15991_v48, 0.0  ;;  %v15899_v61 = vadd.f32 %v21773_v47, %v15802_v15  ;;  %v16011_v57 = vpop.f32.mrf.mxu0  ;;  %v26372_v15 = vld [vmem:[#allocation15_spill] sm:$0xff]  ;;  %v15818_v2 = vadd.f32 %v21721_v41, %v15721_v12 }
 0x703   : > { %v21775_v54 = vpop.f32.mrf.mxu1  ;;  %v26373_v47 = vld [vmem:[#allocation27_spill] sm:$0xff] }
 0x704   : > { %v16065_v53 = vadd.f32 %v16049_v26, %v16033_v3  ;;  %v15996_v27 = vadd.f32 %v15995_v36, %v15899_v61  ;;  %v21776_v52 = vadd.f32 %v21775_v54, %v21774_v7  ;;  %v21660_v36 = vadd.f32 %v26372_v15, %v26371_v6  ;;  %v26375_v3 = vld [vmem:[#allocation11_spill] sm:$0xff]  ;;  %v26376_v61 = vld [vmem:[#allocation26_spill] sm:$0xff] }
 0x705   : > { %v21777_v50 = vpop.f32.mrf.mxu1  ;;  %v21663_v14 = vadd.f32 %v26376_v61, %v26375_v3 }
 0x706   : > { %16081 = vst [vmem:[%s26028_s17 + $0x38] sm:$0xff] %v16065_v53  ;;  %v16034_v34 = vmax.f32 %v15996_v27, 0.0  ;;  %v15902_v21 = vadd.f32 %v21776_v52, %v15805_v37  ;;  %v21938_v37 = vpop.f32.mrf.mxu0  ;;  %v26377_v53 = vld [vmem:[#allocation16_spill] sm:$0xff] }
 0x707   : > { %v21778_v5 = vpop.f32.mrf.mxu1  ;;  %v15724_v27 = vadd.f32 %v21660_v36, %v26377_v53  ;;  %v16057_v36 = vld [vmem:[%s26160_s3 + $0x78] sm:$0xff] }
 0x708   : > { %v16066_v20 = vadd.f32 %v16050_v63, %v16034_v34  ;;  %v15999_v40 = vadd.f32 %v15998_v24, %v15902_v21  ;;  %v21779_v17 = vadd.f32 %v21778_v5, %v21777_v50  ;;  %v26379_v63 = vld [vmem:[#allocation30_spill] sm:$0xff]  ;;  %v16054_v24 = vld [vmem:[%s26160_s3 + $0x60] sm:$0xff]  ;;  %v16014_v32 = vpop.f32.mrf.mxu0 }
 0x709   : > { %v21780_v39 = vpop.f32.mrf.mxu1  ;;  %v21727_v50 = vadd.f32 %v26379_v63, %v26378_v59  ;;  %v26380_v21 = vld [vmem:[#allocation22_spill] sm:$0xff] }
 0x70a   : > { %16082 = vst [vmem:[%s26028_s17 + $0x40] sm:$0xff] %v16066_v20  ;;  %v16035_v9 = vmax.f32 %v15999_v40, 0.0  ;;  %v15907_v16 = vadd.f32 %v21779_v17, %v15810_v29  ;;  %v15729_v29 = vadd.f32 %v21663_v14, %v26380_v21  ;;  %v21666_v20 = vadd.f32 %v26382_v8, %v26381_v30 }
 0x70b   : > { %v21781_v31 = vpop.f32.mrf.mxu1 }
 0x70c   : > { %v16067_v55 = vadd.f32 %v16051_v22, %v16035_v9  ;;  %v16004_v4 = vadd.f32 %v21933_v43, %v15907_v16  ;;  %v21782_v44 = vadd.f32 %v21781_v31, %v21780_v39  ;;  %v26374_v43 = vld [vmem:[#allocation17_spill] sm:$0xff]  ;;  %v15826_v33 = vadd.f32 %v21727_v50, %v15729_v29 }
 0x70d   : > { %v21783_v18 = vpop.f32.mrf.mxu1  ;;  %v21724_v1 = vadd.f32 %v26374_v43, %v26373_v47  ;;  %v26384_v22 = vld [vmem:[#allocation9_spill] sm:$0xff]  ;;  %v15732_v41 = vadd.f32 %v21666_v20, %v26385_v56 }
 0x70e   : > { %16083 = vst [vmem:[%s26028_s17 + $0x48] sm:$0xff] %v16067_v55  ;;  %v16036_v0 = vmax.f32 %v16004_v4, 0.0  ;;  %v15910_v19 = vadd.f32 %v21782_v44, %v15813_v23  ;;  %v21730_v39 = vadd.f32 %v26384_v22, %v26383_v58  ;;  %v16055_v16 = vld [vmem:[%s26160_s3 + $0x68] sm:$0xff] }
 0x70f   : > { %v21784_v48 = vpop.f32.mrf.mxu1  ;;  %v15821_v35 = vadd.f32 %v21724_v1, %v15724_v27 }
 0x710   : > { %v16068_v26 = vadd.f32 %v16052_v38, %v16036_v0  ;;  %v16007_v7 = vadd.f32 %v21934_v60, %v15910_v19  ;;  %v21785_v42 = vadd.f32 %v21784_v48, %v21783_v18  ;;  %v15829_v4 = vadd.f32 %v21730_v39, %v15732_v41  ;;  %v16056_v38 = vld [vmem:[%s26160_s3 + $0x70] sm:$0xff] }
 0x711   : > { %v21786_v54 = vpop.f32.mrf.mxu1 }
 0x712   : > { %16084 = vst [vmem:[%s26028_s17 + $0x50] sm:$0xff] %v16068_v26  ;;  %v16037_v52 = vmax.f32 %v16007_v7, 0.0  ;;  %v15915_v28 = vadd.f32 %v21785_v42, %v15818_v2 }
 0x713   : > { %v21787_v60 = vpop.f32.mrf.mxu1 }
 0x714   : > { %v16069_v51 = vadd.f32 %v16053_v25, %v16037_v52  ;;  %v21788_v49 = vadd.f32 %v21787_v60, %v21786_v54  ;;  %v16012_v34 = vadd.f32 %v16011_v57, %v15915_v28 }
 0x715   : > { %v21789_v5 = vpop.f32.mrf.mxu1 }
 0x716   : > { %16085 = vst [vmem:[%s26028_s17 + $0x58] sm:$0xff] %v16069_v51  ;;  %v16038_v40 = vmax.f32 %v16012_v34, 0.0  ;;  %v15918_v17 = vadd.f32 %v21788_v49, %v15821_v35 }
 0x717   : > { %v21790_v62 = vpop.f32.mrf.mxu1 }
 0x718   : > { %v16070_v46 = vadd.f32 %v16054_v24, %v16038_v40  ;;  %v21791_v13 = vadd.f32 %v21790_v62, %v21789_v5  ;;  %v16015_v9 = vadd.f32 %v16014_v32, %v15918_v17 }
 0x719   : > { %v21792_v10 = vpop.f32.mrf.mxu1 }
 0x71a   : > { %16086 = vst [vmem:[%s26028_s17 + $0x60] sm:$0xff] %v16070_v46  ;;  %v15923_v31 = vadd.f32 %v21791_v13, %v15826_v33  ;;  %v16039_v23 = vmax.f32 %v16015_v9, 0.0 }
 0x71b   : > { %v21793_v55 = vpop.f32.mrf.mxu1 }
 0x71c   : > { %v16020_v44 = vadd.f32 %v21937_v11, %v15923_v31  ;;  %v16071_v45 = vadd.f32 %v16055_v16, %v16039_v23  ;;  %v21794_v12 = vadd.f32 %v21793_v55, %v21792_v10 }
 0x71e   : > { %v16040_v18 = vmax.f32 %v16020_v44, 0.0  ;;  %16087 = vst [vmem:[%s26028_s17 + $0x68] sm:$0xff] %v16071_v45  ;;  %v15926_v57 = vadd.f32 %v21794_v12, %v15829_v4 }
 0x720   : > { %v16072_v6 = vadd.f32 %v16056_v38, %v16040_v18  ;;  %v16023_v15 = vadd.f32 %v21938_v37, %v15926_v57 }
 0x722   : > { %16088 = vst [vmem:[%s26028_s17 + $0x70] sm:$0xff] %v16072_v6  ;;  %v16041_v0 = vmax.f32 %v16023_v15, 0.0 }
 0x724   : > { %v16073_v19 = vadd.f32 %v16057_v36, %v16041_v0 }
 0x726   : > { %16089 = vst [vmem:[%s26028_s17 + $0x78] sm:$0xff] %v16073_v19 }
 0x727 PF: > { %s14_s15 = sadd.s32 1, %s23096_s15  }
 0x728   : > { %p11_p4 = scmp.ge.s32.totalorder %s14_s15, 4  }
 0x72a   :  { %13 = sbr.rel (!%p11_p4) target bundleno = 1 (0x1), region = 81 }

</bundles_post_ra>
